<compile_context>
chip_gen: v7x
topology: tpu7x:2x2x1
jax: 0.10.0
libtpu: 0.0.40
codegen_flags: <defaults>
</compile_context>

<pallas_src>
import numpy as np
import jax
import jax.numpy as jnp
from jax.experimental import pallas as pl
from jax.experimental.pallas import tpu as pltpu


# ----------------------------------------------------------------------------
# host-side (numpy) operator builders
# ----------------------------------------------------------------------------
def _group_matrix(c, g):
    """(C, G) one-hot assignment of contiguous channel groups."""
    m = np.zeros((c, g), np.float32)
    per = c // g
    for ch in range(c):
        m[ch, ch // per] = 1.0
    return m


def _avg_matrix_1d(out_size, in_size):
    """Exact adaptive average pooling (in_size divisible by out_size)."""
    k = in_size // out_size
    m = np.zeros((out_size, in_size), np.float32)
    for p in range(out_size):
        m[p, p * k:(p + 1) * k] = 1.0 / k
    return m


def _bilinear_matrix_1d(out_size, in_size):
    """PyTorch F.interpolate(mode='bilinear', align_corners=False), 1-D."""
    m = np.zeros((out_size, in_size), np.float32)
    scale = in_size / out_size
    for i in range(out_size):
        src = max((i + 0.5) * scale - 0.5, 0.0)
        i0 = min(int(np.floor(src)), in_size - 1)
        i1 = min(i0 + 1, in_size - 1)
        t = src - i0
        m[i, i0] += 1.0 - t
        m[i, i1] += t
    return m


def _dw_masks(kh, kw):
    """(9, kh*kw) {0,1} validity of each 3x3 tap at each output position
    (zero padding), for the roll-based depthwise conv."""
    s = kh * kw
    m = np.zeros((9, s), np.float32)
    for t in range(9):
        dy, dx = t // 3 - 1, t % 3 - 1
        for p in range(kh):
            for q in range(kw):
                if 0 <= p + dy < kh and 0 <= q + dx < kw:
                    m[t, p * kw + q] = 1.0
    return m


def _shift_matrices_T(kh, kw):
    """(9, S, S) right-multiplication shift operators: (rc,S) @ M_t shifts the
    flattened spatial axis by tap t with zero padding.  Only used for tiny
    levels where S is not lane-aligned (operand is a few KB)."""
    s = kh * kw
    mats = np.zeros((9, s, s), np.float32)
    for t in range(9):
        dy, dx = t // 3 - 1, t % 3 - 1
        for p in range(kh):
            for q in range(kw):
                pp, qq = p + dy, q + dx
                if 0 <= pp < kh and 0 <= qq < kw:
                    mats[t, pp * kw + qq, p * kw + q] = 1.0
    return mats


# ----------------------------------------------------------------------------
# in-kernel helpers
# ----------------------------------------------------------------------------
def _groupnorm(x, gmat, gmat_t, gamma, beta, eps=1e-5):
    """GroupNorm over a single sample in (C, N) layout (channels on sublanes).

    gmat: (C, G) one-hot group assignment, gmat_t: (G, C); gamma/beta: (C, 1).
    Group statistics via two tiny matmul round-trips (no lane reshapes)."""
    c, n = x.shape
    g = gmat.shape[1]
    inv_cnt = 1.0 / float(n * (c // g))
    s = jnp.sum(x, axis=1, keepdims=True)                              # (C, 1)
    ss = jnp.sum(x * x, axis=1, keepdims=True)                         # (C, 1)
    gs = jnp.dot(gmat_t, s, preferred_element_type=jnp.float32)        # (G, 1)
    gss = jnp.dot(gmat_t, ss, preferred_element_type=jnp.float32)      # (G, 1)
    mean = jnp.dot(gmat, gs, preferred_element_type=jnp.float32) * inv_cnt   # (C, 1)
    ex2 = jnp.dot(gmat, gss, preferred_element_type=jnp.float32) * inv_cnt   # (C, 1)
    var = jnp.maximum(ex2 - mean * mean, 0.0)   # clamp: E[x^2]-E[x]^2 cancellation
    inv = jax.lax.rsqrt(var + eps)
    return (x - mean) * (inv * gamma) + beta


def _l2_normalize(x):
    """x / (||x||_2 over channels + 1e-6), channels on sublane axis."""
    nrm = jnp.sqrt(jnp.sum(x * x, axis=0, keepdims=True))              # (1, N)
    return x * pl.reciprocal(nrm + 1e-6, approx=True)


def _bf16(a):
    return a.astype(jnp.bfloat16)


# ----------------------------------------------------------------------------
# fused kernel factory (static per-level config baked in at trace time)
# ----------------------------------------------------------------------------
def _make_kernel(lvl_cfgs):
    n_extra = sum(11 + (0 if cfg["identity"] else 2) for cfg in lvl_cfgs)
    n_expected = 11 + n_extra + 2 + 1   # globals + per-level + fusion GN + output

    def kernel(*refs):
        refs = list(refs)
        assert len(refs) == n_expected, (len(refs), n_expected)
        it = iter(refs)

        scale_ref = next(it)                              # SMEM (num_levels,)
        x_ref = next(it)                                  # (1, C, HW) f32
        gin_g = next(it)[...]
        gin_b = next(it)[...]
        g8 = next(it)[...]
        g8t = next(it)[...]
        g4 = next(it)[...]
        g4t = next(it)[...]
        g44 = next(it)[...]
        g44t = next(it)[...]
        wfx = next(it)[...]                               # (C, C) bf16

        per_lvl = []
        for cfg in lvl_cfgs:
            d = {}
            if not cfg["identity"]:
                d["poolT"] = next(it)[...]                # (HW, S) bf16
                d["upT"] = next(it)[...]                  # (S, HW) bf16
            d["w1"] = next(it)[...]                       # (rc, C) bf16
            d["g1g"] = next(it)[...]
            d["g1b"] = next(it)[...]
            d["wdw"] = next(it)[...]                      # (rc, 9) f32
            if cfg["use_roll"]:
                d["dwmask"] = next(it)[...]               # (9, S) f32
            else:
                d["shiftsT"] = next(it)                   # ref (9, S, S) f32
            d["g2g"] = next(it)[...]
            d["g2b"] = next(it)[...]
            d["w3"] = next(it)[...]                       # (4rc, rc) bf16
            d["g3g"] = next(it)[...]
            d["g3b"] = next(it)[...]
            d["wf"] = next(it)[...]                       # (C, 4rc) bf16
            per_lvl.append(d)

        gf_g = next(it)[...]
        gf_b = next(it)[...]
        o_ref = next(it)                                  # (1, C, HW) f32

        # ---- input GroupNorm(8, C) -------------------------------------------
        x = x_ref[0]                                      # (C, HW) f32
        xn = _groupnorm(x, g8, g8t, gin_g, gin_b)
        xn_bf = _bf16(xn)

        # fusion accumulator: w_fuse split per source, no concat buffer.
        y = jnp.dot(wfx, xn_bf, preferred_element_type=jnp.float32)   # (C, HW)

        # ---- pyramid branches ------------------------------------------------
        for i, (cfg, d) in enumerate(zip(lvl_cfgs, per_lvl)):
            S, kw = cfg["S"], cfg["kw"]

            # adaptive avg pool (identity for level 1 -> skipped)
            if cfg["identity"]:
                pooled_bf = xn_bf
            else:
                pooled = jnp.dot(xn_bf, d["poolT"],
                                 preferred_element_type=jnp.float32)   # (C, S)
                pooled_bf = _bf16(pooled)

            # 1x1 conv C -> rc, GN(4), ReLU
            h1 = jnp.dot(d["w1"], pooled_bf,
                         preferred_element_type=jnp.float32)           # (rc, S)
            h1 = jnp.maximum(_groupnorm(h1, g4, g4t, d["g1g"], d["g1b"]), 0.0)

            # depthwise 3x3 conv (zero padding)
            wdw = d["wdw"]
            acc = h1 * wdw[:, 4:5]                                     # centre tap
            for t in range(9):
                if t == 4:
                    continue
                dy, dx = t // 3 - 1, t % 3 - 1
                if cfg["use_roll"]:
                    # lane roll + boundary mask (XLU + VPU, no MXU work)
                    off = dy * kw + dx
                    r = pltpu.roll(h1, shift=(-off) % S, axis=1)
                    acc = acc + r * d["dwmask"][t:t + 1, :] * wdw[:, t:t + 1]
                else:
                    # tiny-level fallback: dense shift operator matmul
                    sh = jnp.dot(h1, d["shiftsT"][t],
                                 preferred_element_type=jnp.float32)
                    acc = acc + sh * wdw[:, t:t + 1]
            h2 = jnp.maximum(_groupnorm(acc, g4, g4t, d["g2g"], d["g2b"]), 0.0)

            # 1x1 conv rc -> 4rc, GN(4), ReLU
            h3 = jnp.dot(d["w3"], _bf16(h2),
                         preferred_element_type=jnp.float32)           # (4rc, S)
            h3 = jnp.maximum(_groupnorm(h3, g44, g44t, d["g3g"], d["g3b"]), 0.0)

            # bilinear upsample (identity for level 1 -> skipped)
            if cfg["identity"]:
                up = h3
            else:
                up = jnp.dot(_bf16(h3), d["upT"],
                             preferred_element_type=jnp.float32)       # (4rc, HW)

            up = up * scale_ref[i]
            feat = _l2_normalize(up)

            # accumulate this branch's slice of the fusion 1x1 conv
            y = y + jnp.dot(d["wf"], _bf16(feat),
                            preferred_element_type=jnp.float32)

        # ---- fusion GN(8, C) + ReLU + L2 norm --------------------------------
        y = jnp.maximum(_groupnorm(y, g8, g8t, gf_g, gf_b), 0.0)
        # TODO(synk): nn.Dropout2d(0.1) is identity in eval mode; training-mode
        # channel dropout is not implemented here.
        o_ref[0] = _l2_normalize(y)

    return kernel


# ----------------------------------------------------------------------------
# wrapper
# ----------------------------------------------------------------------------
def _const_spec(shape):
    nd = len(shape)
    return pl.BlockSpec(shape, lambda *_: (0,) * nd)


def directional_pyramid_pooling(x_nchw, params, levels=(1, 2, 4)):
    B, C, H, W = x_nchw.shape
    rc = params["rc"]
    HW = H * W
    assert C % 8 == 0 and rc % 4 == 0, "GroupNorm group divisibility"
    for lv in levels:
        assert H % lv == 0 and W % lv == 0, "adaptive pool assumed exactly divisible"

    f32, bf16 = jnp.float32, jnp.bfloat16
    # NCHW -> (B, C, HW): pure reshape, spatial on the lane dim.
    x = x_nchw.reshape(B, C, HW).astype(f32)

    def col(v):
        return jnp.reshape(jnp.asarray(v, f32), (-1, 1))

    # static per-level configuration
    lvl_cfgs = []
    for lv in levels:
        kh, kw = max(1, H // lv), max(1, W // lv)
        S = kh * kw
        lvl_cfgs.append(dict(lv=lv, kh=kh, kw=kw, S=S,
                             identity=(kh == H and kw == W),
                             use_roll=(S % 128 == 0)))

    # ---- operands + specs (order mirrors the kernel's unpacking) -------------
    operands, in_specs = [], []

    def add(arr, spec):
        operands.append(arr)
        in_specs.append(spec)

    def add_full(arr, dtype):
        a = jnp.asarray(arr, dtype)
        add(a, _const_spec(a.shape))

    # scalars for per-level scale factors live in SMEM
    add(jnp.asarray(params["scale_factors"], f32),
        pl.BlockSpec(memory_space=pltpu.MemorySpace.SMEM))
    add(x, pl.BlockSpec((1, C, HW), lambda b: (b, 0, 0)))

    add_full(col(params["gn_in_gamma"]), f32)
    add_full(col(params["gn_in_beta"]), f32)
    g8 = _group_matrix(C, 8)
    g4 = _group_matrix(rc, 4)
    g44 = _group_matrix(4 * rc, 4)
    add_full(g8, f32)
    add_full(g8.T, f32)
    add_full(g4, f32)
    add_full(g4.T, f32)
    add_full(g44, f32)
    add_full(g44.T, f32)

    w_fuse = jnp.asarray(params["w_fuse"], f32)           # (C, C + 12*rc)
    add_full(w_fuse[:, :C], bf16)                         # slice feeding x_norm

    for i, cfg in enumerate(lvl_cfgs):
        kh, kw, S = cfg["kh"], cfg["kw"], cfg["S"]
        br = params["branches"][i]
        if not cfg["identity"]:
            P = np.kron(_avg_matrix_1d(kh, H), _avg_matrix_1d(kw, W))           # (S, HW)
            U = np.kron(_bilinear_matrix_1d(H, kh), _bilinear_matrix_1d(W, kw))  # (HW, S)
            add_full(P.T, bf16)                           # poolT (HW, S)
            add_full(U.T, bf16)                           # upT   (S, HW)
        add_full(br["w1"], bf16)                          # (rc, C)
        add_full(col(br["gn1_gamma"]), f32)
        add_full(col(br["gn1_beta"]), f32)
        add_full(br["w_dw"], f32)                         # (rc, 9)
        if cfg["use_roll"]:
            add_full(_dw_masks(kh, kw), f32)              # (9, S)
        else:
            add_full(_shift_matrices_T(kh, kw), f32)      # (9, S, S) — tiny levels only
        add_full(col(br["gn2_gamma"]), f32)
        add_full(col(br["gn2_beta"]), f32)
        add_full(br["w3"], bf16)                          # (4rc, rc)
        add_full(col(br["gn3_gamma"]), f32)
        add_full(col(br["gn3_beta"]), f32)
        add_full(w_fuse[:, C + i * 4 * rc: C + (i + 1) * 4 * rc], bf16)  # (C, 4rc)

    add_full(col(params["gn_f_gamma"]), f32)
    add_full(col(params["gn_f_beta"]), f32)

    kernel = _make_kernel(lvl_cfgs)
    out = pl.pallas_call(
        kernel,
        out_shape=jax.ShapeDtypeStruct((B, C, HW), f32),
        grid=(B,),
        in_specs=in_specs,
        out_specs=pl.BlockSpec((1, C, HW), lambda b: (b, 0, 0)),
        compiler_params=pltpu.CompilerParams(
            dimension_semantics=("parallel",),
            vmem_limit_bytes=64 * 1024 * 1024,
        ),
    )(*operands)

    # (B, C, HW) -> NCHW: pure reshape
    return out.reshape(B, C, H, W)


# ----------------------------------------------------------------------------
# deterministic synthetic parameters (shapes mirror the module's __init__)
# ----------------------------------------------------------------------------
def init_params(key, in_channels, reduction_ratio=4, num_levels=3):
    rc = in_channels // reduction_ratio

    def nrm(k, shape, fan_in):
        return (jax.random.normal(k, shape, jnp.float32) /
                np.sqrt(float(fan_in))).astype(jnp.float32)

    keys = jax.random.split(key, num_levels + 1)
    branches = []
    for i in range(num_levels):
        k1, k2, k3 = jax.random.split(keys[i], 3)
        branches.append(dict(
            w1=nrm(k1, (rc, in_channels), in_channels),   # Conv2d(C, rc, 1)  (out, in)
            gn1_gamma=jnp.ones((rc,), jnp.float32),
            gn1_beta=jnp.zeros((rc,), jnp.float32),
            # Conv2d(rc, rc, 3, groups=rc): w_dw[c, ky*3+kx] == torch_w[c, 0, ky, kx]
            w_dw=nrm(k2, (rc, 9), 9),
            gn2_gamma=jnp.ones((rc,), jnp.float32),
            gn2_beta=jnp.zeros((rc,), jnp.float32),
            w3=nrm(k3, (4 * rc, rc), rc),                 # Conv2d(rc, 4rc, 1)
            gn3_gamma=jnp.ones((4 * rc,), jnp.float32),
            gn3_beta=jnp.zeros((4 * rc,), jnp.float32),
        ))
    cat_c = in_channels + 4 * rc * num_levels
    return dict(
        rc=rc,
        gn_in_gamma=jnp.ones((in_channels,), jnp.float32),
        gn_in_beta=jnp.zeros((in_channels,), jnp.float32),
        scale_factors=0.1 * jnp.ones((num_levels,), jnp.float32),
        branches=branches,
        w_fuse=nrm(keys[num_levels], (in_channels, cat_c), cat_c),  # Conv2d(cat_c, C, 1)
        gn_f_gamma=jnp.ones((in_channels,), jnp.float32),
        gn_f_beta=jnp.zeros((in_channels,), jnp.float32),
    )


if __name__ == "__main__":
    key = jax.random.PRNGKey(0)
    kx, kp = jax.random.split(key)

    # C must be divisible by 16 (GroupNorm(8, C) and GroupNorm(4, C // 4)).
    B, C, H, W = 2, 16, 16, 16
    x = jax.random.normal(kx, (B, C, H, W), jnp.float32)
    params = init_params(kp, C, reduction_ratio=4)

    out = directional_pyramid_pooling(x, params)
    out = jax.block_until_ready(out)

    assert out.shape == (B, C, H, W), out.shape
    assert bool(jnp.all(jnp.isfinite(out)))
    print("KERNEL_OK")
</pallas_src>

<mosaic_0001>
module attributes {stable_mosaic.version = 11 : i64} {
  func.func @kernel(%arg0: i32, %arg1: memref<3xf32, #tpu.memory_space<smem>>, %arg2: memref<1x16x256xf32, #tpu.memory_space<vmem>>, %arg3: memref<16x1xf32, #tpu.memory_space<vmem>>, %arg4: memref<16x1xf32, #tpu.memory_space<vmem>>, %arg5: memref<16x8xf32, #tpu.memory_space<vmem>>, %arg6: memref<8x16xf32, #tpu.memory_space<vmem>>, %arg7: memref<4x4xf32, #tpu.memory_space<vmem>>, %arg8: memref<4x4xf32, #tpu.memory_space<vmem>>, %arg9: memref<16x4xf32, #tpu.memory_space<vmem>>, %arg10: memref<4x16xf32, #tpu.memory_space<vmem>>, %arg11: memref<16x16xbf16, #tpu.memory_space<vmem>>, %arg12: memref<4x16xbf16, #tpu.memory_space<vmem>>, %arg13: memref<4x1xf32, #tpu.memory_space<vmem>>, %arg14: memref<4x1xf32, #tpu.memory_space<vmem>>, %arg15: memref<4x9xf32, #tpu.memory_space<vmem>>, %arg16: memref<9x256xf32, #tpu.memory_space<vmem>>, %arg17: memref<4x1xf32, #tpu.memory_space<vmem>>, %arg18: memref<4x1xf32, #tpu.memory_space<vmem>>, %arg19: memref<16x4xbf16, #tpu.memory_space<vmem>>, %arg20: memref<16x1xf32, #tpu.memory_space<vmem>>, %arg21: memref<16x1xf32, #tpu.memory_space<vmem>>, %arg22: memref<16x16xbf16, #tpu.memory_space<vmem>>, %arg23: memref<256x64xbf16, #tpu.memory_space<vmem>>, %arg24: memref<64x256xbf16, #tpu.memory_space<vmem>>, %arg25: memref<4x16xbf16, #tpu.memory_space<vmem>>, %arg26: memref<4x1xf32, #tpu.memory_space<vmem>>, %arg27: memref<4x1xf32, #tpu.memory_space<vmem>>, %arg28: memref<4x9xf32, #tpu.memory_space<vmem>>, %arg29: memref<9x64x64xf32, #tpu.memory_space<vmem>>, %arg30: memref<4x1xf32, #tpu.memory_space<vmem>>, %arg31: memref<4x1xf32, #tpu.memory_space<vmem>>, %arg32: memref<16x4xbf16, #tpu.memory_space<vmem>>, %arg33: memref<16x1xf32, #tpu.memory_space<vmem>>, %arg34: memref<16x1xf32, #tpu.memory_space<vmem>>, %arg35: memref<16x16xbf16, #tpu.memory_space<vmem>>, %arg36: memref<256x16xbf16, #tpu.memory_space<vmem>>, %arg37: memref<16x256xbf16, #tpu.memory_space<vmem>>, %arg38: memref<4x16xbf16, #tpu.memory_space<vmem>>, %arg39: memref<4x1xf32, #tpu.memory_space<vmem>>, %arg40: memref<4x1xf32, #tpu.memory_space<vmem>>, %arg41: memref<4x9xf32, #tpu.memory_space<vmem>>, %arg42: memref<9x16x16xf32, #tpu.memory_space<vmem>>, %arg43: memref<4x1xf32, #tpu.memory_space<vmem>>, %arg44: memref<4x1xf32, #tpu.memory_space<vmem>>, %arg45: memref<16x4xbf16, #tpu.memory_space<vmem>>, %arg46: memref<16x1xf32, #tpu.memory_space<vmem>>, %arg47: memref<16x1xf32, #tpu.memory_space<vmem>>, %arg48: memref<16x16xbf16, #tpu.memory_space<vmem>>, %arg49: memref<16x1xf32, #tpu.memory_space<vmem>>, %arg50: memref<16x1xf32, #tpu.memory_space<vmem>>, %arg51: memref<1x16x256xf32, #tpu.memory_space<vmem>>) attributes {dimension_semantics = [#tpu.dimension_semantics<parallel>], iteration_bounds = array<i64: 2>, scalar_prefetch = 0 : i64, scratch_operands = 0 : i64, tpu.core_type = #tpu.core_type<tc>, window_params = [{transform_indices = @transform_0, window_bounds = array<i64: 3>}, {transform_indices = @transform_1, window_bounds = array<i64: 1, 16, 256>}, {pipeline_mode = #tpu.pipeline_mode<synchronous>, transform_indices = @transform_2, window_bounds = array<i64: 16, 1>}, {pipeline_mode = #tpu.pipeline_mode<synchronous>, transform_indices = @transform_3, window_bounds = array<i64: 16, 1>}, {pipeline_mode = #tpu.pipeline_mode<synchronous>, transform_indices = @transform_4, window_bounds = array<i64: 16, 8>}, {pipeline_mode = #tpu.pipeline_mode<synchronous>, transform_indices = @transform_5, window_bounds = array<i64: 8, 16>}, {pipeline_mode = #tpu.pipeline_mode<synchronous>, transform_indices = @transform_6, window_bounds = array<i64: 4, 4>}, {pipeline_mode = #tpu.pipeline_mode<synchronous>, transform_indices = @transform_7, window_bounds = array<i64: 4, 4>}, {pipeline_mode = #tpu.pipeline_mode<synchronous>, transform_indices = @transform_8, window_bounds = array<i64: 16, 4>}, {pipeline_mode = #tpu.pipeline_mode<synchronous>, transform_indices = @transform_9, window_bounds = array<i64: 4, 16>}, {pipeline_mode = #tpu.pipeline_mode<synchronous>, transform_indices = @transform_10, window_bounds = array<i64: 16, 16>}, {pipeline_mode = #tpu.pipeline_mode<synchronous>, transform_indices = @transform_11, window_bounds = array<i64: 4, 16>}, {pipeline_mode = #tpu.pipeline_mode<synchronous>, transform_indices = @transform_12, window_bounds = array<i64: 4, 1>}, {pipeline_mode = #tpu.pipeline_mode<synchronous>, transform_indices = @transform_13, window_bounds = array<i64: 4, 1>}, {pipeline_mode = #tpu.pipeline_mode<synchronous>, transform_indices = @transform_14, window_bounds = array<i64: 4, 9>}, {pipeline_mode = #tpu.pipeline_mode<synchronous>, transform_indices = @transform_15, window_bounds = array<i64: 9, 256>}, {pipeline_mode = #tpu.pipeline_mode<synchronous>, transform_indices = @transform_16, window_bounds = array<i64: 4, 1>}, {pipeline_mode = #tpu.pipeline_mode<synchronous>, transform_indices = @transform_17, window_bounds = array<i64: 4, 1>}, {pipeline_mode = #tpu.pipeline_mode<synchronous>, transform_indices = @transform_18, window_bounds = array<i64: 16, 4>}, {pipeline_mode = #tpu.pipeline_mode<synchronous>, transform_indices = @transform_19, window_bounds = array<i64: 16, 1>}, {pipeline_mode = #tpu.pipeline_mode<synchronous>, transform_indices = @transform_20, window_bounds = array<i64: 16, 1>}, {pipeline_mode = #tpu.pipeline_mode<synchronous>, transform_indices = @transform_21, window_bounds = array<i64: 16, 16>}, {pipeline_mode = #tpu.pipeline_mode<synchronous>, transform_indices = @transform_22, window_bounds = array<i64: 256, 64>}, {pipeline_mode = #tpu.pipeline_mode<synchronous>, transform_indices = @transform_23, window_bounds = array<i64: 64, 256>}, {pipeline_mode = #tpu.pipeline_mode<synchronous>, transform_indices = @transform_24, window_bounds = array<i64: 4, 16>}, {pipeline_mode = #tpu.pipeline_mode<synchronous>, transform_indices = @transform_25, window_bounds = array<i64: 4, 1>}, {pipeline_mode = #tpu.pipeline_mode<synchronous>, transform_indices = @transform_26, window_bounds = array<i64: 4, 1>}, {pipeline_mode = #tpu.pipeline_mode<synchronous>, transform_indices = @transform_27, window_bounds = array<i64: 4, 9>}, {pipeline_mode = #tpu.pipeline_mode<synchronous>, transform_indices = @transform_28, window_bounds = array<i64: 9, 64, 64>}, {pipeline_mode = #tpu.pipeline_mode<synchronous>, transform_indices = @transform_29, window_bounds = array<i64: 4, 1>}, {pipeline_mode = #tpu.pipeline_mode<synchronous>, transform_indices = @transform_30, window_bounds = array<i64: 4, 1>}, {pipeline_mode = #tpu.pipeline_mode<synchronous>, transform_indices = @transform_31, window_bounds = array<i64: 16, 4>}, {pipeline_mode = #tpu.pipeline_mode<synchronous>, transform_indices = @transform_32, window_bounds = array<i64: 16, 1>}, {pipeline_mode = #tpu.pipeline_mode<synchronous>, transform_indices = @transform_33, window_bounds = array<i64: 16, 1>}, {pipeline_mode = #tpu.pipeline_mode<synchronous>, transform_indices = @transform_34, window_bounds = array<i64: 16, 16>}, {pipeline_mode = #tpu.pipeline_mode<synchronous>, transform_indices = @transform_35, window_bounds = array<i64: 256, 16>}, {pipeline_mode = #tpu.pipeline_mode<synchronous>, transform_indices = @transform_36, window_bounds = array<i64: 16, 256>}, {pipeline_mode = #tpu.pipeline_mode<synchronous>, transform_indices = @transform_37, window_bounds = array<i64: 4, 16>}, {pipeline_mode = #tpu.pipeline_mode<synchronous>, transform_indices = @transform_38, window_bounds = array<i64: 4, 1>}, {pipeline_mode = #tpu.pipeline_mode<synchronous>, transform_indices = @transform_39, window_bounds = array<i64: 4, 1>}, {pipeline_mode = #tpu.pipeline_mode<synchronous>, transform_indices = @transform_40, window_bounds = array<i64: 4, 9>}, {pipeline_mode = #tpu.pipeline_mode<synchronous>, transform_indices = @transform_41, window_bounds = array<i64: 9, 16, 16>}, {pipeline_mode = #tpu.pipeline_mode<synchronous>, transform_indices = @transform_42, window_bounds = array<i64: 4, 1>}, {pipeline_mode = #tpu.pipeline_mode<synchronous>, transform_indices = @transform_43, window_bounds = array<i64: 4, 1>}, {pipeline_mode = #tpu.pipeline_mode<synchronous>, transform_indices = @transform_44, window_bounds = array<i64: 16, 4>}, {pipeline_mode = #tpu.pipeline_mode<synchronous>, transform_indices = @transform_45, window_bounds = array<i64: 16, 1>}, {pipeline_mode = #tpu.pipeline_mode<synchronous>, transform_indices = @transform_46, window_bounds = array<i64: 16, 1>}, {pipeline_mode = #tpu.pipeline_mode<synchronous>, transform_indices = @transform_47, window_bounds = array<i64: 16, 16>}, {pipeline_mode = #tpu.pipeline_mode<synchronous>, transform_indices = @transform_48, window_bounds = array<i64: 16, 1>}, {pipeline_mode = #tpu.pipeline_mode<synchronous>, transform_indices = @transform_49, window_bounds = array<i64: 16, 1>}, {transform_indices = @transform_50, window_bounds = array<i64: 1, 16, 256>}]} {
    %c0 = arith.constant 0 : index
    %c0_0 = arith.constant 0 : index
    %0 = vector.load %arg3[%c0, %c0_0] : memref<16x1xf32, #tpu.memory_space<vmem>>, vector<16x1xf32>
    %c0_1 = arith.constant 0 : index
    %c0_2 = arith.constant 0 : index
    %1 = vector.load %arg4[%c0_1, %c0_2] : memref<16x1xf32, #tpu.memory_space<vmem>>, vector<16x1xf32>
    %c0_3 = arith.constant 0 : index
    %c0_4 = arith.constant 0 : index
    %2 = vector.load %arg5[%c0_3, %c0_4] : memref<16x8xf32, #tpu.memory_space<vmem>>, vector<16x8xf32>
    %c0_5 = arith.constant 0 : index
    %c0_6 = arith.constant 0 : index
    %3 = vector.load %arg6[%c0_5, %c0_6] : memref<8x16xf32, #tpu.memory_space<vmem>>, vector<8x16xf32>
    %c0_7 = arith.constant 0 : index
    %c0_8 = arith.constant 0 : index
    %4 = vector.load %arg7[%c0_7, %c0_8] : memref<4x4xf32, #tpu.memory_space<vmem>>, vector<4x4xf32>
    %c0_9 = arith.constant 0 : index
    %c0_10 = arith.constant 0 : index
    %5 = vector.load %arg8[%c0_9, %c0_10] : memref<4x4xf32, #tpu.memory_space<vmem>>, vector<4x4xf32>
    %c0_11 = arith.constant 0 : index
    %c0_12 = arith.constant 0 : index
    %6 = vector.load %arg9[%c0_11, %c0_12] : memref<16x4xf32, #tpu.memory_space<vmem>>, vector<16x4xf32>
    %c0_13 = arith.constant 0 : index
    %c0_14 = arith.constant 0 : index
    %7 = vector.load %arg10[%c0_13, %c0_14] : memref<4x16xf32, #tpu.memory_space<vmem>>, vector<4x16xf32>
    %c0_15 = arith.constant 0 : index
    %c0_16 = arith.constant 0 : index
    %8 = vector.load %arg11[%c0_15, %c0_16] : memref<16x16xbf16, #tpu.memory_space<vmem>>, vector<16x16xbf16>
    %c0_17 = arith.constant 0 : index
    %c0_18 = arith.constant 0 : index
    %9 = vector.load %arg12[%c0_17, %c0_18] : memref<4x16xbf16, #tpu.memory_space<vmem>>, vector<4x16xbf16>
    %c0_19 = arith.constant 0 : index
    %c0_20 = arith.constant 0 : index
    %10 = vector.load %arg13[%c0_19, %c0_20] : memref<4x1xf32, #tpu.memory_space<vmem>>, vector<4x1xf32>
    %c0_21 = arith.constant 0 : index
    %c0_22 = arith.constant 0 : index
    %11 = vector.load %arg14[%c0_21, %c0_22] : memref<4x1xf32, #tpu.memory_space<vmem>>, vector<4x1xf32>
    %c0_23 = arith.constant 0 : index
    %c0_24 = arith.constant 0 : index
    %12 = vector.load %arg15[%c0_23, %c0_24] : memref<4x9xf32, #tpu.memory_space<vmem>>, vector<4x9xf32>
    %c0_25 = arith.constant 0 : index
    %c0_26 = arith.constant 0 : index
    %13 = vector.load %arg16[%c0_25, %c0_26] : memref<9x256xf32, #tpu.memory_space<vmem>>, vector<9x256xf32>
    %c0_27 = arith.constant 0 : index
    %c0_28 = arith.constant 0 : index
    %14 = vector.load %arg17[%c0_27, %c0_28] : memref<4x1xf32, #tpu.memory_space<vmem>>, vector<4x1xf32>
    %c0_29 = arith.constant 0 : index
    %c0_30 = arith.constant 0 : index
    %15 = vector.load %arg18[%c0_29, %c0_30] : memref<4x1xf32, #tpu.memory_space<vmem>>, vector<4x1xf32>
    %c0_31 = arith.constant 0 : index
    %c0_32 = arith.constant 0 : index
    %16 = vector.load %arg19[%c0_31, %c0_32] : memref<16x4xbf16, #tpu.memory_space<vmem>>, vector<16x4xbf16>
    %c0_33 = arith.constant 0 : index
    %c0_34 = arith.constant 0 : index
    %17 = vector.load %arg20[%c0_33, %c0_34] : memref<16x1xf32, #tpu.memory_space<vmem>>, vector<16x1xf32>
    %c0_35 = arith.constant 0 : index
    %c0_36 = arith.constant 0 : index
    %18 = vector.load %arg21[%c0_35, %c0_36] : memref<16x1xf32, #tpu.memory_space<vmem>>, vector<16x1xf32>
    %c0_37 = arith.constant 0 : index
    %c0_38 = arith.constant 0 : index
    %19 = vector.load %arg22[%c0_37, %c0_38] : memref<16x16xbf16, #tpu.memory_space<vmem>>, vector<16x16xbf16>
    %c0_39 = arith.constant 0 : index
    %c0_40 = arith.constant 0 : index
    %20 = vector.load %arg23[%c0_39, %c0_40] : memref<256x64xbf16, #tpu.memory_space<vmem>>, vector<256x64xbf16>
    %c0_41 = arith.constant 0 : index
    %c0_42 = arith.constant 0 : index
    %21 = vector.load %arg24[%c0_41, %c0_42] : memref<64x256xbf16, #tpu.memory_space<vmem>>, vector<64x256xbf16>
    %c0_43 = arith.constant 0 : index
    %c0_44 = arith.constant 0 : index
    %22 = vector.load %arg25[%c0_43, %c0_44] : memref<4x16xbf16, #tpu.memory_space<vmem>>, vector<4x16xbf16>
    %c0_45 = arith.constant 0 : index
    %c0_46 = arith.constant 0 : index
    %23 = vector.load %arg26[%c0_45, %c0_46] : memref<4x1xf32, #tpu.memory_space<vmem>>, vector<4x1xf32>
    %c0_47 = arith.constant 0 : index
    %c0_48 = arith.constant 0 : index
    %24 = vector.load %arg27[%c0_47, %c0_48] : memref<4x1xf32, #tpu.memory_space<vmem>>, vector<4x1xf32>
    %c0_49 = arith.constant 0 : index
    %c0_50 = arith.constant 0 : index
    %25 = vector.load %arg28[%c0_49, %c0_50] : memref<4x9xf32, #tpu.memory_space<vmem>>, vector<4x9xf32>
    %c0_51 = arith.constant 0 : index
    %c0_52 = arith.constant 0 : index
    %26 = vector.load %arg30[%c0_51, %c0_52] : memref<4x1xf32, #tpu.memory_space<vmem>>, vector<4x1xf32>
    %c0_53 = arith.constant 0 : index
    %c0_54 = arith.constant 0 : index
    %27 = vector.load %arg31[%c0_53, %c0_54] : memref<4x1xf32, #tpu.memory_space<vmem>>, vector<4x1xf32>
    %c0_55 = arith.constant 0 : index
    %c0_56 = arith.constant 0 : index
    %28 = vector.load %arg32[%c0_55, %c0_56] : memref<16x4xbf16, #tpu.memory_space<vmem>>, vector<16x4xbf16>
    %c0_57 = arith.constant 0 : index
    %c0_58 = arith.constant 0 : index
    %29 = vector.load %arg33[%c0_57, %c0_58] : memref<16x1xf32, #tpu.memory_space<vmem>>, vector<16x1xf32>
    %c0_59 = arith.constant 0 : index
    %c0_60 = arith.constant 0 : index
    %30 = vector.load %arg34[%c0_59, %c0_60] : memref<16x1xf32, #tpu.memory_space<vmem>>, vector<16x1xf32>
    %c0_61 = arith.constant 0 : index
    %c0_62 = arith.constant 0 : index
    %31 = vector.load %arg35[%c0_61, %c0_62] : memref<16x16xbf16, #tpu.memory_space<vmem>>, vector<16x16xbf16>
    %c0_63 = arith.constant 0 : index
    %c0_64 = arith.constant 0 : index
    %32 = vector.load %arg36[%c0_63, %c0_64] : memref<256x16xbf16, #tpu.memory_space<vmem>>, vector<256x16xbf16>
    %c0_65 = arith.constant 0 : index
    %c0_66 = arith.constant 0 : index
    %33 = vector.load %arg37[%c0_65, %c0_66] : memref<16x256xbf16, #tpu.memory_space<vmem>>, vector<16x256xbf16>
    %c0_67 = arith.constant 0 : index
    %c0_68 = arith.constant 0 : index
    %34 = vector.load %arg38[%c0_67, %c0_68] : memref<4x16xbf16, #tpu.memory_space<vmem>>, vector<4x16xbf16>
    %c0_69 = arith.constant 0 : index
    %c0_70 = arith.constant 0 : index
    %35 = vector.load %arg39[%c0_69, %c0_70] : memref<4x1xf32, #tpu.memory_space<vmem>>, vector<4x1xf32>
    %c0_71 = arith.constant 0 : index
    %c0_72 = arith.constant 0 : index
    %36 = vector.load %arg40[%c0_71, %c0_72] : memref<4x1xf32, #tpu.memory_space<vmem>>, vector<4x1xf32>
    %c0_73 = arith.constant 0 : index
    %c0_74 = arith.constant 0 : index
    %37 = vector.load %arg41[%c0_73, %c0_74] : memref<4x9xf32, #tpu.memory_space<vmem>>, vector<4x9xf32>
    %c0_75 = arith.constant 0 : index
    %c0_76 = arith.constant 0 : index
    %38 = vector.load %arg43[%c0_75, %c0_76] : memref<4x1xf32, #tpu.memory_space<vmem>>, vector<4x1xf32>
    %c0_77 = arith.constant 0 : index
    %c0_78 = arith.constant 0 : index
    %39 = vector.load %arg44[%c0_77, %c0_78] : memref<4x1xf32, #tpu.memory_space<vmem>>, vector<4x1xf32>
    %c0_79 = arith.constant 0 : index
    %c0_80 = arith.constant 0 : index
    %40 = vector.load %arg45[%c0_79, %c0_80] : memref<16x4xbf16, #tpu.memory_space<vmem>>, vector<16x4xbf16>
    %c0_81 = arith.constant 0 : index
    %c0_82 = arith.constant 0 : index
    %41 = vector.load %arg46[%c0_81, %c0_82] : memref<16x1xf32, #tpu.memory_space<vmem>>, vector<16x1xf32>
    %c0_83 = arith.constant 0 : index
    %c0_84 = arith.constant 0 : index
    %42 = vector.load %arg47[%c0_83, %c0_84] : memref<16x1xf32, #tpu.memory_space<vmem>>, vector<16x1xf32>
    %c0_85 = arith.constant 0 : index
    %c0_86 = arith.constant 0 : index
    %43 = vector.load %arg48[%c0_85, %c0_86] : memref<16x16xbf16, #tpu.memory_space<vmem>>, vector<16x16xbf16>
    %c0_87 = arith.constant 0 : index
    %c0_88 = arith.constant 0 : index
    %44 = vector.load %arg49[%c0_87, %c0_88] : memref<16x1xf32, #tpu.memory_space<vmem>>, vector<16x1xf32>
    %c0_89 = arith.constant 0 : index
    %c0_90 = arith.constant 0 : index
    %45 = vector.load %arg50[%c0_89, %c0_90] : memref<16x1xf32, #tpu.memory_space<vmem>>, vector<16x1xf32>
    %c0_91 = arith.constant 0 : index
    %c0_92 = arith.constant 0 : index
    %c0_93 = arith.constant 0 : index
    %46 = vector.load %arg2[%c0_91, %c0_92, %c0_93] : memref<1x16x256xf32, #tpu.memory_space<vmem>>, vector<1x16x256xf32>
    %47 = vector.shape_cast %46 : vector<1x16x256xf32> to vector<16x256xf32>
    %cst = arith.constant dense<0.000000e+00> : vector<16xf32>
    %48 = vector.multi_reduction <add>, %47, %cst [1] : vector<16x256xf32> to vector<16xf32>
    %49 = vector.shape_cast %48 : vector<16xf32> to vector<16x1xf32>
    %50 = arith.mulf %47, %47 : vector<16x256xf32>
    %cst_94 = arith.constant dense<0.000000e+00> : vector<16xf32>
    %51 = vector.multi_reduction <add>, %50, %cst_94 [1] : vector<16x256xf32> to vector<16xf32>
    %52 = vector.shape_cast %51 : vector<16xf32> to vector<16x1xf32>
    %cst_95 = arith.constant dense<0.000000e+00> : vector<8x1xf32>
    %53 = tpu.matmul %3, %49, %cst_95 {dimension_numbers = #tpu.dot_dimension_numbers<[1], [0], [0], [1], [0, 0, 1, 1], [], []>} : vector<8x16xf32>, vector<16x1xf32>, vector<8x1xf32> -> vector<8x1xf32>
    %cst_96 = arith.constant dense<0.000000e+00> : vector<8x1xf32>
    %54 = tpu.matmul %3, %52, %cst_96 {dimension_numbers = #tpu.dot_dimension_numbers<[1], [0], [0], [1], [0, 0, 1, 1], [], []>} : vector<8x16xf32>, vector<16x1xf32>, vector<8x1xf32> -> vector<8x1xf32>
    %cst_97 = arith.constant dense<0.000000e+00> : vector<16x1xf32>
    %55 = tpu.matmul %2, %53, %cst_97 {dimension_numbers = #tpu.dot_dimension_numbers<[1], [0], [0], [1], [0, 0, 1, 1], [], []>} : vector<16x8xf32>, vector<8x1xf32>, vector<16x1xf32> -> vector<16x1xf32>
    %cst_98 = arith.constant 0.001953125 : f32
    %56 = vector.broadcast %cst_98 : f32 to vector<16x1xf32>
    %57 = arith.mulf %55, %56 : vector<16x1xf32>
    %cst_99 = arith.constant dense<0.000000e+00> : vector<16x1xf32>
    %58 = tpu.matmul %2, %54, %cst_99 {dimension_numbers = #tpu.dot_dimension_numbers<[1], [0], [0], [1], [0, 0, 1, 1], [], []>} : vector<16x8xf32>, vector<8x1xf32>, vector<16x1xf32> -> vector<16x1xf32>
    %cst_100 = arith.constant 0.001953125 : f32
    %59 = vector.broadcast %cst_100 : f32 to vector<16x1xf32>
    %60 = arith.mulf %58, %59 : vector<16x1xf32>
    %61 = arith.mulf %57, %57 : vector<16x1xf32>
    %62 = arith.subf %60, %61 : vector<16x1xf32>
    %cst_101 = arith.constant 0.000000e+00 : f32
    %63 = vector.broadcast %cst_101 : f32 to vector<16x1xf32>
    %64 = arith.maximumf %62, %63 : vector<16x1xf32>
    %cst_102 = arith.constant 9.99999974E-6 : f32
    %65 = vector.broadcast %cst_102 : f32 to vector<16x1xf32>
    %66 = arith.addf %64, %65 : vector<16x1xf32>
    %67 = math.rsqrt %66 : vector<16x1xf32>
    %68 = vector.broadcast %57 : vector<16x1xf32> to vector<16x256xf32>
    %69 = arith.subf %47, %68 : vector<16x256xf32>
    %70 = arith.mulf %67, %0 : vector<16x1xf32>
    %71 = vector.broadcast %70 : vector<16x1xf32> to vector<16x256xf32>
    %72 = arith.mulf %69, %71 : vector<16x256xf32>
    %73 = vector.broadcast %1 : vector<16x1xf32> to vector<16x256xf32>
    %74 = arith.addf %72, %73 : vector<16x256xf32>
    %75 = arith.truncf %74 : vector<16x256xf32> to vector<16x256xbf16>
    %cst_103 = arith.constant dense<0.000000e+00> : vector<16x256xf32>
    %76 = tpu.matmul %8, %75, %cst_103 {dimension_numbers = #tpu.dot_dimension_numbers<[1], [0], [0], [1], [0, 0, 1, 1], [], []>} : vector<16x16xbf16>, vector<16x256xbf16>, vector<16x256xf32> -> vector<16x256xf32>
    %cst_104 = arith.constant dense<0.000000e+00> : vector<4x256xf32>
    %77 = tpu.matmul %9, %75, %cst_104 {dimension_numbers = #tpu.dot_dimension_numbers<[1], [0], [0], [1], [0, 0, 1, 1], [], []>} : vector<4x16xbf16>, vector<16x256xbf16>, vector<4x256xf32> -> vector<4x256xf32>
    %cst_105 = arith.constant dense<0.000000e+00> : vector<4xf32>
    %78 = vector.multi_reduction <add>, %77, %cst_105 [1] : vector<4x256xf32> to vector<4xf32>
    %79 = vector.shape_cast %78 : vector<4xf32> to vector<4x1xf32>
    %80 = arith.mulf %77, %77 : vector<4x256xf32>
    %cst_106 = arith.constant dense<0.000000e+00> : vector<4xf32>
    %81 = vector.multi_reduction <add>, %80, %cst_106 [1] : vector<4x256xf32> to vector<4xf32>
    %82 = vector.shape_cast %81 : vector<4xf32> to vector<4x1xf32>
    %cst_107 = arith.constant dense<0.000000e+00> : vector<4x1xf32>
    %83 = tpu.matmul %5, %79, %cst_107 {dimension_numbers = #tpu.dot_dimension_numbers<[1], [0], [0], [1], [0, 0, 1, 1], [], []>} : vector<4x4xf32>, vector<4x1xf32>, vector<4x1xf32> -> vector<4x1xf32>
    %cst_108 = arith.constant dense<0.000000e+00> : vector<4x1xf32>
    %84 = tpu.matmul %5, %82, %cst_108 {dimension_numbers = #tpu.dot_dimension_numbers<[1], [0], [0], [1], [0, 0, 1, 1], [], []>} : vector<4x4xf32>, vector<4x1xf32>, vector<4x1xf32> -> vector<4x1xf32>
    %cst_109 = arith.constant dense<0.000000e+00> : vector<4x1xf32>
    %85 = tpu.matmul %4, %83, %cst_109 {dimension_numbers = #tpu.dot_dimension_numbers<[1], [0], [0], [1], [0, 0, 1, 1], [], []>} : vector<4x4xf32>, vector<4x1xf32>, vector<4x1xf32> -> vector<4x1xf32>
    %cst_110 = arith.constant 3.906250e-03 : f32
    %86 = vector.broadcast %cst_110 : f32 to vector<4x1xf32>
    %87 = arith.mulf %85, %86 : vector<4x1xf32>
    %cst_111 = arith.constant dense<0.000000e+00> : vector<4x1xf32>
    %88 = tpu.matmul %4, %84, %cst_111 {dimension_numbers = #tpu.dot_dimension_numbers<[1], [0], [0], [1], [0, 0, 1, 1], [], []>} : vector<4x4xf32>, vector<4x1xf32>, vector<4x1xf32> -> vector<4x1xf32>
    %cst_112 = arith.constant 3.906250e-03 : f32
    %89 = vector.broadcast %cst_112 : f32 to vector<4x1xf32>
    %90 = arith.mulf %88, %89 : vector<4x1xf32>
    %91 = arith.mulf %87, %87 : vector<4x1xf32>
    %92 = arith.subf %90, %91 : vector<4x1xf32>
    %cst_113 = arith.constant 0.000000e+00 : f32
    %93 = vector.broadcast %cst_113 : f32 to vector<4x1xf32>
    %94 = arith.maximumf %92, %93 : vector<4x1xf32>
    %cst_114 = arith.constant 9.99999974E-6 : f32
    %95 = vector.broadcast %cst_114 : f32 to vector<4x1xf32>
    %96 = arith.addf %94, %95 : vector<4x1xf32>
    %97 = math.rsqrt %96 : vector<4x1xf32>
    %98 = vector.broadcast %87 : vector<4x1xf32> to vector<4x256xf32>
    %99 = arith.subf %77, %98 : vector<4x256xf32>
    %100 = arith.mulf %97, %10 : vector<4x1xf32>
    %101 = vector.broadcast %100 : vector<4x1xf32> to vector<4x256xf32>
    %102 = arith.mulf %99, %101 : vector<4x256xf32>
    %103 = vector.broadcast %11 : vector<4x1xf32> to vector<4x256xf32>
    %104 = arith.addf %102, %103 : vector<4x256xf32>
    %cst_115 = arith.constant 0.000000e+00 : f32
    %105 = vector.broadcast %cst_115 : f32 to vector<4x256xf32>
    %106 = arith.maximumf %104, %105 : vector<4x256xf32>
    %107 = vector.extract_strided_slice %12 {offsets = [0, 4], sizes = [4, 1], strides = [1, 1]} : vector<4x9xf32> to vector<4x1xf32>
    %108 = vector.broadcast %107 : vector<4x1xf32> to vector<4x256xf32>
    %109 = arith.mulf %106, %108 : vector<4x256xf32>
    %c17_i32 = arith.constant 17 : i32
    %110 = tpu.dynamic_rotate %106 by %c17_i32 dim 1 : vector<4x256xf32>, i32 -> vector<4x256xf32>
    %111 = vector.extract_strided_slice %13 {offsets = [0, 0], sizes = [1, 256], strides = [1, 1]} : vector<9x256xf32> to vector<1x256xf32>
    %112 = vector.broadcast %111 : vector<1x256xf32> to vector<4x256xf32>
    %113 = arith.mulf %110, %112 : vector<4x256xf32>
    %114 = vector.extract_strided_slice %12 {offsets = [0, 0], sizes = [4, 1], strides = [1, 1]} : vector<4x9xf32> to vector<4x1xf32>
    %115 = vector.broadcast %114 : vector<4x1xf32> to vector<4x256xf32>
    %116 = arith.mulf %113, %115 : vector<4x256xf32>
    %117 = arith.addf %109, %116 : vector<4x256xf32>
    %c16_i32 = arith.constant 16 : i32
    %118 = tpu.dynamic_rotate %106 by %c16_i32 dim 1 : vector<4x256xf32>, i32 -> vector<4x256xf32>
    %119 = vector.extract_strided_slice %13 {offsets = [1, 0], sizes = [1, 256], strides = [1, 1]} : vector<9x256xf32> to vector<1x256xf32>
    %120 = vector.broadcast %119 : vector<1x256xf32> to vector<4x256xf32>
    %121 = arith.mulf %118, %120 : vector<4x256xf32>
    %122 = vector.extract_strided_slice %12 {offsets = [0, 1], sizes = [4, 1], strides = [1, 1]} : vector<4x9xf32> to vector<4x1xf32>
    %123 = vector.broadcast %122 : vector<4x1xf32> to vector<4x256xf32>
    %124 = arith.mulf %121, %123 : vector<4x256xf32>
    %125 = arith.addf %117, %124 : vector<4x256xf32>
    %c15_i32 = arith.constant 15 : i32
    %126 = tpu.dynamic_rotate %106 by %c15_i32 dim 1 : vector<4x256xf32>, i32 -> vector<4x256xf32>
    %127 = vector.extract_strided_slice %13 {offsets = [2, 0], sizes = [1, 256], strides = [1, 1]} : vector<9x256xf32> to vector<1x256xf32>
    %128 = vector.broadcast %127 : vector<1x256xf32> to vector<4x256xf32>
    %129 = arith.mulf %126, %128 : vector<4x256xf32>
    %130 = vector.extract_strided_slice %12 {offsets = [0, 2], sizes = [4, 1], strides = [1, 1]} : vector<4x9xf32> to vector<4x1xf32>
    %131 = vector.broadcast %130 : vector<4x1xf32> to vector<4x256xf32>
    %132 = arith.mulf %129, %131 : vector<4x256xf32>
    %133 = arith.addf %125, %132 : vector<4x256xf32>
    %c1_i32 = arith.constant 1 : i32
    %134 = tpu.dynamic_rotate %106 by %c1_i32 dim 1 : vector<4x256xf32>, i32 -> vector<4x256xf32>
    %135 = vector.extract_strided_slice %13 {offsets = [3, 0], sizes = [1, 256], strides = [1, 1]} : vector<9x256xf32> to vector<1x256xf32>
    %136 = vector.broadcast %135 : vector<1x256xf32> to vector<4x256xf32>
    %137 = arith.mulf %134, %136 : vector<4x256xf32>
    %138 = vector.extract_strided_slice %12 {offsets = [0, 3], sizes = [4, 1], strides = [1, 1]} : vector<4x9xf32> to vector<4x1xf32>
    %139 = vector.broadcast %138 : vector<4x1xf32> to vector<4x256xf32>
    %140 = arith.mulf %137, %139 : vector<4x256xf32>
    %141 = arith.addf %133, %140 : vector<4x256xf32>
    %c255_i32 = arith.constant 255 : i32
    %142 = tpu.dynamic_rotate %106 by %c255_i32 dim 1 : vector<4x256xf32>, i32 -> vector<4x256xf32>
    %143 = vector.extract_strided_slice %13 {offsets = [5, 0], sizes = [1, 256], strides = [1, 1]} : vector<9x256xf32> to vector<1x256xf32>
    %144 = vector.broadcast %143 : vector<1x256xf32> to vector<4x256xf32>
    %145 = arith.mulf %142, %144 : vector<4x256xf32>
    %146 = vector.extract_strided_slice %12 {offsets = [0, 5], sizes = [4, 1], strides = [1, 1]} : vector<4x9xf32> to vector<4x1xf32>
    %147 = vector.broadcast %146 : vector<4x1xf32> to vector<4x256xf32>
    %148 = arith.mulf %145, %147 : vector<4x256xf32>
    %149 = arith.addf %141, %148 : vector<4x256xf32>
    %c241_i32 = arith.constant 241 : i32
    %150 = tpu.dynamic_rotate %106 by %c241_i32 dim 1 : vector<4x256xf32>, i32 -> vector<4x256xf32>
    %151 = vector.extract_strided_slice %13 {offsets = [6, 0], sizes = [1, 256], strides = [1, 1]} : vector<9x256xf32> to vector<1x256xf32>
    %152 = vector.broadcast %151 : vector<1x256xf32> to vector<4x256xf32>
    %153 = arith.mulf %150, %152 : vector<4x256xf32>
    %154 = vector.extract_strided_slice %12 {offsets = [0, 6], sizes = [4, 1], strides = [1, 1]} : vector<4x9xf32> to vector<4x1xf32>
    %155 = vector.broadcast %154 : vector<4x1xf32> to vector<4x256xf32>
    %156 = arith.mulf %153, %155 : vector<4x256xf32>
    %157 = arith.addf %149, %156 : vector<4x256xf32>
    %c240_i32 = arith.constant 240 : i32
    %158 = tpu.dynamic_rotate %106 by %c240_i32 dim 1 : vector<4x256xf32>, i32 -> vector<4x256xf32>
    %159 = vector.extract_strided_slice %13 {offsets = [7, 0], sizes = [1, 256], strides = [1, 1]} : vector<9x256xf32> to vector<1x256xf32>
    %160 = vector.broadcast %159 : vector<1x256xf32> to vector<4x256xf32>
    %161 = arith.mulf %158, %160 : vector<4x256xf32>
    %162 = vector.extract_strided_slice %12 {offsets = [0, 7], sizes = [4, 1], strides = [1, 1]} : vector<4x9xf32> to vector<4x1xf32>
    %163 = vector.broadcast %162 : vector<4x1xf32> to vector<4x256xf32>
    %164 = arith.mulf %161, %163 : vector<4x256xf32>
    %165 = arith.addf %157, %164 : vector<4x256xf32>
    %c239_i32 = arith.constant 239 : i32
    %166 = tpu.dynamic_rotate %106 by %c239_i32 dim 1 : vector<4x256xf32>, i32 -> vector<4x256xf32>
    %167 = vector.extract_strided_slice %13 {offsets = [8, 0], sizes = [1, 256], strides = [1, 1]} : vector<9x256xf32> to vector<1x256xf32>
    %168 = vector.broadcast %167 : vector<1x256xf32> to vector<4x256xf32>
    %169 = arith.mulf %166, %168 : vector<4x256xf32>
    %170 = vector.extract_strided_slice %12 {offsets = [0, 8], sizes = [4, 1], strides = [1, 1]} : vector<4x9xf32> to vector<4x1xf32>
    %171 = vector.broadcast %170 : vector<4x1xf32> to vector<4x256xf32>
    %172 = arith.mulf %169, %171 : vector<4x256xf32>
    %173 = arith.addf %165, %172 : vector<4x256xf32>
    %cst_116 = arith.constant dense<0.000000e+00> : vector<4xf32>
    %174 = vector.multi_reduction <add>, %173, %cst_116 [1] : vector<4x256xf32> to vector<4xf32>
    %175 = vector.shape_cast %174 : vector<4xf32> to vector<4x1xf32>
    %176 = arith.mulf %173, %173 : vector<4x256xf32>
    %cst_117 = arith.constant dense<0.000000e+00> : vector<4xf32>
    %177 = vector.multi_reduction <add>, %176, %cst_117 [1] : vector<4x256xf32> to vector<4xf32>
    %178 = vector.shape_cast %177 : vector<4xf32> to vector<4x1xf32>
    %cst_118 = arith.constant dense<0.000000e+00> : vector<4x1xf32>
    %179 = tpu.matmul %5, %175, %cst_118 {dimension_numbers = #tpu.dot_dimension_numbers<[1], [0], [0], [1], [0, 0, 1, 1], [], []>} : vector<4x4xf32>, vector<4x1xf32>, vector<4x1xf32> -> vector<4x1xf32>
    %cst_119 = arith.constant dense<0.000000e+00> : vector<4x1xf32>
    %180 = tpu.matmul %5, %178, %cst_119 {dimension_numbers = #tpu.dot_dimension_numbers<[1], [0], [0], [1], [0, 0, 1, 1], [], []>} : vector<4x4xf32>, vector<4x1xf32>, vector<4x1xf32> -> vector<4x1xf32>
    %cst_120 = arith.constant dense<0.000000e+00> : vector<4x1xf32>
    %181 = tpu.matmul %4, %179, %cst_120 {dimension_numbers = #tpu.dot_dimension_numbers<[1], [0], [0], [1], [0, 0, 1, 1], [], []>} : vector<4x4xf32>, vector<4x1xf32>, vector<4x1xf32> -> vector<4x1xf32>
    %cst_121 = arith.constant 3.906250e-03 : f32
    %182 = vector.broadcast %cst_121 : f32 to vector<4x1xf32>
    %183 = arith.mulf %181, %182 : vector<4x1xf32>
    %cst_122 = arith.constant dense<0.000000e+00> : vector<4x1xf32>
    %184 = tpu.matmul %4, %180, %cst_122 {dimension_numbers = #tpu.dot_dimension_numbers<[1], [0], [0], [1], [0, 0, 1, 1], [], []>} : vector<4x4xf32>, vector<4x1xf32>, vector<4x1xf32> -> vector<4x1xf32>
    %cst_123 = arith.constant 3.906250e-03 : f32
    %185 = vector.broadcast %cst_123 : f32 to vector<4x1xf32>
    %186 = arith.mulf %184, %185 : vector<4x1xf32>
    %187 = arith.mulf %183, %183 : vector<4x1xf32>
    %188 = arith.subf %186, %187 : vector<4x1xf32>
    %cst_124 = arith.constant 0.000000e+00 : f32
    %189 = vector.broadcast %cst_124 : f32 to vector<4x1xf32>
    %190 = arith.maximumf %188, %189 : vector<4x1xf32>
    %cst_125 = arith.constant 9.99999974E-6 : f32
    %191 = vector.broadcast %cst_125 : f32 to vector<4x1xf32>
    %192 = arith.addf %190, %191 : vector<4x1xf32>
    %193 = math.rsqrt %192 : vector<4x1xf32>
    %194 = vector.broadcast %183 : vector<4x1xf32> to vector<4x256xf32>
    %195 = arith.subf %173, %194 : vector<4x256xf32>
    %196 = arith.mulf %193, %14 : vector<4x1xf32>
    %197 = vector.broadcast %196 : vector<4x1xf32> to vector<4x256xf32>
    %198 = arith.mulf %195, %197 : vector<4x256xf32>
    %199 = vector.broadcast %15 : vector<4x1xf32> to vector<4x256xf32>
    %200 = arith.addf %198, %199 : vector<4x256xf32>
    %cst_126 = arith.constant 0.000000e+00 : f32
    %201 = vector.broadcast %cst_126 : f32 to vector<4x256xf32>
    %202 = arith.maximumf %200, %201 : vector<4x256xf32>
    %203 = arith.truncf %202 : vector<4x256xf32> to vector<4x256xbf16>
    %cst_127 = arith.constant dense<0.000000e+00> : vector<16x256xf32>
    %204 = tpu.matmul %16, %203, %cst_127 {dimension_numbers = #tpu.dot_dimension_numbers<[1], [0], [0], [1], [0, 0, 1, 1], [], []>} : vector<16x4xbf16>, vector<4x256xbf16>, vector<16x256xf32> -> vector<16x256xf32>
    %cst_128 = arith.constant dense<0.000000e+00> : vector<16xf32>
    %205 = vector.multi_reduction <add>, %204, %cst_128 [1] : vector<16x256xf32> to vector<16xf32>
    %206 = vector.shape_cast %205 : vector<16xf32> to vector<16x1xf32>
    %207 = arith.mulf %204, %204 : vector<16x256xf32>
    %cst_129 = arith.constant dense<0.000000e+00> : vector<16xf32>
    %208 = vector.multi_reduction <add>, %207, %cst_129 [1] : vector<16x256xf32> to vector<16xf32>
    %209 = vector.shape_cast %208 : vector<16xf32> to vector<16x1xf32>
    %cst_130 = arith.constant dense<0.000000e+00> : vector<4x1xf32>
    %210 = tpu.matmul %7, %206, %cst_130 {dimension_numbers = #tpu.dot_dimension_numbers<[1], [0], [0], [1], [0, 0, 1, 1], [], []>} : vector<4x16xf32>, vector<16x1xf32>, vector<4x1xf32> -> vector<4x1xf32>
    %cst_131 = arith.constant dense<0.000000e+00> : vector<4x1xf32>
    %211 = tpu.matmul %7, %209, %cst_131 {dimension_numbers = #tpu.dot_dimension_numbers<[1], [0], [0], [1], [0, 0, 1, 1], [], []>} : vector<4x16xf32>, vector<16x1xf32>, vector<4x1xf32> -> vector<4x1xf32>
    %cst_132 = arith.constant dense<0.000000e+00> : vector<16x1xf32>
    %212 = tpu.matmul %6, %210, %cst_132 {dimension_numbers = #tpu.dot_dimension_numbers<[1], [0], [0], [1], [0, 0, 1, 1], [], []>} : vector<16x4xf32>, vector<4x1xf32>, vector<16x1xf32> -> vector<16x1xf32>
    %cst_133 = arith.constant 9.765625E-4 : f32
    %213 = vector.broadcast %cst_133 : f32 to vector<16x1xf32>
    %214 = arith.mulf %212, %213 : vector<16x1xf32>
    %cst_134 = arith.constant dense<0.000000e+00> : vector<16x1xf32>
    %215 = tpu.matmul %6, %211, %cst_134 {dimension_numbers = #tpu.dot_dimension_numbers<[1], [0], [0], [1], [0, 0, 1, 1], [], []>} : vector<16x4xf32>, vector<4x1xf32>, vector<16x1xf32> -> vector<16x1xf32>
    %cst_135 = arith.constant 9.765625E-4 : f32
    %216 = vector.broadcast %cst_135 : f32 to vector<16x1xf32>
    %217 = arith.mulf %215, %216 : vector<16x1xf32>
    %218 = arith.mulf %214, %214 : vector<16x1xf32>
    %219 = arith.subf %217, %218 : vector<16x1xf32>
    %cst_136 = arith.constant 0.000000e+00 : f32
    %220 = vector.broadcast %cst_136 : f32 to vector<16x1xf32>
    %221 = arith.maximumf %219, %220 : vector<16x1xf32>
    %cst_137 = arith.constant 9.99999974E-6 : f32
    %222 = vector.broadcast %cst_137 : f32 to vector<16x1xf32>
    %223 = arith.addf %221, %222 : vector<16x1xf32>
    %224 = math.rsqrt %223 : vector<16x1xf32>
    %225 = vector.broadcast %214 : vector<16x1xf32> to vector<16x256xf32>
    %226 = arith.subf %204, %225 : vector<16x256xf32>
    %227 = arith.mulf %224, %17 : vector<16x1xf32>
    %228 = vector.broadcast %227 : vector<16x1xf32> to vector<16x256xf32>
    %229 = arith.mulf %226, %228 : vector<16x256xf32>
    %230 = vector.broadcast %18 : vector<16x1xf32> to vector<16x256xf32>
    %231 = arith.addf %229, %230 : vector<16x256xf32>
    %cst_138 = arith.constant 0.000000e+00 : f32
    %232 = vector.broadcast %cst_138 : f32 to vector<16x256xf32>
    %233 = arith.maximumf %231, %232 : vector<16x256xf32>
    %c0_139 = arith.constant 0 : index
    %234 = memref.load %arg1[%c0_139] : memref<3xf32, #tpu.memory_space<smem>>
    %235 = vector.broadcast %234 : f32 to vector<16x256xf32>
    %236 = arith.mulf %233, %235 : vector<16x256xf32>
    %237 = arith.mulf %236, %236 : vector<16x256xf32>
    %cst_140 = arith.constant dense<0.000000e+00> : vector<256xf32>
    %238 = vector.multi_reduction <add>, %237, %cst_140 [0] : vector<16x256xf32> to vector<256xf32>
    %239 = vector.shape_cast %238 : vector<256xf32> to vector<1x256xf32>
    %240 = math.sqrt %239 : vector<1x256xf32>
    %cst_141 = arith.constant 9.99999997E-7 : f32
    %241 = vector.broadcast %cst_141 : f32 to vector<1x256xf32>
    %242 = arith.addf %240, %241 : vector<1x256xf32>
    %243 = tpu.reciprocal %242 {approx = true} : vector<1x256xf32> -> vector<1x256xf32>
    %244 = vector.broadcast %243 : vector<1x256xf32> to vector<16x256xf32>
    %245 = arith.mulf %236, %244 : vector<16x256xf32>
    %246 = arith.truncf %245 : vector<16x256xf32> to vector<16x256xbf16>
    %cst_142 = arith.constant dense<0.000000e+00> : vector<16x256xf32>
    %247 = tpu.matmul %19, %246, %cst_142 {dimension_numbers = #tpu.dot_dimension_numbers<[1], [0], [0], [1], [0, 0, 1, 1], [], []>} : vector<16x16xbf16>, vector<16x256xbf16>, vector<16x256xf32> -> vector<16x256xf32>
    %248 = arith.addf %76, %247 : vector<16x256xf32>
    %cst_143 = arith.constant dense<0.000000e+00> : vector<16x64xf32>
    %249 = tpu.matmul %75, %20, %cst_143 {dimension_numbers = #tpu.dot_dimension_numbers<[1], [0], [0], [1], [0, 0, 1, 1], [], []>} : vector<16x256xbf16>, vector<256x64xbf16>, vector<16x64xf32> -> vector<16x64xf32>
    %250 = arith.truncf %249 : vector<16x64xf32> to vector<16x64xbf16>
    %cst_144 = arith.constant dense<0.000000e+00> : vector<4x64xf32>
    %251 = tpu.matmul %22, %250, %cst_144 {dimension_numbers = #tpu.dot_dimension_numbers<[1], [0], [0], [1], [0, 0, 1, 1], [], []>} : vector<4x16xbf16>, vector<16x64xbf16>, vector<4x64xf32> -> vector<4x64xf32>
    %cst_145 = arith.constant dense<0.000000e+00> : vector<4xf32>
    %252 = vector.multi_reduction <add>, %251, %cst_145 [1] : vector<4x64xf32> to vector<4xf32>
    %253 = vector.shape_cast %252 : vector<4xf32> to vector<4x1xf32>
    %254 = arith.mulf %251, %251 : vector<4x64xf32>
    %cst_146 = arith.constant dense<0.000000e+00> : vector<4xf32>
    %255 = vector.multi_reduction <add>, %254, %cst_146 [1] : vector<4x64xf32> to vector<4xf32>
    %256 = vector.shape_cast %255 : vector<4xf32> to vector<4x1xf32>
    %cst_147 = arith.constant dense<0.000000e+00> : vector<4x1xf32>
    %257 = tpu.matmul %5, %253, %cst_147 {dimension_numbers = #tpu.dot_dimension_numbers<[1], [0], [0], [1], [0, 0, 1, 1], [], []>} : vector<4x4xf32>, vector<4x1xf32>, vector<4x1xf32> -> vector<4x1xf32>
    %cst_148 = arith.constant dense<0.000000e+00> : vector<4x1xf32>
    %258 = tpu.matmul %5, %256, %cst_148 {dimension_numbers = #tpu.dot_dimension_numbers<[1], [0], [0], [1], [0, 0, 1, 1], [], []>} : vector<4x4xf32>, vector<4x1xf32>, vector<4x1xf32> -> vector<4x1xf32>
    %cst_149 = arith.constant dense<0.000000e+00> : vector<4x1xf32>
    %259 = tpu.matmul %4, %257, %cst_149 {dimension_numbers = #tpu.dot_dimension_numbers<[1], [0], [0], [1], [0, 0, 1, 1], [], []>} : vector<4x4xf32>, vector<4x1xf32>, vector<4x1xf32> -> vector<4x1xf32>
    %cst_150 = arith.constant 1.562500e-02 : f32
    %260 = vector.broadcast %cst_150 : f32 to vector<4x1xf32>
    %261 = arith.mulf %259, %260 : vector<4x1xf32>
    %cst_151 = arith.constant dense<0.000000e+00> : vector<4x1xf32>
    %262 = tpu.matmul %4, %258, %cst_151 {dimension_numbers = #tpu.dot_dimension_numbers<[1], [0], [0], [1], [0, 0, 1, 1], [], []>} : vector<4x4xf32>, vector<4x1xf32>, vector<4x1xf32> -> vector<4x1xf32>
    %cst_152 = arith.constant 1.562500e-02 : f32
    %263 = vector.broadcast %cst_152 : f32 to vector<4x1xf32>
    %264 = arith.mulf %262, %263 : vector<4x1xf32>
    %265 = arith.mulf %261, %261 : vector<4x1xf32>
    %266 = arith.subf %264, %265 : vector<4x1xf32>
    %cst_153 = arith.constant 0.000000e+00 : f32
    %267 = vector.broadcast %cst_153 : f32 to vector<4x1xf32>
    %268 = arith.maximumf %266, %267 : vector<4x1xf32>
    %cst_154 = arith.constant 9.99999974E-6 : f32
    %269 = vector.broadcast %cst_154 : f32 to vector<4x1xf32>
    %270 = arith.addf %268, %269 : vector<4x1xf32>
    %271 = math.rsqrt %270 : vector<4x1xf32>
    %272 = vector.broadcast %261 : vector<4x1xf32> to vector<4x64xf32>
    %273 = arith.subf %251, %272 : vector<4x64xf32>
    %274 = arith.mulf %271, %23 : vector<4x1xf32>
    %275 = vector.broadcast %274 : vector<4x1xf32> to vector<4x64xf32>
    %276 = arith.mulf %273, %275 : vector<4x64xf32>
    %277 = vector.broadcast %24 : vector<4x1xf32> to vector<4x64xf32>
    %278 = arith.addf %276, %277 : vector<4x64xf32>
    %cst_155 = arith.constant 0.000000e+00 : f32
    %279 = vector.broadcast %cst_155 : f32 to vector<4x64xf32>
    %280 = arith.maximumf %278, %279 : vector<4x64xf32>
    %281 = vector.extract_strided_slice %25 {offsets = [0, 4], sizes = [4, 1], strides = [1, 1]} : vector<4x9xf32> to vector<4x1xf32>
    %282 = vector.broadcast %281 : vector<4x1xf32> to vector<4x64xf32>
    %283 = arith.mulf %280, %282 : vector<4x64xf32>
    %c0_156 = arith.constant 0 : index
    %c0_157 = arith.constant 0 : index
    %c0_158 = arith.constant 0 : index
    %284 = vector.load %arg29[%c0_156, %c0_157, %c0_158] : memref<9x64x64xf32, #tpu.memory_space<vmem>>, vector<1x64x64xf32>
    %285 = vector.shape_cast %284 : vector<1x64x64xf32> to vector<64x64xf32>
    %cst_159 = arith.constant dense<0.000000e+00> : vector<4x64xf32>
    %286 = tpu.matmul %280, %285, %cst_159 {dimension_numbers = #tpu.dot_dimension_numbers<[1], [0], [0], [1], [0, 0, 1, 1], [], []>} : vector<4x64xf32>, vector<64x64xf32>, vector<4x64xf32> -> vector<4x64xf32>
    %287 = vector.extract_strided_slice %25 {offsets = [0, 0], sizes = [4, 1], strides = [1, 1]} : vector<4x9xf32> to vector<4x1xf32>
    %288 = vector.broadcast %287 : vector<4x1xf32> to vector<4x64xf32>
    %289 = arith.mulf %286, %288 : vector<4x64xf32>
    %290 = arith.addf %283, %289 : vector<4x64xf32>
    %c1 = arith.constant 1 : index
    %c0_160 = arith.constant 0 : index
    %c0_161 = arith.constant 0 : index
    %291 = vector.load %arg29[%c1, %c0_160, %c0_161] : memref<9x64x64xf32, #tpu.memory_space<vmem>>, vector<1x64x64xf32>
    %292 = vector.shape_cast %291 : vector<1x64x64xf32> to vector<64x64xf32>
    %cst_162 = arith.constant dense<0.000000e+00> : vector<4x64xf32>
    %293 = tpu.matmul %280, %292, %cst_162 {dimension_numbers = #tpu.dot_dimension_numbers<[1], [0], [0], [1], [0, 0, 1, 1], [], []>} : vector<4x64xf32>, vector<64x64xf32>, vector<4x64xf32> -> vector<4x64xf32>
    %294 = vector.extract_strided_slice %25 {offsets = [0, 1], sizes = [4, 1], strides = [1, 1]} : vector<4x9xf32> to vector<4x1xf32>
    %295 = vector.broadcast %294 : vector<4x1xf32> to vector<4x64xf32>
    %296 = arith.mulf %293, %295 : vector<4x64xf32>
    %297 = arith.addf %290, %296 : vector<4x64xf32>
    %c2 = arith.constant 2 : index
    %c0_163 = arith.constant 0 : index
    %c0_164 = arith.constant 0 : index
    %298 = vector.load %arg29[%c2, %c0_163, %c0_164] : memref<9x64x64xf32, #tpu.memory_space<vmem>>, vector<1x64x64xf32>
    %299 = vector.shape_cast %298 : vector<1x64x64xf32> to vector<64x64xf32>
    %cst_165 = arith.constant dense<0.000000e+00> : vector<4x64xf32>
    %300 = tpu.matmul %280, %299, %cst_165 {dimension_numbers = #tpu.dot_dimension_numbers<[1], [0], [0], [1], [0, 0, 1, 1], [], []>} : vector<4x64xf32>, vector<64x64xf32>, vector<4x64xf32> -> vector<4x64xf32>
    %301 = vector.extract_strided_slice %25 {offsets = [0, 2], sizes = [4, 1], strides = [1, 1]} : vector<4x9xf32> to vector<4x1xf32>
    %302 = vector.broadcast %301 : vector<4x1xf32> to vector<4x64xf32>
    %303 = arith.mulf %300, %302 : vector<4x64xf32>
    %304 = arith.addf %297, %303 : vector<4x64xf32>
    %c3 = arith.constant 3 : index
    %c0_166 = arith.constant 0 : index
    %c0_167 = arith.constant 0 : index
    %305 = vector.load %arg29[%c3, %c0_166, %c0_167] : memref<9x64x64xf32, #tpu.memory_space<vmem>>, vector<1x64x64xf32>
    %306 = vector.shape_cast %305 : vector<1x64x64xf32> to vector<64x64xf32>
    %cst_168 = arith.constant dense<0.000000e+00> : vector<4x64xf32>
    %307 = tpu.matmul %280, %306, %cst_168 {dimension_numbers = #tpu.dot_dimension_numbers<[1], [0], [0], [1], [0, 0, 1, 1], [], []>} : vector<4x64xf32>, vector<64x64xf32>, vector<4x64xf32> -> vector<4x64xf32>
    %308 = vector.extract_strided_slice %25 {offsets = [0, 3], sizes = [4, 1], strides = [1, 1]} : vector<4x9xf32> to vector<4x1xf32>
    %309 = vector.broadcast %308 : vector<4x1xf32> to vector<4x64xf32>
    %310 = arith.mulf %307, %309 : vector<4x64xf32>
    %311 = arith.addf %304, %310 : vector<4x64xf32>
    %c5 = arith.constant 5 : index
    %c0_169 = arith.constant 0 : index
    %c0_170 = arith.constant 0 : index
    %312 = vector.load %arg29[%c5, %c0_169, %c0_170] : memref<9x64x64xf32, #tpu.memory_space<vmem>>, vector<1x64x64xf32>
    %313 = vector.shape_cast %312 : vector<1x64x64xf32> to vector<64x64xf32>
    %cst_171 = arith.constant dense<0.000000e+00> : vector<4x64xf32>
    %314 = tpu.matmul %280, %313, %cst_171 {dimension_numbers = #tpu.dot_dimension_numbers<[1], [0], [0], [1], [0, 0, 1, 1], [], []>} : vector<4x64xf32>, vector<64x64xf32>, vector<4x64xf32> -> vector<4x64xf32>
    %315 = vector.extract_strided_slice %25 {offsets = [0, 5], sizes = [4, 1], strides = [1, 1]} : vector<4x9xf32> to vector<4x1xf32>
    %316 = vector.broadcast %315 : vector<4x1xf32> to vector<4x64xf32>
    %317 = arith.mulf %314, %316 : vector<4x64xf32>
    %318 = arith.addf %311, %317 : vector<4x64xf32>
    %c6 = arith.constant 6 : index
    %c0_172 = arith.constant 0 : index
    %c0_173 = arith.constant 0 : index
    %319 = vector.load %arg29[%c6, %c0_172, %c0_173] : memref<9x64x64xf32, #tpu.memory_space<vmem>>, vector<1x64x64xf32>
    %320 = vector.shape_cast %319 : vector<1x64x64xf32> to vector<64x64xf32>
    %cst_174 = arith.constant dense<0.000000e+00> : vector<4x64xf32>
    %321 = tpu.matmul %280, %320, %cst_174 {dimension_numbers = #tpu.dot_dimension_numbers<[1], [0], [0], [1], [0, 0, 1, 1], [], []>} : vector<4x64xf32>, vector<64x64xf32>, vector<4x64xf32> -> vector<4x64xf32>
    %322 = vector.extract_strided_slice %25 {offsets = [0, 6], sizes = [4, 1], strides = [1, 1]} : vector<4x9xf32> to vector<4x1xf32>
    %323 = vector.broadcast %322 : vector<4x1xf32> to vector<4x64xf32>
    %324 = arith.mulf %321, %323 : vector<4x64xf32>
    %325 = arith.addf %318, %324 : vector<4x64xf32>
    %c7 = arith.constant 7 : index
    %c0_175 = arith.constant 0 : index
    %c0_176 = arith.constant 0 : index
    %326 = vector.load %arg29[%c7, %c0_175, %c0_176] : memref<9x64x64xf32, #tpu.memory_space<vmem>>, vector<1x64x64xf32>
    %327 = vector.shape_cast %326 : vector<1x64x64xf32> to vector<64x64xf32>
    %cst_177 = arith.constant dense<0.000000e+00> : vector<4x64xf32>
    %328 = tpu.matmul %280, %327, %cst_177 {dimension_numbers = #tpu.dot_dimension_numbers<[1], [0], [0], [1], [0, 0, 1, 1], [], []>} : vector<4x64xf32>, vector<64x64xf32>, vector<4x64xf32> -> vector<4x64xf32>
    %329 = vector.extract_strided_slice %25 {offsets = [0, 7], sizes = [4, 1], strides = [1, 1]} : vector<4x9xf32> to vector<4x1xf32>
    %330 = vector.broadcast %329 : vector<4x1xf32> to vector<4x64xf32>
    %331 = arith.mulf %328, %330 : vector<4x64xf32>
    %332 = arith.addf %325, %331 : vector<4x64xf32>
    %c8 = arith.constant 8 : index
    %c0_178 = arith.constant 0 : index
    %c0_179 = arith.constant 0 : index
    %333 = vector.load %arg29[%c8, %c0_178, %c0_179] : memref<9x64x64xf32, #tpu.memory_space<vmem>>, vector<1x64x64xf32>
    %334 = vector.shape_cast %333 : vector<1x64x64xf32> to vector<64x64xf32>
    %cst_180 = arith.constant dense<0.000000e+00> : vector<4x64xf32>
    %335 = tpu.matmul %280, %334, %cst_180 {dimension_numbers = #tpu.dot_dimension_numbers<[1], [0], [0], [1], [0, 0, 1, 1], [], []>} : vector<4x64xf32>, vector<64x64xf32>, vector<4x64xf32> -> vector<4x64xf32>
    %336 = vector.extract_strided_slice %25 {offsets = [0, 8], sizes = [4, 1], strides = [1, 1]} : vector<4x9xf32> to vector<4x1xf32>
    %337 = vector.broadcast %336 : vector<4x1xf32> to vector<4x64xf32>
    %338 = arith.mulf %335, %337 : vector<4x64xf32>
    %339 = arith.addf %332, %338 : vector<4x64xf32>
    %cst_181 = arith.constant dense<0.000000e+00> : vector<4xf32>
    %340 = vector.multi_reduction <add>, %339, %cst_181 [1] : vector<4x64xf32> to vector<4xf32>
    %341 = vector.shape_cast %340 : vector<4xf32> to vector<4x1xf32>
    %342 = arith.mulf %339, %339 : vector<4x64xf32>
    %cst_182 = arith.constant dense<0.000000e+00> : vector<4xf32>
    %343 = vector.multi_reduction <add>, %342, %cst_182 [1] : vector<4x64xf32> to vector<4xf32>
    %344 = vector.shape_cast %343 : vector<4xf32> to vector<4x1xf32>
    %cst_183 = arith.constant dense<0.000000e+00> : vector<4x1xf32>
    %345 = tpu.matmul %5, %341, %cst_183 {dimension_numbers = #tpu.dot_dimension_numbers<[1], [0], [0], [1], [0, 0, 1, 1], [], []>} : vector<4x4xf32>, vector<4x1xf32>, vector<4x1xf32> -> vector<4x1xf32>
    %cst_184 = arith.constant dense<0.000000e+00> : vector<4x1xf32>
    %346 = tpu.matmul %5, %344, %cst_184 {dimension_numbers = #tpu.dot_dimension_numbers<[1], [0], [0], [1], [0, 0, 1, 1], [], []>} : vector<4x4xf32>, vector<4x1xf32>, vector<4x1xf32> -> vector<4x1xf32>
    %cst_185 = arith.constant dense<0.000000e+00> : vector<4x1xf32>
    %347 = tpu.matmul %4, %345, %cst_185 {dimension_numbers = #tpu.dot_dimension_numbers<[1], [0], [0], [1], [0, 0, 1, 1], [], []>} : vector<4x4xf32>, vector<4x1xf32>, vector<4x1xf32> -> vector<4x1xf32>
    %cst_186 = arith.constant 1.562500e-02 : f32
    %348 = vector.broadcast %cst_186 : f32 to vector<4x1xf32>
    %349 = arith.mulf %347, %348 : vector<4x1xf32>
    %cst_187 = arith.constant dense<0.000000e+00> : vector<4x1xf32>
    %350 = tpu.matmul %4, %346, %cst_187 {dimension_numbers = #tpu.dot_dimension_numbers<[1], [0], [0], [1], [0, 0, 1, 1], [], []>} : vector<4x4xf32>, vector<4x1xf32>, vector<4x1xf32> -> vector<4x1xf32>
    %cst_188 = arith.constant 1.562500e-02 : f32
    %351 = vector.broadcast %cst_188 : f32 to vector<4x1xf32>
    %352 = arith.mulf %350, %351 : vector<4x1xf32>
    %353 = arith.mulf %349, %349 : vector<4x1xf32>
    %354 = arith.subf %352, %353 : vector<4x1xf32>
    %cst_189 = arith.constant 0.000000e+00 : f32
    %355 = vector.broadcast %cst_189 : f32 to vector<4x1xf32>
    %356 = arith.maximumf %354, %355 : vector<4x1xf32>
    %cst_190 = arith.constant 9.99999974E-6 : f32
    %357 = vector.broadcast %cst_190 : f32 to vector<4x1xf32>
    %358 = arith.addf %356, %357 : vector<4x1xf32>
    %359 = math.rsqrt %358 : vector<4x1xf32>
    %360 = vector.broadcast %349 : vector<4x1xf32> to vector<4x64xf32>
    %361 = arith.subf %339, %360 : vector<4x64xf32>
    %362 = arith.mulf %359, %26 : vector<4x1xf32>
    %363 = vector.broadcast %362 : vector<4x1xf32> to vector<4x64xf32>
    %364 = arith.mulf %361, %363 : vector<4x64xf32>
    %365 = vector.broadcast %27 : vector<4x1xf32> to vector<4x64xf32>
    %366 = arith.addf %364, %365 : vector<4x64xf32>
    %cst_191 = arith.constant 0.000000e+00 : f32
    %367 = vector.broadcast %cst_191 : f32 to vector<4x64xf32>
    %368 = arith.maximumf %366, %367 : vector<4x64xf32>
    %369 = arith.truncf %368 : vector<4x64xf32> to vector<4x64xbf16>
    %cst_192 = arith.constant dense<0.000000e+00> : vector<16x64xf32>
    %370 = tpu.matmul %28, %369, %cst_192 {dimension_numbers = #tpu.dot_dimension_numbers<[1], [0], [0], [1], [0, 0, 1, 1], [], []>} : vector<16x4xbf16>, vector<4x64xbf16>, vector<16x64xf32> -> vector<16x64xf32>
    %cst_193 = arith.constant dense<0.000000e+00> : vector<16xf32>
    %371 = vector.multi_reduction <add>, %370, %cst_193 [1] : vector<16x64xf32> to vector<16xf32>
    %372 = vector.shape_cast %371 : vector<16xf32> to vector<16x1xf32>
    %373 = arith.mulf %370, %370 : vector<16x64xf32>
    %cst_194 = arith.constant dense<0.000000e+00> : vector<16xf32>
    %374 = vector.multi_reduction <add>, %373, %cst_194 [1] : vector<16x64xf32> to vector<16xf32>
    %375 = vector.shape_cast %374 : vector<16xf32> to vector<16x1xf32>
    %cst_195 = arith.constant dense<0.000000e+00> : vector<4x1xf32>
    %376 = tpu.matmul %7, %372, %cst_195 {dimension_numbers = #tpu.dot_dimension_numbers<[1], [0], [0], [1], [0, 0, 1, 1], [], []>} : vector<4x16xf32>, vector<16x1xf32>, vector<4x1xf32> -> vector<4x1xf32>
    %cst_196 = arith.constant dense<0.000000e+00> : vector<4x1xf32>
    %377 = tpu.matmul %7, %375, %cst_196 {dimension_numbers = #tpu.dot_dimension_numbers<[1], [0], [0], [1], [0, 0, 1, 1], [], []>} : vector<4x16xf32>, vector<16x1xf32>, vector<4x1xf32> -> vector<4x1xf32>
    %cst_197 = arith.constant dense<0.000000e+00> : vector<16x1xf32>
    %378 = tpu.matmul %6, %376, %cst_197 {dimension_numbers = #tpu.dot_dimension_numbers<[1], [0], [0], [1], [0, 0, 1, 1], [], []>} : vector<16x4xf32>, vector<4x1xf32>, vector<16x1xf32> -> vector<16x1xf32>
    %cst_198 = arith.constant 3.906250e-03 : f32
    %379 = vector.broadcast %cst_198 : f32 to vector<16x1xf32>
    %380 = arith.mulf %378, %379 : vector<16x1xf32>
    %cst_199 = arith.constant dense<0.000000e+00> : vector<16x1xf32>
    %381 = tpu.matmul %6, %377, %cst_199 {dimension_numbers = #tpu.dot_dimension_numbers<[1], [0], [0], [1], [0, 0, 1, 1], [], []>} : vector<16x4xf32>, vector<4x1xf32>, vector<16x1xf32> -> vector<16x1xf32>
    %cst_200 = arith.constant 3.906250e-03 : f32
    %382 = vector.broadcast %cst_200 : f32 to vector<16x1xf32>
    %383 = arith.mulf %381, %382 : vector<16x1xf32>
    %384 = arith.mulf %380, %380 : vector<16x1xf32>
    %385 = arith.subf %383, %384 : vector<16x1xf32>
    %cst_201 = arith.constant 0.000000e+00 : f32
    %386 = vector.broadcast %cst_201 : f32 to vector<16x1xf32>
    %387 = arith.maximumf %385, %386 : vector<16x1xf32>
    %cst_202 = arith.constant 9.99999974E-6 : f32
    %388 = vector.broadcast %cst_202 : f32 to vector<16x1xf32>
    %389 = arith.addf %387, %388 : vector<16x1xf32>
    %390 = math.rsqrt %389 : vector<16x1xf32>
    %391 = vector.broadcast %380 : vector<16x1xf32> to vector<16x64xf32>
    %392 = arith.subf %370, %391 : vector<16x64xf32>
    %393 = arith.mulf %390, %29 : vector<16x1xf32>
    %394 = vector.broadcast %393 : vector<16x1xf32> to vector<16x64xf32>
    %395 = arith.mulf %392, %394 : vector<16x64xf32>
    %396 = vector.broadcast %30 : vector<16x1xf32> to vector<16x64xf32>
    %397 = arith.addf %395, %396 : vector<16x64xf32>
    %cst_203 = arith.constant 0.000000e+00 : f32
    %398 = vector.broadcast %cst_203 : f32 to vector<16x64xf32>
    %399 = arith.maximumf %397, %398 : vector<16x64xf32>
    %400 = arith.truncf %399 : vector<16x64xf32> to vector<16x64xbf16>
    %cst_204 = arith.constant dense<0.000000e+00> : vector<16x256xf32>
    %401 = tpu.matmul %400, %21, %cst_204 {dimension_numbers = #tpu.dot_dimension_numbers<[1], [0], [0], [1], [0, 0, 1, 1], [], []>} : vector<16x64xbf16>, vector<64x256xbf16>, vector<16x256xf32> -> vector<16x256xf32>
    %c1_205 = arith.constant 1 : index
    %402 = memref.load %arg1[%c1_205] : memref<3xf32, #tpu.memory_space<smem>>
    %403 = vector.broadcast %402 : f32 to vector<16x256xf32>
    %404 = arith.mulf %401, %403 : vector<16x256xf32>
    %405 = arith.mulf %404, %404 : vector<16x256xf32>
    %cst_206 = arith.constant dense<0.000000e+00> : vector<256xf32>
    %406 = vector.multi_reduction <add>, %405, %cst_206 [0] : vector<16x256xf32> to vector<256xf32>
    %407 = vector.shape_cast %406 : vector<256xf32> to vector<1x256xf32>
    %408 = math.sqrt %407 : vector<1x256xf32>
    %cst_207 = arith.constant 9.99999997E-7 : f32
    %409 = vector.broadcast %cst_207 : f32 to vector<1x256xf32>
    %410 = arith.addf %408, %409 : vector<1x256xf32>
    %411 = tpu.reciprocal %410 {approx = true} : vector<1x256xf32> -> vector<1x256xf32>
    %412 = vector.broadcast %411 : vector<1x256xf32> to vector<16x256xf32>
    %413 = arith.mulf %404, %412 : vector<16x256xf32>
    %414 = arith.truncf %413 : vector<16x256xf32> to vector<16x256xbf16>
    %cst_208 = arith.constant dense<0.000000e+00> : vector<16x256xf32>
    %415 = tpu.matmul %31, %414, %cst_208 {dimension_numbers = #tpu.dot_dimension_numbers<[1], [0], [0], [1], [0, 0, 1, 1], [], []>} : vector<16x16xbf16>, vector<16x256xbf16>, vector<16x256xf32> -> vector<16x256xf32>
    %416 = arith.addf %248, %415 : vector<16x256xf32>
    %cst_209 = arith.constant dense<0.000000e+00> : vector<16x16xf32>
    %417 = tpu.matmul %75, %32, %cst_209 {dimension_numbers = #tpu.dot_dimension_numbers<[1], [0], [0], [1], [0, 0, 1, 1], [], []>} : vector<16x256xbf16>, vector<256x16xbf16>, vector<16x16xf32> -> vector<16x16xf32>
    %418 = arith.truncf %417 : vector<16x16xf32> to vector<16x16xbf16>
    %cst_210 = arith.constant dense<0.000000e+00> : vector<4x16xf32>
    %419 = tpu.matmul %34, %418, %cst_210 {dimension_numbers = #tpu.dot_dimension_numbers<[1], [0], [0], [1], [0, 0, 1, 1], [], []>} : vector<4x16xbf16>, vector<16x16xbf16>, vector<4x16xf32> -> vector<4x16xf32>
    %cst_211 = arith.constant dense<0.000000e+00> : vector<4xf32>
    %420 = vector.multi_reduction <add>, %419, %cst_211 [1] : vector<4x16xf32> to vector<4xf32>
    %421 = vector.shape_cast %420 : vector<4xf32> to vector<4x1xf32>
    %422 = arith.mulf %419, %419 : vector<4x16xf32>
    %cst_212 = arith.constant dense<0.000000e+00> : vector<4xf32>
    %423 = vector.multi_reduction <add>, %422, %cst_212 [1] : vector<4x16xf32> to vector<4xf32>
    %424 = vector.shape_cast %423 : vector<4xf32> to vector<4x1xf32>
    %cst_213 = arith.constant dense<0.000000e+00> : vector<4x1xf32>
    %425 = tpu.matmul %5, %421, %cst_213 {dimension_numbers = #tpu.dot_dimension_numbers<[1], [0], [0], [1], [0, 0, 1, 1], [], []>} : vector<4x4xf32>, vector<4x1xf32>, vector<4x1xf32> -> vector<4x1xf32>
    %cst_214 = arith.constant dense<0.000000e+00> : vector<4x1xf32>
    %426 = tpu.matmul %5, %424, %cst_214 {dimension_numbers = #tpu.dot_dimension_numbers<[1], [0], [0], [1], [0, 0, 1, 1], [], []>} : vector<4x4xf32>, vector<4x1xf32>, vector<4x1xf32> -> vector<4x1xf32>
    %cst_215 = arith.constant dense<0.000000e+00> : vector<4x1xf32>
    %427 = tpu.matmul %4, %425, %cst_215 {dimension_numbers = #tpu.dot_dimension_numbers<[1], [0], [0], [1], [0, 0, 1, 1], [], []>} : vector<4x4xf32>, vector<4x1xf32>, vector<4x1xf32> -> vector<4x1xf32>
    %cst_216 = arith.constant 6.250000e-02 : f32
    %428 = vector.broadcast %cst_216 : f32 to vector<4x1xf32>
    %429 = arith.mulf %427, %428 : vector<4x1xf32>
    %cst_217 = arith.constant dense<0.000000e+00> : vector<4x1xf32>
    %430 = tpu.matmul %4, %426, %cst_217 {dimension_numbers = #tpu.dot_dimension_numbers<[1], [0], [0], [1], [0, 0, 1, 1], [], []>} : vector<4x4xf32>, vector<4x1xf32>, vector<4x1xf32> -> vector<4x1xf32>
    %cst_218 = arith.constant 6.250000e-02 : f32
    %431 = vector.broadcast %cst_218 : f32 to vector<4x1xf32>
    %432 = arith.mulf %430, %431 : vector<4x1xf32>
    %433 = arith.mulf %429, %429 : vector<4x1xf32>
    %434 = arith.subf %432, %433 : vector<4x1xf32>
    %cst_219 = arith.constant 0.000000e+00 : f32
    %435 = vector.broadcast %cst_219 : f32 to vector<4x1xf32>
    %436 = arith.maximumf %434, %435 : vector<4x1xf32>
    %cst_220 = arith.constant 9.99999974E-6 : f32
    %437 = vector.broadcast %cst_220 : f32 to vector<4x1xf32>
    %438 = arith.addf %436, %437 : vector<4x1xf32>
    %439 = math.rsqrt %438 : vector<4x1xf32>
    %440 = vector.broadcast %429 : vector<4x1xf32> to vector<4x16xf32>
    %441 = arith.subf %419, %440 : vector<4x16xf32>
    %442 = arith.mulf %439, %35 : vector<4x1xf32>
    %443 = vector.broadcast %442 : vector<4x1xf32> to vector<4x16xf32>
    %444 = arith.mulf %441, %443 : vector<4x16xf32>
    %445 = vector.broadcast %36 : vector<4x1xf32> to vector<4x16xf32>
    %446 = arith.addf %444, %445 : vector<4x16xf32>
    %cst_221 = arith.constant 0.000000e+00 : f32
    %447 = vector.broadcast %cst_221 : f32 to vector<4x16xf32>
    %448 = arith.maximumf %446, %447 : vector<4x16xf32>
    %449 = vector.extract_strided_slice %37 {offsets = [0, 4], sizes = [4, 1], strides = [1, 1]} : vector<4x9xf32> to vector<4x1xf32>
    %450 = vector.broadcast %449 : vector<4x1xf32> to vector<4x16xf32>
    %451 = arith.mulf %448, %450 : vector<4x16xf32>
    %c0_222 = arith.constant 0 : index
    %c0_223 = arith.constant 0 : index
    %c0_224 = arith.constant 0 : index
    %452 = vector.load %arg42[%c0_222, %c0_223, %c0_224] : memref<9x16x16xf32, #tpu.memory_space<vmem>>, vector<1x16x16xf32>
    %453 = vector.shape_cast %452 : vector<1x16x16xf32> to vector<16x16xf32>
    %cst_225 = arith.constant dense<0.000000e+00> : vector<4x16xf32>
    %454 = tpu.matmul %448, %453, %cst_225 {dimension_numbers = #tpu.dot_dimension_numbers<[1], [0], [0], [1], [0, 0, 1, 1], [], []>} : vector<4x16xf32>, vector<16x16xf32>, vector<4x16xf32> -> vector<4x16xf32>
    %455 = vector.extract_strided_slice %37 {offsets = [0, 0], sizes = [4, 1], strides = [1, 1]} : vector<4x9xf32> to vector<4x1xf32>
    %456 = vector.broadcast %455 : vector<4x1xf32> to vector<4x16xf32>
    %457 = arith.mulf %454, %456 : vector<4x16xf32>
    %458 = arith.addf %451, %457 : vector<4x16xf32>
    %c1_226 = arith.constant 1 : index
    %c0_227 = arith.constant 0 : index
    %c0_228 = arith.constant 0 : index
    %459 = vector.load %arg42[%c1_226, %c0_227, %c0_228] : memref<9x16x16xf32, #tpu.memory_space<vmem>>, vector<1x16x16xf32>
    %460 = vector.shape_cast %459 : vector<1x16x16xf32> to vector<16x16xf32>
    %cst_229 = arith.constant dense<0.000000e+00> : vector<4x16xf32>
    %461 = tpu.matmul %448, %460, %cst_229 {dimension_numbers = #tpu.dot_dimension_numbers<[1], [0], [0], [1], [0, 0, 1, 1], [], []>} : vector<4x16xf32>, vector<16x16xf32>, vector<4x16xf32> -> vector<4x16xf32>
    %462 = vector.extract_strided_slice %37 {offsets = [0, 1], sizes = [4, 1], strides = [1, 1]} : vector<4x9xf32> to vector<4x1xf32>
    %463 = vector.broadcast %462 : vector<4x1xf32> to vector<4x16xf32>
    %464 = arith.mulf %461, %463 : vector<4x16xf32>
    %465 = arith.addf %458, %464 : vector<4x16xf32>
    %c2_230 = arith.constant 2 : index
    %c0_231 = arith.constant 0 : index
    %c0_232 = arith.constant 0 : index
    %466 = vector.load %arg42[%c2_230, %c0_231, %c0_232] : memref<9x16x16xf32, #tpu.memory_space<vmem>>, vector<1x16x16xf32>
    %467 = vector.shape_cast %466 : vector<1x16x16xf32> to vector<16x16xf32>
    %cst_233 = arith.constant dense<0.000000e+00> : vector<4x16xf32>
    %468 = tpu.matmul %448, %467, %cst_233 {dimension_numbers = #tpu.dot_dimension_numbers<[1], [0], [0], [1], [0, 0, 1, 1], [], []>} : vector<4x16xf32>, vector<16x16xf32>, vector<4x16xf32> -> vector<4x16xf32>
    %469 = vector.extract_strided_slice %37 {offsets = [0, 2], sizes = [4, 1], strides = [1, 1]} : vector<4x9xf32> to vector<4x1xf32>
    %470 = vector.broadcast %469 : vector<4x1xf32> to vector<4x16xf32>
    %471 = arith.mulf %468, %470 : vector<4x16xf32>
    %472 = arith.addf %465, %471 : vector<4x16xf32>
    %c3_234 = arith.constant 3 : index
    %c0_235 = arith.constant 0 : index
    %c0_236 = arith.constant 0 : index
    %473 = vector.load %arg42[%c3_234, %c0_235, %c0_236] : memref<9x16x16xf32, #tpu.memory_space<vmem>>, vector<1x16x16xf32>
    %474 = vector.shape_cast %473 : vector<1x16x16xf32> to vector<16x16xf32>
    %cst_237 = arith.constant dense<0.000000e+00> : vector<4x16xf32>
    %475 = tpu.matmul %448, %474, %cst_237 {dimension_numbers = #tpu.dot_dimension_numbers<[1], [0], [0], [1], [0, 0, 1, 1], [], []>} : vector<4x16xf32>, vector<16x16xf32>, vector<4x16xf32> -> vector<4x16xf32>
    %476 = vector.extract_strided_slice %37 {offsets = [0, 3], sizes = [4, 1], strides = [1, 1]} : vector<4x9xf32> to vector<4x1xf32>
    %477 = vector.broadcast %476 : vector<4x1xf32> to vector<4x16xf32>
    %478 = arith.mulf %475, %477 : vector<4x16xf32>
    %479 = arith.addf %472, %478 : vector<4x16xf32>
    %c5_238 = arith.constant 5 : index
    %c0_239 = arith.constant 0 : index
    %c0_240 = arith.constant 0 : index
    %480 = vector.load %arg42[%c5_238, %c0_239, %c0_240] : memref<9x16x16xf32, #tpu.memory_space<vmem>>, vector<1x16x16xf32>
    %481 = vector.shape_cast %480 : vector<1x16x16xf32> to vector<16x16xf32>
    %cst_241 = arith.constant dense<0.000000e+00> : vector<4x16xf32>
    %482 = tpu.matmul %448, %481, %cst_241 {dimension_numbers = #tpu.dot_dimension_numbers<[1], [0], [0], [1], [0, 0, 1, 1], [], []>} : vector<4x16xf32>, vector<16x16xf32>, vector<4x16xf32> -> vector<4x16xf32>
    %483 = vector.extract_strided_slice %37 {offsets = [0, 5], sizes = [4, 1], strides = [1, 1]} : vector<4x9xf32> to vector<4x1xf32>
    %484 = vector.broadcast %483 : vector<4x1xf32> to vector<4x16xf32>
    %485 = arith.mulf %482, %484 : vector<4x16xf32>
    %486 = arith.addf %479, %485 : vector<4x16xf32>
    %c6_242 = arith.constant 6 : index
    %c0_243 = arith.constant 0 : index
    %c0_244 = arith.constant 0 : index
    %487 = vector.load %arg42[%c6_242, %c0_243, %c0_244] : memref<9x16x16xf32, #tpu.memory_space<vmem>>, vector<1x16x16xf32>
    %488 = vector.shape_cast %487 : vector<1x16x16xf32> to vector<16x16xf32>
    %cst_245 = arith.constant dense<0.000000e+00> : vector<4x16xf32>
    %489 = tpu.matmul %448, %488, %cst_245 {dimension_numbers = #tpu.dot_dimension_numbers<[1], [0], [0], [1], [0, 0, 1, 1], [], []>} : vector<4x16xf32>, vector<16x16xf32>, vector<4x16xf32> -> vector<4x16xf32>
    %490 = vector.extract_strided_slice %37 {offsets = [0, 6], sizes = [4, 1], strides = [1, 1]} : vector<4x9xf32> to vector<4x1xf32>
    %491 = vector.broadcast %490 : vector<4x1xf32> to vector<4x16xf32>
    %492 = arith.mulf %489, %491 : vector<4x16xf32>
    %493 = arith.addf %486, %492 : vector<4x16xf32>
    %c7_246 = arith.constant 7 : index
    %c0_247 = arith.constant 0 : index
    %c0_248 = arith.constant 0 : index
    %494 = vector.load %arg42[%c7_246, %c0_247, %c0_248] : memref<9x16x16xf32, #tpu.memory_space<vmem>>, vector<1x16x16xf32>
    %495 = vector.shape_cast %494 : vector<1x16x16xf32> to vector<16x16xf32>
    %cst_249 = arith.constant dense<0.000000e+00> : vector<4x16xf32>
    %496 = tpu.matmul %448, %495, %cst_249 {dimension_numbers = #tpu.dot_dimension_numbers<[1], [0], [0], [1], [0, 0, 1, 1], [], []>} : vector<4x16xf32>, vector<16x16xf32>, vector<4x16xf32> -> vector<4x16xf32>
    %497 = vector.extract_strided_slice %37 {offsets = [0, 7], sizes = [4, 1], strides = [1, 1]} : vector<4x9xf32> to vector<4x1xf32>
    %498 = vector.broadcast %497 : vector<4x1xf32> to vector<4x16xf32>
    %499 = arith.mulf %496, %498 : vector<4x16xf32>
    %500 = arith.addf %493, %499 : vector<4x16xf32>
    %c8_250 = arith.constant 8 : index
    %c0_251 = arith.constant 0 : index
    %c0_252 = arith.constant 0 : index
    %501 = vector.load %arg42[%c8_250, %c0_251, %c0_252] : memref<9x16x16xf32, #tpu.memory_space<vmem>>, vector<1x16x16xf32>
    %502 = vector.shape_cast %501 : vector<1x16x16xf32> to vector<16x16xf32>
    %cst_253 = arith.constant dense<0.000000e+00> : vector<4x16xf32>
    %503 = tpu.matmul %448, %502, %cst_253 {dimension_numbers = #tpu.dot_dimension_numbers<[1], [0], [0], [1], [0, 0, 1, 1], [], []>} : vector<4x16xf32>, vector<16x16xf32>, vector<4x16xf32> -> vector<4x16xf32>
    %504 = vector.extract_strided_slice %37 {offsets = [0, 8], sizes = [4, 1], strides = [1, 1]} : vector<4x9xf32> to vector<4x1xf32>
    %505 = vector.broadcast %504 : vector<4x1xf32> to vector<4x16xf32>
    %506 = arith.mulf %503, %505 : vector<4x16xf32>
    %507 = arith.addf %500, %506 : vector<4x16xf32>
    %cst_254 = arith.constant dense<0.000000e+00> : vector<4xf32>
    %508 = vector.multi_reduction <add>, %507, %cst_254 [1] : vector<4x16xf32> to vector<4xf32>
    %509 = vector.shape_cast %508 : vector<4xf32> to vector<4x1xf32>
    %510 = arith.mulf %507, %507 : vector<4x16xf32>
    %cst_255 = arith.constant dense<0.000000e+00> : vector<4xf32>
    %511 = vector.multi_reduction <add>, %510, %cst_255 [1] : vector<4x16xf32> to vector<4xf32>
    %512 = vector.shape_cast %511 : vector<4xf32> to vector<4x1xf32>
    %cst_256 = arith.constant dense<0.000000e+00> : vector<4x1xf32>
    %513 = tpu.matmul %5, %509, %cst_256 {dimension_numbers = #tpu.dot_dimension_numbers<[1], [0], [0], [1], [0, 0, 1, 1], [], []>} : vector<4x4xf32>, vector<4x1xf32>, vector<4x1xf32> -> vector<4x1xf32>
    %cst_257 = arith.constant dense<0.000000e+00> : vector<4x1xf32>
    %514 = tpu.matmul %5, %512, %cst_257 {dimension_numbers = #tpu.dot_dimension_numbers<[1], [0], [0], [1], [0, 0, 1, 1], [], []>} : vector<4x4xf32>, vector<4x1xf32>, vector<4x1xf32> -> vector<4x1xf32>
    %cst_258 = arith.constant dense<0.000000e+00> : vector<4x1xf32>
    %515 = tpu.matmul %4, %513, %cst_258 {dimension_numbers = #tpu.dot_dimension_numbers<[1], [0], [0], [1], [0, 0, 1, 1], [], []>} : vector<4x4xf32>, vector<4x1xf32>, vector<4x1xf32> -> vector<4x1xf32>
    %cst_259 = arith.constant 6.250000e-02 : f32
    %516 = vector.broadcast %cst_259 : f32 to vector<4x1xf32>
    %517 = arith.mulf %515, %516 : vector<4x1xf32>
    %cst_260 = arith.constant dense<0.000000e+00> : vector<4x1xf32>
    %518 = tpu.matmul %4, %514, %cst_260 {dimension_numbers = #tpu.dot_dimension_numbers<[1], [0], [0], [1], [0, 0, 1, 1], [], []>} : vector<4x4xf32>, vector<4x1xf32>, vector<4x1xf32> -> vector<4x1xf32>
    %cst_261 = arith.constant 6.250000e-02 : f32
    %519 = vector.broadcast %cst_261 : f32 to vector<4x1xf32>
    %520 = arith.mulf %518, %519 : vector<4x1xf32>
    %521 = arith.mulf %517, %517 : vector<4x1xf32>
    %522 = arith.subf %520, %521 : vector<4x1xf32>
    %cst_262 = arith.constant 0.000000e+00 : f32
    %523 = vector.broadcast %cst_262 : f32 to vector<4x1xf32>
    %524 = arith.maximumf %522, %523 : vector<4x1xf32>
    %cst_263 = arith.constant 9.99999974E-6 : f32
    %525 = vector.broadcast %cst_263 : f32 to vector<4x1xf32>
    %526 = arith.addf %524, %525 : vector<4x1xf32>
    %527 = math.rsqrt %526 : vector<4x1xf32>
    %528 = vector.broadcast %517 : vector<4x1xf32> to vector<4x16xf32>
    %529 = arith.subf %507, %528 : vector<4x16xf32>
    %530 = arith.mulf %527, %38 : vector<4x1xf32>
    %531 = vector.broadcast %530 : vector<4x1xf32> to vector<4x16xf32>
    %532 = arith.mulf %529, %531 : vector<4x16xf32>
    %533 = vector.broadcast %39 : vector<4x1xf32> to vector<4x16xf32>
    %534 = arith.addf %532, %533 : vector<4x16xf32>
    %cst_264 = arith.constant 0.000000e+00 : f32
    %535 = vector.broadcast %cst_264 : f32 to vector<4x16xf32>
    %536 = arith.maximumf %534, %535 : vector<4x16xf32>
    %537 = arith.truncf %536 : vector<4x16xf32> to vector<4x16xbf16>
    %cst_265 = arith.constant dense<0.000000e+00> : vector<16x16xf32>
    %538 = tpu.matmul %40, %537, %cst_265 {dimension_numbers = #tpu.dot_dimension_numbers<[1], [0], [0], [1], [0, 0, 1, 1], [], []>} : vector<16x4xbf16>, vector<4x16xbf16>, vector<16x16xf32> -> vector<16x16xf32>
    %cst_266 = arith.constant dense<0.000000e+00> : vector<16xf32>
    %539 = vector.multi_reduction <add>, %538, %cst_266 [1] : vector<16x16xf32> to vector<16xf32>
    %540 = vector.shape_cast %539 : vector<16xf32> to vector<16x1xf32>
    %541 = arith.mulf %538, %538 : vector<16x16xf32>
    %cst_267 = arith.constant dense<0.000000e+00> : vector<16xf32>
    %542 = vector.multi_reduction <add>, %541, %cst_267 [1] : vector<16x16xf32> to vector<16xf32>
    %543 = vector.shape_cast %542 : vector<16xf32> to vector<16x1xf32>
    %cst_268 = arith.constant dense<0.000000e+00> : vector<4x1xf32>
    %544 = tpu.matmul %7, %540, %cst_268 {dimension_numbers = #tpu.dot_dimension_numbers<[1], [0], [0], [1], [0, 0, 1, 1], [], []>} : vector<4x16xf32>, vector<16x1xf32>, vector<4x1xf32> -> vector<4x1xf32>
    %cst_269 = arith.constant dense<0.000000e+00> : vector<4x1xf32>
    %545 = tpu.matmul %7, %543, %cst_269 {dimension_numbers = #tpu.dot_dimension_numbers<[1], [0], [0], [1], [0, 0, 1, 1], [], []>} : vector<4x16xf32>, vector<16x1xf32>, vector<4x1xf32> -> vector<4x1xf32>
    %cst_270 = arith.constant dense<0.000000e+00> : vector<16x1xf32>
    %546 = tpu.matmul %6, %544, %cst_270 {dimension_numbers = #tpu.dot_dimension_numbers<[1], [0], [0], [1], [0, 0, 1, 1], [], []>} : vector<16x4xf32>, vector<4x1xf32>, vector<16x1xf32> -> vector<16x1xf32>
    %cst_271 = arith.constant 1.562500e-02 : f32
    %547 = vector.broadcast %cst_271 : f32 to vector<16x1xf32>
    %548 = arith.mulf %546, %547 : vector<16x1xf32>
    %cst_272 = arith.constant dense<0.000000e+00> : vector<16x1xf32>
    %549 = tpu.matmul %6, %545, %cst_272 {dimension_numbers = #tpu.dot_dimension_numbers<[1], [0], [0], [1], [0, 0, 1, 1], [], []>} : vector<16x4xf32>, vector<4x1xf32>, vector<16x1xf32> -> vector<16x1xf32>
    %cst_273 = arith.constant 1.562500e-02 : f32
    %550 = vector.broadcast %cst_273 : f32 to vector<16x1xf32>
    %551 = arith.mulf %549, %550 : vector<16x1xf32>
    %552 = arith.mulf %548, %548 : vector<16x1xf32>
    %553 = arith.subf %551, %552 : vector<16x1xf32>
    %cst_274 = arith.constant 0.000000e+00 : f32
    %554 = vector.broadcast %cst_274 : f32 to vector<16x1xf32>
    %555 = arith.maximumf %553, %554 : vector<16x1xf32>
    %cst_275 = arith.constant 9.99999974E-6 : f32
    %556 = vector.broadcast %cst_275 : f32 to vector<16x1xf32>
    %557 = arith.addf %555, %556 : vector<16x1xf32>
    %558 = math.rsqrt %557 : vector<16x1xf32>
    %559 = vector.broadcast %548 : vector<16x1xf32> to vector<16x16xf32>
    %560 = arith.subf %538, %559 : vector<16x16xf32>
    %561 = arith.mulf %558, %41 : vector<16x1xf32>
    %562 = vector.broadcast %561 : vector<16x1xf32> to vector<16x16xf32>
    %563 = arith.mulf %560, %562 : vector<16x16xf32>
    %564 = vector.broadcast %42 : vector<16x1xf32> to vector<16x16xf32>
    %565 = arith.addf %563, %564 : vector<16x16xf32>
    %cst_276 = arith.constant 0.000000e+00 : f32
    %566 = vector.broadcast %cst_276 : f32 to vector<16x16xf32>
    %567 = arith.maximumf %565, %566 : vector<16x16xf32>
    %568 = arith.truncf %567 : vector<16x16xf32> to vector<16x16xbf16>
    %cst_277 = arith.constant dense<0.000000e+00> : vector<16x256xf32>
    %569 = tpu.matmul %568, %33, %cst_277 {dimension_numbers = #tpu.dot_dimension_numbers<[1], [0], [0], [1], [0, 0, 1, 1], [], []>} : vector<16x16xbf16>, vector<16x256xbf16>, vector<16x256xf32> -> vector<16x256xf32>
    %c2_278 = arith.constant 2 : index
    %570 = memref.load %arg1[%c2_278] : memref<3xf32, #tpu.memory_space<smem>>
    %571 = vector.broadcast %570 : f32 to vector<16x256xf32>
    %572 = arith.mulf %569, %571 : vector<16x256xf32>
    %573 = arith.mulf %572, %572 : vector<16x256xf32>
    %cst_279 = arith.constant dense<0.000000e+00> : vector<256xf32>
    %574 = vector.multi_reduction <add>, %573, %cst_279 [0] : vector<16x256xf32> to vector<256xf32>
    %575 = vector.shape_cast %574 : vector<256xf32> to vector<1x256xf32>
    %576 = math.sqrt %575 : vector<1x256xf32>
    %cst_280 = arith.constant 9.99999997E-7 : f32
    %577 = vector.broadcast %cst_280 : f32 to vector<1x256xf32>
    %578 = arith.addf %576, %577 : vector<1x256xf32>
    %579 = tpu.reciprocal %578 {approx = true} : vector<1x256xf32> -> vector<1x256xf32>
    %580 = vector.broadcast %579 : vector<1x256xf32> to vector<16x256xf32>
    %581 = arith.mulf %572, %580 : vector<16x256xf32>
    %582 = arith.truncf %581 : vector<16x256xf32> to vector<16x256xbf16>
    %cst_281 = arith.constant dense<0.000000e+00> : vector<16x256xf32>
    %583 = tpu.matmul %43, %582, %cst_281 {dimension_numbers = #tpu.dot_dimension_numbers<[1], [0], [0], [1], [0, 0, 1, 1], [], []>} : vector<16x16xbf16>, vector<16x256xbf16>, vector<16x256xf32> -> vector<16x256xf32>
    %584 = arith.addf %416, %583 : vector<16x256xf32>
    %cst_282 = arith.constant dense<0.000000e+00> : vector<16xf32>
    %585 = vector.multi_reduction <add>, %584, %cst_282 [1] : vector<16x256xf32> to vector<16xf32>
    %586 = vector.shape_cast %585 : vector<16xf32> to vector<16x1xf32>
    %587 = arith.mulf %584, %584 : vector<16x256xf32>
    %cst_283 = arith.constant dense<0.000000e+00> : vector<16xf32>
    %588 = vector.multi_reduction <add>, %587, %cst_283 [1] : vector<16x256xf32> to vector<16xf32>
    %589 = vector.shape_cast %588 : vector<16xf32> to vector<16x1xf32>
    %cst_284 = arith.constant dense<0.000000e+00> : vector<8x1xf32>
    %590 = tpu.matmul %3, %586, %cst_284 {dimension_numbers = #tpu.dot_dimension_numbers<[1], [0], [0], [1], [0, 0, 1, 1], [], []>} : vector<8x16xf32>, vector<16x1xf32>, vector<8x1xf32> -> vector<8x1xf32>
    %cst_285 = arith.constant dense<0.000000e+00> : vector<8x1xf32>
    %591 = tpu.matmul %3, %589, %cst_285 {dimension_numbers = #tpu.dot_dimension_numbers<[1], [0], [0], [1], [0, 0, 1, 1], [], []>} : vector<8x16xf32>, vector<16x1xf32>, vector<8x1xf32> -> vector<8x1xf32>
    %cst_286 = arith.constant dense<0.000000e+00> : vector<16x1xf32>
    %592 = tpu.matmul %2, %590, %cst_286 {dimension_numbers = #tpu.dot_dimension_numbers<[1], [0], [0], [1], [0, 0, 1, 1], [], []>} : vector<16x8xf32>, vector<8x1xf32>, vector<16x1xf32> -> vector<16x1xf32>
    %cst_287 = arith.constant 0.001953125 : f32
    %593 = vector.broadcast %cst_287 : f32 to vector<16x1xf32>
    %594 = arith.mulf %592, %593 : vector<16x1xf32>
    %cst_288 = arith.constant dense<0.000000e+00> : vector<16x1xf32>
    %595 = tpu.matmul %2, %591, %cst_288 {dimension_numbers = #tpu.dot_dimension_numbers<[1], [0], [0], [1], [0, 0, 1, 1], [], []>} : vector<16x8xf32>, vector<8x1xf32>, vector<16x1xf32> -> vector<16x1xf32>
    %cst_289 = arith.constant 0.001953125 : f32
    %596 = vector.broadcast %cst_289 : f32 to vector<16x1xf32>
    %597 = arith.mulf %595, %596 : vector<16x1xf32>
    %598 = arith.mulf %594, %594 : vector<16x1xf32>
    %599 = arith.subf %597, %598 : vector<16x1xf32>
    %cst_290 = arith.constant 0.000000e+00 : f32
    %600 = vector.broadcast %cst_290 : f32 to vector<16x1xf32>
    %601 = arith.maximumf %599, %600 : vector<16x1xf32>
    %cst_291 = arith.constant 9.99999974E-6 : f32
    %602 = vector.broadcast %cst_291 : f32 to vector<16x1xf32>
    %603 = arith.addf %601, %602 : vector<16x1xf32>
    %604 = math.rsqrt %603 : vector<16x1xf32>
    %605 = vector.broadcast %594 : vector<16x1xf32> to vector<16x256xf32>
    %606 = arith.subf %584, %605 : vector<16x256xf32>
    %607 = arith.mulf %604, %44 : vector<16x1xf32>
    %608 = vector.broadcast %607 : vector<16x1xf32> to vector<16x256xf32>
    %609 = arith.mulf %606, %608 : vector<16x256xf32>
    %610 = vector.broadcast %45 : vector<16x1xf32> to vector<16x256xf32>
    %611 = arith.addf %609, %610 : vector<16x256xf32>
    %cst_292 = arith.constant 0.000000e+00 : f32
    %612 = vector.broadcast %cst_292 : f32 to vector<16x256xf32>
    %613 = arith.maximumf %611, %612 : vector<16x256xf32>
    %614 = arith.mulf %613, %613 : vector<16x256xf32>
    %cst_293 = arith.constant dense<0.000000e+00> : vector<256xf32>
    %615 = vector.multi_reduction <add>, %614, %cst_293 [0] : vector<16x256xf32> to vector<256xf32>
    %616 = vector.shape_cast %615 : vector<256xf32> to vector<1x256xf32>
    %617 = math.sqrt %616 : vector<1x256xf32>
    %cst_294 = arith.constant 9.99999997E-7 : f32
    %618 = vector.broadcast %cst_294 : f32 to vector<1x256xf32>
    %619 = arith.addf %617, %618 : vector<1x256xf32>
    %620 = tpu.reciprocal %619 {approx = true} : vector<1x256xf32> -> vector<1x256xf32>
    %621 = vector.broadcast %620 : vector<1x256xf32> to vector<16x256xf32>
    %622 = arith.mulf %613, %621 : vector<16x256xf32>
    %c0_295 = arith.constant 0 : index
    %c0_296 = arith.constant 0 : index
    %c0_297 = arith.constant 0 : index
    %623 = vector.load %arg51[%c0_295, %c0_296, %c0_297] : memref<1x16x256xf32, #tpu.memory_space<vmem>>, vector<1x16x256xf32>
    %624 = vector.shape_cast %623 : vector<1x16x256xf32> to vector<16x256xf32>
    %625 = vector.shape_cast %622 : vector<16x256xf32> to vector<1x16x256xf32>
    tpu.vector_store %arg51[%c0_295, %c0_296, %c0_297], %625 {strides = array<i32>} : memref<1x16x256xf32, #tpu.memory_space<vmem>>, vector<1x16x256xf32>,
    return
  }
  func.func @transform_0(%arg0: i32) -> i32 {
    %c0_i32 = arith.constant 0 : i32
    %c0_i32_0 = arith.constant 0 : i32
    return %c0_i32 : i32
  }
  func.func @transform_1(%arg0: i32) -> (i32, i32, i32) {
    %c0_i32 = arith.constant 0 : i32
    %c0_i32_0 = arith.constant 0 : i32
    %c0_i32_1 = arith.constant 0 : i32
    return %arg0, %c0_i32, %c0_i32_0 : i32, i32, i32
  }
  func.func @transform_2(%arg0: i32) -> (i32, i32) {
    %c0_i32 = arith.constant 0 : i32
    %c0_i32_0 = arith.constant 0 : i32
    %c0_i32_1 = arith.constant 0 : i32
    return %c0_i32, %c0_i32_0 : i32, i32
  }
  func.func @transform_3(%arg0: i32) -> (i32, i32) {
    %c0_i32 = arith.constant 0 : i32
    %c0_i32_0 = arith.constant 0 : i32
    %c0_i32_1 = arith.constant 0 : i32
    return %c0_i32, %c0_i32_0 : i32, i32
  }
  func.func @transform_4(%arg0: i32) -> (i32, i32) {
    %c0_i32 = arith.constant 0 : i32
    %c0_i32_0 = arith.constant 0 : i32
    %c0_i32_1 = arith.constant 0 : i32
    return %c0_i32, %c0_i32_0 : i32, i32
  }
  func.func @transform_5(%arg0: i32) -> (i32, i32) {
    %c0_i32 = arith.constant 0 : i32
    %c0_i32_0 = arith.constant 0 : i32
    %c0_i32_1 = arith.constant 0 : i32
    return %c0_i32, %c0_i32_0 : i32, i32
  }
  func.func @transform_6(%arg0: i32) -> (i32, i32) {
    %c0_i32 = arith.constant 0 : i32
    %c0_i32_0 = arith.constant 0 : i32
    %c0_i32_1 = arith.constant 0 : i32
    return %c0_i32, %c0_i32_0 : i32, i32
  }
  func.func @transform_7(%arg0: i32) -> (i32, i32) {
    %c0_i32 = arith.constant 0 : i32
    %c0_i32_0 = arith.constant 0 : i32
    %c0_i32_1 = arith.constant 0 : i32
    return %c0_i32, %c0_i32_0 : i32, i32
  }
  func.func @transform_8(%arg0: i32) -> (i32, i32) {
    %c0_i32 = arith.constant 0 : i32
    %c0_i32_0 = arith.constant 0 : i32
    %c0_i32_1 = arith.constant 0 : i32
    return %c0_i32, %c0_i32_0 : i32, i32
  }
  func.func @transform_9(%arg0: i32) -> (i32, i32) {
    %c0_i32 = arith.constant 0 : i32
    %c0_i32_0 = arith.constant 0 : i32
    %c0_i32_1 = arith.constant 0 : i32
    return %c0_i32, %c0_i32_0 : i32, i32
  }
  func.func @transform_10(%arg0: i32) -> (i32, i32) {
    %c0_i32 = arith.constant 0 : i32
    %c0_i32_0 = arith.constant 0 : i32
    %c0_i32_1 = arith.constant 0 : i32
    return %c0_i32, %c0_i32_0 : i32, i32
  }
  func.func @transform_11(%arg0: i32) -> (i32, i32) {
    %c0_i32 = arith.constant 0 : i32
    %c0_i32_0 = arith.constant 0 : i32
    %c0_i32_1 = arith.constant 0 : i32
    return %c0_i32, %c0_i32_0 : i32, i32
  }
  func.func @transform_12(%arg0: i32) -> (i32, i32) {
    %c0_i32 = arith.constant 0 : i32
    %c0_i32_0 = arith.constant 0 : i32
    %c0_i32_1 = arith.constant 0 : i32
    return %c0_i32, %c0_i32_0 : i32, i32
  }
  func.func @transform_13(%arg0: i32) -> (i32, i32) {
    %c0_i32 = arith.constant 0 : i32
    %c0_i32_0 = arith.constant 0 : i32
    %c0_i32_1 = arith.constant 0 : i32
    return %c0_i32, %c0_i32_0 : i32, i32
  }
  func.func @transform_14(%arg0: i32) -> (i32, i32) {
    %c0_i32 = arith.constant 0 : i32
    %c0_i32_0 = arith.constant 0 : i32
    %c0_i32_1 = arith.constant 0 : i32
    return %c0_i32, %c0_i32_0 : i32, i32
  }
  func.func @transform_15(%arg0: i32) -> (i32, i32) {
    %c0_i32 = arith.constant 0 : i32
    %c0_i32_0 = arith.constant 0 : i32
    %c0_i32_1 = arith.constant 0 : i32
    return %c0_i32, %c0_i32_0 : i32, i32
  }
  func.func @transform_16(%arg0: i32) -> (i32, i32) {
    %c0_i32 = arith.constant 0 : i32
    %c0_i32_0 = arith.constant 0 : i32
    %c0_i32_1 = arith.constant 0 : i32
    return %c0_i32, %c0_i32_0 : i32, i32
  }
  func.func @transform_17(%arg0: i32) -> (i32, i32) {
    %c0_i32 = arith.constant 0 : i32
    %c0_i32_0 = arith.constant 0 : i32
    %c0_i32_1 = arith.constant 0 : i32
    return %c0_i32, %c0_i32_0 : i32, i32
  }
  func.func @transform_18(%arg0: i32) -> (i32, i32) {
    %c0_i32 = arith.constant 0 : i32
    %c0_i32_0 = arith.constant 0 : i32
    %c0_i32_1 = arith.constant 0 : i32
    return %c0_i32, %c0_i32_0 : i32, i32
  }
  func.func @transform_19(%arg0: i32) -> (i32, i32) {
    %c0_i32 = arith.constant 0 : i32
    %c0_i32_0 = arith.constant 0 : i32
    %c0_i32_1 = arith.constant 0 : i32
    return %c0_i32, %c0_i32_0 : i32, i32
  }
  func.func @transform_20(%arg0: i32) -> (i32, i32) {
    %c0_i32 = arith.constant 0 : i32
    %c0_i32_0 = arith.constant 0 : i32
    %c0_i32_1 = arith.constant 0 : i32
    return %c0_i32, %c0_i32_0 : i32, i32
  }
  func.func @transform_21(%arg0: i32) -> (i32, i32) {
    %c0_i32 = arith.constant 0 : i32
    %c0_i32_0 = arith.constant 0 : i32
    %c0_i32_1 = arith.constant 0 : i32
    return %c0_i32, %c0_i32_0 : i32, i32
  }
  func.func @transform_22(%arg0: i32) -> (i32, i32) {
    %c0_i32 = arith.constant 0 : i32
    %c0_i32_0 = arith.constant 0 : i32
    %c0_i32_1 = arith.constant 0 : i32
    return %c0_i32, %c0_i32_0 : i32, i32
  }
  func.func @transform_23(%arg0: i32) -> (i32, i32) {
    %c0_i32 = arith.constant 0 : i32
    %c0_i32_0 = arith.constant 0 : i32
    %c0_i32_1 = arith.constant 0 : i32
    return %c0_i32, %c0_i32_0 : i32, i32
  }
  func.func @transform_24(%arg0: i32) -> (i32, i32) {
    %c0_i32 = arith.constant 0 : i32
    %c0_i32_0 = arith.constant 0 : i32
    %c0_i32_1 = arith.constant 0 : i32
    return %c0_i32, %c0_i32_0 : i32, i32
  }
  func.func @transform_25(%arg0: i32) -> (i32, i32) {
    %c0_i32 = arith.constant 0 : i32
    %c0_i32_0 = arith.constant 0 : i32
    %c0_i32_1 = arith.constant 0 : i32
    return %c0_i32, %c0_i32_0 : i32, i32
  }
  func.func @transform_26(%arg0: i32) -> (i32, i32) {
    %c0_i32 = arith.constant 0 : i32
    %c0_i32_0 = arith.constant 0 : i32
    %c0_i32_1 = arith.constant 0 : i32
    return %c0_i32, %c0_i32_0 : i32, i32
  }
  func.func @transform_27(%arg0: i32) -> (i32, i32) {
    %c0_i32 = arith.constant 0 : i32
    %c0_i32_0 = arith.constant 0 : i32
    %c0_i32_1 = arith.constant 0 : i32
    return %c0_i32, %c0_i32_0 : i32, i32
  }
  func.func @transform_28(%arg0: i32) -> (i32, i32, i32) {
    %c0_i32 = arith.constant 0 : i32
    %c0_i32_0 = arith.constant 0 : i32
    %c0_i32_1 = arith.constant 0 : i32
    %c0_i32_2 = arith.constant 0 : i32
    return %c0_i32, %c0_i32_0, %c0_i32_1 : i32, i32, i32
  }
  func.func @transform_29(%arg0: i32) -> (i32, i32) {
    %c0_i32 = arith.constant 0 : i32
    %c0_i32_0 = arith.constant 0 : i32
    %c0_i32_1 = arith.constant 0 : i32
    return %c0_i32, %c0_i32_0 : i32, i32
  }
  func.func @transform_30(%arg0: i32) -> (i32, i32) {
    %c0_i32 = arith.constant 0 : i32
    %c0_i32_0 = arith.constant 0 : i32
    %c0_i32_1 = arith.constant 0 : i32
    return %c0_i32, %c0_i32_0 : i32, i32
  }
  func.func @transform_31(%arg0: i32) -> (i32, i32) {
    %c0_i32 = arith.constant 0 : i32
    %c0_i32_0 = arith.constant 0 : i32
    %c0_i32_1 = arith.constant 0 : i32
    return %c0_i32, %c0_i32_0 : i32, i32
  }
  func.func @transform_32(%arg0: i32) -> (i32, i32) {
    %c0_i32 = arith.constant 0 : i32
    %c0_i32_0 = arith.constant 0 : i32
    %c0_i32_1 = arith.constant 0 : i32
    return %c0_i32, %c0_i32_0 : i32, i32
  }
  func.func @transform_33(%arg0: i32) -> (i32, i32) {
    %c0_i32 = arith.constant 0 : i32
    %c0_i32_0 = arith.constant 0 : i32
    %c0_i32_1 = arith.constant 0 : i32
    return %c0_i32, %c0_i32_0 : i32, i32
  }
  func.func @transform_34(%arg0: i32) -> (i32, i32) {
    %c0_i32 = arith.constant 0 : i32
    %c0_i32_0 = arith.constant 0 : i32
    %c0_i32_1 = arith.constant 0 : i32
    return %c0_i32, %c0_i32_0 : i32, i32
  }
  func.func @transform_35(%arg0: i32) -> (i32, i32) {
    %c0_i32 = arith.constant 0 : i32
    %c0_i32_0 = arith.constant 0 : i32
    %c0_i32_1 = arith.constant 0 : i32
    return %c0_i32, %c0_i32_0 : i32, i32
  }
  func.func @transform_36(%arg0: i32) -> (i32, i32) {
    %c0_i32 = arith.constant 0 : i32
    %c0_i32_0 = arith.constant 0 : i32
    %c0_i32_1 = arith.constant 0 : i32
    return %c0_i32, %c0_i32_0 : i32, i32
  }
  func.func @transform_37(%arg0: i32) -> (i32, i32) {
    %c0_i32 = arith.constant 0 : i32
    %c0_i32_0 = arith.constant 0 : i32
    %c0_i32_1 = arith.constant 0 : i32
    return %c0_i32, %c0_i32_0 : i32, i32
  }
  func.func @transform_38(%arg0: i32) -> (i32, i32) {
    %c0_i32 = arith.constant 0 : i32
    %c0_i32_0 = arith.constant 0 : i32
    %c0_i32_1 = arith.constant 0 : i32
    return %c0_i32, %c0_i32_0 : i32, i32
  }
  func.func @transform_39(%arg0: i32) -> (i32, i32) {
    %c0_i32 = arith.constant 0 : i32
    %c0_i32_0 = arith.constant 0 : i32
    %c0_i32_1 = arith.constant 0 : i32
    return %c0_i32, %c0_i32_0 : i32, i32
  }
  func.func @transform_40(%arg0: i32) -> (i32, i32) {
    %c0_i32 = arith.constant 0 : i32
    %c0_i32_0 = arith.constant 0 : i32
    %c0_i32_1 = arith.constant 0 : i32
    return %c0_i32, %c0_i32_0 : i32, i32
  }
  func.func @transform_41(%arg0: i32) -> (i32, i32, i32) {
    %c0_i32 = arith.constant 0 : i32
    %c0_i32_0 = arith.constant 0 : i32
    %c0_i32_1 = arith.constant 0 : i32
    %c0_i32_2 = arith.constant 0 : i32
    return %c0_i32, %c0_i32_0, %c0_i32_1 : i32, i32, i32
  }
  func.func @transform_42(%arg0: i32) -> (i32, i32) {
    %c0_i32 = arith.constant 0 : i32
    %c0_i32_0 = arith.constant 0 : i32
    %c0_i32_1 = arith.constant 0 : i32
    return %c0_i32, %c0_i32_0 : i32, i32
  }
  func.func @transform_43(%arg0: i32) -> (i32, i32) {
    %c0_i32 = arith.constant 0 : i32
    %c0_i32_0 = arith.constant 0 : i32
    %c0_i32_1 = arith.constant 0 : i32
    return %c0_i32, %c0_i32_0 : i32, i32
  }
  func.func @transform_44(%arg0: i32) -> (i32, i32) {
    %c0_i32 = arith.constant 0 : i32
    %c0_i32_0 = arith.constant 0 : i32
    %c0_i32_1 = arith.constant 0 : i32
    return %c0_i32, %c0_i32_0 : i32, i32
  }
  func.func @transform_45(%arg0: i32) -> (i32, i32) {
    %c0_i32 = arith.constant 0 : i32
    %c0_i32_0 = arith.constant 0 : i32
    %c0_i32_1 = arith.constant 0 : i32
    return %c0_i32, %c0_i32_0 : i32, i32
  }
  func.func @transform_46(%arg0: i32) -> (i32, i32) {
    %c0_i32 = arith.constant 0 : i32
    %c0_i32_0 = arith.constant 0 : i32
    %c0_i32_1 = arith.constant 0 : i32
    return %c0_i32, %c0_i32_0 : i32, i32
  }
  func.func @transform_47(%arg0: i32) -> (i32, i32) {
    %c0_i32 = arith.constant 0 : i32
    %c0_i32_0 = arith.constant 0 : i32
    %c0_i32_1 = arith.constant 0 : i32
    return %c0_i32, %c0_i32_0 : i32, i32
  }
  func.func @transform_48(%arg0: i32) -> (i32, i32) {
    %c0_i32 = arith.constant 0 : i32
    %c0_i32_0 = arith.constant 0 : i32
    %c0_i32_1 = arith.constant 0 : i32
    return %c0_i32, %c0_i32_0 : i32, i32
  }
  func.func @transform_49(%arg0: i32) -> (i32, i32) {
    %c0_i32 = arith.constant 0 : i32
    %c0_i32_0 = arith.constant 0 : i32
    %c0_i32_1 = arith.constant 0 : i32
    return %c0_i32, %c0_i32_0 : i32, i32
  }
  func.func @transform_50(%arg0: i32) -> (i32, i32, i32) {
    %c0_i32 = arith.constant 0 : i32
    %c0_i32_0 = arith.constant 0 : i32
    %c0_i32_1 = arith.constant 0 : i32
    return %arg0, %c0_i32, %c0_i32_0 : i32, i32, i32
  }
}

</mosaic_0001>

<bundles_post_ra>
// kernel: tpu_custom_call.1
= control target key start
LH: loop header
LB: loop body
LE: loop exit
PB: predicated region body
PF: predicated region fallthrough
CT: control target
= control target key end

     0   :  { %s12671_s6 = smov 1   ;;  %s12672_s10 = smov 2   ;;  %s14581_s0 = inlined_call_operand.smem [shape: u32[51], index: -1, kind: input, shape index: {}] }
   0x1   :  { %s12809_s5 = sld [smem:[%s14581_s0]]   ;;  %s12673_s14 = smov 3  }
   0x2   :  { %s12814_s9 = sld [smem:[%s14581_s0 + %s12671_s6]]   ;;  %s12674_s18 = smov 4  }
   0x3   :  { %s12819_s13 = sld [smem:[%s14581_s0 + %s12672_s10]]   ;;  %s12675_s22 = smov 5  }
   0x4   :  { %s12824_s17 = sld [smem:[%s14581_s0 + %s12673_s14]]   ;;  %s12676_s26 = smov 6  }
   0x5   :  { %s12829_s21 = sld [smem:[%s14581_s0 + %s12674_s18]]   ;;  %s12677_s30 = smov 7  }
   0x6   :  { %s12834_s25 = sld [smem:[%s14581_s0 + %s12675_s22]]   ;;  %s12678_s4 = smov 8  }
   0x7   :  { %14672 = sst [smem:[#allocation107_spill]] %s12809_s5  ;;  %s12679_s10 = smov 9  }
   0x8   :  { %14673 = sst [smem:[#allocation108_spill]] %s12814_s9  ;;  %s12680_s15 = smov 10  }
   0x9   :  { %14674 = sst [smem:[#allocation109_spill]] %s12819_s13  ;;  %s12681_s20 = smov 11  }
   0xa   :  { %14675 = sst [smem:[#allocation110_spill]] %s12824_s17  ;;  %s12683_s1 = smov 13  }
   0xb   :  { %s12839_s29 = sld [smem:[%s14581_s0 + %s12676_s26]]   ;;  %s12682_s26 = smov 12  }
   0xc   :  { %14676 = sst [smem:[#allocation111_spill]] %s12834_s25  ;;  %s12684_s7 = smov 14  }
   0xd   :  { %s12844_s3 = sld [smem:[%s14581_s0 + %s12677_s30]]   ;;  %s12686_s22 = smov 16  }
   0xe   :  { %s12849_s8 = sld [smem:[%s14581_s0 + %s12678_s4]]   ;;  %s12687_s28 = smov 17  }
   0xf   :  { %s12854_s14 = sld [smem:[%s14581_s0 + %s12679_s10]]  }
  0x10   :  { %s12859_s19 = sld [smem:[%s14581_s0 + %s12680_s15]]   ;;  %s12685_s15 = smov 15  }
  0x11   :  { %s12864_s24 = sld [smem:[%s14581_s0 + %s12681_s20]]  }
  0x12   :  { %s12869_s30 = sld [smem:[%s14581_s0 + %s12682_s26]]  }
  0x13   :  { %14677 = sst [smem:[#allocation112_spill]] %s12844_s3 }
  0x14   :  { %14678 = sst [smem:[#allocation113_spill]] %s12849_s8 }
  0x15   :  { %14679 = sst [smem:[#allocation114_spill]] %s12854_s14 }
  0x16   :  { %14680 = sst [smem:[#allocation115_spill]] %s12859_s19 }
  0x17   :  { %14681 = sst [smem:[#allocation116_spill]] %s12864_s24 }
  0x18   :  { %s12874_s6 = sld [smem:[%s14581_s0 + %s12683_s1]]  }
  0x19   :  { %s12879_s12 = sld [smem:[%s14581_s0 + %s12684_s7]]   ;;  %s12688_s7 = smov 18  }
  0x1a   :  { %s12884_s20 = sld [smem:[%s14581_s0 + %s12685_s15]]   ;;  %s12689_s15 = smov 19  }
  0x1b   :  { %s12889_s27 = sld [smem:[%s14581_s0 + %s12686_s22]]   ;;  %s12690_s22 = smov 20  }
  0x1c   :  { %s12894_s4 = sld [smem:[%s14581_s0 + %s12687_s28]]   ;;  %s12691_s28 = smov 21  }
  0x1d   :  { %s12899_s9 = sld [smem:[%s14581_s0 + %s12688_s7]]   ;;  %s12692_s7 = smov 22  }
  0x1e   :  { %14682 = sst [smem:[#allocation117_spill]] %s12874_s6 }
  0x1f   :  { %14683 = sst [smem:[#allocation118_spill]] %s12879_s12 }
  0x20   :  { %14684 = sst [smem:[#allocation119_spill]] %s12884_s20 }
  0x21   :  { %s12904_s20 = sld [smem:[%s14581_s0 + %s12689_s15]]   ;;  %s12693_s15 = smov 23  }
  0x22   :  { %14685 = sst [smem:[#allocation120_spill]] %s12894_s4 }
  0x23   :  { %14686 = sst [smem:[#allocation121_spill]] %s12899_s9 }
  0x24   :  { %s12909_s6 = sld [smem:[%s14581_s0 + %s12690_s22]]   ;;  %s12694_s22 = smov 24  }
  0x25   :  { %s12914_s4 = sld [smem:[%s14581_s0 + %s12691_s28]]   ;;  %s12695_s28 = smov 25  }
  0x26   :  { %s12919_s24 = sld [smem:[%s14581_s0 + %s12692_s7]]   ;;  %s12696_s7 = smov 26  }
  0x27   :  { %14687 = sst [smem:[#allocation122_spill]] %s12904_s20 }
  0x28   :  { %s12924_s20 = sld [smem:[%s14581_s0 + %s12693_s15]]   ;;  %s12697_s15 = smov 27  }
  0x29   :  { %s12929_s14 = sld [smem:[%s14581_s0 + %s12694_s22]]   ;;  %s12698_s22 = smov 28  }
  0x2a   :  { %14688 = sst [smem:[#allocation123_spill]] %s12909_s6 }
  0x2b   :  { %14689 = sst [smem:[#allocation124_spill]] %s12914_s4 }
  0x2c   :  { %s12934_s4 = sld [smem:[%s14581_s0 + %s12695_s28]]   ;;  %s12699_s28 = smov 29  }
  0x2d   :  { %s12939_s3 = sld [smem:[%s14581_s0 + %s12696_s7]]   ;;  %s12700_s7 = smov 30  }
  0x2e   :  { %14690 = sst [smem:[#allocation125_spill]] %s12924_s20 }
  0x2f   :  { %14691 = sst [smem:[#allocation126_spill]] %s12929_s14 }
  0x30   :  { %s12944_s20 = sld [smem:[%s14581_s0 + %s12697_s15]]   ;;  %s12701_s15 = smov 31  }
  0x31   :  { %s12949_s25 = sld [smem:[%s14581_s0 + %s12698_s22]]   ;;  %s12702_s22 = smov 32  }
  0x32   :  { %14692 = sst [smem:[#allocation127_spill]] %s12934_s4 }
  0x33   :  { %14693 = sst [smem:[#allocation128_spill]] %s12939_s3 }
  0x34   :  { %s12954_s4 = sld [smem:[%s14581_s0 + %s12699_s28]]   ;;  %s12703_s28 = smov 33  }
  0x35   :  { %s12959_s17 = sld [smem:[%s14581_s0 + %s12700_s7]]   ;;  %s12704_s7 = smov 34  }
  0x36   :  { %14694 = sst [smem:[#allocation129_spill]] %s12944_s20 }
  0x37   :  { %s12964_s20 = sld [smem:[%s14581_s0 + %s12701_s15]]   ;;  %s12705_s15 = smov 35  }
  0x38   :  { %s12969_s5 = sld [smem:[%s14581_s0 + %s12702_s22]]   ;;  %s12706_s22 = smov 36  }
  0x3a   :  { %14695 = sst [smem:[#allocation130_spill]] %s12954_s4 }
  0x3b   :  { %14696 = sst [smem:[#allocation131_spill]] %s12959_s17 }
  0x3c   :  { %s12974_s4 = sld [smem:[%s14581_s0 + %s12703_s28]]   ;;  %s12707_s28 = smov 37  }
  0x3d   :  { %14697 = sst [smem:[#allocation132_spill]] %s12964_s20 }
  0x3e   :  { %14698 = sst [smem:[#allocation133_spill]] %s12969_s5 }
  0x3f   :  { %s12979_s17 = sld [smem:[%s14581_s0 + %s12704_s7]]   ;;  %s12708_s7 = smov 38  }
  0x40   :  { %s12984_s20 = sld [smem:[%s14581_s0 + %s12705_s15]]   ;;  %s12709_s15 = smov 39  }
  0x41   :  { %s12989_s5 = sld [smem:[%s14581_s0 + %s12706_s22]]   ;;  %s12710_s22 = smov 40  }
  0x42   :  { %14699 = sst [smem:[#allocation134_spill]] %s12974_s4 }
  0x43   :  { %s12994_s4 = sld [smem:[%s14581_s0 + %s12707_s28]]   ;;  %s12711_s28 = smov 41  }
  0x45   :  { %14700 = sst [smem:[#allocation135_spill]] %s12979_s17 }
  0x46   :  { %14701 = sst [smem:[#allocation136_spill]] %s12984_s20 }
  0x47   :  { %14702 = sst [smem:[#allocation137_spill]] %s12989_s5 }
  0x48   :  { %s12999_s17 = sld [smem:[%s14581_s0 + %s12708_s7]]   ;;  %s12712_s7 = smov 42  }
  0x49   :  { %14703 = sst [smem:[#allocation138_spill]] %s12994_s4 }
  0x4a   :  { %s13004_s20 = sld [smem:[%s14581_s0 + %s12709_s15]]   ;;  %s12713_s15 = smov 43  }
  0x4b   :  { %s13009_s5 = sld [smem:[%s14581_s0 + %s12710_s22]]   ;;  %s12714_s22 = smov 44  }
  0x4c   :  { %s13014_s4 = sld [smem:[%s14581_s0 + %s12711_s28]]   ;;  %s12715_s28 = smov 45  }
  0x4e   :  { %14704 = sst [smem:[#allocation139_spill]] %s12999_s17 }
  0x4f   :  { %s13019_s17 = sld [smem:[%s14581_s0 + %s12712_s7]]   ;;  %s12716_s7 = smov 46  }
  0x50   :  { %14705 = sst [smem:[#allocation140_spill]] %s13004_s20 }
  0x51   :  { %14706 = sst [smem:[#allocation141_spill]] %s13009_s5 }
  0x52   :  { %14707 = sst [smem:[#allocation142_spill]] %s13014_s4 }
  0x53   :  { %s13024_s20 = sld [smem:[%s14581_s0 + %s12713_s15]]   ;;  %s12717_s15 = smov 47  }
  0x54   :  { %s13029_s5 = sld [smem:[%s14581_s0 + %s12714_s22]]   ;;  %s12718_s22 = smov 48  }
  0x55   :  { %14708 = sst [smem:[#allocation143_spill]] %s13019_s17 }
  0x56   :  { %s13034_s4 = sld [smem:[%s14581_s0 + %s12715_s28]]   ;;  %s12719_s28 = smov 49  }
  0x57   :  { %s13039_s17 = sld [smem:[%s14581_s0 + %s12716_s7]]   ;;  %s12720_s7 = smov 50  }
  0x59   :  { %14709 = sst [smem:[#allocation144_spill]] %s13024_s20 }
  0x5a   :  { %14710 = sst [smem:[#allocation145_spill]] %s13029_s5 }
  0x5b   :  { %s13044_s20 = sld [smem:[%s14581_s0 + %s12717_s15]]  }
  0x5c   :  { %14711 = sst [smem:[#allocation146_spill]] %s13034_s4 }
  0x5d   :  { %14712 = sst [smem:[#allocation147_spill]] %s13039_s17 }
  0x5e   :  { %s13049_s5 = sld [smem:[%s14581_s0 + %s12718_s22]]  }
  0x5f   :  { %s13054_s4 = sld [smem:[%s14581_s0 + %s12719_s28]]  }
  0x60   :  { %s13059_s17 = sld [smem:[%s14581_s0 + %s12720_s7]]  }
  0x64   :  { %14713 = sst [smem:[#allocation148_spill]] %s13049_s5 }
  0x66   :  { %14714 = sst [smem:[#allocation149_spill]] %s13059_s17 }
  0x67   :  { %106 = vsyncpa [#allocation5], 0 }
  0x68   :  { %107 = vsyncpa [#allocation3], 0 }
  0x69   :  { %109 = vsyncpa [#allocation3 + $0x1], 0 }
  0x6a   :  { %110 = vsyncpa [#allocation8], 0 }
  0x6b   :  { %111 = vsyncpa [#allocation11], 0 }
  0x6c   :  { %112 = vsyncpa [#allocation14], 0 }
  0x6d   :  { %113 = vsyncpa [#allocation17], 0 }
  0x6e   :  { %114 = vsyncpa [#allocation20], 0 }
  0x6f   :  { %115 = vsyncpa [#allocation23], 0 }
  0x70   :  { %116 = vsyncpa [#allocation26], 0 }
  0x71   :  { %117 = vsyncpa [#allocation29], 0 }
  0x72   :  { %118 = vsyncpa [#allocation32], 0 }
  0x73   :  { %119 = vsyncpa [#allocation35], 0 }
  0x74   :  { %120 = vsyncpa [#allocation38], 0 }
  0x75   :  { %121 = vsyncpa [#allocation41], 0 }
  0x76   :  { %122 = vsyncpa [#allocation44], 0 }
  0x77   :  { %123 = vsyncpa [#allocation47], 0 }
  0x78   :  { %124 = vsyncpa [#allocation50], 0 }
  0x79   :  { %125 = vsyncpa [#allocation53], 0 }
  0x7a   :  { %126 = vsyncpa [#allocation56], 0 }
  0x7b   :  { %127 = vsyncpa [#allocation59], 0 }
  0x7c   :  { %128 = vsyncpa [#allocation62], 0 }
  0x7d   :  { %129 = vsyncpa [#allocation65], 0 }
  0x7e   :  { %130 = vsyncpa [#allocation68], 0 }
  0x7f   :  { %131 = vsyncpa [#allocation71], 0 }
  0x80   :  { %132 = vsyncpa [#allocation74], 0 }
  0x81   :  { %133 = vsyncpa [#allocation77], 0 }
  0x82   :  { %134 = vsyncpa [#allocation4], 0 }
  0x83   :  { %136 = vsyncpa [#allocation4 + $0x1], 0  ;;  %s13061_s0 = smov 0   ;;  %s13063_s15 = smov 0  }
  0x84   :  { %s13065_s16 = smov 0   ;;  %s13067_s18 = smov 0  }
  0x85 LB: > { %s14715_s19 = sld [smem:[#allocation115_spill]]  ;;  %s14716_s14 = sld [smem:[#allocation126_spill]]  ;;  %s12657_s0 = sphi %s13061_s0, %s14835_s0   ;;  %s12669_s18 = sphi %s13067_s18, %s14834_s18   ;;  %s12665_s16 = sphi %s13065_s16, %s14838_s16   ;;  %s12661_s15 = sphi %s13063_s15, %s14837_s15  }
  0x86   : > { %s14717_s5 = sld [smem:[#allocation148_spill]]  ;;  %s14718_s13 = sld [smem:[#allocation109_spill]] }
  0x87   : > { %s14719_s12 = sld [smem:[#allocation118_spill]]  ;;  %s14720_s9 = sld [smem:[#allocation121_spill]] }
  0x88   : > { %s14721_s3 = sld [smem:[#allocation128_spill]]  ;;  %s14722_s8 = sld [smem:[#allocation113_spill]] }
  0x89   : > { %s14723_s6 = sld [smem:[#allocation123_spill]]  ;;  %14724 = sst [smem:[#allocation150_spill]] %s12657_s0 }
  0x8a   : > { %14725 = sst [smem:[#allocation151_spill]] %s12661_s15  ;;  %s13082_s22 = sadd.s32 4294967295, %s12669_s18  }
  0x8b   : > { %s9415_s23 = sadd.s32 4294967294, %s12669_s18   ;;  %s13086_s26 = sadd.s32 1, %s12669_s18  }
  0x8c   : > { %14726 = sst [smem:[#allocation152_spill]] %s13086_s26  ;;  %s170_s28 = sadd.s32 1, %s12665_s16 }
  0x8d   : > { %s167_s1 = ssub.s32 %s12669_s18, %s13086_s26  ;;  %p177_p0 = scmp.ne.s32.totalorder %s12665_s16, %s12661_s15 }
  0x8e   : > { %p168_p1 = scmp.eq.s32.totalorder %s167_s1, 0  ;;  %p178_p2 = scmp.eq.s32.totalorder %s12669_s18, 0 }
  0x8f   : > { %p183_p3 = scmp.ne.s32.totalorder %s12661_s15, %s12657_s0  ;;  %p14670_p4 = scmp.eq.s32.totalorder %s13082_s22, 0 }
  0x90   : > { %s13098_s2 = scalar_select %p168_p1, %s12665_s16, %s170_s28  }
  0x91   : > { %p13100_p5 = por %p178_p2, %p177_p0  ;;  %p13106_p6 = por %p14670_p4, %p183_p3 }
  0x92   : > { %14727 = sst [smem:[#allocation153_spill]] %s13098_s2  ;;  %p1215_p7 = scmp.eq.s32.totalorder %s13082_s22, 1 }
  0x93   : > { %s14729_s10 = scalar_select %p13106_p6, 1, 0 }
  0x94   : > { %p1221_p8 = scmp.eq.s32.totalorder %s9415_s23, 1  ;;  %p9416_p9 = scmp.ge.s32.totalorder %s12669_s18, 1 }
  0x95   : > { %14730 = sst [smem:[#allocation154_spill]] %s14729_s10  ;;  %p1228_p10 = scmp.lt.s32.totalorder %s12669_s18, 3 }
  0x96   : > { %p13113_p11 = por %p1215_p7, %p177_p0  ;;  %p13117_p12 = por %p1221_p8, %p183_p3 }
  0x97   : > { %p13121_p13 = pnand %p9416_p9, %p1228_p10 }
  0x98   : > { %s14731_s11 = scalar_select %p13113_p11, 1, 0 }
  0x99   : > { %s14733_s28 = scalar_select %p13117_p12, 1, 0 }
  0x9a   : > { %14732 = sst [smem:[#allocation155_spill]] %s14731_s11  ;;  %1232 = sbr.rel (%p13121_p13) target bundleno = 1354 (0x54a), region = 12 }
  0x9b   : > { %14734 = sst [smem:[#allocation156_spill]] %s14733_s28  ;;  %s12721_s2 = smov (!%p13121_p13), [#allocation7]  }
  0x9c   : > { %s14735_s1 = scalar_select %p13121_p13, 1, 0 }
  0x9d   : > { %s1249_s23 = sshll.u32 (!%p13121_p13), %s12721_s2, 4  ;;  %s11213_s26 = scalar_lea.hbm (!%p13121_p13), %s14718_s13, 256  ;;  %s1250_s23 = int_to_ptr.vmem [resolvable:$true] %s1249_s23 }
  0x9e   : > { %p11214_p0 = scmp.ne.s32.totalorder (!%p13121_p13), %s14718_s13, %s11213_s26  ;;  %p11219_p3 = scmp.lt.u32.totalorder (!%p13121_p13), %s11213_s26, %s14718_s13 }
  0xa0   : > { %p11215_p1 = pnand (!%p13121_p13), %p11214_p0, %p14670_p4 }
  0xa2   : > { %p11216_p2 = pneg %p11215_p1 }
  0xa4   : > { %p11221_p7 = pnand %p11219_p3, %p11216_p2 }
  0xa6   : > { %11224 = shalt.err (!%p11221_p7)
}
  0xa7   : > { %s11225_s28 = scalar_lea.vmem %s1250_s23, 256  ;;  %p11232_p12 = scmp.lt.s32.totalorder %s1250_s23, %s1250_s23 }
  0xa8   : > { %p11226_p8 = scmp.ne.s32.totalorder %s1250_s23, %s11225_s28  ;;  %p11233_p11 = scmp.lt.s32.totalorder %s11225_s28, %s11225_s28 }
  0xaa   : > { %p11227_p9 = pnand %p11226_p8, %p14670_p4  ;;  %p11234_p6 = por %p11233_p11, %p11232_p12 }
  0xac   : > { %p11228_p10 = pneg %p11227_p9 }
  0xae   : > { %p11235_p13 = pnand %p11234_p6, %p11228_p10 }
  0xb0   : > { %11238 = shalt.err (!%p11235_p13)
}
  0xb1   : > { %s14628_s2 = smov 128   ;;  %s14630_s26 = smov 8  }
  0xb2   : > { %10588 = dma.hbm_to_vmem [thread:$0]  (%p14670_p4), %s14718_s13, 256, %s1250_s23, [#allocation8], %s14628_s2, %s14628_s2, %s14630_s26  }
  0xb3   : > { %s12724_s0 = smov [#allocation10]   ;;  %s12725_s28 = smov [#allocation13]  }
  0xb4   : > { %s1275_s11 = sshll.u32 %s12724_s0, 4  ;;  %s1300_s17 = sshll.u32 %s12725_s28, 4  ;;  %s1276_s11 = int_to_ptr.vmem [resolvable:$true] %s1275_s11  ;;  %s1301_s17 = int_to_ptr.vmem [resolvable:$true] %s1300_s17 }
  0xb5   : > { %s11239_s10 = scalar_lea.hbm %s12829_s21, 256 }
  0xb6   : > { %p11240_p6 = scmp.ne.s32.totalorder %s12829_s21, %s11239_s10  ;;  %p11245_p13 = scmp.lt.u32.totalorder %s11239_s10, %s12829_s21 }
  0xb8   : > { %p11241_p11 = pnand %p11240_p6, %p14670_p4 }
  0xba   : > { %p11242_p12 = pneg %p11241_p11 }
  0xbc   : > { %p11247_p0 = pnand %p11245_p13, %p11242_p12 }
  0xbe   : > { %11250 = shalt.err (!%p11247_p0)
}
  0xbf   : > { %s11251_s15 = scalar_lea.vmem %s1276_s11, 256  ;;  %p11258_p7 = scmp.lt.s32.totalorder %s1276_s11, %s1276_s11 }
  0xc0   : > { %p11252_p1 = scmp.ne.s32.totalorder %s1276_s11, %s11251_s15  ;;  %p11259_p8 = scmp.lt.s32.totalorder %s11251_s15, %s11251_s15 }
  0xc2   : > { %p11253_p2 = pnand %p11252_p1, %p14670_p4  ;;  %p11260_p9 = por %p11259_p8, %p11258_p7 }
  0xc4   : > { %p11254_p3 = pneg %p11253_p2 }
  0xc6   : > { %p11261_p10 = pnand %p11260_p9, %p11254_p3 }
  0xc8   : > { %11264 = shalt.err (!%p11261_p10)
}
  0xc9   : > { %10592 = dma.hbm_to_vmem [thread:$0]  (%p14670_p4), %s12829_s21, 256, %s1276_s11, [#allocation11], %s14628_s2, %s14628_s2, %s14630_s26  }
  0xca   : > { %s11265_s0 = scalar_lea.hbm %s12839_s29, 64 }
  0xcb   : > { %p11266_p6 = scmp.ne.s32.totalorder %s12839_s29, %s11265_s0  ;;  %p11271_p13 = scmp.lt.u32.totalorder %s11265_s0, %s12839_s29 }
  0xcd   : > { %p11267_p11 = pnand %p11266_p6, %p14670_p4 }
  0xcf   : > { %p11268_p12 = pneg %p11267_p11 }
  0xd1   : > { %p11273_p0 = pnand %p11271_p13, %p11268_p12 }
  0xd3   : > { %11276 = shalt.err (!%p11273_p0)
}
  0xd4   : > { %s11277_s15 = scalar_lea.vmem %s1301_s17, 64  ;;  %p11284_p7 = scmp.lt.s32.totalorder %s1301_s17, %s1301_s17 }
  0xd5   : > { %p11278_p1 = scmp.ne.s32.totalorder %s1301_s17, %s11277_s15  ;;  %p11285_p8 = scmp.lt.s32.totalorder %s11277_s15, %s11277_s15 }
  0xd7   : > { %p11279_p2 = pnand %p11278_p1, %p14670_p4  ;;  %p11286_p9 = por %p11285_p8, %p11284_p7 }
  0xd9   : > { %p11280_p3 = pneg %p11279_p2 }
  0xdb   : > { %p11287_p10 = pnand %p11286_p9, %p11280_p3 }
  0xdd   : > { %11290 = shalt.err (!%p11287_p10)
}
  0xde   : > { %10596 = dma.hbm_to_vmem [thread:$0]  (%p14670_p4), %s12839_s29, 64, %s1301_s17, [#allocation14]  }
  0xdf   : > { %s12726_s10 = smov [#allocation16]   ;;  %s12727_s23 = smov [#allocation19]  }
  0xe0   : > { %s1321_s11 = sshll.u32 %s12726_s10, 4  ;;  %s1345_s28 = sshll.u32 %s12727_s23, 4  ;;  %s1322_s11 = int_to_ptr.vmem [resolvable:$true] %s1321_s11  ;;  %s1346_s28 = int_to_ptr.vmem [resolvable:$true] %s1345_s28 }
  0xe1   : > { %s11291_s0 = scalar_lea.hbm %s14722_s8, 256 }
  0xe2   : > { %p11292_p6 = scmp.ne.s32.totalorder %s14722_s8, %s11291_s0  ;;  %p11297_p13 = scmp.lt.u32.totalorder %s11291_s0, %s14722_s8 }
  0xe4   : > { %p11293_p11 = pnand %p11292_p6, %p14670_p4 }
  0xe6   : > { %p11294_p12 = pneg %p11293_p11 }
  0xe8   : > { %p11299_p0 = pnand %p11297_p13, %p11294_p12 }
  0xea   : > { %11302 = shalt.err (!%p11299_p0)
}
  0xeb   : > { %s11303_s15 = scalar_lea.vmem %s1322_s11, 256  ;;  %p11310_p7 = scmp.lt.s32.totalorder %s1322_s11, %s1322_s11 }
  0xec   : > { %p11304_p1 = scmp.ne.s32.totalorder %s1322_s11, %s11303_s15  ;;  %p11311_p8 = scmp.lt.s32.totalorder %s11303_s15, %s11303_s15 }
  0xee   : > { %p11305_p2 = pnand %p11304_p1, %p14670_p4  ;;  %p11312_p9 = por %p11311_p8, %p11310_p7 }
  0xf0   : > { %p11306_p3 = pneg %p11305_p2 }
  0xf2   : > { %p11313_p10 = pnand %p11312_p9, %p11306_p3 }
  0xf4   : > { %11316 = shalt.err (!%p11313_p10)
}
  0xf5   : > { %10600 = dma.hbm_to_vmem [thread:$0]  (%p14670_p4), %s14722_s8, 256, %s1322_s11, [#allocation17], %s14628_s2, %s14628_s2, %s14630_s26  }
  0xf6   : > { %s11317_s17 = scalar_lea.hbm %s14715_s19, 128 }
  0xf7   : > { %p11318_p6 = scmp.ne.s32.totalorder %s14715_s19, %s11317_s17  ;;  %p11323_p13 = scmp.lt.u32.totalorder %s11317_s17, %s14715_s19 }
  0xf9   : > { %p11319_p11 = pnand %p11318_p6, %p14670_p4 }
  0xfb   : > { %p11320_p12 = pneg %p11319_p11 }
  0xfd   : > { %p11325_p0 = pnand %p11323_p13, %p11320_p12 }
  0xff   : > { %11328 = shalt.err (!%p11325_p0)
}
 0x100   : > { %s11329_s10 = scalar_lea.vmem %s1346_s28, 128  ;;  %p11336_p7 = scmp.lt.s32.totalorder %s1346_s28, %s1346_s28 }
 0x101   : > { %p11330_p1 = scmp.ne.s32.totalorder %s1346_s28, %s11329_s10  ;;  %p11337_p8 = scmp.lt.s32.totalorder %s11329_s10, %s11329_s10 }
 0x103   : > { %p11331_p2 = pnand %p11330_p1, %p14670_p4  ;;  %p11338_p9 = por %p11337_p8, %p11336_p7 }
 0x105   : > { %p11332_p3 = pneg %p11331_p2 }
 0x107   : > { %p11339_p10 = pnand %p11338_p9, %p11332_p3 }
 0x109   : > { %11342 = shalt.err (!%p11339_p10)
}
 0x10a   : > { %s14634_s11 = smov 64   ;;  %s14636_s23 = smov 4  }
 0x10b   : > { %10604 = dma.hbm_to_vmem [thread:$0]  (%p14670_p4), %s14715_s19, 128, %s1346_s28, [#allocation20], %s14634_s11, %s14634_s11, %s14636_s23  }
 0x10c   : > { %s12730_s0 = smov [#allocation22]   ;;  %s12731_s17 = smov [#allocation25]  }
 0x10d   : > { %s1370_s15 = sshll.u32 %s12730_s0, 4  ;;  %s1392_s10 = sshll.u32 %s12731_s17, 4  ;;  %s1371_s15 = int_to_ptr.vmem [resolvable:$true] %s1370_s15  ;;  %s1393_s10 = int_to_ptr.vmem [resolvable:$true] %s1392_s10 }
 0x10e   : > { %s11343_s2 = scalar_lea.hbm %s12869_s30, 64 }
 0x10f   : > { %p11344_p6 = scmp.ne.s32.totalorder %s12869_s30, %s11343_s2  ;;  %p11349_p13 = scmp.lt.u32.totalorder %s11343_s2, %s12869_s30 }
 0x111   : > { %p11345_p11 = pnand %p11344_p6, %p14670_p4 }
 0x113   : > { %p11346_p12 = pneg %p11345_p11 }
 0x115   : > { %p11351_p0 = pnand %p11349_p13, %p11346_p12 }
 0x117   : > { %11354 = shalt.err (!%p11351_p0)
}
 0x118   : > { %s11355_s26 = scalar_lea.vmem %s1371_s15, 64  ;;  %p11362_p7 = scmp.lt.s32.totalorder %s1371_s15, %s1371_s15 }
 0x119   : > { %p11356_p1 = scmp.ne.s32.totalorder %s1371_s15, %s11355_s26  ;;  %p11363_p8 = scmp.lt.s32.totalorder %s11355_s26, %s11355_s26 }
 0x11b   : > { %p11357_p2 = pnand %p11356_p1, %p14670_p4  ;;  %p11364_p9 = por %p11363_p8, %p11362_p7 }
 0x11d   : > { %p11358_p3 = pneg %p11357_p2 }
 0x11f   : > { %p11365_p10 = pnand %p11364_p9, %p11358_p3 }
 0x121   : > { %11368 = shalt.err (!%p11365_p10)
}
 0x122   : > { %10608 = dma.hbm_to_vmem [thread:$0]  (%p14670_p4), %s12869_s30, 64, %s1371_s15, [#allocation23]  }
 0x123   : > { %s11369_s2 = scalar_lea.hbm %s14719_s12, 64 }
 0x124   : > { %p11370_p6 = scmp.ne.s32.totalorder %s14719_s12, %s11369_s2  ;;  %p11375_p13 = scmp.lt.u32.totalorder %s11369_s2, %s14719_s12 }
 0x126   : > { %p11371_p11 = pnand %p11370_p6, %p14670_p4 }
 0x128   : > { %p11372_p12 = pneg %p11371_p11 }
 0x12a   : > { %p11377_p0 = pnand %p11375_p13, %p11372_p12 }
 0x12c   : > { %11380 = shalt.err (!%p11377_p0)
}
 0x12d   : > { %s11381_s26 = scalar_lea.vmem %s1393_s10, 64  ;;  %p11388_p7 = scmp.lt.s32.totalorder %s1393_s10, %s1393_s10 }
 0x12e   : > { %p11382_p1 = scmp.ne.s32.totalorder %s1393_s10, %s11381_s26  ;;  %p11389_p8 = scmp.lt.s32.totalorder %s11381_s26, %s11381_s26 }
 0x130   : > { %p11383_p2 = pnand %p11382_p1, %p14670_p4  ;;  %p11390_p9 = por %p11389_p8, %p11388_p7 }
 0x132   : > { %p11384_p3 = pneg %p11383_p2 }
 0x134   : > { %p11391_p10 = pnand %p11390_p9, %p11384_p3 }
 0x136   : > { %11394 = shalt.err (!%p11391_p10)
}
 0x137   : > { %10612 = dma.hbm_to_vmem [thread:$0]  (%p14670_p4), %s14719_s12, 64, %s1393_s10, [#allocation26]  }
 0x138   : > { %s12732_s28 = smov [#allocation28]   ;;  %s12733_s15 = smov [#allocation31]  }
 0x139   : > { %s1416_s0 = sshll.u32 %s12732_s28, 4  ;;  %s1437_s17 = sshll.u32 %s12733_s15, 4  ;;  %s1417_s0 = int_to_ptr.vmem [resolvable:$true] %s1416_s0  ;;  %s1438_s17 = int_to_ptr.vmem [resolvable:$true] %s1437_s17 }
 0x13a   : > { %s11395_s2 = scalar_lea.hbm %s12889_s27, 64 }
 0x13b   : > { %p11396_p6 = scmp.ne.s32.totalorder %s12889_s27, %s11395_s2  ;;  %p11401_p13 = scmp.lt.u32.totalorder %s11395_s2, %s12889_s27 }
 0x13d   : > { %p11397_p11 = pnand %p11396_p6, %p14670_p4 }
 0x13f   : > { %p11398_p12 = pneg %p11397_p11 }
 0x141   : > { %p11403_p0 = pnand %p11401_p13, %p11398_p12 }
 0x143   : > { %11406 = shalt.err (!%p11403_p0)
}
 0x144   : > { %s11407_s26 = scalar_lea.vmem %s1417_s0, 64  ;;  %p11414_p7 = scmp.lt.s32.totalorder %s1417_s0, %s1417_s0 }
 0x145   : > { %p11408_p1 = scmp.ne.s32.totalorder %s1417_s0, %s11407_s26  ;;  %p11415_p8 = scmp.lt.s32.totalorder %s11407_s26, %s11407_s26 }
 0x147   : > { %p11409_p2 = pnand %p11408_p1, %p14670_p4  ;;  %p11416_p9 = por %p11415_p8, %p11414_p7 }
 0x149   : > { %p11410_p3 = pneg %p11409_p2 }
 0x14b   : > { %p11417_p10 = pnand %p11416_p9, %p11410_p3 }
 0x14d   : > { %11420 = shalt.err (!%p11417_p10)
}
 0x14e   : > { %10616 = dma.hbm_to_vmem [thread:$0]  (%p14670_p4), %s12889_s27, 64, %s1417_s0, [#allocation29]  }
 0x14f   : > { %s11421_s10 = scalar_lea.hbm %s14720_s9, 128 }
 0x150   : > { %p11422_p6 = scmp.ne.s32.totalorder %s14720_s9, %s11421_s10  ;;  %p11427_p13 = scmp.lt.u32.totalorder %s11421_s10, %s14720_s9 }
 0x152   : > { %p11423_p11 = pnand %p11422_p6, %p14670_p4 }
 0x154   : > { %p11424_p12 = pneg %p11423_p11 }
 0x156   : > { %p11429_p0 = pnand %p11427_p13, %p11424_p12 }
 0x158   : > { %11432 = shalt.err (!%p11429_p0)
}
 0x159   : > { %s11433_s28 = scalar_lea.vmem %s1438_s17, 128  ;;  %p11440_p7 = scmp.lt.s32.totalorder %s1438_s17, %s1438_s17 }
 0x15a   : > { %p11434_p1 = scmp.ne.s32.totalorder %s1438_s17, %s11433_s28  ;;  %p11441_p8 = scmp.lt.s32.totalorder %s11433_s28, %s11433_s28 }
 0x15c   : > { %p11435_p2 = pnand %p11434_p1, %p14670_p4  ;;  %p11442_p9 = por %p11441_p8, %p11440_p7 }
 0x15e   : > { %p11436_p3 = pneg %p11435_p2 }
 0x160   : > { %p11443_p10 = pnand %p11442_p9, %p11436_p3 }
 0x162   : > { %11446 = shalt.err (!%p11443_p10)
}
 0x163   : > { %10620 = dma.hbm_to_vmem [thread:$0]  (%p14670_p4), %s14720_s9, 128, %s1438_s17, [#allocation32], %s14634_s11, %s14634_s11, %s14636_s23  }
 0x164   : > { %s12734_s0 = smov [#allocation34]   ;;  %s12735_s2 = smov [#allocation37]  }
 0x165   : > { %s1463_s15 = sshll.u32 %s12734_s0, 4  ;;  %s1489_s26 = sshll.u32 %s12735_s2, 4  ;;  %s1464_s15 = int_to_ptr.vmem [resolvable:$true] %s1463_s15  ;;  %s1490_s26 = int_to_ptr.vmem [resolvable:$true] %s1489_s26 }
 0x166   : > { %s11447_s10 = scalar_lea.hbm %s14723_s6, 256 }
 0x167   : > { %p11448_p6 = scmp.ne.s32.totalorder %s14723_s6, %s11447_s10  ;;  %p11453_p13 = scmp.lt.u32.totalorder %s11447_s10, %s14723_s6 }
 0x169   : > { %p11449_p11 = pnand %p11448_p6, %p14670_p4 }
 0x16b   : > { %p11450_p12 = pneg %p11449_p11 }
 0x16d   : > { %p11455_p0 = pnand %p11453_p13, %p11450_p12 }
 0x16f   : > { %11458 = shalt.err (!%p11455_p0)
}
 0x170   : > { %s11459_s28 = scalar_lea.vmem %s1464_s15, 256  ;;  %p11466_p7 = scmp.lt.s32.totalorder %s1464_s15, %s1464_s15 }
 0x171   : > { %p11460_p1 = scmp.ne.s32.totalorder %s1464_s15, %s11459_s28  ;;  %p11467_p8 = scmp.lt.s32.totalorder %s11459_s28, %s11459_s28 }
 0x173   : > { %p11461_p2 = pnand %p11460_p1, %p14670_p4  ;;  %p11468_p9 = por %p11467_p8, %p11466_p7 }
 0x175   : > { %p11462_p3 = pneg %p11461_p2 }
 0x177   : > { %p11469_p10 = pnand %p11468_p9, %p11462_p3 }
 0x179   : > { %11472 = shalt.err (!%p11469_p10)
}
 0x17a   : > { %s14736_s17 = smov 8   ;;  %s14737_s0 = smov 128  }
 0x17b   : > { %10624 = dma.hbm_to_vmem [thread:$0]  (%p14670_p4), %s14723_s6, 256, %s1464_s15, [#allocation35], %s14737_s0, %s14737_s0, %s14736_s17  }
 0x17c   : > { %s11473_s2 = scalar_lea.hbm %s12919_s24, 2048 }
 0x17d   : > { %p11474_p6 = scmp.ne.s32.totalorder %s12919_s24, %s11473_s2  ;;  %p11479_p13 = scmp.lt.u32.totalorder %s11473_s2, %s12919_s24 }
 0x17f   : > { %p11475_p11 = pnand %p11474_p6, %p14670_p4 }
 0x181   : > { %p11476_p12 = pneg %p11475_p11 }
 0x183   : > { %p11481_p0 = pnand %p11479_p13, %p11476_p12 }
 0x185   : > { %11484 = shalt.err (!%p11481_p0)
}
 0x186   : > { %s11485_s10 = scalar_lea.vmem %s1490_s26, 2048  ;;  %p11492_p7 = scmp.lt.s32.totalorder %s1490_s26, %s1490_s26 }
 0x187   : > { %p11486_p1 = scmp.ne.s32.totalorder %s1490_s26, %s11485_s10  ;;  %p11493_p8 = scmp.lt.s32.totalorder %s11485_s10, %s11485_s10 }
 0x189   : > { %p11487_p2 = pnand %p11486_p1, %p14670_p4  ;;  %p11494_p9 = por %p11493_p8, %p11492_p7 }
 0x18b   : > { %p11488_p3 = pneg %p11487_p2 }
 0x18d   : > { %p11495_p10 = pnand %p11494_p9, %p11488_p3 }
 0x18f   : > { %11498 = shalt.err (!%p11495_p10)
}
 0x190   : > { %10628 = dma.hbm_to_vmem [thread:$0]  (%p14670_p4), %s12919_s24, 2048, %s1490_s26, [#allocation38], %s14634_s11, %s14634_s11, %s14636_s23  }
 0x191   : > { %s12736_s15 = smov [#allocation40]   ;;  %s12737_s2 = smov [#allocation43]  }
 0x192   : > { %s1516_s28 = sshll.u32 %s12736_s15, 4  ;;  %s1538_s6 = sshll.u32 %s12737_s2, 4  ;;  %s1517_s28 = int_to_ptr.vmem [resolvable:$true] %s1516_s28  ;;  %s1539_s6 = int_to_ptr.vmem [resolvable:$true] %s1538_s6 }
 0x193   : > { %s11499_s10 = scalar_lea.hbm %s14716_s14, 32 }
 0x194   : > { %p11500_p6 = scmp.ne.s32.totalorder %s14716_s14, %s11499_s10  ;;  %p11505_p13 = scmp.lt.u32.totalorder %s11499_s10, %s14716_s14 }
 0x196   : > { %p11501_p11 = pnand %p11500_p6, %p14670_p4 }
 0x198   : > { %p11502_p12 = pneg %p11501_p11 }
 0x19a   : > { %p11507_p0 = pnand %p11505_p13, %p11502_p12 }
 0x19c   : > { %11510 = shalt.err (!%p11507_p0)
}
 0x19d   : > { %s11511_s8 = scalar_lea.vmem %s1517_s28, 32  ;;  %p11518_p7 = scmp.lt.s32.totalorder %s1517_s28, %s1517_s28 }
 0x19e   : > { %p11512_p1 = scmp.ne.s32.totalorder %s1517_s28, %s11511_s8  ;;  %p11519_p8 = scmp.lt.s32.totalorder %s11511_s8, %s11511_s8 }
 0x1a0   : > { %p11513_p2 = pnand %p11512_p1, %p14670_p4  ;;  %p11520_p9 = por %p11519_p8, %p11518_p7 }
 0x1a2   : > { %p11514_p3 = pneg %p11513_p2 }
 0x1a4   : > { %p11521_p10 = pnand %p11520_p9, %p11514_p3 }
 0x1a6   : > { %11524 = shalt.err (!%p11521_p10)
}
 0x1a7   : > { %10632 = dma.hbm_to_vmem [thread:$0]  (%p14670_p4), %s14716_s14, 32, %s1517_s28, [#allocation41]  }
 0x1a8   : > { %s11525_s26 = scalar_lea.hbm %s14721_s3, 64 }
 0x1a9   : > { %p11526_p6 = scmp.ne.s32.totalorder %s14721_s3, %s11525_s26  ;;  %p11531_p13 = scmp.lt.u32.totalorder %s11525_s26, %s14721_s3 }
 0x1ab   : > { %p11527_p11 = pnand %p11526_p6, %p14670_p4 }
 0x1ad   : > { %p11528_p12 = pneg %p11527_p11 }
 0x1af   : > { %p11533_p0 = pnand %p11531_p13, %p11528_p12 }
 0x1b1   : > { %11536 = shalt.err (!%p11533_p0)
}
 0x1b2   : > { %s11537_s8 = scalar_lea.vmem %s1539_s6, 64  ;;  %p11544_p7 = scmp.lt.s32.totalorder %s1539_s6, %s1539_s6 }
 0x1b3   : > { %p11538_p1 = scmp.ne.s32.totalorder %s1539_s6, %s11537_s8  ;;  %p11545_p8 = scmp.lt.s32.totalorder %s11537_s8, %s11537_s8 }
 0x1b5   : > { %p11539_p2 = pnand %p11538_p1, %p14670_p4  ;;  %p11546_p9 = por %p11545_p8, %p11544_p7 }
 0x1b7   : > { %p11540_p3 = pneg %p11539_p2 }
 0x1b9   : > { %p11547_p10 = pnand %p11546_p9, %p11540_p3 }
 0x1bb   : > { %11550 = shalt.err (!%p11547_p10)
}
 0x1bc   : > { %10636 = dma.hbm_to_vmem [thread:$0]  (%p14670_p4), %s14721_s3, 64, %s1539_s6, [#allocation44]  }
 0x1bd   : > { %s12738_s15 = smov [#allocation46]   ;;  %s12739_s2 = smov [#allocation49]  }
 0x1be   : > { %s1559_s28 = sshll.u32 %s12738_s15, 4  ;;  %s1584_s10 = sshll.u32 %s12739_s2, 4  ;;  %s1560_s28 = int_to_ptr.vmem [resolvable:$true] %s1559_s28  ;;  %s1585_s10 = int_to_ptr.vmem [resolvable:$true] %s1584_s10 }
 0x1bf   : > { %s11551_s26 = scalar_lea.hbm %s12949_s25, 9216 }
 0x1c0   : > { %p11552_p6 = scmp.ne.s32.totalorder %s12949_s25, %s11551_s26  ;;  %p11557_p13 = scmp.lt.u32.totalorder %s11551_s26, %s12949_s25 }
 0x1c2   : > { %p11553_p11 = pnand %p11552_p6, %p14670_p4 }
 0x1c4   : > { %p11554_p12 = pneg %p11553_p11 }
 0x1c6   : > { %p11559_p0 = pnand %p11557_p13, %p11554_p12 }
 0x1c8   : > { %11562 = shalt.err (!%p11559_p0)
}
 0x1c9   : > { %s11563_s8 = scalar_lea.vmem %s1560_s28, 9216  ;;  %p11570_p7 = scmp.lt.s32.totalorder %s1560_s28, %s1560_s28 }
 0x1ca   : > { %p11564_p1 = scmp.ne.s32.totalorder %s1560_s28, %s11563_s8  ;;  %p11571_p8 = scmp.lt.s32.totalorder %s11563_s8, %s11563_s8 }
 0x1cc   : > { %p11565_p2 = pnand %p11564_p1, %p14670_p4  ;;  %p11572_p9 = por %p11571_p8, %p11570_p7 }
 0x1ce   : > { %p11566_p3 = pneg %p11565_p2 }
 0x1d0   : > { %p11573_p10 = pnand %p11572_p9, %p11566_p3 }
 0x1d2   : > { %11576 = shalt.err (!%p11573_p10)
}
 0x1d3   : > { %s14738_s6 = sld [smem:[#allocation131_spill]] }
 0x1d4   : > { %10640 = dma.hbm_to_vmem [thread:$0]  (%p14670_p4), %s12949_s25, 9216, %s1560_s28, [#allocation47], %s14737_s0, %s14737_s0, %s14736_s17  }
 0x1d9   : > { %s11577_s15 = scalar_lea.hbm %s14738_s6, 64 }
 0x1da   : > { %p11578_p6 = scmp.ne.s32.totalorder %s14738_s6, %s11577_s15  ;;  %p11583_p13 = scmp.lt.u32.totalorder %s11577_s15, %s14738_s6 }
 0x1dc   : > { %p11579_p11 = pnand %p11578_p6, %p14670_p4 }
 0x1de   : > { %p11580_p12 = pneg %p11579_p11 }
 0x1e0   : > { %p11585_p0 = pnand %p11583_p13, %p11580_p12 }
 0x1e2   : > { %11588 = shalt.err (!%p11585_p0)
}
 0x1e3   : > { %s11589_s2 = scalar_lea.vmem %s1585_s10, 64  ;;  %p11596_p7 = scmp.lt.s32.totalorder %s1585_s10, %s1585_s10 }
 0x1e4   : > { %p11590_p1 = scmp.ne.s32.totalorder %s1585_s10, %s11589_s2  ;;  %p11597_p8 = scmp.lt.s32.totalorder %s11589_s2, %s11589_s2 }
 0x1e6   : > { %p11591_p2 = pnand %p11590_p1, %p14670_p4  ;;  %p11598_p9 = por %p11597_p8, %p11596_p7 }
 0x1e8   : > { %p11592_p3 = pneg %p11591_p2 }
 0x1ea   : > { %p11599_p10 = pnand %p11598_p9, %p11592_p3 }
 0x1ec   : > { %11602 = shalt.err (!%p11599_p10)
}
 0x1ed   : > { %s14739_s28 = sld [smem:[#allocation133_spill]]  ;;  %s12740_s26 = smov [#allocation52]  }
 0x1ee   : > { %10644 = dma.hbm_to_vmem [thread:$0]  (%p14670_p4), %s14738_s6, 64, %s1585_s10, [#allocation50]  }
 0x1ef   : > { %s1607_s8 = sshll.u32 %s12740_s26, 4  ;;  %s12741_s15 = smov [#allocation55]   ;;  %s1608_s8 = int_to_ptr.vmem [resolvable:$true] %s1607_s8 }
 0x1f0   : > { %s1633_s11 = sshll.u32 %s12741_s15, 4  ;;  %s1634_s11 = int_to_ptr.vmem [resolvable:$true] %s1633_s11 }
 0x1f3   : > { %s11603_s23 = scalar_lea.hbm %s14739_s28, 256 }
 0x1f4   : > { %p11604_p6 = scmp.ne.s32.totalorder %s14739_s28, %s11603_s23  ;;  %p11609_p13 = scmp.lt.u32.totalorder %s11603_s23, %s14739_s28 }
 0x1f6   : > { %p11605_p11 = pnand %p11604_p6, %p14670_p4 }
 0x1f8   : > { %p11606_p12 = pneg %p11605_p11 }
 0x1fa   : > { %p11611_p0 = pnand %p11609_p13, %p11606_p12 }
 0x1fc   : > { %11614 = shalt.err (!%p11611_p0)
}
 0x1fd   : > { %s11615_s2 = scalar_lea.vmem %s1608_s8, 256  ;;  %p11622_p7 = scmp.lt.s32.totalorder %s1608_s8, %s1608_s8 }
 0x1fe   : > { %p11616_p1 = scmp.ne.s32.totalorder %s1608_s8, %s11615_s2  ;;  %p11623_p8 = scmp.lt.s32.totalorder %s11615_s2, %s11615_s2 }
 0x200   : > { %p11617_p2 = pnand %p11616_p1, %p14670_p4  ;;  %p11624_p9 = por %p11623_p8, %p11622_p7 }
 0x202   : > { %p11618_p3 = pneg %p11617_p2 }
 0x204   : > { %p11625_p10 = pnand %p11624_p9, %p11618_p3 }
 0x206   : > { %11628 = shalt.err (!%p11625_p10)
}
 0x207   : > { %s14740_s23 = sld [smem:[#allocation135_spill]] }
 0x208   : > { %10648 = dma.hbm_to_vmem [thread:$0]  (%p14670_p4), %s14739_s28, 256, %s1608_s8, [#allocation53], %s14737_s0, %s14737_s0, %s14736_s17  }
 0x20d   : > { %s11629_s10 = scalar_lea.hbm %s14740_s23, 128 }
 0x20e   : > { %p11630_p6 = scmp.ne.s32.totalorder %s14740_s23, %s11629_s10  ;;  %p11635_p13 = scmp.lt.u32.totalorder %s11629_s10, %s14740_s23 }
 0x210   : > { %p11631_p11 = pnand %p11630_p6, %p14670_p4 }
 0x212   : > { %p11632_p12 = pneg %p11631_p11 }
 0x214   : > { %p11637_p0 = pnand %p11635_p13, %p11632_p12 }
 0x216   : > { %11640 = shalt.err (!%p11637_p0)
}
 0x217   : > { %s11641_s26 = scalar_lea.vmem %s1634_s11, 128  ;;  %p11648_p7 = scmp.lt.s32.totalorder %s1634_s11, %s1634_s11 }
 0x218   : > { %p11642_p1 = scmp.ne.s32.totalorder %s1634_s11, %s11641_s26  ;;  %p11649_p8 = scmp.lt.s32.totalorder %s11641_s26, %s11641_s26 }
 0x21a   : > { %p11643_p2 = pnand %p11642_p1, %p14670_p4  ;;  %p11650_p9 = por %p11649_p8, %p11648_p7 }
 0x21c   : > { %p11644_p3 = pneg %p11643_p2 }
 0x21e   : > { %p11651_p10 = pnand %p11650_p9, %p11644_p3 }
 0x220   : > { %11654 = shalt.err (!%p11651_p10)
}
 0x221   : > { %s14741_s8 = smov 4   ;;  %s14742_s15 = smov 64  }
 0x222   : > { %s14743_s2 = sld [smem:[#allocation137_spill]]  ;;  %s12742_s10 = smov [#allocation58]  }
 0x223   : > { %10652 = dma.hbm_to_vmem [thread:$0]  (%p14670_p4), %s14740_s23, 128, %s1634_s11, [#allocation56], %s14742_s15, %s14742_s15, %s14741_s8  }
 0x224   : > { %s1659_s3 = sshll.u32 %s12742_s10, 4  ;;  %s12743_s6 = smov [#allocation61]   ;;  %s1660_s3 = int_to_ptr.vmem [resolvable:$true] %s1659_s3 }
 0x225   : > { %s1684_s9 = sshll.u32 %s12743_s6, 4  ;;  %s1685_s9 = int_to_ptr.vmem [resolvable:$true] %s1684_s9 }
 0x228   : > { %s11655_s26 = scalar_lea.hbm %s14743_s2, 256 }
 0x229   : > { %p11656_p6 = scmp.ne.s32.totalorder %s14743_s2, %s11655_s26  ;;  %p11661_p13 = scmp.lt.u32.totalorder %s11655_s26, %s14743_s2 }
 0x22b   : > { %p11657_p11 = pnand %p11656_p6, %p14670_p4 }
 0x22d   : > { %p11658_p12 = pneg %p11657_p11 }
 0x22f   : > { %p11663_p0 = pnand %p11661_p13, %p11658_p12 }
 0x231   : > { %11666 = shalt.err (!%p11663_p0)
}
 0x232   : > { %s11667_s12 = scalar_lea.vmem %s1660_s3, 256  ;;  %p11674_p7 = scmp.lt.s32.totalorder %s1660_s3, %s1660_s3 }
 0x233   : > { %p11668_p1 = scmp.ne.s32.totalorder %s1660_s3, %s11667_s12  ;;  %p11675_p8 = scmp.lt.s32.totalorder %s11667_s12, %s11667_s12 }
 0x235   : > { %p11669_p2 = pnand %p11668_p1, %p14670_p4  ;;  %p11676_p9 = por %p11675_p8, %p11674_p7 }
 0x237   : > { %p11670_p3 = pneg %p11669_p2 }
 0x239   : > { %p11677_p10 = pnand %p11676_p9, %p11670_p3 }
 0x23b   : > { %11680 = shalt.err (!%p11677_p10)
}
 0x23c   : > { %s14744_s11 = sld [smem:[#allocation139_spill]] }
 0x23d   : > { %10656 = dma.hbm_to_vmem [thread:$0]  (%p14670_p4), %s14743_s2, 256, %s1660_s3, [#allocation59], %s14737_s0, %s14737_s0, %s14736_s17  }
 0x242   : > { %s11681_s6 = scalar_lea.hbm %s14744_s11, 64 }
 0x243   : > { %p11682_p6 = scmp.ne.s32.totalorder %s14744_s11, %s11681_s6  ;;  %p11687_p13 = scmp.lt.u32.totalorder %s11681_s6, %s14744_s11 }
 0x245   : > { %p11683_p11 = pnand %p11682_p6, %p14670_p4 }
 0x247   : > { %p11684_p12 = pneg %p11683_p11 }
 0x249   : > { %p11689_p0 = pnand %p11687_p13, %p11684_p12 }
 0x24b   : > { %11692 = shalt.err (!%p11689_p0)
}
 0x24c   : > { %s11693_s12 = scalar_lea.vmem %s1685_s9, 64  ;;  %p11700_p7 = scmp.lt.s32.totalorder %s1685_s9, %s1685_s9 }
 0x24d   : > { %p11694_p1 = scmp.ne.s32.totalorder %s1685_s9, %s11693_s12  ;;  %p11701_p8 = scmp.lt.s32.totalorder %s11693_s12, %s11693_s12 }
 0x24f   : > { %p11695_p2 = pnand %p11694_p1, %p14670_p4  ;;  %p11702_p9 = por %p11701_p8, %p11700_p7 }
 0x251   : > { %p11696_p3 = pneg %p11695_p2 }
 0x253   : > { %p11703_p10 = pnand %p11702_p9, %p11696_p3 }
 0x255   : > { %11706 = shalt.err (!%p11703_p10)
}
 0x256   : > { %s14745_s3 = sld [smem:[#allocation141_spill]]  ;;  %s12744_s10 = smov [#allocation64]  }
 0x257   : > { %10660 = dma.hbm_to_vmem [thread:$0]  (%p14670_p4), %s14744_s11, 64, %s1685_s9, [#allocation62]  }
 0x258   : > { %s1706_s26 = sshll.u32 %s12744_s10, 4  ;;  %s12745_s6 = smov [#allocation67]   ;;  %s1707_s26 = int_to_ptr.vmem [resolvable:$true] %s1706_s26 }
 0x259   : > { %s1730_s2 = sshll.u32 %s12745_s6, 4  ;;  %s1731_s2 = int_to_ptr.vmem [resolvable:$true] %s1730_s2 }
 0x25c   : > { %s11707_s13 = scalar_lea.hbm %s14745_s3, 64 }
 0x25d   : > { %p11708_p6 = scmp.ne.s32.totalorder %s14745_s3, %s11707_s13  ;;  %p11713_p13 = scmp.lt.u32.totalorder %s11707_s13, %s14745_s3 }
 0x25f   : > { %p11709_p11 = pnand %p11708_p6, %p14670_p4 }
 0x261   : > { %p11710_p12 = pneg %p11709_p11 }
 0x263   : > { %p11715_p0 = pnand %p11713_p13, %p11710_p12 }
 0x265   : > { %11718 = shalt.err (!%p11715_p0)
}
 0x266   : > { %s11719_s12 = scalar_lea.vmem %s1707_s26, 64  ;;  %p11726_p7 = scmp.lt.s32.totalorder %s1707_s26, %s1707_s26 }
 0x267   : > { %p11720_p1 = scmp.ne.s32.totalorder %s1707_s26, %s11719_s12  ;;  %p11727_p8 = scmp.lt.s32.totalorder %s11719_s12, %s11719_s12 }
 0x269   : > { %p11721_p2 = pnand %p11720_p1, %p14670_p4  ;;  %p11728_p9 = por %p11727_p8, %p11726_p7 }
 0x26b   : > { %p11722_p3 = pneg %p11721_p2 }
 0x26d   : > { %p11729_p10 = pnand %p11728_p9, %p11722_p3 }
 0x26f   : > { %11732 = shalt.err (!%p11729_p10)
}
 0x270   : > { %s14746_s9 = sld [smem:[#allocation143_spill]] }
 0x271   : > { %10664 = dma.hbm_to_vmem [thread:$0]  (%p14670_p4), %s14745_s3, 64, %s1707_s26, [#allocation65]  }
 0x276   : > { %s11733_s13 = scalar_lea.hbm %s14746_s9, 64 }
 0x277   : > { %p11734_p6 = scmp.ne.s32.totalorder %s14746_s9, %s11733_s13  ;;  %p11739_p13 = scmp.lt.u32.totalorder %s11733_s13, %s14746_s9 }
 0x279   : > { %p11735_p11 = pnand %p11734_p6, %p14670_p4 }
 0x27b   : > { %p11736_p12 = pneg %p11735_p11 }
 0x27d   : > { %p11741_p0 = pnand %p11739_p13, %p11736_p12 }
 0x27f   : > { %11744 = shalt.err (!%p11741_p0)
}
 0x280   : > { %s11745_s10 = scalar_lea.vmem %s1731_s2, 64  ;;  %p11752_p7 = scmp.lt.s32.totalorder %s1731_s2, %s1731_s2 }
 0x281   : > { %p11746_p1 = scmp.ne.s32.totalorder %s1731_s2, %s11745_s10  ;;  %p11753_p8 = scmp.lt.s32.totalorder %s11745_s10, %s11745_s10 }
 0x283   : > { %p11747_p2 = pnand %p11746_p1, %p14670_p4  ;;  %p11754_p9 = por %p11753_p8, %p11752_p7 }
 0x285   : > { %p11748_p3 = pneg %p11747_p2 }
 0x287   : > { %p11755_p10 = pnand %p11754_p9, %p11748_p3 }
 0x289   : > { %11758 = shalt.err (!%p11755_p10)
}
 0x28a   : > { %s14747_s26 = sld [smem:[#allocation145_spill]]  ;;  %s12746_s6 = smov [#allocation70]  }
 0x28b   : > { %10668 = dma.hbm_to_vmem [thread:$0]  (%p14670_p4), %s14746_s9, 64, %s1731_s2, [#allocation68]  }
 0x28c   : > { %s1751_s12 = sshll.u32 %s12746_s6, 4  ;;  %s12747_s13 = smov [#allocation73]   ;;  %s1752_s12 = int_to_ptr.vmem [resolvable:$true] %s1751_s12 }
 0x28d   : > { %s1777_s3 = sshll.u32 %s12747_s13, 4  ;;  %s1778_s3 = int_to_ptr.vmem [resolvable:$true] %s1777_s3 }
 0x290   : > { %s11759_s11 = scalar_lea.hbm %s14747_s26, 128 }
 0x291   : > { %p11760_p6 = scmp.ne.s32.totalorder %s14747_s26, %s11759_s11  ;;  %p11765_p13 = scmp.lt.u32.totalorder %s11759_s11, %s14747_s26 }
 0x293   : > { %p11761_p11 = pnand %p11760_p6, %p14670_p4 }
 0x295   : > { %p11762_p12 = pneg %p11761_p11 }
 0x297   : > { %p11767_p0 = pnand %p11765_p13, %p11762_p12 }
 0x299   : > { %11770 = shalt.err (!%p11767_p0)
}
 0x29a   : > { %s11771_s10 = scalar_lea.vmem %s1752_s12, 128  ;;  %p11778_p7 = scmp.lt.s32.totalorder %s1752_s12, %s1752_s12 }
 0x29b   : > { %p11772_p1 = scmp.ne.s32.totalorder %s1752_s12, %s11771_s10  ;;  %p11779_p8 = scmp.lt.s32.totalorder %s11771_s10, %s11771_s10 }
 0x29d   : > { %p11773_p2 = pnand %p11772_p1, %p14670_p4  ;;  %p11780_p9 = por %p11779_p8, %p11778_p7 }
 0x29f   : > { %p11774_p3 = pneg %p11773_p2 }
 0x2a1   : > { %p11781_p10 = pnand %p11780_p9, %p11774_p3 }
 0x2a3   : > { %11784 = shalt.err (!%p11781_p10)
}
 0x2a4   : > { %s14748_s2 = sld [smem:[#allocation147_spill]] }
 0x2a5   : > { %10672 = dma.hbm_to_vmem [thread:$0]  (%p14670_p4), %s14747_s26, 128, %s1752_s12, [#allocation71], %s14742_s15, %s14742_s15, %s14741_s8  }
 0x2aa   : > { %s11785_s11 = scalar_lea.hbm %s14748_s2, 256 }
 0x2ab   : > { %p11786_p6 = scmp.ne.s32.totalorder %s14748_s2, %s11785_s11  ;;  %p11791_p13 = scmp.lt.u32.totalorder %s11785_s11, %s14748_s2 }
 0x2ad   : > { %p11787_p11 = pnand %p11786_p6, %p14670_p4 }
 0x2af   : > { %p11788_p12 = pneg %p11787_p11 }
 0x2b1   : > { %p11793_p0 = pnand %p11791_p13, %p11788_p12 }
 0x2b3   : > { %11796 = shalt.err (!%p11793_p0)
}
 0x2b4   : > { %s11797_s6 = scalar_lea.vmem %s1778_s3, 256  ;;  %p11804_p7 = scmp.lt.s32.totalorder %s1778_s3, %s1778_s3 }
 0x2b5   : > { %p11798_p1 = scmp.ne.s32.totalorder %s1778_s3, %s11797_s6  ;;  %p11805_p8 = scmp.lt.s32.totalorder %s11797_s6, %s11797_s6 }
 0x2b7   : > { %p11799_p2 = pnand %p11798_p1, %p14670_p4  ;;  %p11806_p9 = por %p11805_p8, %p11804_p7 }
 0x2b9   : > { %p11800_p3 = pneg %p11799_p2 }
 0x2bb   : > { %p11807_p10 = pnand %p11806_p9, %p11800_p3 }
 0x2bd   : > { %11810 = shalt.err (!%p11807_p10)
}
 0x2be   : > { %10676 = dma.hbm_to_vmem [thread:$0]  (%p14670_p4), %s14748_s2, 256, %s1778_s3, [#allocation74], %s14737_s0, %s14737_s0, %s14736_s17  }
 0x2bf   : > { %s12748_s12 = smov [#allocation76]   ;;  %s11811_s10 = scalar_lea.hbm %s14717_s5, 256 }
 0x2c0   : > { %s1803_s13 = sshll.u32 %s12748_s12, 4  ;;  %p11812_p6 = scmp.ne.s32.totalorder %s14717_s5, %s11811_s10  ;;  %s1804_s13 = int_to_ptr.vmem [resolvable:$true] %s1803_s13 }
 0x2c1   : > { %p11817_p13 = scmp.lt.u32.totalorder %s11811_s10, %s14717_s5 }
 0x2c2   : > { %p11813_p11 = pnand %p11812_p6, %p14670_p4 }
 0x2c4   : > { %p11814_p12 = pneg %p11813_p11 }
 0x2c6   : > { %p11819_p0 = pnand %p11817_p13, %p11814_p12 }
 0x2c8   : > { %11822 = shalt.err (!%p11819_p0)
}
 0x2c9   : > { %s11823_s11 = scalar_lea.vmem %s1804_s13, 256  ;;  %p11830_p7 = scmp.lt.s32.totalorder %s1804_s13, %s1804_s13 }
 0x2ca   : > { %p11824_p1 = scmp.ne.s32.totalorder %s1804_s13, %s11823_s11  ;;  %p11831_p8 = scmp.lt.s32.totalorder %s11823_s11, %s11823_s11 }
 0x2cc   : > { %p11825_p2 = pnand %p11824_p1, %p14670_p4  ;;  %p11832_p9 = por %p11831_p8, %p11830_p7 }
 0x2ce   : > { %p11826_p3 = pneg %p11825_p2 }
 0x2d0   : > { %p11833_p10 = pnand %p11832_p9, %p11826_p3 }
 0x2d2   : > { %11836 = shalt.err (!%p11833_p10)
}
 0x2d3   : > { %s14749_s3 = sld [smem:[#allocation107_spill]] }
 0x2d4   : > { %10680 = dma.hbm_to_vmem [thread:$0]  (%p14670_p4), %s14717_s5, 256, %s1804_s13, [#allocation77], %s14737_s0, %s14737_s0, %s14736_s17  }
 0x2d9   : > { %s11837_s6 = scalar_lea.hbm %s14749_s3, 16 }
 0x2da   : > { %p11838_p6 = scmp.ne.s32.totalorder %s14749_s3, %s11837_s6  ;;  %p11843_p13 = scmp.lt.u32.totalorder %s11837_s6, %s14749_s3 }
 0x2dc   : > { %p11839_p11 = pnand %p11838_p6, %p14670_p4 }
 0x2de   : > { %p11840_p12 = pneg %p11839_p11 }
 0x2e0   : > { %p11845_p0 = pnand %p11843_p13, %p11840_p12 }
 0x2e2   : > { %11848 = shalt.err (!%p11845_p0)
}
 0x2e3   : > { %s12749_s12 = smov [#allocation2]   ;;  %s14750_s10 = sld [smem:[#allocation110_spill]] }
 0x2e4   : > { %10586 = dma.hbm_to_smem (%p14670_p4), %s14749_s3, 16, %s12749_s12, [#allocation5]  }
 0x2e5   : > { %s12750_s11 = smov [#allocation9]   ;;  %s12751_s13 = smov [#allocation12]  }
 0x2e6   : > { %s1262_s2 = sshll.u32 %s12750_s11, 4  ;;  %s1289_s5 = sshll.u32 %s12751_s13, 4  ;;  %s1263_s2 = int_to_ptr.vmem [resolvable:$true] %s1262_s2  ;;  %s13417_s5 = int_to_ptr.vmem [resolvable:$true] %s1289_s5 }
 0x2e9   : > { %s11849_s9 = scalar_lea.hbm %s14750_s10, 256 }
 0x2ea   : > { %p11850_p1 = scmp.ne.s32.totalorder %s14750_s10, %s11849_s9  ;;  %p11855_p7 = scmp.lt.u32.totalorder %s11849_s9, %s14750_s10 }
 0x2ec   : > { %p11851_p2 = pnand %p11850_p1, %p14670_p4 }
 0x2ee   : > { %p11852_p3 = pneg %p11851_p2 }
 0x2f0   : > { %p11857_p8 = pnand %p11855_p7, %p11852_p3 }
 0x2f2   : > { %11860 = shalt.err (!%p11857_p8)
}
 0x2f3   : > { %s11861_s6 = scalar_lea.vmem %s1263_s2, 256  ;;  %p11868_p11 = scmp.lt.s32.totalorder %s1263_s2, %s1263_s2 }
 0x2f4   : > { %p11862_p9 = scmp.ne.s32.totalorder %s1263_s2, %s11861_s6  ;;  %p11869_p12 = scmp.lt.s32.totalorder %s11861_s6, %s11861_s6 }
 0x2f6   : > { %p11863_p10 = pnand %p11862_p9, %p14670_p4  ;;  %p11870_p13 = por %p11869_p12, %p11868_p11 }
 0x2f8   : > { %p11864_p6 = pneg %p11863_p10 }
 0x2fa   : > { %p11871_p0 = pnand %p11870_p13, %p11864_p6 }
 0x2fc   : > { %11874 = shalt.err (!%p11871_p0)
}
 0x2fd   : > { %s14751_s9 = sld [smem:[#allocation111_spill]] }
 0x2fe   : > { %10590 = dma.hbm_to_vmem [thread:$0]  (%p14670_p4), %s14750_s10, 256, %s1263_s2, [#allocation8], %s14737_s0, %s14737_s0, %s14736_s17  }
 0x303   : > { %s11875_s12 = scalar_lea.hbm %s14751_s9, 128 }
 0x304   : > { %p11876_p1 = scmp.ne.s32.totalorder %s14751_s9, %s11875_s12  ;;  %p11881_p7 = scmp.lt.u32.totalorder %s11875_s12, %s14751_s9 }
 0x306   : > { %p11877_p2 = pnand %p11876_p1, %p14670_p4 }
 0x308   : > { %p11878_p3 = pneg %p11877_p2 }
 0x30a   : > { %p11883_p8 = pnand %p11881_p7, %p11878_p3 }
 0x30c   : > { %11886 = shalt.err (!%p11883_p8)
}
 0x30d   : > { %s11887_s11 = scalar_lea.vmem %s13417_s5, 128  ;;  %p11894_p11 = scmp.lt.s32.totalorder %s13417_s5, %s13417_s5 }
 0x30e   : > { %p11888_p9 = scmp.ne.s32.totalorder %s13417_s5, %s11887_s11  ;;  %p11895_p12 = scmp.lt.s32.totalorder %s11887_s11, %s11887_s11 }
 0x310   : > { %p11889_p10 = pnand %p11888_p9, %p14670_p4  ;;  %p11896_p13 = por %p11895_p12, %p11894_p11 }
 0x312   : > { %p11890_p6 = pneg %p11889_p10 }
 0x314   : > { %p11897_p0 = pnand %p11896_p13, %p11890_p6 }
 0x316   : > { %11900 = shalt.err (!%p11897_p0)
}
 0x317   : > { %s14752_s2 = sld [smem:[#allocation112_spill]]  ;;  %s12752_s13 = smov [#allocation15]  }
 0x318   : > { %10594 = dma.hbm_to_vmem [thread:$0]  (%p14670_p4), %s14751_s9, 128, %s13417_s5, [#allocation11]  }
 0x319   : > { %s1311_s6 = sshll.u32 %s12752_s13, 4  ;;  %s12753_s12 = smov [#allocation18]   ;;  %s1312_s6 = int_to_ptr.vmem [resolvable:$true] %s1311_s6 }
 0x31a   : > { %s1335_s3 = sshll.u32 %s12753_s12, 4  ;;  %s13447_s3 = int_to_ptr.vmem [resolvable:$true] %s1335_s3 }
 0x31d   : > { %s11901_s11 = scalar_lea.hbm %s14752_s2, 64 }
 0x31e   : > { %p11902_p1 = scmp.ne.s32.totalorder %s14752_s2, %s11901_s11  ;;  %p11907_p7 = scmp.lt.u32.totalorder %s11901_s11, %s14752_s2 }
 0x320   : > { %p11903_p2 = pnand %p11902_p1, %p14670_p4 }
 0x322   : > { %p11904_p3 = pneg %p11903_p2 }
 0x324   : > { %p11909_p8 = pnand %p11907_p7, %p11904_p3 }
 0x326   : > { %11912 = shalt.err (!%p11909_p8)
}
 0x327   : > { %s11913_s10 = scalar_lea.vmem %s1312_s6, 64  ;;  %p11920_p11 = scmp.lt.s32.totalorder %s1312_s6, %s1312_s6 }
 0x328   : > { %p11914_p9 = scmp.ne.s32.totalorder %s1312_s6, %s11913_s10  ;;  %p11921_p12 = scmp.lt.s32.totalorder %s11913_s10, %s11913_s10 }
 0x32a   : > { %p11915_p10 = pnand %p11914_p9, %p14670_p4  ;;  %p11922_p13 = por %p11921_p12, %p11920_p11 }
 0x32c   : > { %p11916_p6 = pneg %p11915_p10 }
 0x32e   : > { %p11923_p0 = pnand %p11922_p13, %p11916_p6 }
 0x330   : > { %11926 = shalt.err (!%p11923_p0)
}
 0x331   : > { %s14753_s5 = sld [smem:[#allocation114_spill]] }
 0x332   : > { %10598 = dma.hbm_to_vmem [thread:$0]  (%p14670_p4), %s14752_s2, 64, %s1312_s6, [#allocation14]  }
 0x337   : > { %s11927_s13 = scalar_lea.hbm %s14753_s5, 64 }
 0x338   : > { %p11928_p1 = scmp.ne.s32.totalorder %s14753_s5, %s11927_s13  ;;  %p11933_p7 = scmp.lt.u32.totalorder %s11927_s13, %s14753_s5 }
 0x33a   : > { %p11929_p2 = pnand %p11928_p1, %p14670_p4 }
 0x33c   : > { %p11930_p3 = pneg %p11929_p2 }
 0x33e   : > { %p11935_p8 = pnand %p11933_p7, %p11930_p3 }
 0x340   : > { %11938 = shalt.err (!%p11935_p8)
}
 0x341   : > { %s11939_s10 = scalar_lea.vmem %s13447_s3, 64  ;;  %p11946_p11 = scmp.lt.s32.totalorder %s13447_s3, %s13447_s3 }
 0x342   : > { %p11940_p9 = scmp.ne.s32.totalorder %s13447_s3, %s11939_s10  ;;  %p11947_p12 = scmp.lt.s32.totalorder %s11939_s10, %s11939_s10 }
 0x344   : > { %p11941_p10 = pnand %p11940_p9, %p14670_p4  ;;  %p11948_p13 = por %p11947_p12, %p11946_p11 }
 0x346   : > { %p11942_p6 = pneg %p11941_p10 }
 0x348   : > { %p11949_p0 = pnand %p11948_p13, %p11942_p6 }
 0x34a   : > { %11952 = shalt.err (!%p11949_p0)
}
 0x34b   : > { %s14754_s6 = sld [smem:[#allocation116_spill]]  ;;  %s12754_s12 = smov [#allocation21]  }
 0x34c   : > { %10602 = dma.hbm_to_vmem [thread:$0]  (%p14670_p4), %s14753_s5, 64, %s13447_s3, [#allocation17]  }
 0x34d   : > { %s1359_s11 = sshll.u32 %s12754_s12, 4  ;;  %s12755_s13 = smov [#allocation24]   ;;  %s1360_s11 = int_to_ptr.vmem [resolvable:$true] %s1359_s11 }
 0x34e   : > { %s1381_s2 = sshll.u32 %s12755_s13, 4  ;;  %s13474_s2 = int_to_ptr.vmem [resolvable:$true] %s1381_s2 }
 0x351   : > { %s11953_s10 = scalar_lea.hbm %s14754_s6, 32 }
 0x352   : > { %p11954_p1 = scmp.ne.s32.totalorder %s14754_s6, %s11953_s10  ;;  %p11959_p7 = scmp.lt.u32.totalorder %s11953_s10, %s14754_s6 }
 0x354   : > { %p11955_p2 = pnand %p11954_p1, %p14670_p4 }
 0x356   : > { %p11956_p3 = pneg %p11955_p2 }
 0x358   : > { %p11961_p8 = pnand %p11959_p7, %p11956_p3 }
 0x35a   : > { %11964 = shalt.err (!%p11961_p8)
}
 0x35b   : > { %s11965_s9 = scalar_lea.vmem %s1360_s11, 32  ;;  %p11972_p11 = scmp.lt.s32.totalorder %s1360_s11, %s1360_s11 }
 0x35c   : > { %p11966_p9 = scmp.ne.s32.totalorder %s1360_s11, %s11965_s9  ;;  %p11973_p12 = scmp.lt.s32.totalorder %s11965_s9, %s11965_s9 }
 0x35e   : > { %p11967_p10 = pnand %p11966_p9, %p14670_p4  ;;  %p11974_p13 = por %p11973_p12, %p11972_p11 }
 0x360   : > { %p11968_p6 = pneg %p11967_p10 }
 0x362   : > { %p11975_p0 = pnand %p11974_p13, %p11968_p6 }
 0x364   : > { %11978 = shalt.err (!%p11975_p0)
}
 0x365   : > { %s14755_s3 = sld [smem:[#allocation117_spill]] }
 0x366   : > { %10606 = dma.hbm_to_vmem [thread:$0]  (%p14670_p4), %s14754_s6, 32, %s1360_s11, [#allocation20]  }
 0x36b   : > { %s11979_s12 = scalar_lea.hbm %s14755_s3, 64 }
 0x36c   : > { %p11980_p1 = scmp.ne.s32.totalorder %s14755_s3, %s11979_s12  ;;  %p11985_p7 = scmp.lt.u32.totalorder %s11979_s12, %s14755_s3 }
 0x36e   : > { %p11981_p2 = pnand %p11980_p1, %p14670_p4 }
 0x370   : > { %p11982_p3 = pneg %p11981_p2 }
 0x372   : > { %p11987_p8 = pnand %p11985_p7, %p11982_p3 }
 0x374   : > { %11990 = shalt.err (!%p11987_p8)
}
 0x375   : > { %s11991_s9 = scalar_lea.vmem %s13474_s2, 64  ;;  %p11998_p11 = scmp.lt.s32.totalorder %s13474_s2, %s13474_s2 }
 0x376   : > { %p11992_p9 = scmp.ne.s32.totalorder %s13474_s2, %s11991_s9  ;;  %p11999_p12 = scmp.lt.s32.totalorder %s11991_s9, %s11991_s9 }
 0x378   : > { %p11993_p10 = pnand %p11992_p9, %p14670_p4  ;;  %p12000_p13 = por %p11999_p12, %p11998_p11 }
 0x37a   : > { %p11994_p6 = pneg %p11993_p10 }
 0x37c   : > { %p12001_p0 = pnand %p12000_p13, %p11994_p6 }
 0x37e   : > { %12004 = shalt.err (!%p12001_p0)
}
 0x37f   : > { %s14756_s11 = sld [smem:[#allocation119_spill]]  ;;  %s12756_s13 = smov [#allocation27]  }
 0x380   : > { %10610 = dma.hbm_to_vmem [thread:$0]  (%p14670_p4), %s14755_s3, 64, %s13474_s2, [#allocation23]  }
 0x381   : > { %s1402_s10 = sshll.u32 %s12756_s13, 4  ;;  %s1403_s10 = int_to_ptr.vmem [resolvable:$true] %s1402_s10 }
 0x385   : > { %s12005_s12 = scalar_lea.hbm %s14756_s11, 512 }
 0x386   : > { %p12006_p1 = scmp.ne.s32.totalorder %s14756_s11, %s12005_s12  ;;  %p12011_p7 = scmp.lt.u32.totalorder %s12005_s12, %s14756_s11 }
 0x388   : > { %p12007_p2 = pnand %p12006_p1, %p14670_p4 }
 0x38a   : > { %p12008_p3 = pneg %p12007_p2 }
 0x38c   : > { %p12013_p8 = pnand %p12011_p7, %p12008_p3 }
 0x38e   : > { %12016 = shalt.err (!%p12013_p8)
}
 0x38f   : > { %s12017_s9 = scalar_lea.vmem %s1403_s10, 512  ;;  %p12024_p11 = scmp.lt.s32.totalorder %s1403_s10, %s1403_s10 }
 0x390   : > { %p12018_p9 = scmp.ne.s32.totalorder %s1403_s10, %s12017_s9  ;;  %p12025_p12 = scmp.lt.s32.totalorder %s12017_s9, %s12017_s9 }
 0x392   : > { %p12019_p10 = pnand %p12018_p9, %p14670_p4  ;;  %p12026_p13 = por %p12025_p12, %p12024_p11 }
 0x394   : > { %p12020_p6 = pneg %p12019_p10 }
 0x396   : > { %p12027_p0 = pnand %p12026_p13, %p12020_p6 }
 0x398   : > { %12030 = shalt.err (!%p12027_p0)
}
 0x399   : > { %s12757_s2 = smov 256   ;;  %s14757_s13 = sld [smem:[#allocation120_spill]] }
 0x39a   : > { %s12758_s12 = smov 16   ;;  %s12759_s3 = smov [#allocation30]  }
 0x39b   : > { %10614 = dma.hbm_to_vmem [thread:$0]  (%p14670_p4), %s14756_s11, 512, %s1403_s10, [#allocation26], %s12757_s2, %s12757_s2, %s12758_s12  }
 0x39c   : > { %s1427_s5 = sshll.u32 %s12759_s3, 4  ;;  %s12760_s6 = smov [#allocation33]   ;;  %s1428_s5 = int_to_ptr.vmem [resolvable:$true] %s1427_s5 }
 0x39d   : > { %s1450_s14 = sshll.u32 %s12760_s6, 4  ;;  %s1451_s14 = int_to_ptr.vmem [resolvable:$true] %s1450_s14 }
 0x39f   : > { %s12031_s19 = scalar_lea.hbm %s14757_s13, 64 }
 0x3a0   : > { %p12032_p1 = scmp.ne.s32.totalorder %s14757_s13, %s12031_s19  ;;  %p12037_p7 = scmp.lt.u32.totalorder %s12031_s19, %s14757_s13 }
 0x3a2   : > { %p12033_p2 = pnand %p12032_p1, %p14670_p4 }
 0x3a4   : > { %p12034_p3 = pneg %p12033_p2 }
 0x3a6   : > { %p12039_p8 = pnand %p12037_p7, %p12034_p3 }
 0x3a8   : > { %12042 = shalt.err (!%p12039_p8)
}
 0x3a9   : > { %s12043_s9 = scalar_lea.vmem %s1428_s5, 64  ;;  %p12050_p11 = scmp.lt.s32.totalorder %s1428_s5, %s1428_s5 }
 0x3aa   : > { %p12044_p9 = scmp.ne.s32.totalorder %s1428_s5, %s12043_s9  ;;  %p12051_p12 = scmp.lt.s32.totalorder %s12043_s9, %s12043_s9 }
 0x3ac   : > { %p12045_p10 = pnand %p12044_p9, %p14670_p4  ;;  %p12052_p13 = por %p12051_p12, %p12050_p11 }
 0x3ae   : > { %p12046_p6 = pneg %p12045_p10 }
 0x3b0   : > { %p12053_p0 = pnand %p12052_p13, %p12046_p6 }
 0x3b2   : > { %12056 = shalt.err (!%p12053_p0)
}
 0x3b3   : > { %s14758_s6 = sld [smem:[#allocation122_spill]] }
 0x3b4   : > { %10618 = dma.hbm_to_vmem [thread:$0]  (%p14670_p4), %s14757_s13, 64, %s1428_s5, [#allocation29]  }
 0x3b9   : > { %s12057_s19 = scalar_lea.hbm %s14758_s6, 256 }
 0x3ba   : > { %p12058_p1 = scmp.ne.s32.totalorder %s14758_s6, %s12057_s19  ;;  %p12063_p7 = scmp.lt.u32.totalorder %s12057_s19, %s14758_s6 }
 0x3bc   : > { %p12059_p2 = pnand %p12058_p1, %p14670_p4 }
 0x3be   : > { %p12060_p3 = pneg %p12059_p2 }
 0x3c0   : > { %p12065_p8 = pnand %p12063_p7, %p12060_p3 }
 0x3c2   : > { %12068 = shalt.err (!%p12065_p8)
}
 0x3c3   : > { %s12069_s3 = scalar_lea.vmem %s1451_s14, 256  ;;  %p12076_p11 = scmp.lt.s32.totalorder %s1451_s14, %s1451_s14 }
 0x3c4   : > { %p12070_p9 = scmp.ne.s32.totalorder %s1451_s14, %s12069_s3  ;;  %p12077_p12 = scmp.lt.s32.totalorder %s12069_s3, %s12069_s3 }
 0x3c6   : > { %p12071_p10 = pnand %p12070_p9, %p14670_p4  ;;  %p12078_p13 = por %p12077_p12, %p12076_p11 }
 0x3c8   : > { %p12072_p6 = pneg %p12071_p10 }
 0x3ca   : > { %p12079_p0 = pnand %p12078_p13, %p12072_p6 }
 0x3cc   : > { %12082 = shalt.err (!%p12079_p0)
}
 0x3cd   : > { %s14759_s5 = sld [smem:[#allocation124_spill]]  ;;  %s12761_s10 = smov [#allocation36]  }
 0x3ce   : > { %10622 = dma.hbm_to_vmem [thread:$0]  (%p14670_p4), %s14758_s6, 256, %s1451_s14, [#allocation32], %s14737_s0, %s14737_s0, %s14736_s17  }
 0x3cf   : > { %s1476_s2 = sshll.u32 %s12761_s10, 4  ;;  %s12762_s12 = smov [#allocation39]   ;;  %s1477_s2 = int_to_ptr.vmem [resolvable:$true] %s1476_s2 }
 0x3d0   : > { %s1502_s9 = sshll.u32 %s12762_s12, 4  ;;  %s1503_s9 = int_to_ptr.vmem [resolvable:$true] %s1502_s9 }
 0x3d3   : > { %s12083_s19 = scalar_lea.hbm %s14759_s5, 128 }
 0x3d4   : > { %p12084_p1 = scmp.ne.s32.totalorder %s14759_s5, %s12083_s19  ;;  %p12089_p7 = scmp.lt.u32.totalorder %s12083_s19, %s14759_s5 }
 0x3d6   : > { %p12085_p2 = pnand %p12084_p1, %p14670_p4 }
 0x3d8   : > { %p12086_p3 = pneg %p12085_p2 }
 0x3da   : > { %p12091_p8 = pnand %p12089_p7, %p12086_p3 }
 0x3dc   : > { %12094 = shalt.err (!%p12091_p8)
}
 0x3dd   : > { %s12095_s3 = scalar_lea.vmem %s1477_s2, 128  ;;  %p12102_p11 = scmp.lt.s32.totalorder %s1477_s2, %s1477_s2 }
 0x3de   : > { %p12096_p9 = scmp.ne.s32.totalorder %s1477_s2, %s12095_s3  ;;  %p12103_p12 = scmp.lt.s32.totalorder %s12095_s3, %s12095_s3 }
 0x3e0   : > { %p12097_p10 = pnand %p12096_p9, %p14670_p4  ;;  %p12104_p13 = por %p12103_p12, %p12102_p11 }
 0x3e2   : > { %p12098_p6 = pneg %p12097_p10 }
 0x3e4   : > { %p12105_p0 = pnand %p12104_p13, %p12098_p6 }
 0x3e6   : > { %12108 = shalt.err (!%p12105_p0)
}
 0x3e7   : > { %s14760_s14 = sld [smem:[#allocation125_spill]] }
 0x3e8   : > { %10626 = dma.hbm_to_vmem [thread:$0]  (%p14670_p4), %s14759_s5, 128, %s1477_s2, [#allocation35], %s14742_s15, %s14742_s15, %s14741_s8  }
 0x3ed   : > { %s12109_s10 = scalar_lea.hbm %s14760_s14, 1024 }
 0x3ee   : > { %p12110_p1 = scmp.ne.s32.totalorder %s14760_s14, %s12109_s10  ;;  %p12115_p7 = scmp.lt.u32.totalorder %s12109_s10, %s14760_s14 }
 0x3f0   : > { %p12111_p2 = pnand %p12110_p1, %p14670_p4 }
 0x3f2   : > { %p12112_p3 = pneg %p12111_p2 }
 0x3f4   : > { %p12117_p8 = pnand %p12115_p7, %p12112_p3 }
 0x3f6   : > { %12120 = shalt.err (!%p12117_p8)
}
 0x3f7   : > { %s12121_s12 = scalar_lea.vmem %s1503_s9, 1024  ;;  %p12128_p11 = scmp.lt.s32.totalorder %s1503_s9, %s1503_s9 }
 0x3f8   : > { %p12122_p9 = scmp.ne.s32.totalorder %s1503_s9, %s12121_s12  ;;  %p12129_p12 = scmp.lt.s32.totalorder %s12121_s12, %s12121_s12 }
 0x3fa   : > { %p12123_p10 = pnand %p12122_p9, %p14670_p4  ;;  %p12130_p13 = por %p12129_p12, %p12128_p11 }
 0x3fc   : > { %p12124_p6 = pneg %p12123_p10 }
 0x3fe   : > { %p12131_p0 = pnand %p12130_p13, %p12124_p6 }
 0x400   : > { %12134 = shalt.err (!%p12131_p0)
}
 0x401   : > { %s14761_s2 = sld [smem:[#allocation127_spill]]  ;;  %s12763_s19 = smov [#allocation42]  }
 0x402   : > { %10630 = dma.hbm_to_vmem [thread:$0]  (%p14670_p4), %s14760_s14, 1024, %s1503_s9, [#allocation38], %s14737_s0, %s14737_s0, %s14736_s17  }
 0x403   : > { %s1527_s3 = sshll.u32 %s12763_s19, 4  ;;  %s12764_s10 = smov [#allocation45]   ;;  %s1528_s3 = int_to_ptr.vmem [resolvable:$true] %s1527_s3 }
 0x404   : > { %s1549_s5 = sshll.u32 %s12764_s10, 4  ;;  %s1550_s5 = int_to_ptr.vmem [resolvable:$true] %s1549_s5 }
 0x407   : > { %s12135_s12 = scalar_lea.hbm %s14761_s2, 64 }
 0x408   : > { %p12136_p1 = scmp.ne.s32.totalorder %s14761_s2, %s12135_s12  ;;  %p12141_p7 = scmp.lt.u32.totalorder %s12135_s12, %s14761_s2 }
 0x40a   : > { %p12137_p2 = pnand %p12136_p1, %p14670_p4 }
 0x40c   : > { %p12138_p3 = pneg %p12137_p2 }
 0x40e   : > { %p12143_p8 = pnand %p12141_p7, %p12138_p3 }
 0x410   : > { %12146 = shalt.err (!%p12143_p8)
}
 0x411   : > { %s12147_s6 = scalar_lea.vmem %s1528_s3, 64  ;;  %p12154_p11 = scmp.lt.s32.totalorder %s1528_s3, %s1528_s3 }
 0x412   : > { %p12148_p9 = scmp.ne.s32.totalorder %s1528_s3, %s12147_s6  ;;  %p12155_p12 = scmp.lt.s32.totalorder %s12147_s6, %s12147_s6 }
 0x414   : > { %p12149_p10 = pnand %p12148_p9, %p14670_p4  ;;  %p12156_p13 = por %p12155_p12, %p12154_p11 }
 0x416   : > { %p12150_p6 = pneg %p12149_p10 }
 0x418   : > { %p12157_p0 = pnand %p12156_p13, %p12150_p6 }
 0x41a   : > { %12160 = shalt.err (!%p12157_p0)
}
 0x41b   : > { %s14762_s9 = sld [smem:[#allocation129_spill]] }
 0x41c   : > { %10634 = dma.hbm_to_vmem [thread:$0]  (%p14670_p4), %s14761_s2, 64, %s1528_s3, [#allocation41]  }
 0x421   : > { %s12161_s19 = scalar_lea.hbm %s14762_s9, 64 }
 0x422   : > { %p12162_p1 = scmp.ne.s32.totalorder %s14762_s9, %s12161_s19  ;;  %p12167_p7 = scmp.lt.u32.totalorder %s12161_s19, %s14762_s9 }
 0x424   : > { %p12163_p2 = pnand %p12162_p1, %p14670_p4 }
 0x426   : > { %p12164_p3 = pneg %p12163_p2 }
 0x428   : > { %p12169_p8 = pnand %p12167_p7, %p12164_p3 }
 0x42a   : > { %12172 = shalt.err (!%p12169_p8)
}
 0x42b   : > { %s12173_s6 = scalar_lea.vmem %s1550_s5, 64  ;;  %p12180_p11 = scmp.lt.s32.totalorder %s1550_s5, %s1550_s5 }
 0x42c   : > { %p12174_p9 = scmp.ne.s32.totalorder %s1550_s5, %s12173_s6  ;;  %p12181_p12 = scmp.lt.s32.totalorder %s12173_s6, %s12173_s6 }
 0x42e   : > { %p12175_p10 = pnand %p12174_p9, %p14670_p4  ;;  %p12182_p13 = por %p12181_p12, %p12180_p11 }
 0x430   : > { %p12176_p6 = pneg %p12175_p10 }
 0x432   : > { %p12183_p0 = pnand %p12182_p13, %p12176_p6 }
 0x434   : > { %12186 = shalt.err (!%p12183_p0)
}
 0x435   : > { %s14763_s3 = sld [smem:[#allocation130_spill]]  ;;  %s12765_s10 = smov [#allocation48]  }
 0x436   : > { %10638 = dma.hbm_to_vmem [thread:$0]  (%p14670_p4), %s14762_s9, 64, %s1550_s5, [#allocation44]  }
 0x437   : > { %s1573_s12 = sshll.u32 %s12765_s10, 4  ;;  %s12766_s19 = smov [#allocation51]   ;;  %s1574_s12 = int_to_ptr.vmem [resolvable:$true] %s1573_s12 }
 0x438   : > { %s1594_s2 = sshll.u32 %s12766_s19, 4  ;;  %s1595_s2 = int_to_ptr.vmem [resolvable:$true] %s1594_s2 }
 0x43b   : > { %s12187_s11 = scalar_lea.hbm %s14763_s3, 64 }
 0x43c   : > { %p12188_p1 = scmp.ne.s32.totalorder %s14763_s3, %s12187_s11  ;;  %p12193_p7 = scmp.lt.u32.totalorder %s12187_s11, %s14763_s3 }
 0x43e   : > { %p12189_p2 = pnand %p12188_p1, %p14670_p4 }
 0x440   : > { %p12190_p3 = pneg %p12189_p2 }
 0x442   : > { %p12195_p8 = pnand %p12193_p7, %p12190_p3 }
 0x444   : > { %12198 = shalt.err (!%p12195_p8)
}
 0x445   : > { %s12199_s6 = scalar_lea.vmem %s1574_s12, 64  ;;  %p12206_p11 = scmp.lt.s32.totalorder %s1574_s12, %s1574_s12 }
 0x446   : > { %p12200_p9 = scmp.ne.s32.totalorder %s1574_s12, %s12199_s6  ;;  %p12207_p12 = scmp.lt.s32.totalorder %s12199_s6, %s12199_s6 }
 0x448   : > { %p12201_p10 = pnand %p12200_p9, %p14670_p4  ;;  %p12208_p13 = por %p12207_p12, %p12206_p11 }
 0x44a   : > { %p12202_p6 = pneg %p12201_p10 }
 0x44c   : > { %p12209_p0 = pnand %p12208_p13, %p12202_p6 }
 0x44e   : > { %12212 = shalt.err (!%p12209_p0)
}
 0x44f   : > { %s14764_s5 = sld [smem:[#allocation132_spill]] }
 0x450   : > { %10642 = dma.hbm_to_vmem [thread:$0]  (%p14670_p4), %s14763_s3, 64, %s1574_s12, [#allocation47]  }
 0x455   : > { %s12213_s11 = scalar_lea.hbm %s14764_s5, 128 }
 0x456   : > { %p12214_p1 = scmp.ne.s32.totalorder %s14764_s5, %s12213_s11  ;;  %p12219_p7 = scmp.lt.u32.totalorder %s12213_s11, %s14764_s5 }
 0x458   : > { %p12215_p2 = pnand %p12214_p1, %p14670_p4 }
 0x45a   : > { %p12216_p3 = pneg %p12215_p2 }
 0x45c   : > { %p12221_p8 = pnand %p12219_p7, %p12216_p3 }
 0x45e   : > { %12224 = shalt.err (!%p12221_p8)
}
 0x45f   : > { %s12225_s10 = scalar_lea.vmem %s1595_s2, 128  ;;  %p12232_p11 = scmp.lt.s32.totalorder %s1595_s2, %s1595_s2 }
 0x460   : > { %p12226_p9 = scmp.ne.s32.totalorder %s1595_s2, %s12225_s10  ;;  %p12233_p12 = scmp.lt.s32.totalorder %s12225_s10, %s12225_s10 }
 0x462   : > { %p12227_p10 = pnand %p12226_p9, %p14670_p4  ;;  %p12234_p13 = por %p12233_p12, %p12232_p11 }
 0x464   : > { %p12228_p6 = pneg %p12227_p10 }
 0x466   : > { %p12235_p0 = pnand %p12234_p13, %p12228_p6 }
 0x468   : > { %12238 = shalt.err (!%p12235_p0)
}
 0x469   : > { %s14765_s12 = sld [smem:[#allocation134_spill]]  ;;  %s12767_s19 = smov [#allocation54]  }
 0x46a   : > { %10646 = dma.hbm_to_vmem [thread:$0]  (%p14670_p4), %s14764_s5, 128, %s1595_s2, [#allocation50], %s14742_s15, %s14742_s15, %s14741_s8  }
 0x46b   : > { %s1620_s6 = sshll.u32 %s12767_s19, 4  ;;  %s12768_s11 = smov [#allocation57]   ;;  %s1621_s6 = int_to_ptr.vmem [resolvable:$true] %s1620_s6 }
 0x46c   : > { %s1646_s3 = sshll.u32 %s12768_s11, 4  ;;  %s1647_s3 = int_to_ptr.vmem [resolvable:$true] %s1646_s3 }
 0x46f   : > { %s12239_s10 = scalar_lea.hbm %s14765_s12, 256 }
 0x470   : > { %p12240_p1 = scmp.ne.s32.totalorder %s14765_s12, %s12239_s10  ;;  %p12245_p7 = scmp.lt.u32.totalorder %s12239_s10, %s14765_s12 }
 0x472   : > { %p12241_p2 = pnand %p12240_p1, %p14670_p4 }
 0x474   : > { %p12242_p3 = pneg %p12241_p2 }
 0x476   : > { %p12247_p8 = pnand %p12245_p7, %p12242_p3 }
 0x478   : > { %12250 = shalt.err (!%p12247_p8)
}
 0x479   : > { %s12251_s9 = scalar_lea.vmem %s1621_s6, 256  ;;  %p12258_p11 = scmp.lt.s32.totalorder %s1621_s6, %s1621_s6 }
 0x47a   : > { %p12252_p9 = scmp.ne.s32.totalorder %s1621_s6, %s12251_s9  ;;  %p12259_p12 = scmp.lt.s32.totalorder %s12251_s9, %s12251_s9 }
 0x47c   : > { %p12253_p10 = pnand %p12252_p9, %p14670_p4  ;;  %p12260_p13 = por %p12259_p12, %p12258_p11 }
 0x47e   : > { %p12254_p6 = pneg %p12253_p10 }
 0x480   : > { %p12261_p0 = pnand %p12260_p13, %p12254_p6 }
 0x482   : > { %12264 = shalt.err (!%p12261_p0)
}
 0x483   : > { %s14766_s2 = sld [smem:[#allocation136_spill]] }
 0x484   : > { %10650 = dma.hbm_to_vmem [thread:$0]  (%p14670_p4), %s14765_s12, 256, %s1621_s6, [#allocation53], %s14737_s0, %s14737_s0, %s14736_s17  }
 0x489   : > { %s12265_s19 = scalar_lea.hbm %s14766_s2, 2048 }
 0x48a   : > { %p12266_p1 = scmp.ne.s32.totalorder %s14766_s2, %s12265_s19  ;;  %p12271_p7 = scmp.lt.u32.totalorder %s12265_s19, %s14766_s2 }
 0x48c   : > { %p12267_p2 = pnand %p12266_p1, %p14670_p4 }
 0x48e   : > { %p12268_p3 = pneg %p12267_p2 }
 0x490   : > { %p12273_p8 = pnand %p12271_p7, %p12268_p3 }
 0x492   : > { %12276 = shalt.err (!%p12273_p8)
}
 0x493   : > { %s12277_s9 = scalar_lea.vmem %s1647_s3, 2048  ;;  %p12284_p11 = scmp.lt.s32.totalorder %s1647_s3, %s1647_s3 }
 0x494   : > { %p12278_p9 = scmp.ne.s32.totalorder %s1647_s3, %s12277_s9  ;;  %p12285_p12 = scmp.lt.s32.totalorder %s12277_s9, %s12277_s9 }
 0x496   : > { %p12279_p10 = pnand %p12278_p9, %p14670_p4  ;;  %p12286_p13 = por %p12285_p12, %p12284_p11 }
 0x498   : > { %p12280_p6 = pneg %p12279_p10 }
 0x49a   : > { %p12287_p0 = pnand %p12286_p13, %p12280_p6 }
 0x49c   : > { %12290 = shalt.err (!%p12287_p0)
}
 0x49d   : > { %s14767_s6 = sld [smem:[#allocation138_spill]]  ;;  %s12769_s11 = smov [#allocation60]  }
 0x49e   : > { %10654 = dma.hbm_to_vmem [thread:$0]  (%p14670_p4), %s14766_s2, 2048, %s1647_s3, [#allocation56], %s14742_s15, %s14742_s15, %s14741_s8  }
 0x49f   : > { %s1673_s10 = sshll.u32 %s12769_s11, 4  ;;  %s12770_s19 = smov [#allocation63]   ;;  %s1674_s10 = int_to_ptr.vmem [resolvable:$true] %s1673_s10 }
 0x4a0   : > { %s1695_s5 = sshll.u32 %s12770_s19, 4  ;;  %s1696_s5 = int_to_ptr.vmem [resolvable:$true] %s1695_s5 }
 0x4a3   : > { %s12291_s9 = scalar_lea.hbm %s14767_s6, 32 }
 0x4a4   : > { %p12292_p1 = scmp.ne.s32.totalorder %s14767_s6, %s12291_s9  ;;  %p12297_p7 = scmp.lt.u32.totalorder %s12291_s9, %s14767_s6 }
 0x4a6   : > { %p12293_p2 = pnand %p12292_p1, %p14670_p4 }
 0x4a8   : > { %p12294_p3 = pneg %p12293_p2 }
 0x4aa   : > { %p12299_p8 = pnand %p12297_p7, %p12294_p3 }
 0x4ac   : > { %12302 = shalt.err (!%p12299_p8)
}
 0x4ad   : > { %s12303_s12 = scalar_lea.vmem %s1674_s10, 32  ;;  %p12310_p11 = scmp.lt.s32.totalorder %s1674_s10, %s1674_s10 }
 0x4ae   : > { %p12304_p9 = scmp.ne.s32.totalorder %s1674_s10, %s12303_s12  ;;  %p12311_p12 = scmp.lt.s32.totalorder %s12303_s12, %s12303_s12 }
 0x4b0   : > { %p12305_p10 = pnand %p12304_p9, %p14670_p4  ;;  %p12312_p13 = por %p12311_p12, %p12310_p11 }
 0x4b2   : > { %p12306_p6 = pneg %p12305_p10 }
 0x4b4   : > { %p12313_p0 = pnand %p12312_p13, %p12306_p6 }
 0x4b6   : > { %12316 = shalt.err (!%p12313_p0)
}
 0x4b7   : > { %s14768_s3 = sld [smem:[#allocation140_spill]] }
 0x4b8   : > { %10658 = dma.hbm_to_vmem [thread:$0]  (%p14670_p4), %s14767_s6, 32, %s1674_s10, [#allocation59]  }
 0x4bd   : > { %s12317_s11 = scalar_lea.hbm %s14768_s3, 64 }
 0x4be   : > { %p12318_p1 = scmp.ne.s32.totalorder %s14768_s3, %s12317_s11  ;;  %p12323_p7 = scmp.lt.u32.totalorder %s12317_s11, %s14768_s3 }
 0x4c0   : > { %p12319_p2 = pnand %p12318_p1, %p14670_p4 }
 0x4c2   : > { %p12320_p3 = pneg %p12319_p2 }
 0x4c4   : > { %p12325_p8 = pnand %p12323_p7, %p12320_p3 }
 0x4c6   : > { %12328 = shalt.err (!%p12325_p8)
}
 0x4c7   : > { %s12329_s12 = scalar_lea.vmem %s1696_s5, 64  ;;  %p12336_p11 = scmp.lt.s32.totalorder %s1696_s5, %s1696_s5 }
 0x4c8   : > { %p12330_p9 = scmp.ne.s32.totalorder %s1696_s5, %s12329_s12  ;;  %p12337_p12 = scmp.lt.s32.totalorder %s12329_s12, %s12329_s12 }
 0x4ca   : > { %p12331_p10 = pnand %p12330_p9, %p14670_p4  ;;  %p12338_p13 = por %p12337_p12, %p12336_p11 }
 0x4cc   : > { %p12332_p6 = pneg %p12331_p10 }
 0x4ce   : > { %p12339_p0 = pnand %p12338_p13, %p12332_p6 }
 0x4d0   : > { %12342 = shalt.err (!%p12339_p0)
}
 0x4d1   : > { %s14769_s10 = sld [smem:[#allocation142_spill]]  ;;  %s12771_s19 = smov [#allocation66]  }
 0x4d2   : > { %10662 = dma.hbm_to_vmem [thread:$0]  (%p14670_p4), %s14768_s3, 64, %s1696_s5, [#allocation62]  }
 0x4d3   : > { %s1716_s9 = sshll.u32 %s12771_s19, 4  ;;  %s12772_s11 = smov [#allocation69]   ;;  %s1717_s9 = int_to_ptr.vmem [resolvable:$true] %s1716_s9 }
 0x4d4   : > { %s1741_s2 = sshll.u32 %s12772_s11, 4  ;;  %s1742_s2 = int_to_ptr.vmem [resolvable:$true] %s1741_s2 }
 0x4d7   : > { %s12343_s6 = scalar_lea.hbm %s14769_s10, 2304 }
 0x4d8   : > { %p12344_p1 = scmp.ne.s32.totalorder %s14769_s10, %s12343_s6  ;;  %p12349_p7 = scmp.lt.u32.totalorder %s12343_s6, %s14769_s10 }
 0x4da   : > { %p12345_p2 = pnand %p12344_p1, %p14670_p4 }
 0x4dc   : > { %p12346_p3 = pneg %p12345_p2 }
 0x4de   : > { %p12351_p8 = pnand %p12349_p7, %p12346_p3 }
 0x4e0   : > { %12354 = shalt.err (!%p12351_p8)
}
 0x4e1   : > { %s12355_s12 = scalar_lea.vmem %s1717_s9, 2304  ;;  %p12362_p11 = scmp.lt.s32.totalorder %s1717_s9, %s1717_s9 }
 0x4e2   : > { %p12356_p9 = scmp.ne.s32.totalorder %s1717_s9, %s12355_s12  ;;  %p12363_p12 = scmp.lt.s32.totalorder %s12355_s12, %s12355_s12 }
 0x4e4   : > { %p12357_p10 = pnand %p12356_p9, %p14670_p4  ;;  %p12364_p13 = por %p12363_p12, %p12362_p11 }
 0x4e6   : > { %p12358_p6 = pneg %p12357_p10 }
 0x4e8   : > { %p12365_p0 = pnand %p12364_p13, %p12358_p6 }
 0x4ea   : > { %12368 = shalt.err (!%p12365_p0)
}
 0x4eb   : > { %s14770_s5 = sld [smem:[#allocation144_spill]] }
 0x4ec   : > { %10666 = dma.hbm_to_vmem [thread:$0]  (%p14670_p4), %s14769_s10, 2304, %s1717_s9, [#allocation65], %s14737_s0, %s14737_s0, %s14736_s17  }
 0x4f1   : > { %s12369_s6 = scalar_lea.hbm %s14770_s5, 64 }
 0x4f2   : > { %p12370_p1 = scmp.ne.s32.totalorder %s14770_s5, %s12369_s6  ;;  %p12375_p7 = scmp.lt.u32.totalorder %s12369_s6, %s14770_s5 }
 0x4f4   : > { %p12371_p2 = pnand %p12370_p1, %p14670_p4 }
 0x4f6   : > { %p12372_p3 = pneg %p12371_p2 }
 0x4f8   : > { %p12377_p8 = pnand %p12375_p7, %p12372_p3 }
 0x4fa   : > { %12380 = shalt.err (!%p12377_p8)
}
 0x4fb   : > { %s12381_s19 = scalar_lea.vmem %s1742_s2, 64  ;;  %p12388_p11 = scmp.lt.s32.totalorder %s1742_s2, %s1742_s2 }
 0x4fc   : > { %p12382_p9 = scmp.ne.s32.totalorder %s1742_s2, %s12381_s19  ;;  %p12389_p12 = scmp.lt.s32.totalorder %s12381_s19, %s12381_s19 }
 0x4fe   : > { %p12383_p10 = pnand %p12382_p9, %p14670_p4  ;;  %p12390_p13 = por %p12389_p12, %p12388_p11 }
 0x500   : > { %p12384_p6 = pneg %p12383_p10 }
 0x502   : > { %p12391_p0 = pnand %p12390_p13, %p12384_p6 }
 0x504   : > { %12394 = shalt.err (!%p12391_p0)
}
 0x505   : > { %s14771_s9 = sld [smem:[#allocation146_spill]]  ;;  %s12773_s11 = smov [#allocation72]  }
 0x506   : > { %10670 = dma.hbm_to_vmem [thread:$0]  (%p14670_p4), %s14770_s5, 64, %s1742_s2, [#allocation68]  }
 0x507   : > { %s1764_s12 = sshll.u32 %s12773_s11, 4  ;;  %s12774_s6 = smov [#allocation75]   ;;  %s1765_s12 = int_to_ptr.vmem [resolvable:$true] %s1764_s12 }
 0x508   : > { %s1790_s3 = sshll.u32 %s12774_s6, 4  ;;  %s1791_s3 = int_to_ptr.vmem [resolvable:$true] %s1790_s3 }
 0x50b   : > { %s12395_s10 = scalar_lea.hbm %s14771_s9, 256 }
 0x50c   : > { %p12396_p1 = scmp.ne.s32.totalorder %s14771_s9, %s12395_s10  ;;  %p12401_p7 = scmp.lt.u32.totalorder %s12395_s10, %s14771_s9 }
 0x50e   : > { %p12397_p2 = pnand %p12396_p1, %p14670_p4 }
 0x510   : > { %p12398_p3 = pneg %p12397_p2 }
 0x512   : > { %p12403_p8 = pnand %p12401_p7, %p12398_p3 }
 0x514   : > { %12406 = shalt.err (!%p12403_p8)
}
 0x515   : > { %s12407_s19 = scalar_lea.vmem %s1765_s12, 256  ;;  %p12414_p11 = scmp.lt.s32.totalorder %s1765_s12, %s1765_s12 }
 0x516   : > { %p12408_p9 = scmp.ne.s32.totalorder %s1765_s12, %s12407_s19  ;;  %p12415_p12 = scmp.lt.s32.totalorder %s12407_s19, %s12407_s19 }
 0x518   : > { %p12409_p10 = pnand %p12408_p9, %p14670_p4  ;;  %p12416_p13 = por %p12415_p12, %p12414_p11 }
 0x51a   : > { %p12410_p6 = pneg %p12409_p10 }
 0x51c   : > { %p12417_p0 = pnand %p12416_p13, %p12410_p6 }
 0x51e   : > { %12420 = shalt.err (!%p12417_p0)
}
 0x51f   : > { %10674 = dma.hbm_to_vmem [thread:$0]  (%p14670_p4), %s14771_s9, 256, %s1765_s12, [#allocation71], %s14737_s0, %s14737_s0, %s14736_s17  }
 0x520   : > { %s12421_s2 = scalar_lea.hbm %s13044_s20, 128 }
 0x521   : > { %p12422_p1 = scmp.ne.s32.totalorder %s13044_s20, %s12421_s2  ;;  %p12427_p7 = scmp.lt.u32.totalorder %s12421_s2, %s13044_s20 }
 0x523   : > { %p12423_p2 = pnand %p12422_p1, %p14670_p4 }
 0x525   : > { %p12424_p3 = pneg %p12423_p2 }
 0x527   : > { %p12429_p8 = pnand %p12427_p7, %p12424_p3 }
 0x529   : > { %12432 = shalt.err (!%p12429_p8)
}
 0x52a   : > { %s12433_s10 = scalar_lea.vmem %s1791_s3, 128  ;;  %p12440_p11 = scmp.lt.s32.totalorder %s1791_s3, %s1791_s3 }
 0x52b   : > { %p12434_p9 = scmp.ne.s32.totalorder %s1791_s3, %s12433_s10  ;;  %p12441_p12 = scmp.lt.s32.totalorder %s12433_s10, %s12433_s10 }
 0x52d   : > { %p12435_p10 = pnand %p12434_p9, %p14670_p4  ;;  %p12442_p13 = por %p12441_p12, %p12440_p11 }
 0x52f   : > { %p12436_p6 = pneg %p12435_p10 }
 0x531   : > { %p12443_p0 = pnand %p12442_p13, %p12436_p6 }
 0x533   : > { %12446 = shalt.err (!%p12443_p0)
}
 0x534   : > { %10678 = dma.hbm_to_vmem [thread:$0]  (%p14670_p4), %s13044_s20, 128, %s1791_s3, [#allocation74], %s14742_s15, %s14742_s15, %s14741_s8  }
 0x535   : > { %s12775_s11 = smov [#allocation78]   ;;  %s12447_s6 = scalar_lea.hbm %s13054_s4, 256 }
 0x536   : > { %s1816_s12 = sshll.u32 %s12775_s11, 4  ;;  %p12448_p1 = scmp.ne.s32.totalorder %s13054_s4, %s12447_s6  ;;  %s1817_s12 = int_to_ptr.vmem [resolvable:$true] %s1816_s12 }
 0x537   : > { %p12453_p7 = scmp.lt.u32.totalorder %s12447_s6, %s13054_s4 }
 0x538   : > { %p12449_p2 = pnand %p12448_p1, %p14670_p4 }
 0x53a   : > { %p12450_p3 = pneg %p12449_p2 }
 0x53c   : > { %p12455_p8 = pnand %p12453_p7, %p12450_p3 }
 0x53e   : > { %12458 = shalt.err (!%p12455_p8)
}
 0x53f   : > { %s12459_s19 = scalar_lea.vmem %s1817_s12, 256  ;;  %p12466_p11 = scmp.lt.s32.totalorder %s1817_s12, %s1817_s12 }
 0x540   : > { %p12460_p9 = scmp.ne.s32.totalorder %s1817_s12, %s12459_s19  ;;  %p12467_p12 = scmp.lt.s32.totalorder %s12459_s19, %s12459_s19 }
 0x542   : > { %p12461_p10 = pnand %p12460_p9, %p14670_p4  ;;  %p12468_p13 = por %p12467_p12, %p12466_p11 }
 0x544   : > { %p12462_p6 = pneg %p12461_p10 }
 0x546   : > { %p12469_p0 = pnand %p12468_p13, %p12462_p6 }
 0x548   : > { %12472 = shalt.err (!%p12469_p0)
}
 0x549   : > { %10682 = dma.hbm_to_vmem [thread:$0]  (%p14670_p4), %s13054_s4, 256, %s1817_s12, [#allocation77], %s14737_s0, %s14737_s0, %s14736_s17  }
 0x54a PF: > { %s14772_s8 = sld [smem:[#allocation108_spill]]  ;;  %p10842_p2 = scmp.lt.s32.totalorder %s12669_s18, 2 }
 0x54b   : > { %s1830_s15 = sand.u32 1, %s12665_s16   ;;  %s9693_s3 = sshll.u32 %s12669_s18, 9 }
 0x54c   : > { %s9467_s2 = sshll.u32 %s1830_s15, 5  ;;  %p13720_p3 = pnand %p10842_p2, %p13100_p5 }
 0x54d   : > { %s1834_s17 = scalar_lea.vmem [#allocation6], %s9467_s2  ;;  %s13726_s12 = scalar_lea.sflag [#allocation3], %s1830_s15 }
 0x54e   : > { %s1841_s0 = sshll.u32 %s1834_s17, 4  ;;  %p12475_p8 = pneg %p13720_p3  ;;  %s13724_s0 = int_to_ptr.vmem [resolvable:$true] %s1841_s0 }
 0x550   : > { %s13716_s10 = scalar_lea.hbm %s14772_s8, %s9693_s3  ;;  %s12478_s19 = scalar_lea.hbm %s14772_s8, 1024 }
 0x551   : > { %s12473_s6 = scalar_lea.hbm %s13716_s10, 512  ;;  %p12479_p6 = scmp.lt.u32.totalorder %s13716_s10, %s14772_s8 }
 0x552   : > { %p12474_p7 = scmp.ne.s32.totalorder %s13716_s10, %s12473_s6  ;;  %p12480_p5 = scmp.lt.u32.totalorder %s12478_s19, %s12473_s6 }
 0x553   : > { %p12482_p12 = scmp.lt.u32.totalorder %s12473_s6, %s13716_s10 }
 0x554   : > { %p12476_p9 = pnand %p12475_p8, %p12474_p7  ;;  %p12481_p11 = por %p12480_p5, %p12479_p6 }
 0x556   : > { %p12477_p10 = pneg %p12476_p9  ;;  %p12483_p13 = por %p12482_p12, %p12481_p11 }
 0x558   : > { %p12484_p0 = pnand %p12483_p13, %p12477_p10 }
 0x55a   : > { %12487 = shalt.err (!%p12484_p0)
}
 0x55b   : > { %s12488_s7 = scalar_lea.vmem %s13724_s0, 512  ;;  %s12776_s15 = smov [#allocation6]  }
 0x55c   : > { %p12489_p2 = scmp.ne.s32.totalorder %s13724_s0, %s12488_s7  ;;  %s12493_s3 = sshll.u32 %s12776_s15, 4  ;;  %s12494_s3 = int_to_ptr.vmem [resolvable:$false] %s12493_s3 }
 0x55d   : > { %s12495_s2 = scalar_lea.vmem %s12494_s3, 1024  ;;  %p12496_p7 = scmp.lt.s32.totalorder %s13724_s0, %s12494_s3 }
 0x55e   : > { %p12491_p1 = pnand %p12489_p2, %p12475_p8  ;;  %p12497_p9 = scmp.lt.s32.totalorder %s12495_s2, %s12488_s7 }
 0x560   : > { %p12492_p4 = pneg %p12491_p1  ;;  %p12498_p6 = por %p12497_p9, %p12496_p7 }
 0x562   : > { %p12499_p5 = pnand %p12498_p6, %p12492_p4 }
 0x564   : > { %12502 = shalt.err (!%p12499_p5)
}
 0x565   : > { %s12777_s17 = smov 256   ;;  %s12778_s6 = smov 16  }
 0x566   : > { %10788 = dma.hbm_to_vmem [thread:$0]  (!%p13720_p3), %s13716_s10, 512, %s13724_s0, %s13726_s12, %s12777_s17, %s12777_s17, %s12778_s6  }
 0x567   : > { %p14774_p8 = scmp.ne.s32.totalorder %s14735_s1, 0 }
 0x568   : > { %p14775_p1 = scmp.eq.s32.totalorder (!%p14774_p8), %s13082_s22, 0 }
 0x569   : > { %1853 = sbr.rel (%p14774_p8) target bundleno = 12441 (0x3099), region = 220 }
 0x570   : > { %12548 = dma.done.wait (%p14775_p1), [#allocation5], 16   ;;  %p14776_p10 = pmov %p14775_p1 }
 0x571   : > { %s14777_s19 = sld [smem:[#allocation151_spill]]  ;;  %s14778_s7 = sld [smem:[#allocation154_spill]] }
 0x572   : > { %12550 = vsyncadd (%p14776_p10), [#allocation5], 4294967280 }
 0x577   : > { %s13757_s15 = sand.u32 1, %s14777_s19   ;;  %p14779_p4 = scmp.ne.s32.totalorder %s14778_s7, 0 }
 0x578   : > { %s9472_s3 = sshll.u32 %s13757_s15, 5  ;;  %s1860_s2 = scalar_lea.sflag [#allocation3], %s13757_s15 }
 0x579   : > { %s13763_s10 = scalar_lea.vmem [#allocation6], %s9472_s3 }
 0x57a   : > { %12552 = dma.done.wait (%p14779_p4), %s1860_s2, 512  }
 0x57b   : > { %12554 = vsyncadd (%p14779_p4), %s1860_s2, 4294966784  ;;  %p14780_p3 = pmov %p14775_p1 }
 0x57c   : > { %p14781_p11 = pmov %p14775_p1 }
 0x57d   : > { %12556 = dma.done.wait (%p14780_p3), [#allocation8], 512  }
 0x57e   : > { %12558 = vsyncadd (%p14781_p11), [#allocation8], 4294966784  ;;  %p14782_p12 = pmov %p14775_p1 }
 0x57f   : > { %p14783_p13 = pmov %p14775_p1 }
 0x580   : > { %12560 = dma.done.wait (%p14782_p12), [#allocation11], 384  }
 0x581   : > { %12562 = vsyncadd (%p14783_p13), [#allocation11], 4294966912  ;;  %p14784_p0 = pmov %p14775_p1 }
 0x583   : > { %12564 = dma.done.wait (%p14784_p0), [#allocation14], 128   ;;  %p14785_p2 = pmov %p14784_p0 }
 0x584   : > { %p14786_p7 = pmov %p14784_p0 }
 0x585   : > { %12566 = vsyncadd (%p14785_p2), [#allocation14], 4294967168 }
 0x586   : > { %12568 = dma.done.wait (%p14786_p7), [#allocation17], 320   ;;  %p14787_p9 = pmov %p14784_p0 }
 0x587   : > { %p14788_p6 = pmov %p14784_p0 }
 0x588   : > { %12570 = vsyncadd (%p14787_p9), [#allocation17], 4294966976 }
 0x589   : > { %12572 = dma.done.wait (%p14788_p6), [#allocation20], 160   ;;  %p14789_p5 = pmov %p14784_p0 }
 0x58a   : > { %p14790_p8 = pmov %p14784_p0 }
 0x58b   : > { %12574 = vsyncadd (%p14789_p5), [#allocation20], 4294967136 }
 0x58c   : > { %12576 = dma.done.wait (%p14790_p8), [#allocation23], 128   ;;  %p14791_p1 = pmov %p14784_p0 }
 0x58d   : > { %p14792_p10 = pmov %p14784_p0 }
 0x58e   : > { %12578 = vsyncadd (%p14791_p1), [#allocation23], 4294967168 }
 0x58f   : > { %12580 = dma.done.wait (%p14792_p10), [#allocation26], 576   ;;  %p14793_p4 = pmov %p14784_p0 }
 0x590   : > { %p14794_p3 = pmov %p14784_p0 }
 0x591   : > { %12582 = vsyncadd (%p14793_p4), [#allocation26], 4294966720 }
 0x592   : > { %12584 = dma.done.wait (%p14794_p3), [#allocation29], 128   ;;  %p14795_p11 = pmov %p14784_p0 }
 0x593   : > { %p14796_p12 = pmov %p14784_p0 }
 0x594   : > { %12586 = vsyncadd (%p14795_p11), [#allocation29], 4294967168 }
 0x595   : > { %12588 = dma.done.wait (%p14796_p12), [#allocation32], 384   ;;  %p14797_p13 = pmov %p14784_p0 }
 0x597   : > { %12590 = vsyncadd (%p14797_p13), [#allocation32], 4294966912 }
 0x598   : > { %12592 = dma.done.wait (%p14784_p0), [#allocation35], 384   ;;  %p14798_p2 = pmov %p14784_p0 }
 0x599   : > { %p14799_p7 = pmov %p14784_p0 }
 0x59a   : > { %12594 = vsyncadd (%p14798_p2), [#allocation35], 4294966912 }
 0x59b   : > { %12596 = dma.done.wait (%p14799_p7), [#allocation38], 3072   ;;  %p14800_p9 = pmov %p14784_p0 }
 0x59c   : > { %p14801_p6 = pmov %p14784_p0 }
 0x59d   : > { %12598 = vsyncadd (%p14800_p9), [#allocation38], 4294964224 }
 0x59e   : > { %12600 = dma.done.wait (%p14801_p6), [#allocation41], 96   ;;  %p14802_p5 = pmov %p14784_p0 }
 0x59f   : > { %p14803_p8 = pmov %p14784_p0 }
 0x5a0   : > { %12602 = vsyncadd (%p14802_p5), [#allocation41], 4294967200 }
 0x5a1   : > { %12604 = dma.done.wait (%p14803_p8), [#allocation44], 128   ;;  %p14804_p1 = pmov %p14784_p0 }
 0x5a2   : > { %p14805_p10 = pmov %p14784_p0 }
 0x5a3   : > { %12606 = vsyncadd (%p14804_p1), [#allocation44], 4294967168 }
 0x5a4   : > { %12608 = dma.done.wait (%p14805_p10), [#allocation47], 9280   ;;  %p14806_p4 = pmov %p14784_p0 }
 0x5a5   : > { %p14807_p3 = pmov %p14784_p0 }
 0x5a6   : > { %12610 = vsyncadd (%p14806_p4), [#allocation47], 4294958016 }
 0x5a7   : > { %12612 = dma.done.wait (%p14807_p3), [#allocation50], 192   ;;  %p14808_p11 = pmov %p14784_p0 }
 0x5a8   : > { %p14809_p12 = pmov %p14784_p0 }
 0x5a9   : > { %12614 = vsyncadd (%p14808_p11), [#allocation50], 4294967104 }
 0x5aa   : > { %12616 = dma.done.wait (%p14809_p12), [#allocation53], 512   ;;  %p14810_p13 = pmov %p14784_p0 }
 0x5ac   : > { %12618 = vsyncadd (%p14810_p13), [#allocation53], 4294966784 }
 0x5ad   : > { %12620 = dma.done.wait (%p14784_p0), [#allocation56], 2176   ;;  %p14811_p2 = pmov %p14784_p0 }
 0x5ae   : > { %p14812_p7 = pmov %p14784_p0 }
 0x5af   : > { %12622 = vsyncadd (%p14811_p2), [#allocation56], 4294965120 }
 0x5b0   : > { %12624 = dma.done.wait (%p14812_p7), [#allocation59], 288   ;;  %p14813_p9 = pmov %p14784_p0 }
 0x5b1   : > { %p14814_p6 = pmov %p14784_p0 }
 0x5b2   : > { %12626 = vsyncadd (%p14813_p9), [#allocation59], 4294967008 }
 0x5b3   : > { %12628 = dma.done.wait (%p14814_p6), [#allocation62], 128   ;;  %p14815_p5 = pmov %p14784_p0 }
 0x5b4   : > { %p14816_p8 = pmov %p14784_p0 }
 0x5b5   : > { %12630 = vsyncadd (%p14815_p5), [#allocation62], 4294967168 }
 0x5b6   : > { %12632 = dma.done.wait (%p14816_p8), [#allocation65], 2368   ;;  %p14817_p1 = pmov %p14784_p0 }
 0x5b7   : > { %p14818_p10 = pmov %p14784_p0 }
 0x5b8   : > { %12634 = vsyncadd (%p14817_p1), [#allocation65], 4294964928 }
 0x5b9   : > { %12636 = dma.done.wait (%p14818_p10), [#allocation68], 128   ;;  %p14819_p4 = pmov %p14784_p0 }
 0x5ba   : > { %p14820_p3 = pmov %p14784_p0 }
 0x5bb   : > { %12638 = vsyncadd (%p14819_p4), [#allocation68], 4294967168 }
 0x5bc   : > { %12640 = dma.done.wait (%p14820_p3), [#allocation71], 384   ;;  %p14821_p11 = pmov %p14784_p0 }
 0x5bd   : > { %p14822_p12 = pmov %p14784_p0 }
 0x5be   : > { %12642 = vsyncadd (%p14821_p11), [#allocation71], 4294966912 }
 0x5bf   : > { %12644 = dma.done.wait (%p14822_p12), [#allocation74], 384   ;;  %p14823_p13 = pmov %p14784_p0 }
 0x5c1   : > { %12646 = vsyncadd (%p14823_p13), [#allocation74], 4294966912 }
 0x5c2   : > { %12648 = dma.done.wait (%p14784_p0), [#allocation77], 512   ;;  %p14824_p2 = pmov %p14784_p0 }
 0x5c4   : > { %12650 = vsyncadd (%p14824_p2), [#allocation77], 4294966784 }
 0x5c5   : > { %2060 = sfence }
 0x5c6   : > { %v13866_v0 = vld [vmem:[%s13763_s10] sm:$0xff]  ;;  %v13869_v1 = vld [vmem:[%s13763_s10 + $0x8] sm:$0xff]  ;;  %v13872_v2 = vld [vmem:[%s13763_s10 + $0x10] sm:$0xff]  ;;  %v12779_v12 = vmov 0.0|0.0   ;;  %vm12780_vm0 = vmmov 0   ;;  %v12781_v13 = vmov 0.0  }
 0x5c7   : > { %v2316_v3 = vadd.f32 %v13869_v1, %v13866_v0  ;;  %v2322_v4 = vmul.f32 %v13866_v0, %v13866_v0  ;;  %v2323_v5 = vmul.f32 %v13869_v1, %v13869_v1  ;;  %v13881_v6 = vld [vmem:[%s13763_s10 + $0x18] sm:$0xff]  ;;  %v2324_v7 = vmul.f32 %v13872_v2, %v13872_v2  ;;  %10423 = vmatprep.subr.bf16.mxu0 %v12779_v12  ;;  %v2180_v20 = vld [vmem:[#allocation12] sm:$0xff]  ;;  %v2178_v21 = vld [vmem:[#allocation10] sm:$0xff]  ;;  %s12791_s1 = smov 111   ;;  %s12792_s0 = smov 17  }
 0x5c8   : > { %v2325_v8 = vmul.f32 %v13881_v6, %v13881_v6  ;;  %v2319_v10 = vadd.f32 %v13881_v6, %v13872_v2  ;;  %10426 = vmatprep.subr.bf16.mxu1 %v12779_v12  ;;  %9955 = vmatprep.mubr.msk.f32.mxu0 %vm12780_vm0, %v12781_v13  ;;  %vm2332_vm1 = vcmask 130048   ;;  %vm2476_vm2 = vcmask 64512   ;;  %v2179_v23 = vld [vmem:[#allocation10 + $0x8] sm:$0xff]  ;;  %v2176_v38 = vld [vmem:[#allocation9] sm:$0xff]  ;;  %v2174_v49 = vld [vmem:[#allocation7] sm:$0xff]  ;;  %s14671_s11 = smov 16  }
 0x5c9   : > { %2317 = vadd.xlane.f32.xlu0 %v2316_v3  ;;  %v2326_v9 = vadd.f32 %v2323_v5, %v2322_v4  ;;  %9962 = vmatprep.mubr.msk.f32.mxu1 %vm12780_vm0, %v12781_v13  ;;  %v12782_v27 = vmov 0   ;;  %v2175_v45 = vld [vmem:[#allocation7 + $0x8] sm:$0xff]  ;;  %v2177_v51 = vld [vmem:[#allocation9 + $0x8] sm:$0xff]  ;;  %vm2737_vm3 = vcmask 1043456   ;;  %vm2750_vm4 = vcmask 31744   ;;  %s12794_s12 = smov 15  }
 0x5ca   : > { %v2329_v11 = vadd.f32 %v2325_v8, %v2324_v7  ;;  %11054 = vset.pattern.permute.xlu1 %v12782_v27  ;;  %11053 = vset.pattern.permute.xlu0 %v12782_v27  ;;  %s12795_s17 = smov 1   ;;  %s12796_s6 = smov 127   ;;  %vm3634_vm13 = vcmask 1041408  }
 0x5cb   : > { %2327 = vadd.xlane.f32.xlu1 %v2326_v9  ;;  %s12797_s19 = smov 113   ;;  %s12798_s7 = smov 112  }
 0x5cc   : > { %s4067_s2 = sld [smem:[#allocation2]]  ;;  %s9622_s10 = sld [smem:[#allocation2 + $0x1]] }
 0x5cd   : > { %2320 = vadd.xlane.f32.xlu0 %v2319_v10 }
 0x5cf   : > { %2330 = vadd.xlane.f32.xlu1 %v2329_v11 }
 0x656   : > { %v2318_v14 = vpop.xlane.xlu0 %2317 }
 0x658   : > { %v2328_v15 = vpop.xlane.xlu1 %2327 }
 0x65a   : > { %v2321_v16 = vpop.xlane.xlu0 %2320 }
 0x65b   : > { %v10424_v17 = vpack.c.bf16 %v2321_v16, %v2318_v14 }
 0x65c   : > { %v2331_v18 = vpop.xlane.xlu1 %2330 }
 0x65d   : > { %10425 = vmatpush3.bf16.msra.mxu0 %v10424_v17  ;;  %v10427_v19 = vpack.c.bf16 %v2331_v18, %v2328_v15 }
 0x65f   : > { %10428 = vmatpush3.bf16.msra.mxu1 %v10427_v19 }
 0x660   : > { %9956 = vmatmul.mubr.msk.f32.vlgmr.msra.gmra.mrb[0].mxu0 %vm2332_vm1, %v2180_v20 }
 0x661   : > { %9967 = vmatprep.mubr.msk.f32.mxu0 %vm2476_vm2, %v2178_v21 }
 0x662   : > { %9963 = vmatmul.mubr.msk.f32.vlgmr.msra.gmra.mrb[0].mxu1 %vm2332_vm1, %v2180_v20 }
 0x663   : > { %9972 = vmatprep.mubr.msk.f32.mxu1 %vm2476_vm2, %v2178_v21 }
 0x733   : > { %v2402_v22 = vpop.f32.mrb[0].mxu0 }
 0x734   : > { %v9957_v24 = vpop.f32.mrb[1].mxu0  ;;  %9965 = vmatprep.subr.mxu0 %v2402_v22 }
 0x735   : > { %v2472_v25 = vpop.f32.mrb[0].mxu1  ;;  %9966 = vmatpush3.msra.mxu0 %v2402_v22 }
 0x736   : > { %v9964_v26 = vpop.f32.mrb[1].mxu1  ;;  %9968 = vmatmul.mubr.msk.f32.vlgmr.msra.gmra.mrb[2].mxu0 %vm2476_vm2, %v2179_v23  ;;  %9970 = vmatprep.subr.mxu1 %v2472_v25 }
 0x737   : > { %9971 = vmatpush3.msra.mxu1 %v2472_v25  ;;  %2728 = vmatprep.mubr.bf16.mxu0 %v12782_v27  ;;  %v13949_v26 = vld [vmem:[#allocation13] sm:$0xf] }
 0x738   : > { %9973 = vmatmul.mubr.msk.f32.vlgmr.msra.gmra.mrb[2].mxu1 %vm2476_vm2, %v2179_v23  ;;  %9975 = vmatprep.subr.mxu1 %v12781_v13  ;;  %v13935_v23 = vld [vmem:[#allocation15] sm:$0xf] }
 0x739   : > { %9977 = vmatprep.mubr.msk.f32.mxu1 %vm12780_vm0, %v12781_v13 }
 0x809   : > { %v9969_v28 = vpop.f32.mrb[2].mxu0 }
 0x80a   : > { %v2559_v29 = vmul.f32 0.001953125, %v9969_v28  ;;  %v2549_v30 = vpop.f32.mrb[3].mxu0 }
 0x80b   : > { %v2558_v31 = vmul.f32 0.001953125, %v2549_v30  ;;  %v9974_v32 = vpop.f32.mrb[2].mxu1 }
 0x80c   : > { %v2638_v33 = vmul.f32 %v2559_v29, %v2559_v29  ;;  %v2636_v34 = vmul.f32 0.001953125, %v9974_v32  ;;  %v2626_v35 = vpop.f32.mrb[3].mxu1  ;;  %2654 = vperm.xlu1 %11054, %v2559_v29  }
 0x80d   : > { %v2637_v36 = vmul.f32 %v2558_v31, %v2558_v31  ;;  %v2635_v37 = vmul.f32 0.001953125, %v2626_v35  ;;  %2649 = vperm.xlu0 %11053, %v2558_v31  }
 0x80e   : > { %v2640_v39 = vsub.f32 %v2636_v34, %v2638_v33 }
 0x80f   : > { %v2639_v40 = vsub.f32 %v2635_v37, %v2637_v36  ;;  %v2190_v37 = vld [vmem:[#allocation24] sm:$0xf] }
 0x810   : > { %v2642_v41 = vmax.f32 %v2640_v39, 0.0  ;;  %2679 = vperm.xlu1 %11054, %v2176_v38  }
 0x811   : > { %v2641_v42 = vmax.f32 %v2639_v40, 0.0 }
 0x812   : > { %v2644_v43 = vadd.f32 1e-05, %v2642_v41 }
 0x813   : > { %v2643_v44 = vadd.f32 1e-05, %v2641_v42  ;;  %v2191_v42 = vld [vmem:[#allocation25] sm:$0xf] }
 0x814   : > { %11139 = vrsqrt.f32 %v2644_v43 }
 0x815   : > { %11141 = vrsqrt.f32 %v2643_v44  ;;  %v12783_v44 = vmov 4  }
 0x81e   : > { %v11140_v46 = vpop.eup %11139 }
 0x81f   : > { %v2662_v47 = vmul.f32 %v11140_v46, %v2175_v45  ;;  %v11142_v48 = vpop.eup %11141  ;;  %v2189_v45 = vld [vmem:[#allocation22] sm:$0xf] }
 0x820   : > { %v2661_v50 = vmul.f32 %v11142_v48, %v2174_v49  ;;  %v12784_v48 = vmov 1   ;;  %v12785_v49 = vmov 2  }
 0x821   : > { %2670 = vperm.xlu1 %11054, %v2662_v47  }
 0x825   : > { %2665 = vperm.xlu1 %11054, %v2661_v50   ;;  %v12786_v50 = vmov 3  }
 0x829   : > { %2684 = vperm.xlu1 %11054, %v2177_v51   ;;  %v12787_v51 = vmov 5  }
 0x88b   : > { %v2655_v52 = vpop.permute.xlu1 %2654 }
 0x88c   : > { %v2650_v54 = vpop.permute.xlu0 %2649  ;;  %v2659_v59 = vsub.f32 %v13872_v2, %v2655_v52  ;;  %v2660_v60 = vsub.f32 %v13881_v6, %v2655_v52  ;;  %v12788_v52 = vmov 6  }
 0x88d   : > { %v2657_v56 = vsub.f32 %v13866_v0, %v2650_v54  ;;  %v2658_v57 = vsub.f32 %v13869_v1, %v2650_v54  ;;  %v2188_v0 = vld [vmem:[#allocation21] sm:$0x3]  ;;  %v12790_v54 = vmov 8  }
 0x88f   : > { %v2680_v53 = vpop.permute.xlu1 %2679 }
 0x8a0   : > { %v2671_v55 = vpop.permute.xlu1 %2670 }
 0x8a1   : > { %v2675_v63 = vmul.f32 %v2671_v55, %v2659_v59  ;;  %v2676_v3 = vmul.f32 %v2671_v55, %v2660_v60 }
 0x8a4   : > { %v2666_v58 = vpop.permute.xlu1 %2665 }
 0x8a5   : > { %v2673_v61 = vmul.f32 %v2666_v58, %v2657_v56  ;;  %v2674_v62 = vmul.f32 %v2666_v58, %v2658_v57 }
 0x8a7   : > { %v2687_v5 = vadd.f32 %v2680_v53, %v2673_v61  ;;  %v2688_v7 = vadd.f32 %v2680_v53, %v2674_v62  ;;  %v12789_v53 = vmov 7  }
 0x8a8   : > { %v2685_v4 = vpop.permute.xlu1 %2684 }
 0x8a9   : > { %v2689_v8 = vadd.f32 %v2685_v4, %v2675_v63  ;;  %v2690_v9 = vadd.f32 %v2685_v4, %v2676_v3 }
 0x8ab   : > { %v13911_v10 = vpack.c.bf16 %v2689_v8, %v2687_v5  ;;  %v13913_v11 = vpack.c.bf16 %v2690_v9, %v2688_v7 }
 0x8ad   : > { %2696 = vmatprep.subr.bf16.mxu0 %v13913_v11 }
 0x8ae   : > { %2697 = vmatpush1.bf16.msra.mxu0 %v13911_v10 }
 0x8af   : > { %9985 = vmatprep.subr.mxu0 %v12781_v13 }
 0x8b1   : > { %9528 = vmatmul.mubr.msk.bf16.vlgmr.msra.gmra.mrb[4].mxu0 %vm2332_vm1, %v2188_v0 }
 0x8b2   : > { %9987 = vmatprep.mubr.msk.f32.mxu0 %vm12780_vm0, %v12781_v13 }
 0x984   : > { %v13921_v1 = vpop.f32.mrb[4].mxu0 }
 0x985   : > { %v2743_v2 = vmul.f32 %v13921_v1, %v13921_v1  ;;  %v13925_v6 = vpop.f32.mrb[5].mxu0  ;;  %v2738_v14 = vsel %vm2737_vm3, %v13921_v1, 0.0 }
 0x986   : > { %v2744_v15 = vmul.f32 %v13925_v6, %v13925_v6  ;;  %v2734_v16 = vpop.f32.mrb[6].mxu0  ;;  %v2739_v17 = vsel %vm2737_vm3, %v13925_v6, 0.0 }
 0x987   : > { %v2735_v18 = vpop.f32.mrb[7].mxu0  ;;  %v2740_v19 = vadd.f32 %v2739_v17, %v2738_v14  ;;  %v2745_v20 = vsel %vm2737_vm3, %v2743_v2, 0.0  ;;  %v3091_v16 = vlaneseq }
 0x988   : > { %v2746_v21 = vsel %vm2737_vm3, %v2744_v15, 0.0 }
 0x989   : > { %2741 = vadd.xlane.f32.xlu1 %v2740_v19  ;;  %v2747_v22 = vadd.f32 %v2746_v21, %v2745_v20  ;;  %v13991_v19 = vshrl.u32 %v3091_v16, 7  ;;  %v13993_v20 = vand.u32 127, %v3091_v16 }
 0x98b   : > { %2748 = vadd.xlane.f32.xlu0 %v2747_v22  ;;  %v3098_v22 = vsub.s32 0, %v13991_v19  ;;  %vm3093_vm5 = vcmp.lt.s32.totalorder %v13993_v20, 17  ;;  %vm3118_vm6 = vcmp.lt.s32.totalorder %v13993_v20, 16  ;;  %vm3143_vm7 = vcmp.lt.s32.totalorder %v13993_v20, 15 }
 0x98c   : > { %vm3168_vm8 = vcmp.lt.s32.totalorder %v13993_v20, 1  ;;  %vm3193_vm9 = vcmp.lt.s32.totalorder %v13993_v20, 127  ;;  %vm3218_vm10 = vcmp.lt.s32.totalorder %v13993_v20, 113  ;;  %vm3243_vm11 = vcmp.lt.s32.totalorder %v13993_v20, 112 }
 0x98d   : > { %vm3268_vm12 = vcmp.lt.s32.totalorder %v13993_v20, 111 }
 0xa16   : > { %v2742_v24 = vpop.xlane.xlu1 %2741 }
 0xa17   : > { %9976 = vmatpush3.msk.msra.mxu1 %vm2737_vm3, %v2742_v24  ;;  %v13996_v24 = vld [vmem:[#allocation27] sm:$0xff] }
 0xa18   : > { %v2749_v25 = vpop.xlane.xlu0 %2748  ;;  %9978 = vmatmul.mubr.msk.f32.vlgmr.msra.gmra.mrb[4].mxu1 %vm2750_vm4, %v13935_v23  ;;  %9980 = vmatprep.subr.mxu1 %v12781_v13 }
 0xa19   : > { %9981 = vmatpush3.msk.msra.mxu1 %vm2737_vm3, %v2749_v25  ;;  %9982 = vmatprep.mubr.msk.f32.mxu1 %vm12780_vm0, %v12781_v13  ;;  %v13998_v25 = vld [vmem:[#allocation27 + $0x8] sm:$0xff] }
 0xa1a   : > { %9990 = vmatprep.subr.mxu1 %v12781_v13 }
 0xa1c   : > { %9983 = vmatmul.mubr.msk.f32.vlgmr.msra.gmra.mrb[6].mxu1 %vm2750_vm4, %v13935_v23 }
 0xa1d   : > { %9992 = vmatprep.mubr.msk.f32.mxu1 %vm12780_vm0, %v12781_v13 }
 0xaeb   : > { %v2823_v28 = vpop.f32.mrb[4].mxu1 }
 0xaec   : > { %v9979_v29 = vpop.f32.mrb[5].mxu1  ;;  %9986 = vmatpush3.msk.msra.mxu0 %vm2737_vm3, %v2823_v28 }
 0xaed   : > { %9988 = vmatmul.mubr.msk.f32.vlgmr.msra.gmra.mrb[8].mxu0 %vm2750_vm4, %v13949_v26  ;;  %9995 = vmatprep.subr.mxu0 %v12781_v13  ;;  %v3123_v29 = vsub.s32 1, %v13991_v19 }
 0xaee   : > { %9997 = vmatprep.mubr.msk.f32.mxu0 %vm12780_vm0, %v12781_v13 }
 0xaef   : > { %v2896_v30 = vpop.f32.mrb[6].mxu1 }
 0xaf0   : > { %v9984_v31 = vpop.f32.mrb[7].mxu1  ;;  %9991 = vmatpush3.msk.msra.mxu1 %vm2737_vm3, %v2896_v30 }
 0xaf1   : > { %9993 = vmatmul.mubr.msk.f32.vlgmr.msra.gmra.mrb[8].mxu1 %vm2750_vm4, %v13949_v26  ;;  %10000 = vmatprep.subr.mxu1 %v12781_v13  ;;  %v3099_v31 = vrot.slane %v13996_v24, %v3098_v22 }
 0xaf2   : > { %10002 = vmatprep.mubr.msk.f32.mxu1 %vm12780_vm0, %v12781_v13 }
 0xbc0   : > { %v2972_v32 = vpop.f32.mrb[8].mxu0 }
 0xbc1   : > { %v2976_v33 = vmul.f32 0.00390625, %v2972_v32  ;;  %v9989_v34 = vpop.f32.mrb[9].mxu0  ;;  %v3103_v32 = vrot.slane %v13998_v25, %v3098_v22 }
 0xbc3   : > { %v3051_v35 = vmul.f32 %v2976_v33, %v2976_v33  ;;  %3058 = vperm.xlu1 %11054, %v2976_v33   ;;  %v3148_v33 = vsub.s32 2, %v13991_v19 }
 0xbc4   : > { %v3046_v36 = vpop.f32.mrb[8].mxu1 }
 0xbc5   : > { %v3050_v38 = vmul.f32 0.00390625, %v3046_v36  ;;  %v9994_v39 = vpop.f32.mrb[9].mxu1  ;;  %v3124_v36 = vrot.slane %v13996_v24, %v3123_v29 }
 0xbc7   : > { %v3052_v40 = vsub.f32 %v3050_v38, %v3051_v35  ;;  %3073 = vperm.xlu1 %11054, %v2190_v37   ;;  %v3128_v37 = vrot.slane %v13998_v25, %v3123_v29 }
 0xbc9   : > { %v3053_v41 = vmax.f32 %v3052_v40, 0.0 }
 0xbcb   : > { %v3054_v43 = vadd.f32 1e-05, %v3053_v41  ;;  %11055 = vset.pattern.permute.xlu1 %v12783_v44  ;;  %v3173_v41 = vsub.s32 3, %v13991_v19 }
 0xbcc   : > { %3082 = vperm.xlu1 %11055, %v2191_v42  }
 0xbcd   : > { %11143 = vrsqrt.f32 %v3054_v43 }
 0xbd0   : > { %11056 = vset.pattern.permute.xlu1 %v12782_v27 }
 0xbd1   : > { %3107 = vperm.xlu1 %11056, %v2191_v42  }
 0xbd7   : > { %v11144_v46 = vpop.eup %11143 }
 0xbd8   : > { %v3063_v47 = vmul.f32 %v11144_v46, %v2189_v45 }
 0xbda   : > { %3066 = vperm.xlu0 %11053, %v3063_v47   ;;  %v3149_v47 = vrot.slane %v13996_v24, %v3148_v33 }
 0xbde   : > { %11057 = vset.pattern.permute.xlu0 %v12784_v48 }
 0xbdf   : > { %3132 = vperm.xlu0 %11057, %v2191_v42  }
 0xbe3   : > { %11058 = vset.pattern.permute.xlu0 %v12785_v49 }
 0xbe4   : > { %3157 = vperm.xlu0 %11058, %v2191_v42  }
 0xbe8   : > { %11059 = vset.pattern.permute.xlu0 %v12786_v50 }
 0xbe9   : > { %3182 = vperm.xlu0 %11059, %v2191_v42  }
 0xbed   : > { %11060 = vset.pattern.permute.xlu0 %v12787_v51 }
 0xbee   : > { %3207 = vperm.xlu0 %11060, %v2191_v42  }
 0xbf2   : > { %11061 = vset.pattern.permute.xlu0 %v12788_v52 }
 0xbf3   : > { %3232 = vperm.xlu0 %11061, %v2191_v42  }
 0xbf7   : > { %11062 = vset.pattern.permute.xlu0 %v12789_v53 }
 0xbf8   : > { %3257 = vperm.xlu0 %11062, %v2191_v42  }
 0xbfc   : > { %11063 = vset.pattern.permute.xlu0 %v12790_v54 }
 0xbfd   : > { %3282 = vperm.xlu0 %11063, %v2191_v42  }
 0xc01   : > { %11064 = vset.pattern.permute.xlu0 %v12782_v27 }
 0xc42   : > { %v3059_v55 = vpop.permute.xlu1 %3058 }
 0xc43   : > { %v3061_v56 = vsub.f32 %v13921_v1, %v3059_v55  ;;  %v3062_v57 = vsub.f32 %v13925_v6, %v3059_v55  ;;  %v3153_v55 = vrot.slane %v13998_v25, %v3148_v33 }
 0xc46   : > { %v3074_v61 = vpop.permute.xlu1 %3073 }
 0xc4b   : > { %v3083_v5 = vpop.permute.xlu1 %3082 }
 0xc50   : > { %v3108_v7 = vpop.permute.xlu1 %3107 }
 0xc59   : > { %v3067_v58 = vpop.permute.xlu0 %3066 }
 0xc5a   : > { %v3069_v59 = vmul.f32 %v3067_v58, %v3061_v56  ;;  %v3070_v60 = vmul.f32 %v3067_v58, %v3062_v57  ;;  %v3198_v56 = vsub.s32 5, %v13991_v19  ;;  %v3223_v57 = vsub.s32 6, %v13991_v19 }
 0xc5c   : > { %v3076_v62 = vadd.f32 %v3074_v61, %v3069_v59  ;;  %v3077_v63 = vadd.f32 %v3074_v61, %v3070_v60 }
 0xc5e   : > { %v3078_v3 = vmax.f32 %v3076_v62, 0.0  ;;  %v13975_v4 = vmax.f32 %v3077_v63, 0.0  ;;  %v3133_v2 = vpop.permute.xlu0 %3132 }
 0xc60   : > { %3264 = vrot.lane.b32.xlu0 %v3078_v3, %s12791_s1  ;;  %3087 = vrot.lane.b32.xlu1 %v3078_v3, %s12792_s0  ;;  %v3085_v42 = vmul.f32 %v3083_v5, %v3078_v3  ;;  %v3086_v63 = vmul.f32 %v3083_v5, %v13975_v4 }
 0xc63   : > { %v13987_v14 = vpop.permute.xlu0 %3157 }
 0xc64   : > { %3089 = vrot.lane.b32.xlu1 %v13975_v4, %s12792_s0  ;;  %s14825_s0 = sld [smem:[#allocation149_spill]] }
 0xc68   : > { %3114 = vrot.lane.b32.xlu1 %v3078_v3, %s14671_s11  ;;  %v13989_v18 = vpop.permute.xlu0 %3182 }
 0xc6c   : > { %3116 = vrot.lane.b32.xlu1 %v13975_v4, %s14671_s11 }
 0xc6d   : > { %v14000_v28 = vpop.permute.xlu0 %3207 }
 0xc70   : > { %3139 = vrot.lane.b32.xlu1 %v3078_v3, %s12794_s12 }
 0xc72   : > { %v14012_v43 = vpop.permute.xlu0 %3232 }
 0xc74   : > { %3141 = vrot.lane.b32.xlu1 %v13975_v4, %s12794_s12  ;;  %s14826_s12 = smov %s14825_s0 }
 0xc78   : > { %3164 = vrot.lane.b32.xlu1 %v3078_v3, %s12795_s17 }
 0xc7c   : > { %3166 = vrot.lane.b32.xlu1 %v13975_v4, %s12795_s17  ;;  %s2172_s17 = scalar_lea.vmem [#allocation79], %s9472_s3  ;;  %s8811_s3 = scalar_lea.sflag [#allocation4], %s13757_s15 }
 0xc80   : > { %3189 = vrot.lane.b32.xlu1 %v3078_v3, %s12796_s6 }
 0xc84   : > { %3191 = vrot.lane.b32.xlu1 %v13975_v4, %s12796_s6  ;;  %s8824_s6 = sshll.u32 %s2172_s17, 4  ;;  %s14537_s6 = int_to_ptr.vmem [resolvable:$true] %s8824_s6 }
 0xc88   : > { %3214 = vrot.lane.b32.xlu1 %v3078_v3, %s12797_s19 }
 0xc8c   : > { %3216 = vrot.lane.b32.xlu1 %v13975_v4, %s12797_s19  ;;  %s9694_s19 = sshll.u32 %s13082_s22, 9  ;;  %s12503_s22 = scalar_lea.vmem %s14537_s6, 512 }
 0xc8d   : > { %p12504_p7 = scmp.ne.s32.totalorder %s14537_s6, %s12503_s22 }
 0xc90   : > { %3239 = vrot.lane.b32.xlu1 %v3078_v3, %s12798_s7  ;;  %v3174_v3 = vrot.slane %v13996_v24, %v3173_v41 }
 0xc94   : > { %3241 = vrot.lane.b32.xlu1 %v13975_v4, %s12798_s7  ;;  %s14827_s7 = sld [smem:[#allocation155_spill]] }
 0xc98   : > { %3266 = vrot.lane.b32.xlu1 %v13975_v4, %s12791_s1  ;;  %v3224_v4 = vrot.slane %v13996_v24, %v3223_v57  ;;  %s9679_s1 = sld [smem:[#allocation2 + $0x2]] }
 0xc9a   : > { %p14828_p9 = scmp.ne.s32.totalorder %s14827_s7, 0 }
 0xc9c   : > { %p12505_p6 = pnand %p12504_p7, %p14828_p9 }
 0xc9e   : > { %p12506_p5 = pneg %p12505_p6 }
 0xcd2   : > { %v3088_v8 = vpop.permute.xlu1 %3087 }
 0xcd6   : > { %v3090_v9 = vpop.permute.xlu1 %3089 }
 0xcd7   : > { %v3094_v34 = vsel %vm3093_vm5, %v3088_v8, %v3090_v9  ;;  %v3095_v35 = vsel %vm3093_vm5, %v3090_v9, %v3088_v8  ;;  %v3178_v8 = vrot.slane %v13998_v25, %v3173_v41 }
 0xcd8   : > { %v3104_v45 = vmul.f32 %v3099_v31, %v3095_v35  ;;  %v3105_v46 = vmul.f32 %v3103_v32, %v3094_v34  ;;  %v3199_v31 = vrot.slane %v13996_v24, %v3198_v56  ;;  %v3203_v32 = vrot.slane %v13998_v25, %v3198_v56 }
 0xcda   : > { %v3115_v0 = vpop.permute.xlu1 %3114  ;;  %v3110_v9 = vmul.f32 %v3108_v7, %v3104_v45 }
 0xcde   : > { %v3117_v1 = vpop.permute.xlu1 %3116 }
 0xcdf   : > { %v3119_v39 = vsel %vm3118_vm6, %v3115_v0, %v3117_v1  ;;  %v3120_v40 = vsel %vm3118_vm6, %v3117_v1, %v3115_v0  ;;  %v3111_v0 = vmul.f32 %v3108_v7, %v3105_v46 }
 0xce0   : > { %v3129_v58 = vmul.f32 %v3124_v36, %v3120_v40  ;;  %v3130_v59 = vmul.f32 %v3128_v37, %v3119_v39  ;;  %v3228_v37 = vrot.slane %v13998_v25, %v3223_v57  ;;  %v3248_v39 = vsub.s32 7, %v13991_v19 }
 0xce1   : > { %v3113_v36 = vadd.f32 %v3111_v0, %v3086_v63 }
 0xce2   : > { %v3140_v6 = vpop.permute.xlu1 %3139  ;;  %v3136_v33 = vmul.f32 %v3133_v2, %v3130_v59  ;;  %v3249_v59 = vrot.slane %v13996_v24, %v3248_v39 }
 0xce6   : > { %v3142_v15 = vpop.permute.xlu1 %3141 }
 0xce7   : > { %v3144_v60 = vsel %vm3143_vm7, %v3140_v6, %v3142_v15  ;;  %v3145_v61 = vsel %vm3143_vm7, %v3142_v15, %v3140_v6  ;;  %v3258_v6 = vpop.permute.xlu0 %3257  ;;  %v3135_v15 = vmul.f32 %v3133_v2, %v3129_v58  ;;  %v3138_v58 = vadd.f32 %v3136_v33, %v3113_v36 }
 0xce8   : > { %v3154_v22 = vmul.f32 %v3149_v47, %v3145_v61  ;;  %v3155_v29 = vmul.f32 %v3153_v55, %v3144_v60  ;;  %vm4398_vm7 = vcmask 519168  }
 0xcea   : > { %v3165_v17 = vpop.permute.xlu1 %3164  ;;  %v3160_v2 = vmul.f32 %v13987_v14, %v3154_v22  ;;  %v3161_v40 = vmul.f32 %v13987_v14, %v3155_v29  ;;  %v3253_v14 = vrot.slane %v13998_v25, %v3248_v39  ;;  %v9537_v22 = vld [vmem:[#allocation27 + $0x10] ss:$0 sm:$0xff]  ;;  %v9538_v29 = vld [vmem:[#allocation27 + $0x18] ss:$0 sm:$0xff] }
 0xcec   : > { %v3163_v61 = vadd.f32 %v3161_v40, %v3138_v58 }
 0xcee   : > { %v3167_v21 = vpop.permute.xlu1 %3166 }
 0xcef   : > { %v3169_v1 = vsel %vm3168_vm8, %v3165_v17, %v3167_v21  ;;  %v3170_v16 = vsel %vm3168_vm8, %v3167_v21, %v3165_v17  ;;  %v3112_v21 = vadd.f32 %v3110_v9, %v3085_v42  ;;  %v3283_v42 = vpop.permute.xlu0 %3282  ;;  %vm4739_vm8 = vcmask 523264  }
 0xcf0   : > { %v3179_v34 = vmul.f32 %v3174_v3, %v3170_v16  ;;  %v3180_v35 = vmul.f32 %v3178_v8, %v3169_v1 }
 0xcf1   : > { %v3137_v56 = vadd.f32 %v3135_v15, %v3112_v21 }
 0xcf2   : > { %v3190_v30 = vpop.permute.xlu1 %3189 }
 0xcf3   : > { %v3162_v60 = vadd.f32 %v3160_v2, %v3137_v56 }
 0xcf6   : > { %v3192_v38 = vpop.permute.xlu1 %3191 }
 0xcf7   : > { %v3194_v7 = vsel %vm3193_vm9, %v3190_v30, %v3192_v38  ;;  %v3195_v17 = vsel %vm3193_vm9, %v3192_v38, %v3190_v30  ;;  %v3185_v30 = vmul.f32 %v13989_v18, %v3179_v34  ;;  %v3186_v38 = vmul.f32 %v13989_v18, %v3180_v35 }
 0xcf8   : > { %v3204_v46 = vmul.f32 %v3199_v31, %v3194_v7  ;;  %v3205_v47 = vmul.f32 %v3203_v32, %v3195_v17 }
 0xcf9   : > { %v3187_v8 = vadd.f32 %v3185_v30, %v3162_v60  ;;  %v3188_v9 = vadd.f32 %v3186_v38, %v3163_v61 }
 0xcfa   : > { %v3215_v62 = vpop.permute.xlu1 %3214  ;;  %v3211_v63 = vmul.f32 %v14000_v28, %v3205_v47 }
 0xcfc   : > { %v3213_v32 = vadd.f32 %v3211_v63, %v3188_v9 }
 0xcfe   : > { %v3217_v5 = vpop.permute.xlu1 %3216 }
 0xcff   : > { %v3219_v41 = vsel %vm3218_vm10, %v3215_v62, %v3217_v5  ;;  %v3220_v45 = vsel %vm3218_vm10, %v3217_v5, %v3215_v62  ;;  %v3210_v62 = vmul.f32 %v14000_v28, %v3204_v46  ;;  %v3265_v28 = vpop.permute.xlu0 %3264 }
 0xd00   : > { %v3229_v57 = vmul.f32 %v3224_v4, %v3219_v41  ;;  %v3230_v19 = vmul.f32 %v3228_v37, %v3220_v45 }
 0xd01   : > { %v3212_v31 = vadd.f32 %v3210_v62, %v3187_v8 }
 0xd02   : > { %v3240_v55 = vpop.permute.xlu1 %3239  ;;  %v3235_v24 = vmul.f32 %v14012_v43, %v3229_v57  ;;  %v3236_v25 = vmul.f32 %v14012_v43, %v3230_v19 }
 0xd04   : > { %v3237_v35 = vadd.f32 %v3235_v24, %v3212_v31  ;;  %v3238_v7 = vadd.f32 %v3236_v25, %v3213_v32  ;;  %v2197_v24 = vld [vmem:[#allocation30] sm:$0xf] }
 0xd06   : > { %v3242_v3 = vpop.permute.xlu1 %3241 }
 0xd07   : > { %v3244_v18 = vsel %vm3243_vm11, %v3240_v55, %v3242_v3  ;;  %v3245_v0 = vsel %vm3243_vm11, %v3242_v3, %v3240_v55 }
 0xd08   : > { %v3254_v1 = vmul.f32 %v3249_v59, %v3244_v18  ;;  %v3255_v16 = vmul.f32 %v3253_v14, %v3245_v0  ;;  %v2196_v18 = vld [vmem:[#allocation28] sm:$0xf] }
 0xd0a   : > { %v3260_v15 = vmul.f32 %v3258_v6, %v3254_v1  ;;  %v3261_v33 = vmul.f32 %v3258_v6, %v3255_v16  ;;  %v3267_v4 = vpop.permute.xlu1 %3266 }
 0xd0b   : > { %v3269_v5 = vsel %vm3268_vm12, %v3265_v28, %v3267_v4  ;;  %v3270_v34 = vsel %vm3268_vm12, %v3267_v4, %v3265_v28 }
 0xd0c   : > { %v3279_v17 = vmul.f32 %v9537_v22, %v3269_v5  ;;  %v3280_v43 = vmul.f32 %v9538_v29, %v3270_v34  ;;  %v3262_v21 = vadd.f32 %v3260_v15, %v3237_v35  ;;  %v3263_v36 = vadd.f32 %v3261_v33, %v3238_v7  ;;  %v11085_v7 = vld [vmem:[#allocation31] sm:$0xff]  }
 0xd0e   : > { %v3285_v37 = vmul.f32 %v3283_v42, %v3279_v17  ;;  %v3286_v39 = vmul.f32 %v3283_v42, %v3280_v43 }
 0xd10   : > { %v3287_v2 = vadd.f32 %v3285_v37, %v3262_v21  ;;  %v3288_v40 = vadd.f32 %v3286_v39, %v3263_v36 }
 0xd12   : > { %v3289_v41 = vsel %vm2737_vm3, %v3287_v2, 0.0  ;;  %v3290_v6 = vsel %vm2737_vm3, %v3288_v40, 0.0  ;;  %v3294_v45 = vmul.f32 %v3287_v2, %v3287_v2  ;;  %v3295_v46 = vmul.f32 %v3288_v40, %v3288_v40 }
 0xd13   : > { %v3291_v47 = vadd.f32 %v3290_v6, %v3289_v41 }
 0xd14   : > { %v3296_v20 = vsel %vm2737_vm3, %v3294_v45, 0.0  ;;  %v3297_v55 = vsel %vm2737_vm3, %v3295_v46, 0.0 }
 0xd15   : > { %3292 = vadd.xlane.f32.xlu0 %v3291_v47  ;;  %v3298_v56 = vadd.f32 %v3297_v55, %v3296_v20 }
 0xd17   : > { %3299 = vadd.xlane.f32.xlu1 %v3298_v56 }
 0xda2   : > { %v3293_v58 = vpop.xlane.xlu0 %3292 }
 0xda3   : > { %9996 = vmatpush3.msk.msra.mxu0 %vm2737_vm3, %v3293_v58  ;;  %v2185_v58 = vld [vmem:[#allocation18] sm:$0xf] }
 0xda4   : > { %v3300_v30 = vpop.xlane.xlu1 %3299  ;;  %9998 = vmatmul.mubr.msk.f32.vlgmr.msra.gmra.mrb[10].mxu0 %vm2750_vm4, %v13935_v23  ;;  %10005 = vmatprep.subr.mxu0 %v12781_v13 }
 0xda5   : > { %10001 = vmatpush3.msk.msra.mxu1 %vm2737_vm3, %v3300_v30  ;;  %10007 = vmatprep.mubr.msk.f32.mxu0 %vm12780_vm0, %v12781_v13 }
 0xda6   : > { %10003 = vmatmul.mubr.msk.f32.vlgmr.msra.gmra.mrb[10].mxu1 %vm2750_vm4, %v13935_v23  ;;  %10010 = vmatprep.subr.mxu1 %v12781_v13 }
 0xda7   : > { %10012 = vmatprep.mubr.msk.f32.mxu1 %vm12780_vm0, %v12781_v13 }
 0xe77   : > { %v3370_v38 = vpop.f32.mrb[10].mxu0 }
 0xe78   : > { %v9999_v42 = vpop.f32.mrb[11].mxu0  ;;  %10006 = vmatpush3.msk.msra.mxu0 %vm2737_vm3, %v3370_v38 }
 0xe79   : > { %v3443_v57 = vpop.f32.mrb[10].mxu1  ;;  %10008 = vmatmul.mubr.msk.f32.vlgmr.msra.gmra.mrb[12].mxu0 %vm2750_vm4, %v13949_v26  ;;  %v2183_v42 = vld [vmem:[#allocation16] sm:$0xff] }
 0xe7a   : > { %v10004_v19 = vpop.f32.mrb[11].mxu1  ;;  %10011 = vmatpush3.msk.msra.mxu1 %vm2737_vm3, %v3443_v57  ;;  %3673 = vmatprep.mubr.bf16.mxu0 %v12782_v27 }
 0xe7b   : > { %10013 = vmatmul.mubr.msk.f32.vlgmr.msra.gmra.mrb[12].mxu1 %vm2750_vm4, %v13949_v26  ;;  %10429 = vmatprep.subr.bf16.mxu1 %v12779_v12  ;;  %v2184_v19 = vld [vmem:[#allocation16 + $0x8] sm:$0xff] }
 0xe7c   : > { %10019 = vmatprep.mubr.msk.f32.mxu1 %vm12780_vm0, %v12781_v13 }
 0xf4c   : > { %v3516_v23 = vpop.f32.mrb[12].mxu0 }
 0xf4d   : > { %v3520_v59 = vmul.f32 0.00390625, %v3516_v23  ;;  %v10009_v14 = vpop.f32.mrb[13].mxu0 }
 0xf4e   : > { %v3590_v60 = vpop.f32.mrb[12].mxu1 }
 0xf4f   : > { %v3595_v61 = vmul.f32 %v3520_v59, %v3520_v59  ;;  %v3594_v62 = vmul.f32 0.00390625, %v3590_v60  ;;  %v10014_v63 = vpop.f32.mrb[13].mxu1  ;;  %3602 = vperm.xlu0 %11064, %v3520_v59   ;;  %v11086_v59 = vld [vmem:[#allocation37 + $0x40] sm:$0xff]  }
 0xf50   : > { %v11087_v60 = vld [vmem:[#allocation37] sm:$0xff]   ;;  %v11089_v63 = vld [vmem:[#allocation37 + $0x8] sm:$0xff]  }
 0xf51   : > { %v3596_v3 = vsub.f32 %v3594_v62, %v3595_v61  ;;  %v11088_v62 = vld [vmem:[#allocation37 + $0x48] sm:$0xff]  }
 0xf53   : > { %v3597_v8 = vmax.f32 %v3596_v3, 0.0  ;;  %v11090_v3 = vld [vmem:[#allocation37 + $0x50] sm:$0xff]  }
 0xf55   : > { %v3598_v9 = vadd.f32 1e-05, %v3597_v8  ;;  %v11091_v8 = vld [vmem:[#allocation37 + $0x10] sm:$0xff]  }
 0xf57   : > { %11145 = vrsqrt.f32 %v3598_v9  ;;  %v11092_v9 = vld [vmem:[#allocation37 + $0x58] sm:$0xff]  }
 0xf61   : > { %v11146_v0 = vpop.eup %11145 }
 0xf62   : > { %v3607_v26 = vmul.f32 %v11146_v0, %v2196_v18  ;;  %v11093_v18 = vld [vmem:[#allocation37 + $0x18] sm:$0xff]   ;;  %v11094_v0 = vld [vmem:[#allocation37 + $0x60] sm:$0xff]  }
 0xf64   : > { %3610 = vperm.xlu1 %11056, %v3607_v26   ;;  %v11095_v26 = vld [vmem:[#allocation37 + $0x20] sm:$0xff]  }
 0xf68   : > { %3617 = vperm.xlu1 %11056, %v2197_v24   ;;  %v11096_v24 = vld [vmem:[#allocation37 + $0x68] sm:$0xff]  }
 0xfce   : > { %v3603_v25 = vpop.permute.xlu0 %3602 }
 0xfcf   : > { %v3605_v16 = vsub.f32 %v3287_v2, %v3603_v25  ;;  %v3606_v22 = vsub.f32 %v3288_v40, %v3603_v25  ;;  %v11097_v25 = vld [vmem:[#allocation37 + $0x28] sm:$0xff]  }
 0xfe3   : > { %v3611_v1 = vpop.permute.xlu1 %3610 }
 0xfe4   : > { %v3613_v29 = vmul.f32 %v3611_v1, %v3605_v16  ;;  %v3614_v28 = vmul.f32 %v3611_v1, %v3606_v22  ;;  %v11098_v1 = vld [vmem:[#allocation37 + $0x70] sm:$0xff]   ;;  %v11100_v22 = vld [vmem:[#allocation37 + $0x78] sm:$0xff]  }
 0xfe5   : > { %v11099_v16 = vld [vmem:[#allocation37 + $0x30] sm:$0xff]  }
 0xfe7   : > { %v3618_v31 = vpop.permute.xlu1 %3617 }
 0xfe8   : > { %v3620_v32 = vadd.f32 %v3618_v31, %v3613_v29  ;;  %v3621_v15 = vadd.f32 %v3618_v31, %v3614_v28  ;;  %v11101_v29 = vld [vmem:[#allocation37 + $0x38] sm:$0xff]  }
 0xfea   : > { %v3622_v33 = vmax.f32 %v3620_v32, 0.0  ;;  %v3623_v4 = vmax.f32 %v3621_v15, 0.0 }
 0xfec   : > { %v3624_v5 = vpack.c.bf16 %v3622_v33, %v3622_v33  ;;  %v3625_v34 = vpack.c.bf16 %v3623_v4, %v3623_v4  ;;  %v2203_v33 = vld [vmem:[#allocation34 + $0x8] sm:$0xff] }
 0xfee   : > { %9548 = vmatprep.subr.msk.bf16.mxu0 %vm3634_vm13, %v3625_v34  ;;  %v3636_v35 = vsel %vm3634_vm13, %v3624_v5, 0 }
 0xfef   : > { %3642 = vmatpush1.bf16.msra.mxu0 %v3636_v35 }
 0xff2   : > { %9549 = vmatmul.mubr.msk.bf16.vlgmr.msra.gmra.mrb[16].mxu0 %vm2750_vm4, %v11085_v7 }
 0xff3   : > { %10031 = vmatprep.mubr.msk.f32.mxu0 %vm2750_vm4, %v2183_v42 }
0x10c5   : > { %v14082_v17 = vpop.f32.mrb[16].mxu0 }
0x10c6   : > { %v14084_v43 = vpop.f32.mrb[17].mxu0  ;;  %v3690_v21 = vmul.f32 %v14082_v17, %v14082_v17 }
0x10c7   : > { %v14088_v36 = vpop.f32.mrb[18].mxu0  ;;  %v3684_v37 = vadd.f32 %v14084_v43, %v14082_v17  ;;  %v3691_v39 = vmul.f32 %v14084_v43, %v14084_v43 }
0x10c8   : > { %v14094_v2 = vpop.f32.mrb[19].mxu0  ;;  %v3692_v40 = vmul.f32 %v14088_v36, %v14088_v36 }
0x10c9   : > { %3685 = vadd.xlane.f32.xlu1 %v3684_v37  ;;  %v3687_v41 = vadd.f32 %v14094_v2, %v14088_v36  ;;  %v3694_v6 = vadd.f32 %v3691_v39, %v3690_v21  ;;  %v3693_v45 = vmul.f32 %v14094_v2, %v14094_v2 }
0x10cb   : > { %3688 = vadd.xlane.f32.xlu0 %v3687_v41  ;;  %v3697_v46 = vadd.f32 %v3693_v45, %v3692_v40 }
0x10cd   : > { %3695 = vadd.xlane.f32.xlu1 %v3694_v6 }
0x10d1   : > { %3698 = vadd.xlane.f32.xlu1 %v3697_v46  ;;  %v2201_v46 = vld [vmem:[#allocation33 + $0x8] sm:$0xff] }
0x1156   : > { %v3686_v47 = vpop.xlane.xlu1 %3685 }
0x1158   : > { %v3689_v20 = vpop.xlane.xlu0 %3688 }
0x1159   : > { %v10430_v55 = vpack.c.bf16 %v3689_v20, %v3686_v47 }
0x115a   : > { %v3696_v56 = vpop.xlane.xlu1 %3695 }
0x115b   : > { %10431 = vmatpush3.bf16.msra.mxu1 %v10430_v55 }
0x115c   : > { %10432 = vmatprep.subr.bf16.mxu1 %v12779_v12 }
0x115e   : > { %v3699_v30 = vpop.xlane.xlu1 %3698  ;;  %10020 = vmatmul.mubr.msk.f32.vlgmr.msra.gmra.mrb[14].mxu1 %vm2332_vm1, %v2185_v58 }
0x115f   : > { %v10433_v38 = vpack.c.bf16 %v3699_v30, %v3696_v56  ;;  %10026 = vmatprep.mubr.msk.f32.mxu1 %vm12780_vm0, %v12781_v13  ;;  %v2200_v56 = vld [vmem:[#allocation33] sm:$0xff]  ;;  %v2202_v30 = vld [vmem:[#allocation34] sm:$0xff] }
0x1161   : > { %10434 = vmatpush3.bf16.msra.mxu1 %v10433_v38 }
0x1164   : > { %10027 = vmatmul.mubr.msk.f32.vlgmr.msra.gmra.mrb[16].mxu1 %vm2332_vm1, %v2185_v58 }
0x1165   : > { %10036 = vmatprep.mubr.msk.f32.mxu1 %vm2750_vm4, %v2183_v42 }
0x1231   : > { %v3769_v57 = vpop.f32.mrb[14].mxu1 }
0x1232   : > { %10029 = vmatprep.subr.msk.mxu0 %vm2737_vm3, %v3769_v57  ;;  %v10021_v23 = vpop.f32.mrb[15].mxu1 }
0x1233   : > { %10030 = vmatpush3.msk.msra.mxu0 %vm2737_vm3, %v3769_v57 }
0x1234   : > { %10032 = vmatmul.mubr.msk.f32.vlgmr.msra.gmra.mrb[14].mxu0 %vm2750_vm4, %v2184_v19 }
0x1235   : > { %4155 = vmatprep.mubr.bf16.mxu0 %v12782_v27 }
0x1237   : > { %v3839_v14 = vpop.f32.mrb[16].mxu1 }
0x1238   : > { %v10028_v61 = vpop.f32.mrb[17].mxu1  ;;  %10034 = vmatprep.subr.msk.mxu1 %vm2737_vm3, %v3839_v14 }
0x1239   : > { %10035 = vmatpush3.msk.msra.mxu1 %vm2737_vm3, %v3839_v14 }
0x123a   : > { %10037 = vmatmul.mubr.msk.f32.vlgmr.msra.gmra.mrb[18].mxu1 %vm2750_vm4, %v2184_v19  ;;  %9735 = vmatprep.subr.bf16.mxu1 %v11086_v59 }
0x123b   : > { %9736 = vmatpush3.bf16.msra.mxu1 %v11087_v60  ;;  %4345 = vmatprep.mubr.bf16.mxu1 %v13913_v11 }
0x123c   : > { %9737 = vmatprep.subr.bf16.mxu1 %v11088_v62 }
0x123f   : > { %9738 = vmatpush3.bf16.msra.mxu1 %v11089_v63 }
0x1240   : > { %9739 = vmatprep.subr.bf16.mxu1 %v11090_v3 }
0x1243   : > { %9740 = vmatpush3.bf16.msra.mxu1 %v11091_v8 }
0x1244   : > { %9741 = vmatprep.subr.bf16.mxu1 %v11092_v9 }
0x1247   : > { %9742 = vmatpush3.bf16.msra.mxu1 %v11093_v18 }
0x1248   : > { %9743 = vmatprep.subr.bf16.mxu1 %v11094_v0 }
0x124b   : > { %9744 = vmatpush3.bf16.msra.mxu1 %v11095_v26 }
0x124c   : > { %9745 = vmatprep.subr.bf16.mxu1 %v11096_v24 }
0x124f   : > { %9746 = vmatpush3.bf16.msra.mxu1 %v11097_v25 }
0x1250   : > { %9747 = vmatprep.subr.bf16.mxu1 %v11098_v1 }
0x1253   : > { %9748 = vmatpush3.bf16.msra.mxu1 %v11099_v16 }
0x1254   : > { %9749 = vmatprep.subr.bf16.mxu1 %v11100_v22 }
0x1257   : > { %9750 = vmatpush3.bf16.msra.mxu1 %v11101_v29 }
0x1258   : > { %10435 = vmatprep.subr.bf16.mxu1 %v12779_v12 }
0x125a   : > { %4346 = vmatmul.mubr.bf16.vlgmr.msra.gmra.mrb[20].mxu1 %v13911_v10 }
0x125b   : > { %10081 = vmatprep.mubr.msk.f32.mxu1 %vm12780_vm0, %v12781_v13 }
0x1307   : > { %v10033_v28 = vpop.f32.mrb[14].mxu0 }
0x1308   : > { %v3928_v31 = vmul.f32 0.0009765625, %v10033_v28  ;;  %v3918_v32 = vpop.f32.mrb[15].mxu0 }
0x1309   : > { %v3927_v15 = vmul.f32 0.0009765625, %v3918_v32 }
0x130a   : > { %4026 = vperm.xlu0 %11064, %v3928_v31   ;;  %v4010_v4 = vmul.f32 %v3928_v31, %v3928_v31  ;;  %v4068_v31 = vstv %s4067_s2  ;;  %s14540_s2 = scalar_lea.hbm %s14825_s0, %s9694_s19 }
0x130b   : > { %4021 = vperm.xlu1 %11056, %v3927_v15   ;;  %v4009_v5 = vmul.f32 %v3927_v15, %v3927_v15 }
0x130d   : > { %v10038_v34 = vpop.f32.mrb[18].mxu1 }
0x130e   : > { %v4008_v35 = vmul.f32 0.0009765625, %v10038_v34  ;;  %4056 = vperm.xlu0 %11064, %v2203_v33   ;;  %v3998_v7 = vpop.f32.mrb[19].mxu1 }
0x130f   : > { %v4007_v21 = vmul.f32 0.0009765625, %v3998_v7 }
0x1310   : > { %v4012_v37 = vsub.f32 %v4008_v35, %v4010_v4 }
0x1311   : > { %v4011_v39 = vsub.f32 %v4007_v21, %v4009_v5 }
0x1312   : > { %v4014_v40 = vmax.f32 %v4012_v37, 0.0 }
0x1313   : > { %v4013_v41 = vmax.f32 %v4011_v39, 0.0 }
0x1314   : > { %v4016_v6 = vadd.f32 1e-05, %v4014_v40 }
0x1315   : > { %v4015_v45 = vadd.f32 1e-05, %v4013_v41 }
0x1316   : > { %11147 = vrsqrt.f32 %v4016_v6 }
0x1317   : > { %11149 = vrsqrt.f32 %v4015_v45 }
0x1320   : > { %v11148_v47 = vpop.eup %11147 }
0x1321   : > { %v4034_v20 = vmul.f32 %v11148_v47, %v2201_v46  ;;  %v11150_v55 = vpop.eup %11149 }
0x1322   : > { %v4033_v58 = vmul.f32 %v11150_v55, %v2200_v56 }
0x1323   : > { %4042 = vperm.xlu1 %11056, %v4034_v20  }
0x1327   : > { %4037 = vperm.xlu1 %11056, %v4033_v58  }
0x132b   : > { %4051 = vperm.xlu1 %11056, %v2202_v30  }
0x132d   : > { %v9751_v38 = vpop.f32.mrb[20].mxu1 }
0x132e   : > { %v9752_v42 = vpop.f32.mrb[21].mxu1 }
0x132f   : > { %v14121_v57 = vadd.f32 %v9752_v42, %v9751_v38  ;;  %v9754_v19 = vpop.f32.mrb[22].mxu1 }
0x1330   : > { %v9755_v23 = vpop.f32.mrb[23].mxu1 }
0x1331   : > { %v14123_v59 = vadd.f32 %v9755_v23, %v9754_v19 }
0x1333   : > { %v4354_v14 = vpack.c.bf16 %v14123_v59, %v14121_v57 }
0x1389   : > { %v4027_v60 = vpop.permute.xlu0 %4026 }
0x138a   : > { %v4022_v61 = vpop.permute.xlu1 %4021  ;;  %v4031_v62 = vsub.f32 %v14088_v36, %v4027_v60  ;;  %v4032_v63 = vsub.f32 %v14094_v2, %v4027_v60 }
0x138b   : > { %v4029_v25 = vsub.f32 %v14082_v17, %v4022_v61  ;;  %v4030_v1 = vsub.f32 %v14084_v43, %v4022_v61 }
0x138d   : > { %v4057_v18 = vpop.permute.xlu0 %4056 }
0x13a2   : > { %v4043_v3 = vpop.permute.xlu1 %4042 }
0x13a3   : > { %v4047_v8 = vmul.f32 %v4043_v3, %v4031_v62  ;;  %v4048_v9 = vmul.f32 %v4043_v3, %v4032_v63 }
0x13a5   : > { %v4061_v0 = vadd.f32 %v4057_v18, %v4047_v8  ;;  %v4062_v26 = vadd.f32 %v4057_v18, %v4048_v9 }
0x13a6   : > { %v4038_v24 = vpop.permute.xlu1 %4037 }
0x13a7   : > { %v4065_v16 = vmax.f32 %v4061_v0, 0.0  ;;  %v4066_v22 = vmax.f32 %v4062_v26, 0.0  ;;  %v4045_v29 = vmul.f32 %v4038_v24, %v4029_v25  ;;  %v4046_v28 = vmul.f32 %v4038_v24, %v4030_v1 }
0x13a9   : > { %v4071_v15 = vmul.f32 %v4068_v31, %v4065_v16  ;;  %v4072_v33 = vmul.f32 %v4068_v31, %v4066_v22 }
0x13aa   : > { %v4052_v36 = vpop.permute.xlu1 %4051 }
0x13ab   : > { %v4059_v32 = vadd.f32 %v4052_v36, %v4045_v29  ;;  %v4060_v2 = vadd.f32 %v4052_v36, %v4046_v28  ;;  %v4075_v7 = vmul.f32 %v4071_v15, %v4071_v15  ;;  %v4076_v21 = vmul.f32 %v4072_v33, %v4072_v33  ;;  %v11103_v36 = vld [vmem:[#allocation19] sm:$0xff]  }
0x13ad   : > { %v4063_v4 = vmax.f32 %v4059_v32, 0.0  ;;  %v4064_v5 = vmax.f32 %v4060_v2, 0.0  ;;  %v2246_v32 = vld [vmem:[#allocation40] sm:$0x3] }
0x13af   : > { %v4069_v34 = vmul.f32 %v4068_v31, %v4063_v4  ;;  %v4070_v35 = vmul.f32 %v4068_v31, %v4064_v5  ;;  %v11102_v31 = vld [vmem:[#allocation36] sm:$0xff]  }
0x13b1   : > { %v4073_v37 = vmul.f32 %v4069_v34, %v4069_v34  ;;  %v4074_v17 = vmul.f32 %v4070_v35, %v4070_v35 }
0x13b3   : > { %v4077_v39 = vadd.f32 %v4075_v7, %v4073_v37  ;;  %v4084_v43 = vadd.f32 %v4076_v21, %v4074_v17  ;;  %v14168_v37 = vld [vmem:[#allocation13] sm:$0xf] }
0x13b5   : > { %v4078_v40 = vrot.slane %v4077_v39, 4  ;;  %v4085_v41 = vrot.slane %v4084_v43, 4 }
0x13b7   : > { %v4079_v6 = vadd.f32 %v4078_v40, %v4077_v39  ;;  %v4086_v45 = vadd.f32 %v4085_v41, %v4084_v43 }
0x13b9   : > { %v4080_v46 = vrot.slane %v4079_v6, 2  ;;  %v4087_v47 = vrot.slane %v4086_v45, 2 }
0x13bb   : > { %v4081_v20 = vadd.f32 %v4080_v46, %v4079_v6  ;;  %v4088_v55 = vadd.f32 %v4087_v47, %v4086_v45  ;;  %v4731_v6 = vld [vmem:[#allocation46] sm:$0xff]  ;;  %v4732_v45 = vld [vmem:[#allocation46 + $0x8] sm:$0xff] }
0x13bc   : > { %v4820_v46 = vld [vmem:[#allocation46 + $0x40] sm:$0xff] }
0x13bd   : > { %v4082_v56 = vrot.slane %v4081_v20, 1  ;;  %v4089_v58 = vrot.slane %v4088_v55, 1 }
0x13bf   : > { %v4083_v30 = vadd.f32 %v4082_v56, %v4081_v20  ;;  %v4090_v38 = vadd.f32 %v4089_v58, %v4088_v55  ;;  %v10436_v20 = vpack.c.bf16 %v4732_v45, %v4731_v6  ;;  %v4821_v55 = vld [vmem:[#allocation46 + $0x48] sm:$0xff]  ;;  %v4733_v56 = vld [vmem:[#allocation46 + $0x10] sm:$0xff]  ;;  %v4734_v58 = vld [vmem:[#allocation46 + $0x18] sm:$0xff] }
0x13c0   : > { %v4907_v6 = vld [vmem:[#allocation46 + $0x90] sm:$0xff] }
0x13c1   : > { %11151 = vrsqrt.f32 %v4083_v30  ;;  %vm4093_vm14 = vcmp.eq.f32.partialorder %v4083_v30, inf  ;;  %v4096_v60 = vand.u32 2147483648, %v4083_v30  ;;  %vm4095_vm15 = vcmp.eq.f32.partialorder %v4083_v30, 0.0  ;;  %10437 = vmatpush3.bf16.msra.mxu1 %v10436_v20  ;;  %v4993_v20 = vld [vmem:[#allocation46 + $0xd8] sm:$0xff] }
0x13c2   : > { %11153 = vrsqrt.f32 %v4090_v38  ;;  %vm4100_vm5 = vcmp.eq.f32.partialorder %v4090_v38, inf  ;;  %v4103_v63 = vand.u32 2147483648, %v4090_v38  ;;  %vm4102_vm6 = vcmp.eq.f32.partialorder %v4090_v38, 0.0  ;;  %10438 = vmatprep.subr.bf16.mxu1 %v12779_v12 }
0x13cb   : > { %v11152_v42 = vpop.eup %11151 }
0x13cc   : > { %v11154_v19 = vpop.eup %11153  ;;  %v4092_v23 = vmul.f32 %v11152_v42, %v4083_v30 }
0x13cd   : > { %v4099_v61 = vmul.f32 %v11154_v19, %v4090_v38  ;;  %v2249_v19 = vld [vmem:[#allocation45] sm:$0xf] }
0x13ce   : > { %v4094_v62 = vsel %vm4093_vm14, %v4083_v30, %v4092_v23  ;;  %v10448_v23 = vpack.c.bf16 %v4821_v55, %v4820_v46  ;;  %v4908_v46 = vld [vmem:[#allocation46 + $0x98] sm:$0xff]  ;;  %vm6528_vm14 = vcmask 125952  }
0x13cf   : > { %v4097_v3 = vsel %vm4095_vm15, %v4096_v60, %v4094_v62  ;;  %v4101_v8 = vsel %vm4100_vm5, %v4090_v38, %v4099_v61  ;;  %v4822_v60 = vld [vmem:[#allocation46 + $0x50] sm:$0xff]  ;;  %v4823_v61 = vld [vmem:[#allocation46 + $0x58] sm:$0xff]  ;;  %v10439_v62 = vpack.c.bf16 %v4734_v58, %v4733_v56  ;;  %v4909_v56 = vld [vmem:[#allocation46 + $0xa0] sm:$0xff] }
0x13d0   : > { %v4105_v9 = vadd.f32 1e-06, %v4097_v3  ;;  %v4104_v18 = vsel %vm4102_vm6, %v4103_v63, %v4101_v8  ;;  %v10451_v3 = vpack.c.bf16 %v4823_v61, %v4822_v60  ;;  %v4910_v58 = vld [vmem:[#allocation46 + $0xa8] sm:$0xff]  ;;  %v4912_v60 = vld [vmem:[#allocation46 + $0xb8] sm:$0xff]  ;;  %v4996_v61 = vld [vmem:[#allocation46 + $0xf0] sm:$0xff] }
0x13d1   : > { %v4106_v0 = vadd.f32 1e-06, %v4104_v18  ;;  %10440 = vmatpush3.bf16.msra.mxu1 %v10439_v62  ;;  %v2247_v18 = vld [vmem:[#allocation42] sm:$0xf]  ;;  %v4997_v62 = vld [vmem:[#allocation46 + $0xf8] sm:$0xff] }
0x13d2   : > { %11155 = vrcp.f32 %v4105_v9  ;;  %10441 = vmatprep.subr.bf16.mxu1 %v12779_v12 }
0x13d3   : > { %11157 = vrcp.f32 %v4106_v0 }
0x13dc   : > { %v11156_v26 = vpop.eup %11155 }
0x13dd   : > { %v11158_v24 = vpop.eup %11157  ;;  %v4109_v25 = vmul.f32 %v11156_v26, %v4069_v34  ;;  %v4111_v1 = vmul.f32 %v11156_v26, %v4071_v15 }
0x13de   : > { %v4110_v16 = vmul.f32 %v11158_v24, %v4070_v35  ;;  %v4112_v22 = vmul.f32 %v11158_v24, %v4072_v33  ;;  %v14154_v35 = vld [vmem:[#allocation15] sm:$0xf]  ;;  %v4735_v24 = vld [vmem:[#allocation46 + $0x20] sm:$0xff] }
0x13df   : > { %v4113_v29 = vpack.c.bf16 %v4111_v1, %v4109_v25  ;;  %v4736_v25 = vld [vmem:[#allocation46 + $0x28] sm:$0xff]  ;;  %v4824_v1 = vld [vmem:[#allocation46 + $0x60] sm:$0xff] }
0x13e0   : > { %v4114_v28 = vpack.c.bf16 %v4112_v22, %v4110_v16  ;;  %v10442_v16 = vpack.c.bf16 %v4736_v25, %v4735_v24  ;;  %v4825_v22 = vld [vmem:[#allocation46 + $0x68] sm:$0xff]  ;;  %v5077_v25 = vld [vmem:[#allocation46 + $0x150] sm:$0xff] }
0x13e2   : > { %4123 = vmatprep.subr.bf16.mxu0 %v4114_v28  ;;  %v2248_v28 = vld [vmem:[#allocation43] sm:$0xf]  ;;  %10443 = vmatpush3.bf16.msra.mxu1 %v10442_v16  ;;  %v5162_v16 = vld [vmem:[#allocation46 + $0x190] sm:$0xff] }
0x13e3   : > { %4124 = vmatpush1.bf16.msra.mxu0 %v4113_v29  ;;  %v10454_v29 = vpack.c.bf16 %v4825_v22, %v4824_v1  ;;  %10444 = vmatprep.subr.bf16.mxu1 %v12779_v12  ;;  %v5078_v1 = vld [vmem:[#allocation46 + $0x158] sm:$0xff] }
0x13e4   : > { %4174 = vmatprep.subr.bf16.mxu0 %v13913_v11  ;;  %v5163_v22 = vld [vmem:[#allocation46 + $0x198] sm:$0xff] }
0x13e6   : > { %9559 = vmatmul.mubr.msk.bf16.vlgmr.msra.gmra.mrb[20].mxu0 %vm2332_vm1, %v11102_v31  ;;  %v4737_v31 = vld [vmem:[#allocation46 + $0x30] sm:$0xff] }
0x13e7   : > { %4175 = vmatpush1.bf16.msra.mxu0 %v13911_v10  ;;  %4206 = vmatprep.mubr.bf16.mxu0 %v12782_v27 }
0x13e8   : > { %10039 = vmatprep.subr.bf16.mxu0 %v12781_v13 }
0x13f2   : > { %9561 = vmatmul.mubr.msk.bf16.vlgmr.msra.gmra.mrb[20].mxu0 %vm2332_vm1, %v11103_v36  ;;  %v4738_v36 = vld [vmem:[#allocation46 + $0x38] sm:$0xff] }
0x13f3   : > { %10040 = vmatpush3.bf16.msra.mxu0 %v4354_v14  ;;  %10041 = vmatprep.mubr.msk.bf16.mxu0 %vm12780_vm0, %v12781_v13 }
0x13f4   : > { %10045 = vmatprep.subr.mxu0 %v12781_v13 }
0x13fa   : > { %10042 = vmatmul.mubr.msk.bf16.vlgmr.msra.gmra.mrb[24].mxu0 %vm2332_vm1, %v2246_v32  ;;  %v4826_v32 = vld [vmem:[#allocation46 + $0x70] sm:$0xff] }
0x13fb   : > { %10047 = vmatprep.mubr.msk.f32.mxu0 %vm12780_vm0, %v12781_v13 }
0x14cd   : > { %v14146_v2 = vpop.f32.mrb[24].mxu0 }
0x14ce   : > { %v10043_v15 = vpop.f32.mrb[25].mxu0  ;;  %v4399_v33 = vsel %vm4398_vm7, %v14146_v2, 0.0  ;;  %v4402_v57 = vmul.f32 %v14146_v2, %v14146_v2 }
0x14cf   : > { %4400 = vadd.xlane.f32.xlu1 %v4399_v33  ;;  %v4395_v59 = vpop.f32.mrb[26].mxu0  ;;  %v10445_v15 = vpack.c.bf16 %v4738_v36, %v4737_v31  ;;  %v4827_v33 = vld [vmem:[#allocation46 + $0x78] sm:$0xff]  ;;  %v5079_v31 = vld [vmem:[#allocation46 + $0x160] sm:$0xff]  ;;  %v5080_v36 = vld [vmem:[#allocation46 + $0x168] sm:$0xff] }
0x14d0   : > { %v10044_v14 = vpop.f32.mrb[27].mxu0  ;;  %v4403_v4 = vsel %vm4398_vm7, %v4402_v57, 0.0  ;;  %v10457_v57 = vpack.c.bf16 %v4827_v33, %v4826_v32  ;;  %v5164_v32 = vld [vmem:[#allocation46 + $0x1a0] sm:$0xff]  ;;  %v10490_v33 = vpack.c.bf16 %v5080_v36, %v5079_v31 }
0x14d1   : > { %4404 = vadd.xlane.f32.xlu0 %v4403_v4  ;;  %10446 = vmatpush3.bf16.msra.mxu1 %v10445_v15  ;;  %v5165_v15 = vld [vmem:[#allocation46 + $0x1a8] sm:$0xff] }
0x14d2   : > { %10459 = vmatprep.subr.bf16.mxu1 %v12779_v12 }
0x155c   : > { %v4401_v5 = vpop.xlane.xlu1 %4400 }
0x155d   : > { %10046 = vmatpush3.msk.msra.mxu0 %vm2737_vm3, %v4401_v5  ;;  %v4905_v5 = vld [vmem:[#allocation46 + $0x80] sm:$0xff] }
0x155e   : > { %v4405_v34 = vpop.xlane.xlu0 %4404  ;;  %10048 = vmatmul.mubr.msk.f32.vlgmr.msra.gmra.mrb[28].mxu0 %vm2750_vm4, %v14154_v35  ;;  %10050 = vmatprep.subr.mxu0 %v12781_v13 }
0x155f   : > { %10051 = vmatpush3.msk.msra.mxu0 %vm2737_vm3, %v4405_v34  ;;  %10052 = vmatprep.mubr.msk.f32.mxu0 %vm12780_vm0, %v12781_v13 }
0x1560   : > { %10055 = vmatprep.subr.mxu0 %v12781_v13 }
0x1562   : > { %10053 = vmatmul.mubr.msk.f32.vlgmr.msra.gmra.mrb[30].mxu0 %vm2750_vm4, %v14154_v35 }
0x1563   : > { %10057 = vmatprep.mubr.msk.f32.mxu0 %vm12780_vm0, %v12781_v13 }
0x1631   : > { %v4475_v7 = vpop.f32.mrb[28].mxu0 }
0x1632   : > { %v10049_v21 = vpop.f32.mrb[29].mxu0  ;;  %10056 = vmatpush3.msk.msra.mxu0 %vm2737_vm3, %v4475_v7  ;;  %v4906_v7 = vld [vmem:[#allocation46 + $0x88] sm:$0xff] }
0x1633   : > { %10058 = vmatmul.mubr.msk.f32.vlgmr.msra.gmra.mrb[32].mxu0 %vm2750_vm4, %v14168_v37  ;;  %10060 = vmatprep.subr.mxu0 %v12781_v13  ;;  %v4990_v21 = vld [vmem:[#allocation46 + $0xc0] sm:$0xff] }
0x1634   : > { %10062 = vmatprep.mubr.msk.f32.mxu0 %vm12780_vm0, %v12781_v13 }
0x1635   : > { %v4548_v17 = vpop.f32.mrb[30].mxu0 }
0x1636   : > { %v10054_v39 = vpop.f32.mrb[31].mxu0  ;;  %10061 = vmatpush3.msk.msra.mxu0 %vm2737_vm3, %v4548_v17  ;;  %v4991_v17 = vld [vmem:[#allocation46 + $0xc8] sm:$0xff] }
0x1637   : > { %10063 = vmatmul.mubr.msk.f32.vlgmr.msra.gmra.mrb[34].mxu0 %vm2750_vm4, %v14168_v37  ;;  %10447 = vmatprep.subr.bf16.mxu0 %v12779_v12 }
0x1638   : > { %10100 = vmatprep.mubr.msk.f32.mxu0 %vm12780_vm0, %v12781_v13  ;;  %10449 = vmatpush3.bf16.msra.mxu0 %v10448_v23  ;;  %v4911_v23 = vld [vmem:[#allocation46 + $0xb0] sm:$0xff] }
0x1639   : > { %10450 = vmatprep.subr.bf16.mxu0 %v12779_v12 }
0x163c   : > { %10452 = vmatpush3.bf16.msra.mxu0 %v10451_v3  ;;  %v10481_v3 = vpack.c.bf16 %v4997_v62, %v4996_v61  ;;  %v5336_v61 = vld [vmem:[#allocation46 + $0x230] sm:$0xff]  ;;  %v5337_v62 = vld [vmem:[#allocation46 + $0x238] sm:$0xff] }
0x163d   : > { %10453 = vmatprep.subr.bf16.mxu0 %v12779_v12 }
0x1640   : > { %10455 = vmatpush3.bf16.msra.mxu0 %v10454_v29  ;;  %v10487_v29 = vpack.c.bf16 %v5078_v1, %v5077_v25 }
0x1641   : > { %10456 = vmatprep.subr.bf16.mxu0 %v12779_v12 }
0x1644   : > { %10458 = vmatpush3.bf16.msra.mxu0 %v10457_v57  ;;  %v10502_v57 = vpack.c.bf16 %v5165_v15, %v5164_v32 }
0x1645   : > { %10471 = vmatprep.subr.bf16.mxu0 %v12779_v12 }
0x1706   : > { %v4621_v43 = vpop.f32.mrb[32].mxu0 }
0x1707   : > { %v4625_v40 = vmul.f32 0.015625, %v4621_v43  ;;  %v10059_v41 = vpop.f32.mrb[33].mxu0 }
0x1708   : > { %v10472_v41 = vpack.c.bf16 %v4991_v17, %v4990_v21  ;;  %v5245_v21 = vld [vmem:[#allocation46 + $0x1c0] sm:$0xff]  ;;  %v5246_v17 = vld [vmem:[#allocation46 + $0x1c8] sm:$0xff] }
0x1709   : > { %4707 = vperm.xlu0 %11064, %v4625_v40   ;;  %v4700_v30 = vmul.f32 %v4625_v40, %v4625_v40  ;;  %v10460_v40 = vpack.c.bf16 %v4906_v7, %v4905_v5  ;;  %v5167_v5 = vld [vmem:[#allocation46 + $0x1b8] sm:$0xff] }
0x170a   : > { %v4695_v47 = vpop.f32.mrb[34].mxu0 }
0x170b   : > { %v4699_v38 = vmul.f32 0.015625, %v4695_v47  ;;  %v10064_v42 = vpop.f32.mrb[35].mxu0  ;;  %v4992_v47 = vld [vmem:[#allocation46 + $0xd0] sm:$0xff] }
0x170c   : > { %v10475_v55 = vpack.c.bf16 %v4993_v20, %v4992_v47  ;;  %v10466_v42 = vpack.c.bf16 %v4910_v58, %v4909_v56  ;;  %v5332_v47 = vld [vmem:[#allocation46 + $0x210] sm:$0xff]  ;;  %v5333_v20 = vld [vmem:[#allocation46 + $0x218] sm:$0xff]  ;;  %v5249_v56 = vld [vmem:[#allocation46 + $0x1e0] sm:$0xff] }
0x170d   : > { %v4701_v63 = vsub.f32 %v4699_v38, %v4700_v30  ;;  %11065 = vset.pattern.permute.xlu0 %v12783_v44  ;;  %v4994_v30 = vld [vmem:[#allocation46 + $0xe0] sm:$0xff]  ;;  %v4995_v38 = vld [vmem:[#allocation46 + $0xe8] sm:$0xff] }
0x170e   : > { %4727 = vperm.xlu0 %11065, %v2249_v19   ;;  %v5250_v58 = vld [vmem:[#allocation46 + $0x1e8] sm:$0xff] }
0x170f   : > { %v4702_v8 = vmax.f32 %v4701_v63, 0.0  ;;  %v10469_v63 = vpack.c.bf16 %v4912_v60, %v4911_v23  ;;  %v5251_v23 = vld [vmem:[#allocation46 + $0x1f0] sm:$0xff]  ;;  %v5252_v60 = vld [vmem:[#allocation46 + $0x1f8] sm:$0xff] }
0x1711   : > { %v4703_v9 = vadd.f32 1e-05, %v4702_v8  ;;  %v5075_v8 = vld [vmem:[#allocation46 + $0x140] sm:$0xff] }
0x1712   : > { %11067 = vset.pattern.permute.xlu0 %v12785_v49 }
0x1713   : > { %11159 = vrsqrt.f32 %v4703_v9  ;;  %4984 = vperm.xlu0 %11067, %v2249_v19   ;;  %v5076_v9 = vld [vmem:[#allocation46 + $0x148] sm:$0xff] }
0x1717   : > { %11070 = vset.pattern.permute.xlu0 %v12788_v52 }
0x1718   : > { %5239 = vperm.xlu0 %11070, %v2249_v19  }
0x171c   : > { %11073 = vset.pattern.permute.xlu0 %v12782_v27 }
0x171d   : > { %v11160_v0 = vpop.eup %11159 }
0x171e   : > { %v4711_v26 = vmul.f32 %v11160_v0, %v2247_v18  ;;  %v5160_v18 = vld [vmem:[#allocation46 + $0x180] sm:$0xff]  ;;  %v5161_v0 = vld [vmem:[#allocation46 + $0x188] sm:$0xff] }
0x171f   : > { %v10496_v24 = vpack.c.bf16 %v5161_v0, %v5160_v18 }
0x1720   : > { %4714 = vperm.xlu1 %11056, %v4711_v26   ;;  %v10484_v26 = vpack.c.bf16 %v5076_v9, %v5075_v8 }
0x1724   : > { %4720 = vperm.xlu1 %11056, %v2248_v28   ;;  %v10499_v28 = vpack.c.bf16 %v5163_v22, %v5162_v16 }
0x1728   : > { %4814 = vperm.xlu1 %11056, %v2249_v19  }
0x172c   : > { %11066 = vset.pattern.permute.xlu1 %v12784_v48 }
0x172d   : > { %4899 = vperm.xlu1 %11066, %v2249_v19  }
0x1731   : > { %11068 = vset.pattern.permute.xlu1 %v12786_v50 }
0x1732   : > { %5069 = vperm.xlu1 %11068, %v2249_v19  }
0x1736   : > { %11069 = vset.pattern.permute.xlu1 %v12787_v51 }
0x1737   : > { %5154 = vperm.xlu1 %11069, %v2249_v19  }
0x173b   : > { %11071 = vset.pattern.permute.xlu1 %v12789_v53 }
0x173c   : > { %5324 = vperm.xlu1 %11071, %v2249_v19  }
0x1740   : > { %11072 = vset.pattern.permute.xlu1 %v12790_v54 }
0x1741   : > { %5409 = vperm.xlu1 %11072, %v2249_v19   ;;  %v10478_v19 = vpack.c.bf16 %v4995_v38, %v4994_v30  ;;  %v5334_v30 = vld [vmem:[#allocation46 + $0x220] sm:$0xff]  ;;  %v5335_v38 = vld [vmem:[#allocation46 + $0x228] sm:$0xff] }
0x1745   : > { %11074 = vset.pattern.permute.xlu1 %v12782_v27 }
0x1788   : > { %v4708_v59 = vpop.permute.xlu0 %4707 }
0x1789   : > { %v4710_v4 = vsub.f32 %v14146_v2, %v4708_v59  ;;  %v10463_v2 = vpack.c.bf16 %v4908_v46, %v4907_v6  ;;  %v5081_v59 = vld [vmem:[#allocation46 + $0x170] sm:$0xff]  ;;  %v5248_v46 = vld [vmem:[#allocation46 + $0x1d8] sm:$0xff] }
0x178a   : > { %v5247_v6 = vld [vmem:[#allocation46 + $0x1d0] sm:$0xff] }
0x178d   : > { %v4728_v9 = vpop.permute.xlu0 %4727 }
0x1792   : > { %v4985_v31 = vpop.permute.xlu0 %4984 }
0x179f   : > { %v4715_v14 = vpop.permute.xlu1 %4714 }
0x17a0   : > { %v4717_v34 = vmul.f32 %v4715_v14, %v4710_v4  ;;  %v5082_v14 = vld [vmem:[#allocation46 + $0x178] sm:$0xff]  ;;  %v5166_v4 = vld [vmem:[#allocation46 + $0x1b0] sm:$0xff] }
0x17a1   : > { %v10505_v7 = vpack.c.bf16 %v5167_v5, %v5166_v4 }
0x17a3   : > { %v4721_v39 = vpop.permute.xlu1 %4720 }
0x17a4   : > { %v4723_v43 = vadd.f32 %v4721_v39, %v4717_v34  ;;  %v10493_v34 = vpack.c.bf16 %v5082_v14, %v5081_v59  ;;  %v5330_v39 = vld [vmem:[#allocation46 + $0x200] sm:$0xff] }
0x17a6   : > { %v14200_v45 = vmax.f32 %v4723_v43, 0.0  ;;  %v5331_v43 = vld [vmem:[#allocation46 + $0x208] sm:$0xff] }
0x17a7   : > { %v4815_v8 = vpop.permute.xlu1 %4814 }
0x17a8   : > { %10082 = vmatmul.mubr.msk.f32.vlgmr.msra.gmra.mrb[24].mxu1 %vm4739_vm8, %v14200_v45  ;;  %10101 = vmatmul.mubr.msk.f32.vlgmr.msra.gmra.mrb[36].mxu0 %vm4739_vm8, %v14200_v45 }
0x17a9   : > { %10461 = vmatpush3.bf16.msra.mxu1 %v10460_v40  ;;  %10473 = vmatpush3.bf16.msra.mxu0 %v10472_v41  ;;  %v10508_v40 = vpack.c.bf16 %v5246_v17, %v5245_v21  ;;  %v10520_v41 = vpack.c.bf16 %v5331_v43, %v5330_v39 }
0x17aa   : > { %10462 = vmatprep.subr.bf16.mxu1 %v12779_v12  ;;  %10474 = vmatprep.subr.bf16.mxu0 %v12779_v12 }
0x17ab   : > { %10119 = vmatprep.mubr.msk.f32.mxu1 %vm12780_vm0, %v12781_v13  ;;  %10138 = vmatprep.mubr.msk.f32.mxu0 %vm12780_vm0, %v12781_v13 }
0x17ac   : > { %v4900_v18 = vpop.permute.xlu1 %4899 }
0x17ad   : > { %10464 = vmatpush3.bf16.msra.mxu1 %v10463_v2  ;;  %10476 = vmatpush3.bf16.msra.mxu0 %v10475_v55  ;;  %v10511_v2 = vpack.c.bf16 %v5248_v46, %v5247_v6  ;;  %v10523_v55 = vpack.c.bf16 %v5333_v20, %v5332_v47 }
0x17ae   : > { %10465 = vmatprep.subr.bf16.mxu1 %v12779_v12  ;;  %10477 = vmatprep.subr.bf16.mxu0 %v12779_v12 }
0x17b1   : > { %10467 = vmatpush3.bf16.msra.mxu1 %v10466_v42  ;;  %10479 = vmatpush3.bf16.msra.mxu0 %v10478_v19  ;;  %v10514_v42 = vpack.c.bf16 %v5250_v58, %v5249_v56  ;;  %v10526_v19 = vpack.c.bf16 %v5335_v38, %v5334_v30  ;;  %v5070_v36 = vpop.permute.xlu1 %5069 }
0x17b2   : > { %10468 = vmatprep.subr.bf16.mxu1 %v12779_v12  ;;  %10480 = vmatprep.subr.bf16.mxu0 %v12779_v12 }
0x17b5   : > { %10470 = vmatpush3.bf16.msra.mxu1 %v10469_v63  ;;  %10482 = vmatpush3.bf16.msra.mxu0 %v10481_v3  ;;  %v10517_v63 = vpack.c.bf16 %v5252_v60, %v5251_v23  ;;  %v10529_v3 = vpack.c.bf16 %v5337_v62, %v5336_v61 }
0x17b6   : > { %10483 = vmatprep.subr.bf16.mxu1 %v12779_v12  ;;  %10495 = vmatprep.subr.bf16.mxu0 %v12779_v12 }
0x17b8   : > { %10120 = vmatmul.mubr.msk.f32.vlgmr.msra.gmra.mrb[26].mxu1 %vm4739_vm8, %v14200_v45  ;;  %10139 = vmatmul.mubr.msk.f32.vlgmr.msra.gmra.mrb[38].mxu0 %vm4739_vm8, %v14200_v45 }
0x17b9   : > { %10485 = vmatpush3.bf16.msra.mxu1 %v10484_v26  ;;  %10497 = vmatpush3.bf16.msra.mxu0 %v10496_v24  ;;  %v4730_v24 = vmul.f32 %v4728_v9, %v14200_v45 }
0x17ba   : > { %10486 = vmatprep.subr.bf16.mxu1 %v12779_v12  ;;  %10498 = vmatprep.subr.bf16.mxu0 %v12779_v12 }
0x17bb   : > { %10157 = vmatprep.mubr.msk.f32.mxu1 %vm12780_vm0, %v12781_v13  ;;  %10176 = vmatprep.mubr.msk.f32.mxu0 %vm12780_vm0, %v12781_v13 }
0x17bd   : > { %10488 = vmatpush3.bf16.msra.mxu1 %v10487_v29  ;;  %10500 = vmatpush3.bf16.msra.mxu0 %v10499_v28 }
0x17be   : > { %10489 = vmatprep.subr.bf16.mxu1 %v12779_v12  ;;  %10501 = vmatprep.subr.bf16.mxu0 %v12779_v12 }
0x17c1   : > { %10491 = vmatpush3.bf16.msra.mxu1 %v10490_v33  ;;  %10503 = vmatpush3.bf16.msra.mxu0 %v10502_v57 }
0x17c2   : > { %10492 = vmatprep.subr.bf16.mxu1 %v12779_v12  ;;  %10504 = vmatprep.subr.bf16.mxu0 %v12779_v12 }
0x17c5   : > { %10494 = vmatpush3.bf16.msra.mxu1 %v10493_v34  ;;  %10506 = vmatpush3.bf16.msra.mxu0 %v10505_v7  ;;  %v5155_v34 = vpop.permute.xlu1 %5154  ;;  %v5240_v7 = vpop.permute.xlu0 %5239 }
0x17c6   : > { %10507 = vmatprep.subr.bf16.mxu1 %v12779_v12  ;;  %10519 = vmatprep.subr.bf16.mxu0 %v12779_v12 }
0x17c8   : > { %10158 = vmatmul.mubr.msk.f32.vlgmr.msra.gmra.mrb[28].mxu1 %vm4739_vm8, %v14200_v45  ;;  %10177 = vmatmul.mubr.msk.f32.vlgmr.msra.gmra.mrb[40].mxu0 %vm4739_vm8, %v14200_v45 }
0x17c9   : > { %10509 = vmatpush3.bf16.msra.mxu1 %v10508_v40  ;;  %10521 = vmatpush3.bf16.msra.mxu0 %v10520_v41  ;;  %v5325_v46 = vpop.permute.xlu1 %5324 }
0x17ca   : > { %10510 = vmatprep.subr.bf16.mxu1 %v12779_v12  ;;  %10522 = vmatprep.subr.bf16.mxu0 %v12779_v12 }
0x17cb   : > { %10195 = vmatprep.mubr.msk.f32.mxu1 %vm12780_vm0, %v12781_v13  ;;  %10214 = vmatprep.mubr.msk.f32.mxu0 %vm12780_vm0, %v12781_v13 }
0x17cd   : > { %10512 = vmatpush3.bf16.msra.mxu1 %v10511_v2  ;;  %10524 = vmatpush3.bf16.msra.mxu0 %v10523_v55  ;;  %v5410_v47 = vpop.permute.xlu1 %5409 }
0x17ce   : > { %10513 = vmatprep.subr.bf16.mxu1 %v12779_v12  ;;  %10525 = vmatprep.subr.bf16.mxu0 %v12779_v12 }
0x17d1   : > { %10515 = vmatpush3.bf16.msra.mxu1 %v10514_v42  ;;  %10527 = vmatpush3.bf16.msra.mxu0 %v10526_v19 }
0x17d2   : > { %10516 = vmatprep.subr.bf16.mxu1 %v12779_v12  ;;  %10528 = vmatprep.subr.bf16.mxu0 %v12779_v12 }
0x17d5   : > { %10518 = vmatpush3.bf16.msra.mxu1 %v10517_v63  ;;  %10530 = vmatpush3.bf16.msra.mxu0 %v10529_v3 }
0x17d6   : > { %10217 = vmatprep.subr.mxu1 %v12781_v13  ;;  %10227 = vmatprep.subr.mxu0 %v12781_v13 }
0x17d8   : > { %10196 = vmatmul.mubr.msk.f32.vlgmr.msra.gmra.mrb[30].mxu1 %vm4739_vm8, %v14200_v45  ;;  %10215 = vmatmul.mubr.msk.f32.vlgmr.msra.gmra.mrb[42].mxu0 %vm4739_vm8, %v14200_v45 }
0x17d9   : > { %10219 = vmatprep.mubr.msk.f32.mxu1 %vm12780_vm0, %v12781_v13  ;;  %10229 = vmatprep.mubr.msk.f32.mxu0 %vm12780_vm0, %v12781_v13 }
0x187b   : > { %v4809_v0 = vpop.f32.mrb[24].mxu1  ;;  %v4894_v26 = vpop.f32.mrb[36].mxu0 }
0x187c   : > { %v4817_v25 = vmul.f32 %v4815_v8, %v4809_v0  ;;  %v10083_v1 = vpop.f32.mrb[25].mxu1  ;;  %v10102_v16 = vpop.f32.mrb[37].mxu0  ;;  %v4902_v29 = vmul.f32 %v4900_v18, %v4894_v26 }
0x187e   : > { %v4818_v22 = vadd.f32 %v4817_v25, %v4730_v24 }
0x1880   : > { %v4903_v28 = vadd.f32 %v4902_v29, %v4818_v22 }
0x188b   : > { %v4979_v32 = vpop.f32.mrb[26].mxu1  ;;  %v5064_v15 = vpop.f32.mrb[38].mxu0 }
0x188c   : > { %v4987_v33 = vmul.f32 %v4985_v31, %v4979_v32  ;;  %v10121_v57 = vpop.f32.mrb[27].mxu1  ;;  %v10140_v59 = vpop.f32.mrb[39].mxu0  ;;  %v5072_v4 = vmul.f32 %v5070_v36, %v5064_v15  ;;  %v2251_v36 = vld [vmem:[#allocation49] sm:$0xf] }
0x188e   : > { %v4988_v14 = vadd.f32 %v4987_v33, %v4903_v28  ;;  %v2250_v28 = vld [vmem:[#allocation48] sm:$0xf] }
0x1890   : > { %v5073_v5 = vadd.f32 %v5072_v4, %v4988_v14 }
0x189b   : > { %v5149_v21 = vpop.f32.mrb[28].mxu1  ;;  %v5234_v45 = vpop.f32.mrb[40].mxu0 }
0x189c   : > { %v5157_v17 = vmul.f32 %v5155_v34, %v5149_v21  ;;  %v10159_v39 = vpop.f32.mrb[29].mxu1  ;;  %v10178_v43 = vpop.f32.mrb[41].mxu0  ;;  %v5242_v41 = vmul.f32 %v5240_v7, %v5234_v45  ;;  %v11104_v7 = vld [vmem:[#allocation51] sm:$0xff]   ;;  %v14287_v21 = vld [vmem:[#allocation16] sm:$0xff] }
0x189e   : > { %v5158_v40 = vadd.f32 %v5157_v17, %v5073_v5 }
0x18a0   : > { %v5243_v6 = vadd.f32 %v5242_v41, %v5158_v40 }
0x18ab   : > { %v5319_v20 = vpop.f32.mrb[30].mxu1  ;;  %v5404_v2 = vpop.f32.mrb[42].mxu0 }
0x18ac   : > { %v5327_v55 = vmul.f32 %v5325_v46, %v5319_v20  ;;  %v10197_v56 = vpop.f32.mrb[31].mxu1  ;;  %v10216_v58 = vpop.f32.mrb[43].mxu0  ;;  %v5412_v38 = vmul.f32 %v5410_v47, %v5404_v2 }
0x18ae   : > { %v5328_v30 = vadd.f32 %v5327_v55, %v5243_v6 }
0x18b0   : > { %v5413_v42 = vadd.f32 %v5412_v38, %v5328_v30  ;;  %v14306_v38 = vld [vmem:[#allocation18] sm:$0xf] }
0x18b2   : > { %v5414_v19 = vsel %vm4398_vm7, %v5413_v42, 0.0  ;;  %v5417_v23 = vmul.f32 %v5413_v42, %v5413_v42 }
0x18b3   : > { %5415 = vadd.xlane.f32.xlu0 %v5414_v19 }
0x18b4   : > { %v5418_v60 = vsel %vm4398_vm7, %v5417_v23, 0.0 }
0x18b5   : > { %5419 = vadd.xlane.f32.xlu1 %v5418_v60  ;;  %v14318_v60 = vld [vmem:[#allocation16 + $0x8] sm:$0xff] }
0x1940   : > { %v5416_v61 = vpop.xlane.xlu0 %5415 }
0x1941   : > { %10218 = vmatpush3.msk.msra.mxu1 %vm2737_vm3, %v5416_v61  ;;  %v11105_v61 = vld [vmem:[#allocation57 + $0x40] sm:$0xff]  }
0x1942   : > { %v5420_v62 = vpop.xlane.xlu1 %5419  ;;  %10220 = vmatmul.mubr.msk.f32.vlgmr.msra.gmra.mrb[32].mxu1 %vm2750_vm4, %v14154_v35  ;;  %10222 = vmatprep.subr.mxu1 %v12781_v13 }
0x1943   : > { %10223 = vmatpush3.msk.msra.mxu1 %vm2737_vm3, %v5420_v62  ;;  %10224 = vmatprep.mubr.msk.f32.mxu1 %vm12780_vm0, %v12781_v13 }
0x1944   : > { %10232 = vmatprep.subr.mxu1 %v12781_v13 }
0x1946   : > { %10225 = vmatmul.mubr.msk.f32.vlgmr.msra.gmra.mrb[34].mxu1 %vm2750_vm4, %v14154_v35 }
0x1947   : > { %10234 = vmatprep.mubr.msk.f32.mxu1 %vm12780_vm0, %v12781_v13 }
0x1a15   : > { %v5490_v63 = vpop.f32.mrb[32].mxu1 }
0x1a16   : > { %v10221_v3 = vpop.f32.mrb[33].mxu1  ;;  %10228 = vmatpush3.msk.msra.mxu0 %vm2737_vm3, %v5490_v63  ;;  %v11106_v63 = vld [vmem:[#allocation57] sm:$0xff]  }
0x1a17   : > { %10230 = vmatmul.mubr.msk.f32.vlgmr.msra.gmra.mrb[44].mxu0 %vm2750_vm4, %v14168_v37  ;;  %10237 = vmatprep.subr.bf16.mxu0 %v12781_v13 }
0x1a18   : > { %10239 = vmatprep.mubr.msk.bf16.mxu0 %vm12780_vm0, %v12781_v13 }
0x1a19   : > { %v5563_v8 = vpop.f32.mrb[34].mxu1 }
0x1a1a   : > { %v10226_v9 = vpop.f32.mrb[35].mxu1  ;;  %10233 = vmatpush3.msk.msra.mxu1 %vm2737_vm3, %v5563_v8  ;;  %v11107_v8 = vld [vmem:[#allocation57 + $0x48] sm:$0xff]  }
0x1a1b   : > { %10235 = vmatmul.mubr.msk.f32.vlgmr.msra.gmra.mrb[36].mxu1 %vm2750_vm4, %v14168_v37  ;;  %10531 = vmatprep.subr.bf16.mxu1 %v12779_v12  ;;  %v11108_v9 = vld [vmem:[#allocation57 + $0x8] sm:$0xff]  }
0x1a1c   : > { %10247 = vmatprep.mubr.msk.f32.mxu1 %vm12780_vm0, %v12781_v13 }
0x1aea   : > { %v5636_v35 = vpop.f32.mrb[44].mxu0 }
0x1aeb   : > { %v5640_v18 = vmul.f32 0.015625, %v5636_v35  ;;  %v10231_v0 = vpop.f32.mrb[45].mxu0  ;;  %v11109_v35 = vld [vmem:[#allocation57 + $0x50] sm:$0xff]  }
0x1aec   : > { %v11111_v0 = vld [vmem:[#allocation57 + $0x58] sm:$0xff]  }
0x1aed   : > { %v5715_v26 = vmul.f32 %v5640_v18, %v5640_v18  ;;  %5722 = vperm.xlu0 %11073, %v5640_v18   ;;  %v11110_v18 = vld [vmem:[#allocation57 + $0x10] sm:$0xff]  }
0x1aee   : > { %v5710_v24 = vpop.f32.mrb[36].mxu1 }
0x1aef   : > { %v5714_v25 = vmul.f32 0.015625, %v5710_v24  ;;  %v10236_v1 = vpop.f32.mrb[37].mxu1  ;;  %v11113_v24 = vld [vmem:[#allocation57 + $0x60] sm:$0xff]  }
0x1af0   : > { %v11115_v1 = vld [vmem:[#allocation57 + $0x68] sm:$0xff]  }
0x1af1   : > { %v5716_v16 = vsub.f32 %v5714_v25, %v5715_v26  ;;  %v11112_v26 = vld [vmem:[#allocation57 + $0x18] sm:$0xff]   ;;  %v11114_v25 = vld [vmem:[#allocation57 + $0x20] sm:$0xff]  }
0x1af3   : > { %v5717_v22 = vmax.f32 %v5716_v16, 0.0  ;;  %v11116_v16 = vld [vmem:[#allocation57 + $0x28] sm:$0xff]  }
0x1af5   : > { %v5718_v29 = vadd.f32 1e-05, %v5717_v22  ;;  %v11117_v22 = vld [vmem:[#allocation57 + $0x70] sm:$0xff]  }
0x1af7   : > { %11161 = vrsqrt.f32 %v5718_v29  ;;  %v11119_v29 = vld [vmem:[#allocation57 + $0x78] sm:$0xff]  }
0x1b01   : > { %v11162_v31 = vpop.eup %11161 }
0x1b02   : > { %v5726_v37 = vmul.f32 %v11162_v31, %v2250_v28  ;;  %v11120_v28 = vld [vmem:[#allocation57 + $0x38] sm:$0xff]  }
0x1b04   : > { %5729 = vperm.xlu1 %11074, %v5726_v37  }
0x1b08   : > { %5735 = vperm.xlu1 %11074, %v2251_v36  }
0x1b6c   : > { %v5723_v32 = vpop.permute.xlu0 %5722 }
0x1b6d   : > { %v5725_v33 = vsub.f32 %v5413_v42, %v5723_v32 }
0x1b83   : > { %v5730_v15 = vpop.permute.xlu1 %5729 }
0x1b84   : > { %v5732_v57 = vmul.f32 %v5730_v15, %v5725_v33  ;;  %v2256_v15 = vld [vmem:[#allocation54] sm:$0xff] }
0x1b87   : > { %v5736_v59 = vpop.permute.xlu1 %5735 }
0x1b88   : > { %v5738_v14 = vadd.f32 %v5736_v59, %v5732_v57 }
0x1b8a   : > { %v5739_v4 = vmax.f32 %v5738_v14, 0.0  ;;  %v11121_v14 = vld [vmem:[#allocation39] ss:$8 sps:$4 sm:$0xff]  }
0x1b8c   : > { %v5740_v5 = vpack.c.bf16 %v5739_v4, %v5739_v4  ;;  %v11123_v4 = vld [vmem:[#allocation39 + $0x4] ss:$8 sps:$4 sm:$0xff]  }
0x1b8e   : > { %v5750_v34 = vsel %vm3634_vm13, %v5740_v5, 0 }
0x1b8f   : > { %10238 = vmatpush3.bf16.msra.mxu0 %v5750_v34 }
0x1b92   : > { %10240 = vmatmul.mubr.msk.bf16.vlgmr.msra.gmra.mrb[48].mxu0 %vm2750_vm4, %v11104_v7 }
0x1b93   : > { %10259 = vmatprep.mubr.msk.f32.mxu0 %vm2750_vm4, %v14287_v21 }
0x1c65   : > { %v14291_v45 = vpop.f32.mrb[48].mxu0 }
0x1c66   : > { %v5799_v17 = vmul.f32 %v14291_v45, %v14291_v45  ;;  %v10241_v39 = vpop.f32.mrb[49].mxu0  ;;  %v5793_v43 = vsel %vm4739_vm8, %v14291_v45, 0.0 }
0x1c67   : > { %5794 = vadd.xlane.f32.xlu1 %v5793_v43  ;;  %v14297_v40 = vpop.f32.mrb[50].mxu0 }
0x1c68   : > { %v10242_v41 = vpop.f32.mrb[51].mxu0  ;;  %v5796_v6 = vsel %vm4739_vm8, %v14297_v40, 0.0  ;;  %v5800_v46 = vmul.f32 %v14297_v40, %v14297_v40  ;;  %v5801_v47 = vsel %vm4739_vm8, %v5799_v17, 0.0 }
0x1c69   : > { %5797 = vadd.xlane.f32.xlu0 %v5796_v6 }
0x1c6a   : > { %v5804_v20 = vsel %vm4739_vm8, %v5800_v46, 0.0  ;;  %v2255_v46 = vld [vmem:[#allocation52 + $0x8] sm:$0xff] }
0x1c6b   : > { %5802 = vadd.xlane.f32.xlu1 %v5801_v47 }
0x1c6f   : > { %5805 = vadd.xlane.f32.xlu1 %v5804_v20 }
0x1cf4   : > { %v5795_v2 = vpop.xlane.xlu1 %5794 }
0x1cf6   : > { %v5798_v55 = vpop.xlane.xlu0 %5797 }
0x1cf7   : > { %v10532_v56 = vpack.c.bf16 %v5798_v55, %v5795_v2  ;;  %v2254_v55 = vld [vmem:[#allocation52] sm:$0xff] }
0x1cf8   : > { %v5803_v58 = vpop.xlane.xlu1 %5802 }
0x1cf9   : > { %10533 = vmatpush3.bf16.msra.mxu1 %v10532_v56  ;;  %v11124_v56 = vld [vmem:[#allocation39 + $0x10] ss:$8 sps:$4 sm:$0xff]  }
0x1cfa   : > { %10534 = vmatprep.subr.bf16.mxu1 %v12779_v12 }
0x1cfc   : > { %v5806_v30 = vpop.xlane.xlu1 %5805  ;;  %10248 = vmatmul.mubr.msk.f32.vlgmr.msra.gmra.mrb[38].mxu1 %vm2332_vm1, %v14306_v38 }
0x1cfd   : > { %v10535_v42 = vpack.c.bf16 %v5806_v30, %v5803_v58  ;;  %10254 = vmatprep.mubr.msk.f32.mxu1 %vm12780_vm0, %v12781_v13  ;;  %v11126_v58 = vld [vmem:[#allocation39 + $0x14] ss:$8 sps:$4 sm:$0xff]  }
0x1cff   : > { %10536 = vmatpush3.bf16.msra.mxu1 %v10535_v42  ;;  %v11129_v42 = vld [vmem:[#allocation39 + $0x24] ss:$8 sps:$4 sm:$0xff]  }
0x1d02   : > { %10255 = vmatmul.mubr.msk.f32.vlgmr.msra.gmra.mrb[40].mxu1 %vm2332_vm1, %v14306_v38 }
0x1d03   : > { %10264 = vmatprep.mubr.msk.f32.mxu1 %vm2750_vm4, %v14287_v21 }
0x1dcf   : > { %v5873_v19 = vpop.f32.mrb[38].mxu1 }
0x1dd0   : > { %10257 = vmatprep.subr.msk.mxu0 %vm2737_vm3, %v5873_v19  ;;  %v10249_v23 = vpop.f32.mrb[39].mxu1 }
0x1dd1   : > { %10258 = vmatpush3.msk.msra.mxu0 %vm2737_vm3, %v5873_v19  ;;  %v2257_v19 = vld [vmem:[#allocation54 + $0x8] sm:$0xff]  ;;  %v11127_v23 = vld [vmem:[#allocation39 + $0x20] ss:$8 sps:$4 sm:$0xff]  }
0x1dd2   : > { %10260 = vmatmul.mubr.msk.f32.vlgmr.msra.gmra.mrb[46].mxu0 %vm2750_vm4, %v14318_v60  ;;  %6201 = vmatprep.subr.bf16.mxu0 %v11123_v4 }
0x1dd3   : > { %6233 = vmatprep.mubr.bf16.mxu0 %v12782_v27  ;;  %6202 = vmatpush1.bf16.msra.mxu0 %v11121_v14 }
0x1dd4   : > { %6203 = vmatprep.subr.bf16.mxu0 %v11126_v58 }
0x1dd5   : > { %v5943_v62 = vpop.f32.mrb[40].mxu1 }
0x1dd6   : > { %v10256_v3 = vpop.f32.mrb[41].mxu1  ;;  %10262 = vmatprep.subr.msk.mxu1 %vm2737_vm3, %v5943_v62 }
0x1dd7   : > { %10263 = vmatpush3.msk.msra.mxu1 %vm2737_vm3, %v5943_v62  ;;  %6204 = vmatpush1.bf16.msra.mxu0 %v11124_v56  ;;  %v11130_v62 = vld [vmem:[#allocation39 + $0x30] ss:$8 sps:$4 sm:$0xff]  }
0x1dd8   : > { %10265 = vmatmul.mubr.msk.f32.vlgmr.msra.gmra.mrb[42].mxu1 %vm2750_vm4, %v14318_v60  ;;  %9861 = vmatprep.subr.bf16.mxu1 %v11105_v61  ;;  %v11132_v61 = vld [vmem:[#allocation39 + $0x34] ss:$8 sps:$4 sm:$0xff]  }
0x1dd9   : > { %9862 = vmatpush3.bf16.msra.mxu1 %v11106_v63  ;;  %6475 = vmatprep.mubr.bf16.mxu1 %v13913_v11  ;;  %v11118_v11 = vld [vmem:[#allocation57 + $0x30] sm:$0xff]  }
0x1dda   : > { %9863 = vmatprep.subr.bf16.mxu1 %v11107_v8  ;;  %6205 = vmatprep.subr.bf16.mxu0 %v11129_v42 }
0x1ddb   : > { %6206 = vmatpush1.bf16.msra.mxu0 %v11127_v23 }
0x1ddc   : > { %6207 = vmatprep.subr.bf16.mxu0 %v11132_v61 }
0x1ddd   : > { %9864 = vmatpush3.bf16.msra.mxu1 %v11108_v9 }
0x1dde   : > { %9865 = vmatprep.subr.bf16.mxu1 %v11109_v35 }
0x1ddf   : > { %6208 = vmatpush1.bf16.msra.mxu0 %v11130_v62 }
0x1de1   : > { %9866 = vmatpush3.bf16.msra.mxu1 %v11110_v18 }
0x1de2   : > { %9867 = vmatprep.subr.bf16.mxu1 %v11111_v0 }
0x1de5   : > { %9868 = vmatpush3.bf16.msra.mxu1 %v11112_v26 }
0x1de6   : > { %9869 = vmatprep.subr.bf16.mxu1 %v11113_v24 }
0x1de9   : > { %9870 = vmatpush3.bf16.msra.mxu1 %v11114_v25 }
0x1dea   : > { %9871 = vmatprep.subr.bf16.mxu1 %v11115_v1 }
0x1ded   : > { %9872 = vmatpush3.bf16.msra.mxu1 %v11116_v16 }
0x1dee   : > { %9873 = vmatprep.subr.bf16.mxu1 %v11117_v22 }
0x1df1   : > { %9874 = vmatpush3.bf16.msra.mxu1 %v11118_v11 }
0x1df2   : > { %9875 = vmatprep.subr.bf16.mxu1 %v11119_v29 }
0x1df5   : > { %9876 = vmatpush3.bf16.msra.mxu1 %v11120_v28 }
0x1df6   : > { %10278 = vmatprep.subr.mxu1 %v12781_v13 }
0x1df8   : > { %6476 = vmatmul.mubr.bf16.vlgmr.msra.gmra.mrb[44].mxu1 %v13911_v10 }
0x1df9   : > { %10280 = vmatprep.mubr.msk.f32.mxu1 %vm12780_vm0, %v12781_v13 }
0x1ea5   : > { %v10261_v31 = vpop.f32.mrb[46].mxu0 }
0x1ea6   : > { %v6026_v37 = vmul.f32 0.00390625, %v10261_v31  ;;  %v6016_v36 = vpop.f32.mrb[47].mxu0 }
0x1ea7   : > { %v6025_v32 = vmul.f32 0.00390625, %v6016_v36 }
0x1ea8   : > { %6124 = vperm.xlu0 %11073, %v6026_v37   ;;  %v6108_v33 = vmul.f32 %v6026_v37, %v6026_v37 }
0x1ea9   : > { %6119 = vperm.xlu1 %11074, %v6025_v32   ;;  %v6107_v57 = vmul.f32 %v6025_v32, %v6025_v32 }
0x1eab   : > { %v10266_v59 = vpop.f32.mrb[42].mxu1 }
0x1eac   : > { %v6106_v5 = vmul.f32 0.00390625, %v10266_v59  ;;  %v6096_v34 = vpop.f32.mrb[43].mxu1  ;;  %6145 = vperm.xlu0 %11073, %v2256_v15  }
0x1ead   : > { %v6105_v7 = vmul.f32 0.00390625, %v6096_v34 }
0x1eae   : > { %v6110_v10 = vsub.f32 %v6106_v5, %v6108_v33 }
0x1eaf   : > { %v6109_v17 = vsub.f32 %v6105_v7, %v6107_v57  ;;  %v6245_v57 = vstv %s9622_s10  ;;  %s12799_s10 = smov [#allocation79]  }
0x1eb0   : > { %v6112_v39 = vmax.f32 %v6110_v10, 0.0 }
0x1eb1   : > { %v6111_v43 = vmax.f32 %v6109_v17, 0.0 }
0x1eb2   : > { %v6114_v41 = vadd.f32 1e-05, %v6112_v39 }
0x1eb3   : > { %v6113_v6 = vadd.f32 1e-05, %v6111_v43 }
0x1eb4   : > { %11163 = vrsqrt.f32 %v6114_v41 }
0x1eb5   : > { %11165 = vrsqrt.f32 %v6113_v6 }
0x1ebe   : > { %v11164_v47 = vpop.eup %11163 }
0x1ebf   : > { %v6130_v20 = vmul.f32 %v11164_v47, %v2255_v46  ;;  %v11166_v2 = vpop.eup %11165 }
0x1ec0   : > { %v6129_v30 = vmul.f32 %v11166_v2, %v2254_v55 }
0x1ec1   : > { %6138 = vperm.xlu1 %11074, %v6130_v20  }
0x1ec5   : > { %6133 = vperm.xlu1 %11074, %v6129_v30  }
0x1ec9   : > { %6150 = vperm.xlu1 %11074, %v2257_v19  }
0x1ecb   : > { %v9877_v63 = vpop.f32.mrb[44].mxu1 }
0x1ecc   : > { %v9878_v3 = vpop.f32.mrb[45].mxu1 }
0x1ecd   : > { %v14332_v8 = vadd.f32 %v9878_v3, %v9877_v63  ;;  %v9880_v9 = vpop.f32.mrb[46].mxu1 }
0x1ece   : > { %v9881_v35 = vpop.f32.mrb[47].mxu1 }
0x1ecf   : > { %v14334_v18 = vadd.f32 %v9881_v35, %v9880_v9 }
0x1ed1   : > { %v6484_v0 = vpack.c.bf16 %v14334_v18, %v14332_v8 }
0x1f27   : > { %v6125_v24 = vpop.permute.xlu0 %6124 }
0x1f28   : > { %v6120_v26 = vpop.permute.xlu1 %6119  ;;  %v6128_v22 = vsub.f32 %v14297_v40, %v6125_v24 }
0x1f29   : > { %v6127_v1 = vsub.f32 %v14291_v45, %v6120_v26 }
0x1f2b   : > { %v6146_v29 = vpop.permute.xlu0 %6145 }
0x1f40   : > { %v6139_v25 = vpop.permute.xlu1 %6138 }
0x1f41   : > { %v6142_v28 = vmul.f32 %v6139_v25, %v6128_v22 }
0x1f44   : > { %v6134_v16 = vpop.permute.xlu1 %6133 }
0x1f45   : > { %v6141_v11 = vmul.f32 %v6134_v16, %v6127_v1 }
0x1f47   : > { %v6153_v31 = vadd.f32 %v6146_v29, %v6141_v11 }
0x1f48   : > { %v6151_v37 = vpop.permute.xlu1 %6150 }
0x1f49   : > { %v6154_v36 = vadd.f32 %v6151_v37, %v6142_v28  ;;  %v6155_v32 = vmax.f32 %v6153_v31, 0.0 }
0x1f4b   : > { %v6156_v15 = vmax.f32 %v6154_v36, 0.0 }
0x1f4d   : > { %v6157_v33 = vpack.c.bf16 %v6156_v15, %v6155_v32 }
0x1f4f   : > { %9621 = vmatmul.mubr.msk.bf16.vlgmr.msra.gmra.mrb[52].mxu0 %vm4739_vm8, %v6157_v33 }
0x1f50   : > { %6332 = vmatprep.mubr.bf16.mxu0 %v12782_v27 }
0x2022   : > { %v6235_v59 = vpop.f32.mrb[52].mxu0 }
0x2023   : > { %v6246_v45 = vmul.f32 %v6245_v57, %v6235_v59  ;;  %v6237_v14 = vpop.f32.mrb[53].mxu0  ;;  %v2294_v59 = vld [vmem:[#allocation60] sm:$0x3] }
0x2024   : > { %v6247_v4 = vmul.f32 %v6245_v57, %v6237_v14  ;;  %v6239_v40 = vpop.f32.mrb[54].mxu0 }
0x2025   : > { %v6248_v5 = vmul.f32 %v6245_v57, %v6239_v40  ;;  %v6241_v34 = vpop.f32.mrb[55].mxu0  ;;  %v6250_v10 = vmul.f32 %v6246_v45, %v6246_v45 }
0x2026   : > { %v6249_v7 = vmul.f32 %v6245_v57, %v6241_v34  ;;  %v6251_v39 = vmul.f32 %v6247_v4, %v6247_v4  ;;  %v11133_v57 = vld [vmem:[#allocation55] sm:$0xff]  }
0x2027   : > { %v6252_v17 = vmul.f32 %v6248_v5, %v6248_v5 }
0x2028   : > { %v6253_v43 = vmul.f32 %v6249_v7, %v6249_v7 }
0x2029   : > { %v6254_v41 = vadd.f32 %v6252_v17, %v6250_v10 }
0x202a   : > { %v6261_v6 = vadd.f32 %v6253_v43, %v6251_v39  ;;  %v14375_v43 = vld [vmem:[#allocation13] sm:$0xf] }
0x202b   : > { %v6255_v46 = vrot.slane %v6254_v41, 4 }
0x202c   : > { %v6262_v47 = vrot.slane %v6261_v6, 4 }
0x202d   : > { %v6256_v20 = vadd.f32 %v6255_v46, %v6254_v41 }
0x202e   : > { %v6263_v2 = vadd.f32 %v6262_v47, %v6261_v6 }
0x202f   : > { %v6257_v55 = vrot.slane %v6256_v20, 2 }
0x2030   : > { %v6264_v56 = vrot.slane %v6263_v2, 2 }
0x2031   : > { %v6258_v58 = vadd.f32 %v6257_v55, %v6256_v20 }
0x2032   : > { %v6265_v30 = vadd.f32 %v6264_v56, %v6263_v2 }
0x2033   : > { %v6259_v42 = vrot.slane %v6258_v58, 1 }
0x2034   : > { %v6266_v19 = vrot.slane %v6265_v30, 1 }
0x2035   : > { %v6260_v23 = vadd.f32 %v6259_v42, %v6258_v58  ;;  %v2296_v58 = vld [vmem:[#allocation63] sm:$0xf] }
0x2036   : > { %v6267_v61 = vadd.f32 %v6266_v19, %v6265_v30  ;;  %v2297_v19 = vld [vmem:[#allocation64] sm:$0xf] }
0x2037   : > { %11167 = vrsqrt.f32 %v6260_v23  ;;  %vm6270_vm9 = vcmp.eq.f32.partialorder %v6260_v23, inf  ;;  %v6273_v9 = vand.u32 2147483648, %v6260_v23  ;;  %vm6272_vm10 = vcmp.eq.f32.partialorder %v6260_v23, 0.0 }
0x2038   : > { %11169 = vrsqrt.f32 %v6267_v61  ;;  %vm6277_vm11 = vcmp.eq.f32.partialorder %v6267_v61, inf  ;;  %v6280_v24 = vand.u32 2147483648, %v6267_v61  ;;  %vm6279_vm12 = vcmp.eq.f32.partialorder %v6267_v61, 0.0 }
0x2041   : > { %v11168_v62 = vpop.eup %11167 }
0x2042   : > { %v11170_v63 = vpop.eup %11169  ;;  %v6269_v3 = vmul.f32 %v11168_v62, %v6260_v23 }
0x2043   : > { %v6276_v35 = vmul.f32 %v11170_v63, %v6267_v61 }
0x2044   : > { %v6271_v26 = vsel %vm6270_vm9, %v6260_v23, %v6269_v3  ;;  %v6861_v3 = vld [vmem:[#allocation66] sm:$0xff] }
0x2045   : > { %v6274_v25 = vsel %vm6272_vm10, %v6273_v9, %v6271_v26  ;;  %v6278_v1 = vsel %vm6277_vm11, %v6267_v61, %v6276_v35  ;;  %v2295_v61 = vld [vmem:[#allocation61] sm:$0xf]  ;;  %v6862_v9 = vld [vmem:[#allocation66 + $0x8] sm:$0xff] }
0x2046   : > { %v6282_v16 = vadd.f32 1e-06, %v6274_v25  ;;  %v6281_v22 = vsel %vm6279_vm12, %v6280_v24, %v6278_v1  ;;  %v6943_v35 = vld [vmem:[#allocation66 + $0x10] sm:$0xff]  ;;  %v10538_v26 = vpack.c.bf16 %v6862_v9, %v6861_v3  ;;  %v6944_v24 = vld [vmem:[#allocation66 + $0x18] sm:$0xff] }
0x2047   : > { %v6283_v11 = vadd.f32 1e-06, %v6281_v22  ;;  %v10541_v25 = vpack.c.bf16 %v6944_v24, %v6943_v35  ;;  %v7102_v22 = vld [vmem:[#allocation66 + $0x38] sm:$0xff] }
0x2048   : > { %11171 = vrcp.f32 %v6282_v16  ;;  %v7023_v16 = vld [vmem:[#allocation66 + $0x28] sm:$0xff] }
0x2049   : > { %11173 = vrcp.f32 %v6283_v11 }
0x2052   : > { %v11172_v29 = vpop.eup %11171 }
0x2053   : > { %v11174_v28 = vpop.eup %11173  ;;  %v6286_v31 = vmul.f32 %v11172_v29, %v6246_v45  ;;  %v6288_v37 = vmul.f32 %v11172_v29, %v6248_v5 }
0x2054   : > { %v6289_v36 = vmul.f32 %v11174_v28, %v6249_v7  ;;  %v6287_v32 = vmul.f32 %v11174_v28, %v6247_v4  ;;  %v14361_v7 = vld [vmem:[#allocation15] sm:$0xf] }
0x2055   : > { %v6290_v15 = vpack.c.bf16 %v6288_v37, %v6286_v31  ;;  %v7181_v37 = vld [vmem:[#allocation66 + $0x58] sm:$0xff] }
0x2056   : > { %v6291_v33 = vpack.c.bf16 %v6289_v36, %v6287_v32  ;;  %v7260_v36 = vld [vmem:[#allocation66 + $0x68] sm:$0xff] }
0x2058   : > { %6300 = vmatprep.subr.bf16.mxu0 %v6291_v33  ;;  %v7338_v33 = vld [vmem:[#allocation66 + $0x70] sm:$0xff] }
0x2059   : > { %6301 = vmatpush1.bf16.msra.mxu0 %v6290_v15 }
0x205a   : > { %10267 = vmatprep.subr.bf16.mxu0 %v12781_v13 }
0x205c   : > { %9624 = vmatmul.mubr.msk.bf16.vlgmr.msra.gmra.mrb[20].mxu0 %vm2332_vm1, %v11133_v57  ;;  %v7339_v57 = vld [vmem:[#allocation66 + $0x78] sm:$0xff] }
0x205d   : > { %10268 = vmatpush3.bf16.msra.mxu0 %v6484_v0  ;;  %10269 = vmatprep.mubr.msk.bf16.mxu0 %vm12780_vm0, %v12781_v13 }
0x205e   : > { %10273 = vmatprep.subr.mxu0 %v12781_v13 }
0x2064   : > { %10270 = vmatmul.mubr.msk.bf16.vlgmr.msra.gmra.mrb[56].mxu0 %vm2332_vm1, %v2294_v59  ;;  %v7417_v59 = vld [vmem:[#allocation66 + $0x80] sm:$0xff] }
0x2065   : > { %10275 = vmatprep.mubr.msk.f32.mxu0 %vm12780_vm0, %v12781_v13 }
0x2137   : > { %v14353_v45 = vpop.f32.mrb[56].mxu0 }
0x2138   : > { %v6532_v14 = vmul.f32 %v14353_v45, %v14353_v45  ;;  %v10271_v4 = vpop.f32.mrb[57].mxu0  ;;  %v6529_v8 = vsel %vm6528_vm14, %v14353_v45, 0.0 }
0x2139   : > { %6530 = vadd.xlane.f32.xlu0 %v6529_v8  ;;  %v6525_v18 = vpop.f32.mrb[58].mxu0 }
0x213a   : > { %v10272_v0 = vpop.f32.mrb[59].mxu0  ;;  %v6533_v40 = vsel %vm6528_vm14, %v6532_v14, 0.0  ;;  %v10556_v14 = vpack.c.bf16 %v7339_v57, %v7338_v33 }
0x213b   : > { %6534 = vadd.xlane.f32.xlu1 %v6533_v40 }
0x21c6   : > { %v6531_v5 = vpop.xlane.xlu0 %6530 }
0x21c7   : > { %10274 = vmatpush3.msk.msra.mxu0 %vm2737_vm3, %v6531_v5 }
0x21c8   : > { %v6535_v34 = vpop.xlane.xlu1 %6534  ;;  %10276 = vmatmul.mubr.msk.f32.vlgmr.msra.gmra.mrb[60].mxu0 %vm2750_vm4, %v14361_v7  ;;  %10283 = vmatprep.subr.mxu0 %v12781_v13 }
0x21c9   : > { %10279 = vmatpush3.msk.msra.mxu1 %vm2737_vm3, %v6535_v34  ;;  %10285 = vmatprep.mubr.msk.f32.mxu0 %vm12780_vm0, %v12781_v13 }
0x21ca   : > { %10281 = vmatmul.mubr.msk.f32.vlgmr.msra.gmra.mrb[48].mxu1 %vm2750_vm4, %v14361_v7  ;;  %10288 = vmatprep.subr.mxu1 %v12781_v13 }
0x21cb   : > { %10290 = vmatprep.mubr.msk.f32.mxu1 %vm12780_vm0, %v12781_v13 }
0x229b   : > { %v6605_v10 = vpop.f32.mrb[60].mxu0 }
0x229c   : > { %10284 = vmatpush3.msk.msra.mxu0 %vm2737_vm3, %v6605_v10  ;;  %v10277_v17 = vpop.f32.mrb[61].mxu0 }
0x229d   : > { %v6678_v39 = vpop.f32.mrb[48].mxu1  ;;  %10286 = vmatmul.mubr.msk.f32.vlgmr.msra.gmra.mrb[62].mxu0 %vm2750_vm4, %v14375_v43  ;;  %10537 = vmatprep.subr.bf16.mxu0 %v12779_v12 }
0x229e   : > { %10289 = vmatpush3.msk.msra.mxu1 %vm2737_vm3, %v6678_v39  ;;  %v10282_v41 = vpop.f32.mrb[49].mxu1  ;;  %10297 = vmatprep.mubr.msk.f32.mxu0 %vm12780_vm0, %v12781_v13 }
0x229f   : > { %10291 = vmatmul.mubr.msk.f32.vlgmr.msra.gmra.mrb[50].mxu1 %vm2750_vm4, %v14375_v43  ;;  %10540 = vmatprep.subr.bf16.mxu1 %v12779_v12 }
0x22a0   : > { %10304 = vmatprep.mubr.msk.f32.mxu1 %vm12780_vm0, %v12781_v13  ;;  %10539 = vmatpush3.bf16.msra.mxu0 %v10538_v26 }
0x22a1   : > { %10542 = vmatpush3.bf16.msra.mxu1 %v10541_v25  ;;  %10543 = vmatprep.subr.bf16.mxu0 %v12779_v12 }
0x22a2   : > { %10546 = vmatprep.subr.bf16.mxu1 %v12779_v12 }
0x2370   : > { %v6751_v6 = vpop.f32.mrb[62].mxu0 }
0x2371   : > { %v6755_v46 = vmul.f32 0.0625, %v6751_v6  ;;  %v10287_v47 = vpop.f32.mrb[63].mxu0 }
0x2372   : > { %v6825_v20 = vpop.f32.mrb[50].mxu1 }
0x2373   : > { %v6830_v2 = vmul.f32 %v6755_v46, %v6755_v46  ;;  %v6829_v55 = vmul.f32 0.0625, %v6825_v20  ;;  %6837 = vperm.xlu0 %11073, %v6755_v46   ;;  %v10292_v56 = vpop.f32.mrb[51].mxu1 }
0x2375   : > { %v6831_v30 = vsub.f32 %v6829_v55, %v6830_v2 }
0x2377   : > { %v6832_v42 = vmax.f32 %v6831_v30, 0.0  ;;  %6850 = vperm.xlu0 %11073, %v2296_v58  }
0x2379   : > { %v6833_v23 = vadd.f32 1e-05, %v6832_v42 }
0x237b   : > { %11175 = vrsqrt.f32 %v6833_v23  ;;  %6937 = vperm.xlu0 %11073, %v2297_v19  }
0x237f   : > { %11077 = vset.pattern.permute.xlu0 %v12785_v49 }
0x2380   : > { %7095 = vperm.xlu0 %11077, %v2297_v19  }
0x2384   : > { %11080 = vset.pattern.permute.xlu0 %v12788_v52 }
0x2385   : > { %v11176_v62 = vpop.eup %11175  ;;  %7332 = vperm.xlu0 %11080, %v2297_v19  }
0x2386   : > { %v6841_v63 = vmul.f32 %v11176_v62, %v2295_v61 }
0x2388   : > { %6844 = vperm.xlu1 %11074, %v6841_v63  }
0x2389   : > { %11083 = vset.pattern.permute.xlu0 %v12782_v27 }
0x238c   : > { %11075 = vset.pattern.permute.xlu1 %v12783_v44 }
0x238d   : > { %6857 = vperm.xlu1 %11075, %v2297_v19  }
0x2391   : > { %11076 = vset.pattern.permute.xlu1 %v12784_v48  ;;  %v7022_v48 = vld [vmem:[#allocation66 + $0x20] sm:$0xff] }
0x2392   : > { %7016 = vperm.xlu1 %11076, %v2297_v19   ;;  %v10544_v29 = vpack.c.bf16 %v7023_v16, %v7022_v48 }
0x2396   : > { %11078 = vset.pattern.permute.xlu1 %v12786_v50  ;;  %v7101_v50 = vld [vmem:[#allocation66 + $0x30] sm:$0xff] }
0x2397   : > { %7174 = vperm.xlu1 %11078, %v2297_v19   ;;  %v10547_v28 = vpack.c.bf16 %v7102_v22, %v7101_v50 }
0x239b   : > { %11079 = vset.pattern.permute.xlu1 %v12787_v51 }
0x239c   : > { %7253 = vperm.xlu1 %11079, %v2297_v19  }
0x23a0   : > { %11081 = vset.pattern.permute.xlu1 %v12789_v53  ;;  %v7180_v53 = vld [vmem:[#allocation66 + $0x50] sm:$0xff] }
0x23a1   : > { %7411 = vperm.xlu1 %11081, %v2297_v19   ;;  %v10550_v32 = vpack.c.bf16 %v7181_v37, %v7180_v53 }
0x23a5   : > { %11082 = vset.pattern.permute.xlu1 %v12790_v54  ;;  %v7259_v54 = vld [vmem:[#allocation66 + $0x60] sm:$0xff] }
0x23a6   : > { %7490 = vperm.xlu1 %11082, %v2297_v19   ;;  %v10553_v15 = vpack.c.bf16 %v7260_v36, %v7259_v54 }
0x23aa   : > { %11084 = vset.pattern.permute.xlu1 %v12782_v27 }
0x23f2   : > { %v6838_v44 = vpop.permute.xlu0 %6837 }
0x23f3   : > { %v6840_v49 = vsub.f32 %v14353_v45, %v6838_v44  ;;  %v7418_v45 = vld [vmem:[#allocation66 + $0x88] sm:$0xff] }
0x23f4   : > { %v10559_v4 = vpack.c.bf16 %v7418_v45, %v7417_v59 }
0x23f6   : > { %v6851_v11 = vpop.permute.xlu0 %6850 }
0x23fa   : > { %v6938_v40 = vpop.permute.xlu0 %6937 }
0x23ff   : > { %v7096_v34 = vpop.permute.xlu0 %7095 }
0x2404   : > { %v7333_v62 = vpop.permute.xlu0 %7332 }
0x2407   : > { %v6845_v52 = vpop.permute.xlu1 %6844 }
0x2408   : > { %v6847_v1 = vmul.f32 %v6845_v52, %v6840_v49 }
0x240a   : > { %v6853_v51 = vadd.f32 %v6851_v11, %v6847_v1 }
0x240c   : > { %v6854_v31 = vmax.f32 %v6853_v51, 0.0  ;;  %v6858_v8 = vpop.permute.xlu1 %6857 }
0x240e   : > { %10298 = vmatmul.mubr.msk.f32.vlgmr.msra.gmra.mrb[64].mxu0 %vm2332_vm1, %v6854_v31  ;;  %10305 = vmatmul.mubr.msk.f32.vlgmr.msra.gmra.mrb[52].mxu1 %vm2332_vm1, %v6854_v31  ;;  %v6860_v39 = vmul.f32 %v6858_v8, %v6854_v31 }
0x240f   : > { %10545 = vmatpush3.bf16.msra.mxu0 %v10544_v29  ;;  %10548 = vmatpush3.bf16.msra.mxu1 %v10547_v28 }
0x2410   : > { %10311 = vmatprep.mubr.msk.f32.mxu0 %vm12780_vm0, %v12781_v13  ;;  %10318 = vmatprep.mubr.msk.f32.mxu1 %vm12780_vm0, %v12781_v13 }
0x2411   : > { %10549 = vmatprep.subr.bf16.mxu0 %v12779_v12  ;;  %10552 = vmatprep.subr.bf16.mxu1 %v12779_v12  ;;  %v7017_v18 = vpop.permute.xlu1 %7016 }
0x2412   : > { %10312 = vmatmul.mubr.msk.f32.vlgmr.msra.gmra.mrb[66].mxu0 %vm2332_vm1, %v6854_v31  ;;  %10319 = vmatmul.mubr.msk.f32.vlgmr.msra.gmra.mrb[54].mxu1 %vm2332_vm1, %v6854_v31 }
0x2413   : > { %10551 = vmatpush3.bf16.msra.mxu0 %v10550_v32  ;;  %10554 = vmatpush3.bf16.msra.mxu1 %v10553_v15 }
0x2414   : > { %10325 = vmatprep.mubr.msk.f32.mxu0 %vm12780_vm0, %v12781_v13  ;;  %10332 = vmatprep.mubr.msk.f32.mxu1 %vm12780_vm0, %v12781_v13 }
0x2415   : > { %10555 = vmatprep.subr.bf16.mxu0 %v12779_v12  ;;  %10558 = vmatprep.subr.bf16.mxu1 %v12779_v12 }
0x2416   : > { %10326 = vmatmul.mubr.msk.f32.vlgmr.msra.gmra.mrb[68].mxu0 %vm2332_vm1, %v6854_v31  ;;  %10333 = vmatmul.mubr.msk.f32.vlgmr.msra.gmra.mrb[56].mxu1 %vm2332_vm1, %v6854_v31  ;;  %v7175_v0 = vpop.permute.xlu1 %7174 }
0x2417   : > { %10557 = vmatpush3.bf16.msra.mxu0 %v10556_v14  ;;  %10560 = vmatpush3.bf16.msra.mxu1 %v10559_v4 }
0x2418   : > { %10339 = vmatprep.mubr.msk.f32.mxu0 %vm12780_vm0, %v12781_v13  ;;  %10346 = vmatprep.mubr.msk.f32.mxu1 %vm12780_vm0, %v12781_v13 }
0x2419   : > { %10349 = vmatprep.subr.mxu0 %v12781_v13  ;;  %10354 = vmatprep.subr.mxu1 %v12781_v13 }
0x241a   : > { %10340 = vmatmul.mubr.msk.f32.vlgmr.msra.gmra.mrb[70].mxu0 %vm2332_vm1, %v6854_v31  ;;  %10347 = vmatmul.mubr.msk.f32.vlgmr.msra.gmra.mrb[58].mxu1 %vm2332_vm1, %v6854_v31 }
0x241b   : > { %10351 = vmatprep.mubr.msk.f32.mxu0 %vm12780_vm0, %v12781_v13  ;;  %10356 = vmatprep.mubr.msk.f32.mxu1 %vm12780_vm0, %v12781_v13  ;;  %v7254_v5 = vpop.permute.xlu1 %7253 }
0x2420   : > { %v7412_v2 = vpop.permute.xlu1 %7411 }
0x2425   : > { %v7491_v49 = vpop.permute.xlu1 %7490 }
0x24e1   : > { %v7011_v10 = vpop.f32.mrb[52].mxu1  ;;  %v6932_v17 = vpop.f32.mrb[64].mxu0 }
0x24e2   : > { %v6940_v41 = vmul.f32 %v6938_v40, %v6932_v17  ;;  %v10299_v6 = vpop.f32.mrb[65].mxu0  ;;  %v10306_v46 = vpop.f32.mrb[53].mxu1  ;;  %v7019_v47 = vmul.f32 %v7017_v18, %v7011_v10  ;;  %v2299_v10 = vld [vmem:[#allocation69] sm:$0xf] }
0x24e4   : > { %v6941_v20 = vadd.f32 %v6940_v41, %v6860_v39 }
0x24e5   : > { %v7169_v55 = vpop.f32.mrb[54].mxu1  ;;  %v7090_v56 = vpop.f32.mrb[66].mxu0 }
0x24e6   : > { %v7020_v58 = vadd.f32 %v7019_v47, %v6941_v20  ;;  %v7098_v30 = vmul.f32 %v7096_v34, %v7090_v56  ;;  %v10313_v42 = vpop.f32.mrb[67].mxu0  ;;  %v10320_v19 = vpop.f32.mrb[55].mxu1  ;;  %v7177_v23 = vmul.f32 %v7175_v0, %v7169_v55  ;;  %v11134_v56 = vld [vmem:[#allocation70] sm:$0xff]  }
0x24e8   : > { %v7099_v61 = vadd.f32 %v7098_v30, %v7020_v58 }
0x24e9   : > { %v7327_v63 = vpop.f32.mrb[56].mxu1  ;;  %v7248_v3 = vpop.f32.mrb[68].mxu0 }
0x24ea   : > { %v7178_v9 = vadd.f32 %v7177_v23, %v7099_v61  ;;  %v7256_v35 = vmul.f32 %v7254_v5, %v7248_v3  ;;  %v10327_v26 = vpop.f32.mrb[69].mxu0  ;;  %v10334_v24 = vpop.f32.mrb[57].mxu1  ;;  %v7335_v25 = vmul.f32 %v7333_v62, %v7327_v63  ;;  %v2298_v5 = vld [vmem:[#allocation67] sm:$0xf] }
0x24ec   : > { %v7257_v44 = vadd.f32 %v7256_v35, %v7178_v9 }
0x24ed   : > { %v7485_v52 = vpop.f32.mrb[58].mxu1  ;;  %v7406_v48 = vpop.f32.mrb[70].mxu0 }
0x24ee   : > { %v7336_v1 = vadd.f32 %v7335_v25, %v7257_v44  ;;  %v7414_v16 = vmul.f32 %v7412_v2, %v7406_v48  ;;  %v10341_v50 = vpop.f32.mrb[71].mxu0  ;;  %v10348_v22 = vpop.f32.mrb[59].mxu1  ;;  %v7493_v11 = vmul.f32 %v7491_v49, %v7485_v52 }
0x24f0   : > { %v7415_v51 = vadd.f32 %v7414_v16, %v7336_v1 }
0x24f2   : > { %v7494_v29 = vadd.f32 %v7493_v11, %v7415_v51  ;;  %v2305_v11 = vld [vmem:[#allocation73 + $0x8] sm:$0xff] }
0x24f4   : > { %v7495_v28 = vsel %vm6528_vm14, %v7494_v29, 0.0  ;;  %v7498_v53 = vmul.f32 %v7494_v29, %v7494_v29 }
0x24f5   : > { %7496 = vadd.xlane.f32.xlu0 %v7495_v28 }
0x24f6   : > { %v7499_v31 = vsel %vm6528_vm14, %v7498_v53, 0.0 }
0x24f7   : > { %7500 = vadd.xlane.f32.xlu1 %v7499_v31 }
0x2582   : > { %v7497_v37 = vpop.xlane.xlu0 %7496 }
0x2583   : > { %10350 = vmatpush3.msk.msra.mxu0 %vm2737_vm3, %v7497_v37 }
0x2584   : > { %v7501_v54 = vpop.xlane.xlu1 %7500  ;;  %10352 = vmatmul.mubr.msk.f32.vlgmr.msra.gmra.mrb[72].mxu0 %vm2750_vm4, %v14361_v7  ;;  %10359 = vmatprep.subr.mxu0 %v12781_v13 }
0x2585   : > { %10355 = vmatpush3.msk.msra.mxu1 %vm2737_vm3, %v7501_v54  ;;  %10361 = vmatprep.mubr.msk.f32.mxu0 %vm12780_vm0, %v12781_v13 }
0x2586   : > { %10357 = vmatmul.mubr.msk.f32.vlgmr.msra.gmra.mrb[60].mxu1 %vm2750_vm4, %v14361_v7  ;;  %10364 = vmatprep.subr.mxu1 %v12781_v13 }
0x2587   : > { %10366 = vmatprep.mubr.msk.f32.mxu1 %vm12780_vm0, %v12781_v13 }
0x2657   : > { %v7571_v36 = vpop.f32.mrb[72].mxu0 }
0x2658   : > { %10360 = vmatpush3.msk.msra.mxu0 %vm2737_vm3, %v7571_v36  ;;  %v10353_v32 = vpop.f32.mrb[73].mxu0 }
0x2659   : > { %v7644_v15 = vpop.f32.mrb[60].mxu1  ;;  %10362 = vmatmul.mubr.msk.f32.vlgmr.msra.gmra.mrb[74].mxu0 %vm2750_vm4, %v14375_v43  ;;  %10369 = vmatprep.subr.bf16.mxu0 %v12781_v13 }
0x265a   : > { %10365 = vmatpush3.msk.msra.mxu1 %vm2737_vm3, %v7644_v15  ;;  %v10358_v33 = vpop.f32.mrb[61].mxu1  ;;  %10371 = vmatprep.mubr.msk.bf16.mxu0 %vm12780_vm0, %v12781_v13 }
0x265b   : > { %10367 = vmatmul.mubr.msk.f32.vlgmr.msra.gmra.mrb[62].mxu1 %vm2750_vm4, %v14375_v43  ;;  %10561 = vmatprep.subr.bf16.mxu1 %v12779_v12 }
0x265c   : > { %10379 = vmatprep.mubr.msk.f32.mxu1 %vm12780_vm0, %v12781_v13 }
0x272c   : > { %v7717_v7 = vpop.f32.mrb[74].mxu0 }
0x272d   : > { %v7721_v57 = vmul.f32 0.0625, %v7717_v7  ;;  %v10363_v59 = vpop.f32.mrb[75].mxu0  ;;  %v2303_v7 = vld [vmem:[#allocation72 + $0x8] sm:$0xff] }
0x272e   : > { %v7791_v45 = vpop.f32.mrb[62].mxu1 }
0x272f   : > { %v7796_v14 = vmul.f32 %v7721_v57, %v7721_v57  ;;  %v7795_v4 = vmul.f32 0.0625, %v7791_v45  ;;  %7803 = vperm.xlu0 %11083, %v7721_v57   ;;  %v10368_v8 = vpop.f32.mrb[63].mxu1 }
0x2730   : > { %v2304_v8 = vld [vmem:[#allocation73] sm:$0xff] }
0x2731   : > { %v7797_v18 = vsub.f32 %v7795_v4, %v7796_v14  ;;  %v2302_v14 = vld [vmem:[#allocation72] sm:$0xff] }
0x2733   : > { %v7798_v0 = vmax.f32 %v7797_v18, 0.0  ;;  %v11137_v18 = vld [vmem:[#allocation58 + $0x4] ss:$8 sps:$4 sm:$0xff]  }
0x2735   : > { %v7799_v40 = vadd.f32 1e-05, %v7798_v0  ;;  %v11135_v0 = vld [vmem:[#allocation58] ss:$8 sps:$4 sm:$0xff]  }
0x2737   : > { %11177 = vrsqrt.f32 %v7799_v40 }
0x2741   : > { %v11178_v34 = vpop.eup %11177 }
0x2742   : > { %v7807_v43 = vmul.f32 %v11178_v34, %v2298_v5 }
0x2744   : > { %7810 = vperm.xlu1 %11084, %v7807_v43  }
0x2748   : > { %7816 = vperm.xlu1 %11084, %v2299_v10  }
0x27ae   : > { %v7804_v17 = vpop.permute.xlu0 %7803 }
0x27af   : > { %v7806_v41 = vsub.f32 %v7494_v29, %v7804_v17 }
0x27c3   : > { %v7811_v39 = vpop.permute.xlu1 %7810 }
0x27c4   : > { %v7813_v6 = vmul.f32 %v7811_v39, %v7806_v41 }
0x27c7   : > { %v7817_v46 = vpop.permute.xlu1 %7816 }
0x27c8   : > { %v7819_v47 = vadd.f32 %v7817_v46, %v7813_v6 }
0x27ca   : > { %v7820_v20 = vmax.f32 %v7819_v47, 0.0 }
0x27cc   : > { %v7821_v2 = vpack.c.bf16 %v7820_v20, %v7820_v20 }
0x27ce   : > { %v7831_v55 = vsel %vm3634_vm13, %v7821_v2, 0 }
0x27cf   : > { %10370 = vmatpush3.bf16.msra.mxu0 %v7831_v55 }
0x27d2   : > { %10372 = vmatmul.mubr.msk.bf16.vlgmr.msra.gmra.mrb[76].mxu0 %vm2750_vm4, %v11134_v56 }
0x27d3   : > { %10391 = vmatprep.mubr.msk.f32.mxu0 %vm2750_vm4, %v14287_v21 }
0x28a5   : > { %v14461_v58 = vpop.f32.mrb[76].mxu0 }
0x28a6   : > { %v7880_v30 = vmul.f32 %v14461_v58, %v14461_v58  ;;  %v10373_v42 = vpop.f32.mrb[77].mxu0  ;;  %v7874_v19 = vsel %vm2332_vm1, %v14461_v58, 0.0 }
0x28a7   : > { %7875 = vadd.xlane.f32.xlu1 %v7874_v19  ;;  %v14467_v23 = vpop.f32.mrb[78].mxu0 }
0x28a8   : > { %v10374_v61 = vpop.f32.mrb[79].mxu0  ;;  %v7877_v62 = vsel %vm2332_vm1, %v14467_v23, 0.0  ;;  %v7881_v63 = vmul.f32 %v14467_v23, %v14467_v23  ;;  %v7882_v3 = vsel %vm2332_vm1, %v7880_v30, 0.0  ;;  %v8296_v30 = vstv %s9679_s1  ;;  %s12507_s1 = sshll.u32 %s12799_s10, 4  ;;  %s12508_s1 = int_to_ptr.vmem [resolvable:$false] %s12507_s1 }
0x28a9   : > { %7878 = vadd.xlane.f32.xlu0 %v7877_v62  ;;  %s12509_s11 = scalar_lea.vmem %s12508_s1, 1024  ;;  %p12510_p8 = scmp.lt.s32.totalorder %s14537_s6, %s12508_s1 }
0x28aa   : > { %v7885_v9 = vsel %vm2332_vm1, %v7881_v63, 0.0  ;;  %p12511_p1 = scmp.lt.s32.totalorder %s12509_s11, %s12503_s22 }
0x28ab   : > { %7883 = vadd.xlane.f32.xlu1 %v7882_v3 }
0x28ac   : > { %p12512_p10 = por %p12511_p1, %p12510_p8 }
0x28ae   : > { %p12513_p4 = pnand %p12512_p10, %p12506_p5 }
0x28af   : > { %7886 = vadd.xlane.f32.xlu1 %v7885_v9 }
0x2934   : > { %v7876_v35 = vpop.xlane.xlu1 %7875 }
0x2936   : > { %v7879_v26 = vpop.xlane.xlu0 %7878 }
0x2937   : > { %v10562_v24 = vpack.c.bf16 %v7879_v26, %v7876_v35 }
0x2938   : > { %v7884_v25 = vpop.xlane.xlu1 %7883 }
0x2939   : > { %10563 = vmatpush3.bf16.msra.mxu1 %v10562_v24 }
0x293a   : > { %10564 = vmatprep.subr.bf16.mxu1 %v12779_v12 }
0x293c   : > { %v7887_v44 = vpop.xlane.xlu1 %7886  ;;  %10380 = vmatmul.mubr.msk.f32.vlgmr.msra.gmra.mrb[64].mxu1 %vm2332_vm1, %v14306_v38 }
0x293d   : > { %v10565_v49 = vpack.c.bf16 %v7887_v44, %v7884_v25  ;;  %10386 = vmatprep.mubr.msk.f32.mxu1 %vm12780_vm0, %v12781_v13 }
0x293f   : > { %10566 = vmatpush3.bf16.msra.mxu1 %v10565_v49 }
0x2942   : > { %10387 = vmatmul.mubr.msk.f32.vlgmr.msra.gmra.mrb[66].mxu1 %vm2332_vm1, %v14306_v38 }
0x2943   : > { %10396 = vmatprep.mubr.msk.f32.mxu1 %vm2750_vm4, %v14287_v21 }
0x2a0f   : > { %v7954_v52 = vpop.f32.mrb[64].mxu1 }
0x2a10   : > { %10389 = vmatprep.subr.msk.mxu0 %vm2737_vm3, %v7954_v52  ;;  %v10381_v48 = vpop.f32.mrb[65].mxu1 }
0x2a11   : > { %10390 = vmatpush3.msk.msra.mxu0 %vm2737_vm3, %v7954_v52 }
0x2a12   : > { %10392 = vmatmul.mubr.msk.f32.vlgmr.msra.gmra.mrb[80].mxu0 %vm2750_vm4, %v14318_v60  ;;  %8252 = vmatprep.subr.bf16.mxu0 %v11137_v18 }
0x2a13   : > { %8284 = vmatprep.mubr.bf16.mxu0 %v12782_v27  ;;  %8253 = vmatpush1.bf16.msra.mxu0 %v11135_v0 }
0x2a15   : > { %v8024_v1 = vpop.f32.mrb[66].mxu1 }
0x2a16   : > { %10394 = vmatprep.subr.msk.mxu1 %vm2737_vm3, %v8024_v1  ;;  %v10388_v16 = vpop.f32.mrb[67].mxu1 }
0x2a17   : > { %10395 = vmatpush3.msk.msra.mxu1 %vm2737_vm3, %v8024_v1 }
0x2a18   : > { %10397 = vmatmul.mubr.msk.f32.vlgmr.msra.gmra.mrb[68].mxu1 %vm2750_vm4, %v14318_v60  ;;  %10567 = vmatprep.subr.bf16.mxu1 %v12779_v12 }
0x2a19   : > { %10403 = vmatprep.mubr.msk.f32.mxu1 %vm12780_vm0, %v12781_v13 }
0x2ae5   : > { %v10393_v21 = vpop.f32.mrb[80].mxu0 }
0x2ae6   : > { %v8107_v38 = vmul.f32 0.015625, %v10393_v21  ;;  %v8097_v50 = vpop.f32.mrb[81].mxu0 }
0x2ae7   : > { %v8106_v22 = vmul.f32 0.015625, %v8097_v50 }
0x2ae8   : > { %8205 = vperm.xlu0 %11083, %v8107_v38   ;;  %v8189_v51 = vmul.f32 %v8107_v38, %v8107_v38 }
0x2ae9   : > { %8200 = vperm.xlu1 %11084, %v8106_v22   ;;  %v8188_v29 = vmul.f32 %v8106_v22, %v8106_v22 }
0x2aeb   : > { %v10398_v28 = vpop.f32.mrb[68].mxu1 }
0x2aec   : > { %v8187_v53 = vmul.f32 0.015625, %v10398_v28  ;;  %8231 = vperm.xlu0 %11083, %v2305_v11   ;;  %v8177_v31 = vpop.f32.mrb[69].mxu1 }
0x2aed   : > { %v8186_v37 = vmul.f32 0.015625, %v8177_v31 }
0x2aee   : > { %v8191_v60 = vsub.f32 %v8187_v53, %v8189_v51 }
0x2aef   : > { %v8190_v54 = vsub.f32 %v8186_v37, %v8188_v29 }
0x2af0   : > { %v8193_v36 = vmax.f32 %v8191_v60, 0.0 }
0x2af1   : > { %v8192_v32 = vmax.f32 %v8190_v54, 0.0 }
0x2af2   : > { %v8195_v15 = vadd.f32 1e-05, %v8193_v36 }
0x2af3   : > { %v8194_v33 = vadd.f32 1e-05, %v8192_v32 }
0x2af4   : > { %11179 = vrsqrt.f32 %v8195_v15 }
0x2af5   : > { %11181 = vrsqrt.f32 %v8194_v33 }
0x2afe   : > { %v11180_v57 = vpop.eup %11179 }
0x2aff   : > { %v8211_v59 = vmul.f32 %v11180_v57, %v2303_v7  ;;  %v11182_v45 = vpop.eup %11181 }
0x2b00   : > { %v8210_v4 = vmul.f32 %v11182_v45, %v2302_v14 }
0x2b01   : > { %8219 = vperm.xlu1 %11084, %v8211_v59  }
0x2b05   : > { %8214 = vperm.xlu1 %11084, %v8210_v4  }
0x2b09   : > { %8226 = vperm.xlu1 %11084, %v2304_v8  }
0x2b67   : > { %v8206_v5 = vpop.permute.xlu0 %8205 }
0x2b68   : > { %v8201_v40 = vpop.permute.xlu1 %8200  ;;  %v8209_v43 = vsub.f32 %v14467_v23, %v8206_v5 }
0x2b69   : > { %v8208_v39 = vsub.f32 %v14461_v58, %v8201_v40  ;;  %v11138_v40 = vld [vmem:[#allocation75] sm:$0xff]  }
0x2b6b   : > { %v8232_v41 = vpop.permute.xlu0 %8231 }
0x2b80   : > { %v8220_v34 = vpop.permute.xlu1 %8219 }
0x2b81   : > { %v8223_v10 = vmul.f32 %v8220_v34, %v8209_v43 }
0x2b83   : > { %v8235_v6 = vadd.f32 %v8232_v41, %v8223_v10 }
0x2b84   : > { %v8215_v17 = vpop.permute.xlu1 %8214 }
0x2b85   : > { %v8222_v46 = vmul.f32 %v8215_v17, %v8208_v39  ;;  %v8237_v2 = vmax.f32 %v8235_v6, 0.0 }
0x2b88   : > { %v8227_v47 = vpop.permute.xlu1 %8226 }
0x2b89   : > { %v8234_v20 = vadd.f32 %v8227_v47, %v8222_v46 }
0x2b8b   : > { %v8236_v55 = vmax.f32 %v8234_v20, 0.0 }
0x2b8d   : > { %v8238_v56 = vpack.c.bf16 %v8237_v2, %v8236_v55 }
0x2b8f   : > { %9678 = vmatmul.mubr.msk.bf16.vlgmr.msra.gmra.mrb[84].mxu0 %vm2332_vm1, %v8238_v56 }
0x2b90   : > { %8383 = vmatprep.mubr.bf16.mxu0 %v12782_v27 }
0x2c62   : > { %v8286_v42 = vpop.f32.mrb[84].mxu0 }
0x2c63   : > { %v8297_v19 = vmul.f32 %v8296_v30, %v8286_v42  ;;  %v8288_v23 = vpop.f32.mrb[85].mxu0 }
0x2c64   : > { %v8298_v61 = vmul.f32 %v8296_v30, %v8288_v23  ;;  %v8290_v62 = vpop.f32.mrb[86].mxu0 }
0x2c65   : > { %v8299_v58 = vmul.f32 %v8296_v30, %v8290_v62  ;;  %v8292_v63 = vpop.f32.mrb[87].mxu0  ;;  %v8301_v9 = vmul.f32 %v8297_v19, %v8297_v19  ;;  %v11211_v62 = vld [vmem:[#allocation10] sm:$0xff] }
0x2c66   : > { %v8300_v3 = vmul.f32 %v8296_v30, %v8292_v63  ;;  %v8302_v26 = vmul.f32 %v8298_v61, %v8298_v61 }
0x2c67   : > { %v8303_v35 = vmul.f32 %v8299_v58, %v8299_v58 }
0x2c68   : > { %v8304_v24 = vmul.f32 %v8300_v3, %v8300_v3 }
0x2c69   : > { %v8305_v25 = vadd.f32 %v8303_v35, %v8301_v9 }
0x2c6a   : > { %v8312_v44 = vadd.f32 %v8304_v24, %v8302_v26 }
0x2c6b   : > { %v8306_v49 = vrot.slane %v8305_v25, 4 }
0x2c6c   : > { %v8313_v52 = vrot.slane %v8312_v44, 4 }
0x2c6d   : > { %v8307_v48 = vadd.f32 %v8306_v49, %v8305_v25  ;;  %v2311_v25 = vld [vmem:[#allocation78 + $0x8] sm:$0xff] }
0x2c6e   : > { %v8314_v27 = vadd.f32 %v8313_v52, %v8312_v44 }
0x2c6f   : > { %v8308_v1 = vrot.slane %v8307_v48, 2 }
0x2c70   : > { %v8315_v16 = vrot.slane %v8314_v27, 2 }
0x2c71   : > { %v8309_v21 = vadd.f32 %v8308_v1, %v8307_v48 }
0x2c72   : > { %v8316_v38 = vadd.f32 %v8315_v16, %v8314_v27 }
0x2c73   : > { %v8310_v50 = vrot.slane %v8309_v21, 1 }
0x2c74   : > { %v8317_v22 = vrot.slane %v8316_v38, 1 }
0x2c75   : > { %v8311_v11 = vadd.f32 %v8310_v50, %v8309_v21 }
0x2c76   : > { %v8318_v51 = vadd.f32 %v8317_v22, %v8316_v38 }
0x2c77   : > { %11183 = vrsqrt.f32 %v8311_v11  ;;  %vm8321_vm3 = vcmp.eq.f32.partialorder %v8311_v11, inf  ;;  %v8324_v31 = vand.u32 2147483648, %v8311_v11  ;;  %vm8323_vm4 = vcmp.eq.f32.partialorder %v8311_v11, 0.0 }
0x2c78   : > { %11185 = vrsqrt.f32 %v8318_v51  ;;  %vm8328_vm13 = vcmp.eq.f32.partialorder %v8318_v51, inf  ;;  %v8331_v54 = vand.u32 2147483648, %v8318_v51  ;;  %vm8330_vm15 = vcmp.eq.f32.partialorder %v8318_v51, 0.0 }
0x2c81   : > { %v11184_v29 = vpop.eup %11183 }
0x2c82   : > { %v11186_v28 = vpop.eup %11185  ;;  %v8320_v53 = vmul.f32 %v11184_v29, %v8311_v11 }
0x2c83   : > { %v8327_v37 = vmul.f32 %v11186_v28, %v8318_v51 }
0x2c84   : > { %v8322_v60 = vsel %vm8321_vm3, %v8311_v11, %v8320_v53 }
0x2c85   : > { %v8325_v36 = vsel %vm8323_vm4, %v8324_v31, %v8322_v60  ;;  %v8329_v32 = vsel %vm8328_vm13, %v8318_v51, %v8327_v37  ;;  %v2309_v51 = vld [vmem:[#allocation76 + $0x8] sm:$0xff]  ;;  %v2308_v31 = vld [vmem:[#allocation76] sm:$0xff]  ;;  %v2310_v60 = vld [vmem:[#allocation78] sm:$0xff] }
0x2c86   : > { %v8333_v15 = vadd.f32 1e-06, %v8325_v36  ;;  %v8332_v33 = vsel %vm8330_vm15, %v8331_v54, %v8329_v32 }
0x2c87   : > { %v8334_v7 = vadd.f32 1e-06, %v8332_v33 }
0x2c88   : > { %11187 = vrcp.f32 %v8333_v15 }
0x2c89   : > { %11189 = vrcp.f32 %v8334_v7 }
0x2c92   : > { %v11188_v57 = vpop.eup %11187 }
0x2c93   : > { %v11190_v59 = vpop.eup %11189  ;;  %v8337_v45 = vmul.f32 %v11188_v57, %v8297_v19  ;;  %v8339_v14 = vmul.f32 %v11188_v57, %v8299_v58  ;;  %v11210_v19 = vld [vmem:[#allocation12] sm:$0xff] }
0x2c94   : > { %v8340_v4 = vmul.f32 %v11190_v59, %v8300_v3  ;;  %v8338_v8 = vmul.f32 %v11190_v59, %v8298_v61  ;;  %v11212_v3 = vld [vmem:[#allocation10 + $0x8] sm:$0xff] }
0x2c95   : > { %v8341_v18 = vpack.c.bf16 %v8339_v14, %v8337_v45 }
0x2c96   : > { %v8342_v0 = vpack.c.bf16 %v8340_v4, %v8338_v8 }
0x2c98   : > { %8351 = vmatprep.subr.bf16.mxu0 %v8342_v0 }
0x2c99   : > { %8352 = vmatpush1.bf16.msra.mxu0 %v8341_v18 }
0x2c9c   : > { %9681 = vmatmul.mubr.msk.bf16.vlgmr.msra.gmra.mrb[20].mxu0 %vm2332_vm1, %v11138_v40 }
0x2d6f   : > { %v14501_v5 = vpop.f32.mrb[20].mxu0 }
0x2d70   : > { %v14503_v34 = vpop.f32.mrb[21].mxu0  ;;  %v8404_v43 = vmul.f32 %v14501_v5, %v14501_v5 }
0x2d71   : > { %v8398_v10 = vadd.f32 %v14503_v34, %v14501_v5  ;;  %v14509_v17 = vpop.f32.mrb[22].mxu0  ;;  %v8405_v39 = vmul.f32 %v14503_v34, %v14503_v34 }
0x2d72   : > { %v14513_v41 = vpop.f32.mrb[23].mxu0  ;;  %v8406_v6 = vmul.f32 %v14509_v17, %v14509_v17 }
0x2d73   : > { %v8407_v46 = vmul.f32 %v14513_v41, %v14513_v41  ;;  %8399 = vadd.xlane.f32.xlu1 %v8398_v10  ;;  %v8401_v47 = vadd.f32 %v14513_v41, %v14509_v17  ;;  %v8408_v20 = vadd.f32 %v8405_v39, %v8404_v43 }
0x2d75   : > { %8402 = vadd.xlane.f32.xlu0 %v8401_v47  ;;  %v8411_v2 = vadd.f32 %v8407_v46, %v8406_v6 }
0x2d79   : > { %8409 = vadd.xlane.f32.xlu0 %v8408_v20 }
0x2d7d   : > { %8412 = vadd.xlane.f32.xlu0 %v8411_v2 }
0x2e00   : > { %v8400_v55 = vpop.xlane.xlu1 %8399 }
0x2e02   : > { %v8403_v56 = vpop.xlane.xlu0 %8402 }
0x2e03   : > { %v10568_v30 = vpack.c.bf16 %v8403_v56, %v8400_v55 }
0x2e05   : > { %10569 = vmatpush3.bf16.msra.mxu1 %v10568_v30 }
0x2e06   : > { %v8410_v42 = vpop.xlane.xlu0 %8409  ;;  %10570 = vmatprep.subr.bf16.mxu1 %v12779_v12 }
0x2e08   : > { %10404 = vmatmul.mubr.msk.f32.vlgmr.msra.gmra.mrb[70].mxu1 %vm2332_vm1, %v11210_v19 }
0x2e09   : > { %10410 = vmatprep.mubr.msk.f32.mxu1 %vm12780_vm0, %v12781_v13 }
0x2e0a   : > { %v8413_v23 = vpop.xlane.xlu0 %8412 }
0x2e0b   : > { %v10571_v61 = vpack.c.bf16 %v8413_v23, %v8410_v42 }
0x2e0d   : > { %10572 = vmatpush3.bf16.msra.mxu1 %v10571_v61 }
0x2e10   : > { %10411 = vmatmul.mubr.msk.f32.vlgmr.msra.gmra.mrb[72].mxu1 %vm2332_vm1, %v11210_v19 }
0x2e11   : > { %10415 = vmatprep.mubr.msk.f32.mxu1 %vm2476_vm2, %v11211_v62 }
0x2edb   : > { %v8480_v58 = vpop.f32.mrb[70].mxu1 }
0x2edc   : > { %10413 = vmatprep.subr.mxu1 %v8480_v58  ;;  %v10405_v63 = vpop.f32.mrb[71].mxu1 }
0x2edd   : > { %10414 = vmatpush3.msra.mxu1 %v8480_v58 }
0x2ede   : > { %10416 = vmatmul.mubr.msk.f32.vlgmr.msra.gmra.mrb[74].mxu1 %vm2476_vm2, %v11212_v3 }
0x2edf   : > { %10420 = vmatprep.mubr.msk.f32.mxu1 %vm2476_vm2, %v11211_v62 }
0x2ee3   : > { %v8550_v12 = vpop.f32.mrb[72].mxu1 }
0x2ee4   : > { %10418 = vmatprep.subr.mxu1 %v8550_v12  ;;  %v10412_v13 = vpop.f32.mrb[73].mxu1 }
0x2ee5   : > { %10419 = vmatpush3.msra.mxu1 %v8550_v12 }
0x2ee6   : > { %10421 = vmatmul.mubr.msk.f32.vlgmr.msra.gmra.mrb[76].mxu1 %vm2476_vm2, %v11212_v3 }
0x2fb1   : > { %v10417_v9 = vpop.f32.mrb[74].mxu1 }
0x2fb2   : > { %v8630_v35 = vmul.f32 0.001953125, %v10417_v9  ;;  %v8620_v26 = vpop.f32.mrb[75].mxu1 }
0x2fb3   : > { %v8629_v24 = vmul.f32 0.001953125, %v8620_v26 }
0x2fb4   : > { %8725 = vperm.xlu0 %11083, %v8630_v35   ;;  %v8709_v49 = vmul.f32 %v8630_v35, %v8630_v35 }
0x2fb5   : > { %8720 = vperm.xlu1 %11084, %v8629_v24   ;;  %v8708_v27 = vmul.f32 %v8629_v24, %v8629_v24 }
0x2fb8   : > { %8755 = vperm.xlu0 %11083, %v2311_v25  }
0x2fb9   : > { %v10422_v44 = vpop.f32.mrb[76].mxu1 }
0x2fba   : > { %v8707_v52 = vmul.f32 0.001953125, %v10422_v44  ;;  %v8697_v48 = vpop.f32.mrb[77].mxu1 }
0x2fbb   : > { %v8706_v1 = vmul.f32 0.001953125, %v8697_v48 }
0x2fbc   : > { %v8711_v16 = vsub.f32 %v8707_v52, %v8709_v49 }
0x2fbd   : > { %v8710_v21 = vsub.f32 %v8706_v1, %v8708_v27 }
0x2fbe   : > { %v8713_v38 = vmax.f32 %v8711_v16, 0.0 }
0x2fbf   : > { %v8712_v50 = vmax.f32 %v8710_v21, 0.0 }
0x2fc0   : > { %v8715_v22 = vadd.f32 1e-05, %v8713_v38 }
0x2fc1   : > { %v8714_v11 = vadd.f32 1e-05, %v8712_v50 }
0x2fc2   : > { %11191 = vrsqrt.f32 %v8715_v22 }
0x2fc3   : > { %11193 = vrsqrt.f32 %v8714_v11 }
0x2fcc   : > { %v11192_v29 = vpop.eup %11191 }
0x2fcd   : > { %v8733_v28 = vmul.f32 %v11192_v29, %v2309_v51  ;;  %v11194_v53 = vpop.eup %11193 }
0x2fce   : > { %v8732_v37 = vmul.f32 %v11194_v53, %v2308_v31 }
0x2fcf   : > { %8741 = vperm.xlu1 %11084, %v8733_v28  }
0x2fd3   : > { %8736 = vperm.xlu1 %11084, %v8732_v37  }
0x2fd7   : > { %8750 = vperm.xlu1 %11084, %v2310_v60  }
0x3033   : > { %v8726_v54 = vpop.permute.xlu0 %8725 }
0x3034   : > { %v8721_v36 = vpop.permute.xlu1 %8720  ;;  %v8730_v32 = vsub.f32 %v14509_v17, %v8726_v54  ;;  %v8731_v15 = vsub.f32 %v14513_v41, %v8726_v54 }
0x3035   : > { %v8728_v14 = vsub.f32 %v14501_v5, %v8721_v36  ;;  %v8729_v4 = vsub.f32 %v14503_v34, %v8721_v36 }
0x3037   : > { %v8756_v59 = vpop.permute.xlu0 %8755 }
0x304e   : > { %v8742_v33 = vpop.permute.xlu1 %8741 }
0x304f   : > { %v8746_v7 = vmul.f32 %v8742_v33, %v8730_v32  ;;  %v8747_v57 = vmul.f32 %v8742_v33, %v8731_v15 }
0x3051   : > { %v8760_v8 = vadd.f32 %v8756_v59, %v8746_v7  ;;  %v8761_v18 = vadd.f32 %v8756_v59, %v8747_v57 }
0x3052   : > { %v8737_v45 = vpop.permute.xlu1 %8736 }
0x3053   : > { %v8744_v0 = vmul.f32 %v8737_v45, %v8728_v14  ;;  %v8745_v40 = vmul.f32 %v8737_v45, %v8729_v4  ;;  %v8764_v10 = vmax.f32 %v8760_v8, 0.0  ;;  %v8765_v39 = vmax.f32 %v8761_v18, 0.0 }
0x3055   : > { %v8768_v47 = vmul.f32 %v8764_v10, %v8764_v10  ;;  %v8769_v20 = vmul.f32 %v8765_v39, %v8765_v39 }
0x3056   : > { %v8751_v43 = vpop.permute.xlu1 %8750 }
0x3057   : > { %v8758_v6 = vadd.f32 %v8751_v43, %v8744_v0  ;;  %v8759_v17 = vadd.f32 %v8751_v43, %v8745_v40 }
0x3059   : > { %v8762_v46 = vmax.f32 %v8758_v6, 0.0  ;;  %v8763_v41 = vmax.f32 %v8759_v17, 0.0 }
0x305b   : > { %v8766_v2 = vmul.f32 %v8762_v46, %v8762_v46  ;;  %v8767_v55 = vmul.f32 %v8763_v41, %v8763_v41 }
0x305d   : > { %v8770_v56 = vadd.f32 %v8768_v47, %v8766_v2  ;;  %v8777_v30 = vadd.f32 %v8769_v20, %v8767_v55 }
0x305f   : > { %v8771_v5 = vrot.slane %v8770_v56, 4  ;;  %v8778_v42 = vrot.slane %v8777_v30, 4 }
0x3061   : > { %v8772_v34 = vadd.f32 %v8771_v5, %v8770_v56  ;;  %v8779_v19 = vadd.f32 %v8778_v42, %v8777_v30 }
0x3063   : > { %v8773_v23 = vrot.slane %v8772_v34, 2  ;;  %v8780_v61 = vrot.slane %v8779_v19, 2 }
0x3065   : > { %v8774_v62 = vadd.f32 %v8773_v23, %v8772_v34  ;;  %v8781_v58 = vadd.f32 %v8780_v61, %v8779_v19 }
0x3067   : > { %v8775_v63 = vrot.slane %v8774_v62, 1  ;;  %v8782_v3 = vrot.slane %v8781_v58, 1 }
0x3069   : > { %v8776_v12 = vadd.f32 %v8775_v63, %v8774_v62  ;;  %v8783_v13 = vadd.f32 %v8782_v3, %v8781_v58 }
0x306b   : > { %11195 = vrsqrt.f32 %v8776_v12  ;;  %vm8786_vm0 = vcmp.eq.f32.partialorder %v8776_v12, inf  ;;  %v8789_v24 = vand.u32 2147483648, %v8776_v12  ;;  %vm8788_vm1 = vcmp.eq.f32.partialorder %v8776_v12, 0.0 }
0x306c   : > { %11197 = vrsqrt.f32 %v8783_v13  ;;  %vm8793_vm2 = vcmp.eq.f32.partialorder %v8783_v13, inf  ;;  %v8796_v49 = vand.u32 2147483648, %v8783_v13  ;;  %vm8795_vm5 = vcmp.eq.f32.partialorder %v8783_v13, 0.0 }
0x3075   : > { %v11196_v9 = vpop.eup %11195 }
0x3076   : > { %v11198_v35 = vpop.eup %11197  ;;  %v8785_v26 = vmul.f32 %v11196_v9, %v8776_v12 }
0x3077   : > { %v8792_v25 = vmul.f32 %v11198_v35, %v8783_v13 }
0x3078   : > { %v8787_v44 = vsel %vm8786_vm0, %v8776_v12, %v8785_v26 }
0x3079   : > { %v8790_v52 = vsel %vm8788_vm1, %v8789_v24, %v8787_v44  ;;  %v8794_v48 = vsel %vm8793_vm2, %v8783_v13, %v8792_v25 }
0x307a   : > { %v8797_v27 = vsel %vm8795_vm5, %v8796_v49, %v8794_v48  ;;  %v8798_v1 = vadd.f32 1e-06, %v8790_v52 }
0x307b   : > { %v8799_v16 = vadd.f32 1e-06, %v8797_v27 }
0x307c   : > { %11199 = vrcp.f32 %v8798_v1 }
0x307d   : > { %11201 = vrcp.f32 %v8799_v16 }
0x3086   : > { %v11200_v21 = vpop.eup %11199 }
0x3087   : > { %v11202_v38 = vpop.eup %11201  ;;  %v8802_v50 = vmul.f32 %v11200_v21, %v8762_v46  ;;  %v8804_v22 = vmul.f32 %v11200_v21, %v8764_v10 }
0x3088   : > { %v8803_v11 = vmul.f32 %v11202_v38, %v8763_v41  ;;  %v8805_v51 = vmul.f32 %v11202_v38, %v8765_v39 }
0x3089   : > { %8806 = vst [vmem:[%s2172_s17] sm:$0xff] %v8802_v50  ;;  %8808 = vst [vmem:[%s2172_s17 + $0x10] sm:$0xff] %v8804_v22 }
0x308a   : > { %8807 = vst [vmem:[%s2172_s17 + $0x8] sm:$0xff] %v8803_v11  ;;  %8809 = vst [vmem:[%s2172_s17 + $0x18] sm:$0xff] %v8805_v51 }
0x308b   : > { %12516 = shalt.err (!%p12513_p4)
}
0x308c   : > { %s12517_s0 = scalar_lea.hbm %s14540_s2, 512  ;;  %s12521_s17 = scalar_lea.hbm %s14826_s12, 1024 }
0x308d   : > { %p12518_p3 = scmp.ne.s32.totalorder %s14540_s2, %s12517_s0  ;;  %p12522_p13 = scmp.lt.u32.totalorder %s14540_s2, %s14826_s12 }
0x308e   : > { %p12523_p0 = scmp.lt.u32.totalorder %s12521_s17, %s12517_s0  ;;  %p12525_p7 = scmp.lt.u32.totalorder %s12517_s0, %s14540_s2 }
0x308f   : > { %p12519_p11 = pnand %p12518_p3, %p14828_p9 }
0x3090   : > { %p12524_p2 = por %p12523_p0, %p12522_p13 }
0x3091   : > { %p12520_p12 = pneg %p12519_p11 }
0x3092   : > { %p12526_p6 = por %p12525_p7, %p12524_p2 }
0x3094   : > { %p12527_p5 = pnand %p12526_p6, %p12520_p12 }
0x3096   : > { %12530 = shalt.err (!%p12527_p5)
}
0x3097   : > { %s12800_s11 = smov 256   ;;  %s14829_s19 = smov 16  }
0x3098   : > { %10783 = dma.vmem_to_hbm [thread:$0]  (%p14828_p9), %s14537_s6, 512, %s14540_s2, %s8811_s3, %s12800_s11, %s12800_s11, %s14829_s19  }
0x3099 PF: > { %s14830_s22 = sld [smem:[#allocation150_spill]]  ;;  %s14831_s10 = sld [smem:[#allocation156_spill]] }
0x309a   : > { %p14833_p1 = scmp.ge.s32.totalorder %s12669_s18, 2 }
0x309f   : > { %s8839_s1 = sand.u32 1, %s14830_s22   ;;  %p14832_p8 = scmp.ne.s32.totalorder %s14831_s10, 0 }
0x30a0   : > { %s8840_s0 = scalar_lea.sflag [#allocation4], %s8839_s1 }
0x30a1   : > { %p10790_p10 = pnand %p14833_p1, %p14832_p8 }
0x30a3   : > { %12652 = dma.done.wait (!%p10790_p10), %s8840_s0, 512  }
0x30a4   : > { %12654 = vsyncadd (!%p10790_p10), %s8840_s0, 4294966784  ;;  %s14834_s18 = sld [smem:[#allocation152_spill]]  ;;  %s14835_s0 = sld [smem:[#allocation151_spill]] }
0x30a5   : > { %s14836_s7 = sld [smem:[#allocation153_spill]]  ;;  %s14837_s15 = smov %s12665_s16 }
0x30aa   : > { %p139_p4 = scmp.ge.s32.totalorder %s14834_s18, 4  }
0x30ab   : > { %s14838_s16 = smov %s14836_s7 }
0x30ac   :  { %141 = sbr.rel (!%p139_p4) target bundleno = 133 (0x85), region = 526 }
0x30b3   :  { %8845 = vsyncpa [#allocation3], 1 }
0x30b4   :  { %8847 = vsyncpa [#allocation3 + $0x1], 1 }
0x30b5   :  { %8848 = vsyncpa [#allocation8], 1 }
0x30b6   :  { %8849 = vsyncpa [#allocation11], 1 }
0x30b7   :  { %8850 = vsyncpa [#allocation14], 1 }
0x30b8   :  { %8851 = vsyncpa [#allocation17], 1 }
0x30b9   :  { %8852 = vsyncpa [#allocation20], 1 }
0x30ba   :  { %8853 = vsyncpa [#allocation23], 1 }
0x30bb   :  { %8854 = vsyncpa [#allocation26], 1 }
0x30bc   :  { %8855 = vsyncpa [#allocation29], 1 }
0x30bd   :  { %8856 = vsyncpa [#allocation32], 1 }
0x30be   :  { %8857 = vsyncpa [#allocation35], 1 }
0x30bf   :  { %8858 = vsyncpa [#allocation38], 1 }
0x30c0   :  { %8859 = vsyncpa [#allocation41], 1 }
0x30c1   :  { %8860 = vsyncpa [#allocation44], 1 }
0x30c2   :  { %8861 = vsyncpa [#allocation47], 1 }
0x30c3   :  { %8862 = vsyncpa [#allocation50], 1 }
0x30c4   :  { %8863 = vsyncpa [#allocation53], 1 }
0x30c5   :  { %8864 = vsyncpa [#allocation56], 1 }
0x30c6   :  { %8865 = vsyncpa [#allocation59], 1 }
0x30c7   :  { %8866 = vsyncpa [#allocation62], 1 }
0x30c8   :  { %8867 = vsyncpa [#allocation65], 1 }
0x30c9   :  { %8868 = vsyncpa [#allocation68], 1 }
0x30ca   :  { %8869 = vsyncpa [#allocation71], 1 }
0x30cb   :  { %8870 = vsyncpa [#allocation74], 1 }
0x30cc   :  { %8871 = vsyncpa [#allocation77], 1 }
0x30cd   :  { %8872 = vsyncpa [#allocation4], 1 }
0x30ce   :  { %8874 = vsyncpa [#allocation4 + $0x1], 1 }
0x30cf   :  { %8875 = vsyncpa [#allocation5], 1 }
0x30d0   :  { %8877 = vsyncpa [#allocation5 + $0x1], 1 }

</bundles_post_ra>
